<compile_context>
chip_gen: v7x
topology: tpu7x:2x2x1
jax: 0.10.0
libtpu: 0.0.40
codegen_flags: <defaults>
</compile_context>

<pallas_src>
import numpy as np

import jax
import jax.numpy as jnp
from jax.experimental import pallas as pl
from jax.experimental.pallas import tpu as pltpu


# ----------------------------- fused Pallas kernel ---------------------------

def _lenet5_kernel(x_ref, r1_ref, b1_ref, s1_ref, t1_ref, r2_ref, b2_ref,
                   s2_ref, t2_ref, f3_ref, w3_ref, w4_ref, out_ref):
    """Entire LeNet5 forward on VMEM-resident data.

    Layouts (f32):
      x_ref : (N*28, 28)                input, rows = n*28 + i
      a1    : (N*24, 24*32)             conv1+ReLU, lanes = w*32 + c
      p1    : (N*12, 12*32)             after 2x2 maxpool
      a2    : (N*8,   8*64)             conv2+ReLU, lanes = w*64 + d
      p2    : (N*4,   4*64)             after 2x2 maxpool
      fc1   : (N, 512), out : (N, 10)
    """

    def mm(a, b):
        return jnp.dot(a, b, preferred_element_type=jnp.float32)

    def gathered_matmul_sum(x, gather_ref, rhs_ref):
        # sum_k (gather[k] @ x) @ rhs[k]   -- row gather + banded/FC weight.
        acc = mm(mm(gather_ref[0], x), rhs_ref[0])
        for k in range(1, gather_ref.shape[0]):
            acc = acc + mm(mm(gather_ref[k], x), rhs_ref[k])
        return acc

    def pool2x2(a, s_ref, t_ref):
        # rows:  max over even/odd row selections (within each sample block)
        th = jnp.maximum(mm(s_ref[0], a), mm(s_ref[1], a))
        # lanes: max over even/odd w-block selections
        return jnp.maximum(mm(th, t_ref[0]), mm(th, t_ref[1]))

    x = x_ref[...]                                                  # (N*28, 28)

    a1 = jnp.maximum(gathered_matmul_sum(x, r1_ref, b1_ref), 0.0)   # (N*24, 768)
    p1 = pool2x2(a1, s1_ref, t1_ref)                                # (N*12, 384)

    a2 = jnp.maximum(gathered_matmul_sum(p1, r2_ref, b2_ref), 0.0)  # (N*8, 512)
    p2 = pool2x2(a2, s2_ref, t2_ref)                                # (N*4, 256)

    fc1 = jnp.maximum(gathered_matmul_sum(p2, f3_ref, w3_ref), 0.0) # (N, 512)
    out_ref[...] = mm(fc1, w4_ref[...])                             # (N, 10)


# --------------------------- one-time weight prep ----------------------------

def _row_gather_mats(n, h_out, h_in, k):
    """R[off] (n*h_out, n*h_in): R[off][b*h_out+i, b*h_in+i+off] = 1."""
    mats = np.zeros((k, n * h_out, n * h_in), np.float32)
    for off in range(k):
        for b in range(n):
            for i in range(h_out):
                mats[off, b * h_out + i, b * h_in + i + off] = 1.0
    return jnp.asarray(mats)


def _row_pool_mats(n, h_in):
    """S[p] (n*h_in//2, n*h_in): S[p][b*hp+i, b*h_in+2i+p] = 1."""
    hp = h_in // 2
    mats = np.zeros((2, n * hp, n * h_in), np.float32)
    for p in range(2):
        for b in range(n):
            for i in range(hp):
                mats[p, b * hp + i, b * h_in + 2 * i + p] = 1.0
    return jnp.asarray(mats)


def _lane_pool_mats(w_in, c):
    """T[p] (w_in*c, (w_in//2)*c): T[p][(2i+p)*c+j, i*c+j] = 1."""
    wp = w_in // 2
    mats = np.zeros((2, w_in * c, wp * c), np.float32)
    eye = np.eye(c, dtype=np.float32)
    for p in range(2):
        for i in range(wp):
            mats[p, (2 * i + p) * c:(2 * i + p) * c + c, i * c:(i + 1) * c] = eye
    return jnp.asarray(mats)


def _conv_band_mats(w_oihw, w_out):
    """PyTorch conv weight (Cout, Cin, k, k) -> banded matrices (k, Win*Cin, Wout*Cout).

    band[kh][(wo+kw)*Cin + ci, wo*Cout + co] = w[co, ci, kh, kw]
    so that (rows_kh @ band[kh]) summed over kh equals the valid cross-correlation
    on the lane-packed (w*Cin + ci) layout.
    """
    cout, cin, k, _ = w_oihw.shape
    w_in = w_out + k - 1
    band = jnp.zeros((k, w_in * cin, w_out * cout), jnp.float32)
    wo = jnp.arange(w_out)
    ci = jnp.arange(cin)
    co = jnp.arange(cout)
    cols = wo[:, None, None] * cout + co[None, None, :]          # (w_out, 1, cout)
    for kh in range(k):
        for kw in range(k):
            rows = (wo[:, None, None] + kw) * cin + ci[None, :, None]    # (w_out, cin, 1)
            vals = jnp.broadcast_to(w_oihw[:, :, kh, kw].T[None, :, :],
                                    (w_out, cin, cout))
            band = band.at[kh, rows, cols].set(vals)
    return band


def prepare_lenet5_operands(params, batch):
    """Build every constant operand of the fused kernel once (outside the hot path)."""
    w1, w2, w3, w4 = params
    r1 = _row_gather_mats(batch, 24, 28, 5)       # conv1 shifted-row gathers
    b1 = _conv_band_mats(w1, 24)                  # (5, 28, 768)
    s1 = _row_pool_mats(batch, 24)                # pool1 row selections
    t1 = _lane_pool_mats(24, 32)                  # pool1 lane selections
    r2 = _row_gather_mats(batch, 8, 12, 5)        # conv2 shifted-row gathers
    b2 = _conv_band_mats(w2, 8)                   # (5, 384, 512)
    s2 = _row_pool_mats(batch, 8)                 # pool2 row selections
    t2 = _lane_pool_mats(8, 64)                   # pool2 lane selections
    f3 = _row_gather_mats(batch, 1, 4, 4)         # flatten row gathers (one per h)
    # fc1 weight, re-laid out so lane index is w*64+d and the PyTorch NCHW
    # flatten (index d*16 + h*4 + w) is reproduced exactly:
    w3h = jnp.transpose(w3.reshape(512, 64, 4, 4), (2, 3, 1, 0)).reshape(4, 256, 512)
    w4m = jnp.transpose(w4)                       # (512, 10)
    return (r1, b1, s1, t1, r2, b2, s2, t2, f3, w3h, w4m)


# --------------------------------- forward -----------------------------------

def lenet5_forward(x_nchw, ops):
    n = x_nchw.shape[0]
    x2d = x_nchw.reshape(n * 28, 28)              # free reshape (Cin = 1)
    return pl.pallas_call(
        _lenet5_kernel,
        out_shape=jax.ShapeDtypeStruct((n, 10), jnp.float32),
        compiler_params=pltpu.CompilerParams(
            vmem_limit_bytes=48 * 1024 * 1024),
    )(x2d, *ops)


# ----------------------------- plain-JAX reference ---------------------------

def _reference_forward(x, params):
    w1, w2, w3, w4 = params
    dn = ("NCHW", "OIHW", "NCHW")
    y = jax.lax.conv_general_dilated(x, w1, (1, 1), "VALID", dimension_numbers=dn)
    y = jnp.maximum(y, 0.0)
    y = jax.lax.reduce_window(y, -jnp.inf, jax.lax.max, (1, 1, 2, 2), (1, 1, 2, 2), "VALID")
    y = jax.lax.conv_general_dilated(y, w2, (1, 1), "VALID", dimension_numbers=dn)
    y = jnp.maximum(y, 0.0)
    y = jax.lax.reduce_window(y, -jnp.inf, jax.lax.max, (1, 1, 2, 2), (1, 1, 2, 2), "VALID")
    y = y.reshape(y.shape[0], -1)                 # NCHW flatten, like nn.Flatten
    y = jnp.maximum(y @ w3.T, 0.0)
    return y @ w4.T


# ---------------------------------- main --------------------------------------

if __name__ == "__main__":
    key = jax.random.PRNGKey(0)
    k0, k1, k2, k3, k4 = jax.random.split(key, 5)

    # Input implied by the module: 1 channel, 28x28 (so flatten gives 64*4*4).
    x = jax.random.normal(k0, (2, 1, 28, 28), dtype=jnp.float32)

    # Deterministic synthetic parameters (PyTorch shapes, no bias anywhere).
    w1 = 0.10 * jax.random.normal(k1, (32, 1, 5, 5), dtype=jnp.float32)
    w2 = 0.05 * jax.random.normal(k2, (64, 32, 5, 5), dtype=jnp.float32)
    w3 = 0.02 * jax.random.normal(k3, (512, 1024), dtype=jnp.float32)
    w4 = 0.05 * jax.random.normal(k4, (10, 512), dtype=jnp.float32)
    params = (w1, w2, w3, w4)

    ops = prepare_lenet5_operands(params, batch=2)        # one-time weight prep
    out = jax.jit(lenet5_forward)(x, ops)
    jax.block_until_ready(out)

    assert out.shape == (2, 10) and out.dtype == jnp.float32
    ref = _reference_forward(x, params)
    err = float(jnp.max(jnp.abs(out - ref)))
    assert err < 5e-3, f"mismatch vs reference, max abs err = {err}"
    print("KERNEL_OK")
</pallas_src>

<mosaic_0001>
module attributes {stable_mosaic.version = 11 : i64} {
  func.func @_lenet5_kernel(%arg0: memref<56x28xf32, #tpu.memory_space<vmem>>, %arg1: memref<5x48x56xf32, #tpu.memory_space<vmem>>, %arg2: memref<5x28x768xf32, #tpu.memory_space<vmem>>, %arg3: memref<2x24x48xf32, #tpu.memory_space<vmem>>, %arg4: memref<2x768x384xf32, #tpu.memory_space<vmem>>, %arg5: memref<5x16x24xf32, #tpu.memory_space<vmem>>, %arg6: memref<5x384x512xf32, #tpu.memory_space<vmem>>, %arg7: memref<2x8x16xf32, #tpu.memory_space<vmem>>, %arg8: memref<2x512x256xf32, #tpu.memory_space<vmem>>, %arg9: memref<4x2x8xf32, #tpu.memory_space<vmem>>, %arg10: memref<4x256x512xf32, #tpu.memory_space<vmem>>, %arg11: memref<512x10xf32, #tpu.memory_space<vmem>>, %arg12: memref<2x10xf32, #tpu.memory_space<vmem>>) attributes {dimension_semantics = [], scalar_prefetch = 0 : i64, scratch_operands = 0 : i64, tpu.core_type = #tpu.core_type<tc>} {
    %c0 = arith.constant 0 : index
    %c0_0 = arith.constant 0 : index
    %0 = vector.load %arg0[%c0, %c0_0] : memref<56x28xf32, #tpu.memory_space<vmem>>, vector<56x28xf32>
    %c0_1 = arith.constant 0 : index
    %c0_2 = arith.constant 0 : index
    %c0_3 = arith.constant 0 : index
    %1 = vector.load %arg1[%c0_1, %c0_2, %c0_3] : memref<5x48x56xf32, #tpu.memory_space<vmem>>, vector<1x48x56xf32>
    %2 = vector.shape_cast %1 : vector<1x48x56xf32> to vector<48x56xf32>
    %cst = arith.constant dense<0.000000e+00> : vector<48x28xf32>
    %3 = tpu.matmul %2, %0, %cst {dimension_numbers = #tpu.dot_dimension_numbers<[1], [0], [0], [1], [0, 0, 1, 1], [], []>} : vector<48x56xf32>, vector<56x28xf32>, vector<48x28xf32> -> vector<48x28xf32>
    %c0_4 = arith.constant 0 : index
    %c0_5 = arith.constant 0 : index
    %c0_6 = arith.constant 0 : index
    %4 = vector.load %arg2[%c0_4, %c0_5, %c0_6] : memref<5x28x768xf32, #tpu.memory_space<vmem>>, vector<1x28x768xf32>
    %5 = vector.shape_cast %4 : vector<1x28x768xf32> to vector<28x768xf32>
    %cst_7 = arith.constant dense<0.000000e+00> : vector<48x768xf32>
    %6 = tpu.matmul %3, %5, %cst_7 {dimension_numbers = #tpu.dot_dimension_numbers<[1], [0], [0], [1], [0, 0, 1, 1], [], []>} : vector<48x28xf32>, vector<28x768xf32>, vector<48x768xf32> -> vector<48x768xf32>
    %c1 = arith.constant 1 : index
    %c0_8 = arith.constant 0 : index
    %c0_9 = arith.constant 0 : index
    %7 = vector.load %arg1[%c1, %c0_8, %c0_9] : memref<5x48x56xf32, #tpu.memory_space<vmem>>, vector<1x48x56xf32>
    %8 = vector.shape_cast %7 : vector<1x48x56xf32> to vector<48x56xf32>
    %cst_10 = arith.constant dense<0.000000e+00> : vector<48x28xf32>
    %9 = tpu.matmul %8, %0, %cst_10 {dimension_numbers = #tpu.dot_dimension_numbers<[1], [0], [0], [1], [0, 0, 1, 1], [], []>} : vector<48x56xf32>, vector<56x28xf32>, vector<48x28xf32> -> vector<48x28xf32>
    %c1_11 = arith.constant 1 : index
    %c0_12 = arith.constant 0 : index
    %c0_13 = arith.constant 0 : index
    %10 = vector.load %arg2[%c1_11, %c0_12, %c0_13] : memref<5x28x768xf32, #tpu.memory_space<vmem>>, vector<1x28x768xf32>
    %11 = vector.shape_cast %10 : vector<1x28x768xf32> to vector<28x768xf32>
    %cst_14 = arith.constant dense<0.000000e+00> : vector<48x768xf32>
    %12 = tpu.matmul %9, %11, %cst_14 {dimension_numbers = #tpu.dot_dimension_numbers<[1], [0], [0], [1], [0, 0, 1, 1], [], []>} : vector<48x28xf32>, vector<28x768xf32>, vector<48x768xf32> -> vector<48x768xf32>
    %13 = arith.addf %6, %12 : vector<48x768xf32>
    %c2 = arith.constant 2 : index
    %c0_15 = arith.constant 0 : index
    %c0_16 = arith.constant 0 : index
    %14 = vector.load %arg1[%c2, %c0_15, %c0_16] : memref<5x48x56xf32, #tpu.memory_space<vmem>>, vector<1x48x56xf32>
    %15 = vector.shape_cast %14 : vector<1x48x56xf32> to vector<48x56xf32>
    %cst_17 = arith.constant dense<0.000000e+00> : vector<48x28xf32>
    %16 = tpu.matmul %15, %0, %cst_17 {dimension_numbers = #tpu.dot_dimension_numbers<[1], [0], [0], [1], [0, 0, 1, 1], [], []>} : vector<48x56xf32>, vector<56x28xf32>, vector<48x28xf32> -> vector<48x28xf32>
    %c2_18 = arith.constant 2 : index
    %c0_19 = arith.constant 0 : index
    %c0_20 = arith.constant 0 : index
    %17 = vector.load %arg2[%c2_18, %c0_19, %c0_20] : memref<5x28x768xf32, #tpu.memory_space<vmem>>, vector<1x28x768xf32>
    %18 = vector.shape_cast %17 : vector<1x28x768xf32> to vector<28x768xf32>
    %cst_21 = arith.constant dense<0.000000e+00> : vector<48x768xf32>
    %19 = tpu.matmul %16, %18, %cst_21 {dimension_numbers = #tpu.dot_dimension_numbers<[1], [0], [0], [1], [0, 0, 1, 1], [], []>} : vector<48x28xf32>, vector<28x768xf32>, vector<48x768xf32> -> vector<48x768xf32>
    %20 = arith.addf %13, %19 : vector<48x768xf32>
    %c3 = arith.constant 3 : index
    %c0_22 = arith.constant 0 : index
    %c0_23 = arith.constant 0 : index
    %21 = vector.load %arg1[%c3, %c0_22, %c0_23] : memref<5x48x56xf32, #tpu.memory_space<vmem>>, vector<1x48x56xf32>
    %22 = vector.shape_cast %21 : vector<1x48x56xf32> to vector<48x56xf32>
    %cst_24 = arith.constant dense<0.000000e+00> : vector<48x28xf32>
    %23 = tpu.matmul %22, %0, %cst_24 {dimension_numbers = #tpu.dot_dimension_numbers<[1], [0], [0], [1], [0, 0, 1, 1], [], []>} : vector<48x56xf32>, vector<56x28xf32>, vector<48x28xf32> -> vector<48x28xf32>
    %c3_25 = arith.constant 3 : index
    %c0_26 = arith.constant 0 : index
    %c0_27 = arith.constant 0 : index
    %24 = vector.load %arg2[%c3_25, %c0_26, %c0_27] : memref<5x28x768xf32, #tpu.memory_space<vmem>>, vector<1x28x768xf32>
    %25 = vector.shape_cast %24 : vector<1x28x768xf32> to vector<28x768xf32>
    %cst_28 = arith.constant dense<0.000000e+00> : vector<48x768xf32>
    %26 = tpu.matmul %23, %25, %cst_28 {dimension_numbers = #tpu.dot_dimension_numbers<[1], [0], [0], [1], [0, 0, 1, 1], [], []>} : vector<48x28xf32>, vector<28x768xf32>, vector<48x768xf32> -> vector<48x768xf32>
    %27 = arith.addf %20, %26 : vector<48x768xf32>
    %c4 = arith.constant 4 : index
    %c0_29 = arith.constant 0 : index
    %c0_30 = arith.constant 0 : index
    %28 = vector.load %arg1[%c4, %c0_29, %c0_30] : memref<5x48x56xf32, #tpu.memory_space<vmem>>, vector<1x48x56xf32>
    %29 = vector.shape_cast %28 : vector<1x48x56xf32> to vector<48x56xf32>
    %cst_31 = arith.constant dense<0.000000e+00> : vector<48x28xf32>
    %30 = tpu.matmul %29, %0, %cst_31 {dimension_numbers = #tpu.dot_dimension_numbers<[1], [0], [0], [1], [0, 0, 1, 1], [], []>} : vector<48x56xf32>, vector<56x28xf32>, vector<48x28xf32> -> vector<48x28xf32>
    %c4_32 = arith.constant 4 : index
    %c0_33 = arith.constant 0 : index
    %c0_34 = arith.constant 0 : index
    %31 = vector.load %arg2[%c4_32, %c0_33, %c0_34] : memref<5x28x768xf32, #tpu.memory_space<vmem>>, vector<1x28x768xf32>
    %32 = vector.shape_cast %31 : vector<1x28x768xf32> to vector<28x768xf32>
    %cst_35 = arith.constant dense<0.000000e+00> : vector<48x768xf32>
    %33 = tpu.matmul %30, %32, %cst_35 {dimension_numbers = #tpu.dot_dimension_numbers<[1], [0], [0], [1], [0, 0, 1, 1], [], []>} : vector<48x28xf32>, vector<28x768xf32>, vector<48x768xf32> -> vector<48x768xf32>
    %34 = arith.addf %27, %33 : vector<48x768xf32>
    %cst_36 = arith.constant 0.000000e+00 : f32
    %35 = vector.broadcast %cst_36 : f32 to vector<48x768xf32>
    %36 = arith.maximumf %34, %35 : vector<48x768xf32>
    %c0_37 = arith.constant 0 : index
    %c0_38 = arith.constant 0 : index
    %c0_39 = arith.constant 0 : index
    %37 = vector.load %arg3[%c0_37, %c0_38, %c0_39] : memref<2x24x48xf32, #tpu.memory_space<vmem>>, vector<1x24x48xf32>
    %38 = vector.shape_cast %37 : vector<1x24x48xf32> to vector<24x48xf32>
    %cst_40 = arith.constant dense<0.000000e+00> : vector<24x768xf32>
    %39 = tpu.matmul %38, %36, %cst_40 {dimension_numbers = #tpu.dot_dimension_numbers<[1], [0], [0], [1], [0, 0, 1, 1], [], []>} : vector<24x48xf32>, vector<48x768xf32>, vector<24x768xf32> -> vector<24x768xf32>
    %c1_41 = arith.constant 1 : index
    %c0_42 = arith.constant 0 : index
    %c0_43 = arith.constant 0 : index
    %40 = vector.load %arg3[%c1_41, %c0_42, %c0_43] : memref<2x24x48xf32, #tpu.memory_space<vmem>>, vector<1x24x48xf32>
    %41 = vector.shape_cast %40 : vector<1x24x48xf32> to vector<24x48xf32>
    %cst_44 = arith.constant dense<0.000000e+00> : vector<24x768xf32>
    %42 = tpu.matmul %41, %36, %cst_44 {dimension_numbers = #tpu.dot_dimension_numbers<[1], [0], [0], [1], [0, 0, 1, 1], [], []>} : vector<24x48xf32>, vector<48x768xf32>, vector<24x768xf32> -> vector<24x768xf32>
    %43 = arith.maximumf %39, %42 : vector<24x768xf32>
    %c0_45 = arith.constant 0 : index
    %c0_46 = arith.constant 0 : index
    %c0_47 = arith.constant 0 : index
    %44 = vector.load %arg4[%c0_45, %c0_46, %c0_47] : memref<2x768x384xf32, #tpu.memory_space<vmem>>, vector<1x768x384xf32>
    %45 = vector.shape_cast %44 : vector<1x768x384xf32> to vector<768x384xf32>
    %cst_48 = arith.constant dense<0.000000e+00> : vector<24x384xf32>
    %46 = tpu.matmul %43, %45, %cst_48 {dimension_numbers = #tpu.dot_dimension_numbers<[1], [0], [0], [1], [0, 0, 1, 1], [], []>} : vector<24x768xf32>, vector<768x384xf32>, vector<24x384xf32> -> vector<24x384xf32>
    %c1_49 = arith.constant 1 : index
    %c0_50 = arith.constant 0 : index
    %c0_51 = arith.constant 0 : index
    %47 = vector.load %arg4[%c1_49, %c0_50, %c0_51] : memref<2x768x384xf32, #tpu.memory_space<vmem>>, vector<1x768x384xf32>
    %48 = vector.shape_cast %47 : vector<1x768x384xf32> to vector<768x384xf32>
    %cst_52 = arith.constant dense<0.000000e+00> : vector<24x384xf32>
    %49 = tpu.matmul %43, %48, %cst_52 {dimension_numbers = #tpu.dot_dimension_numbers<[1], [0], [0], [1], [0, 0, 1, 1], [], []>} : vector<24x768xf32>, vector<768x384xf32>, vector<24x384xf32> -> vector<24x384xf32>
    %50 = arith.maximumf %46, %49 : vector<24x384xf32>
    %c0_53 = arith.constant 0 : index
    %c0_54 = arith.constant 0 : index
    %c0_55 = arith.constant 0 : index
    %51 = vector.load %arg5[%c0_53, %c0_54, %c0_55] : memref<5x16x24xf32, #tpu.memory_space<vmem>>, vector<1x16x24xf32>
    %52 = vector.shape_cast %51 : vector<1x16x24xf32> to vector<16x24xf32>
    %cst_56 = arith.constant dense<0.000000e+00> : vector<16x384xf32>
    %53 = tpu.matmul %52, %50, %cst_56 {dimension_numbers = #tpu.dot_dimension_numbers<[1], [0], [0], [1], [0, 0, 1, 1], [], []>} : vector<16x24xf32>, vector<24x384xf32>, vector<16x384xf32> -> vector<16x384xf32>
    %c0_57 = arith.constant 0 : index
    %c0_58 = arith.constant 0 : index
    %c0_59 = arith.constant 0 : index
    %54 = vector.load %arg6[%c0_57, %c0_58, %c0_59] : memref<5x384x512xf32, #tpu.memory_space<vmem>>, vector<1x384x512xf32>
    %55 = vector.shape_cast %54 : vector<1x384x512xf32> to vector<384x512xf32>
    %cst_60 = arith.constant dense<0.000000e+00> : vector<16x512xf32>
    %56 = tpu.matmul %53, %55, %cst_60 {dimension_numbers = #tpu.dot_dimension_numbers<[1], [0], [0], [1], [0, 0, 1, 1], [], []>} : vector<16x384xf32>, vector<384x512xf32>, vector<16x512xf32> -> vector<16x512xf32>
    %c1_61 = arith.constant 1 : index
    %c0_62 = arith.constant 0 : index
    %c0_63 = arith.constant 0 : index
    %57 = vector.load %arg5[%c1_61, %c0_62, %c0_63] : memref<5x16x24xf32, #tpu.memory_space<vmem>>, vector<1x16x24xf32>
    %58 = vector.shape_cast %57 : vector<1x16x24xf32> to vector<16x24xf32>
    %cst_64 = arith.constant dense<0.000000e+00> : vector<16x384xf32>
    %59 = tpu.matmul %58, %50, %cst_64 {dimension_numbers = #tpu.dot_dimension_numbers<[1], [0], [0], [1], [0, 0, 1, 1], [], []>} : vector<16x24xf32>, vector<24x384xf32>, vector<16x384xf32> -> vector<16x384xf32>
    %c1_65 = arith.constant 1 : index
    %c0_66 = arith.constant 0 : index
    %c0_67 = arith.constant 0 : index
    %60 = vector.load %arg6[%c1_65, %c0_66, %c0_67] : memref<5x384x512xf32, #tpu.memory_space<vmem>>, vector<1x384x512xf32>
    %61 = vector.shape_cast %60 : vector<1x384x512xf32> to vector<384x512xf32>
    %cst_68 = arith.constant dense<0.000000e+00> : vector<16x512xf32>
    %62 = tpu.matmul %59, %61, %cst_68 {dimension_numbers = #tpu.dot_dimension_numbers<[1], [0], [0], [1], [0, 0, 1, 1], [], []>} : vector<16x384xf32>, vector<384x512xf32>, vector<16x512xf32> -> vector<16x512xf32>
    %63 = arith.addf %56, %62 : vector<16x512xf32>
    %c2_69 = arith.constant 2 : index
    %c0_70 = arith.constant 0 : index
    %c0_71 = arith.constant 0 : index
    %64 = vector.load %arg5[%c2_69, %c0_70, %c0_71] : memref<5x16x24xf32, #tpu.memory_space<vmem>>, vector<1x16x24xf32>
    %65 = vector.shape_cast %64 : vector<1x16x24xf32> to vector<16x24xf32>
    %cst_72 = arith.constant dense<0.000000e+00> : vector<16x384xf32>
    %66 = tpu.matmul %65, %50, %cst_72 {dimension_numbers = #tpu.dot_dimension_numbers<[1], [0], [0], [1], [0, 0, 1, 1], [], []>} : vector<16x24xf32>, vector<24x384xf32>, vector<16x384xf32> -> vector<16x384xf32>
    %c2_73 = arith.constant 2 : index
    %c0_74 = arith.constant 0 : index
    %c0_75 = arith.constant 0 : index
    %67 = vector.load %arg6[%c2_73, %c0_74, %c0_75] : memref<5x384x512xf32, #tpu.memory_space<vmem>>, vector<1x384x512xf32>
    %68 = vector.shape_cast %67 : vector<1x384x512xf32> to vector<384x512xf32>
    %cst_76 = arith.constant dense<0.000000e+00> : vector<16x512xf32>
    %69 = tpu.matmul %66, %68, %cst_76 {dimension_numbers = #tpu.dot_dimension_numbers<[1], [0], [0], [1], [0, 0, 1, 1], [], []>} : vector<16x384xf32>, vector<384x512xf32>, vector<16x512xf32> -> vector<16x512xf32>
    %70 = arith.addf %63, %69 : vector<16x512xf32>
    %c3_77 = arith.constant 3 : index
    %c0_78 = arith.constant 0 : index
    %c0_79 = arith.constant 0 : index
    %71 = vector.load %arg5[%c3_77, %c0_78, %c0_79] : memref<5x16x24xf32, #tpu.memory_space<vmem>>, vector<1x16x24xf32>
    %72 = vector.shape_cast %71 : vector<1x16x24xf32> to vector<16x24xf32>
    %cst_80 = arith.constant dense<0.000000e+00> : vector<16x384xf32>
    %73 = tpu.matmul %72, %50, %cst_80 {dimension_numbers = #tpu.dot_dimension_numbers<[1], [0], [0], [1], [0, 0, 1, 1], [], []>} : vector<16x24xf32>, vector<24x384xf32>, vector<16x384xf32> -> vector<16x384xf32>
    %c3_81 = arith.constant 3 : index
    %c0_82 = arith.constant 0 : index
    %c0_83 = arith.constant 0 : index
    %74 = vector.load %arg6[%c3_81, %c0_82, %c0_83] : memref<5x384x512xf32, #tpu.memory_space<vmem>>, vector<1x384x512xf32>
    %75 = vector.shape_cast %74 : vector<1x384x512xf32> to vector<384x512xf32>
    %cst_84 = arith.constant dense<0.000000e+00> : vector<16x512xf32>
    %76 = tpu.matmul %73, %75, %cst_84 {dimension_numbers = #tpu.dot_dimension_numbers<[1], [0], [0], [1], [0, 0, 1, 1], [], []>} : vector<16x384xf32>, vector<384x512xf32>, vector<16x512xf32> -> vector<16x512xf32>
    %77 = arith.addf %70, %76 : vector<16x512xf32>
    %c4_85 = arith.constant 4 : index
    %c0_86 = arith.constant 0 : index
    %c0_87 = arith.constant 0 : index
    %78 = vector.load %arg5[%c4_85, %c0_86, %c0_87] : memref<5x16x24xf32, #tpu.memory_space<vmem>>, vector<1x16x24xf32>
    %79 = vector.shape_cast %78 : vector<1x16x24xf32> to vector<16x24xf32>
    %cst_88 = arith.constant dense<0.000000e+00> : vector<16x384xf32>
    %80 = tpu.matmul %79, %50, %cst_88 {dimension_numbers = #tpu.dot_dimension_numbers<[1], [0], [0], [1], [0, 0, 1, 1], [], []>} : vector<16x24xf32>, vector<24x384xf32>, vector<16x384xf32> -> vector<16x384xf32>
    %c4_89 = arith.constant 4 : index
    %c0_90 = arith.constant 0 : index
    %c0_91 = arith.constant 0 : index
    %81 = vector.load %arg6[%c4_89, %c0_90, %c0_91] : memref<5x384x512xf32, #tpu.memory_space<vmem>>, vector<1x384x512xf32>
    %82 = vector.shape_cast %81 : vector<1x384x512xf32> to vector<384x512xf32>
    %cst_92 = arith.constant dense<0.000000e+00> : vector<16x512xf32>
    %83 = tpu.matmul %80, %82, %cst_92 {dimension_numbers = #tpu.dot_dimension_numbers<[1], [0], [0], [1], [0, 0, 1, 1], [], []>} : vector<16x384xf32>, vector<384x512xf32>, vector<16x512xf32> -> vector<16x512xf32>
    %84 = arith.addf %77, %83 : vector<16x512xf32>
    %cst_93 = arith.constant 0.000000e+00 : f32
    %85 = vector.broadcast %cst_93 : f32 to vector<16x512xf32>
    %86 = arith.maximumf %84, %85 : vector<16x512xf32>
    %c0_94 = arith.constant 0 : index
    %c0_95 = arith.constant 0 : index
    %c0_96 = arith.constant 0 : index
    %87 = vector.load %arg7[%c0_94, %c0_95, %c0_96] : memref<2x8x16xf32, #tpu.memory_space<vmem>>, vector<1x8x16xf32>
    %88 = vector.shape_cast %87 : vector<1x8x16xf32> to vector<8x16xf32>
    %cst_97 = arith.constant dense<0.000000e+00> : vector<8x512xf32>
    %89 = tpu.matmul %88, %86, %cst_97 {dimension_numbers = #tpu.dot_dimension_numbers<[1], [0], [0], [1], [0, 0, 1, 1], [], []>} : vector<8x16xf32>, vector<16x512xf32>, vector<8x512xf32> -> vector<8x512xf32>
    %c1_98 = arith.constant 1 : index
    %c0_99 = arith.constant 0 : index
    %c0_100 = arith.constant 0 : index
    %90 = vector.load %arg7[%c1_98, %c0_99, %c0_100] : memref<2x8x16xf32, #tpu.memory_space<vmem>>, vector<1x8x16xf32>
    %91 = vector.shape_cast %90 : vector<1x8x16xf32> to vector<8x16xf32>
    %cst_101 = arith.constant dense<0.000000e+00> : vector<8x512xf32>
    %92 = tpu.matmul %91, %86, %cst_101 {dimension_numbers = #tpu.dot_dimension_numbers<[1], [0], [0], [1], [0, 0, 1, 1], [], []>} : vector<8x16xf32>, vector<16x512xf32>, vector<8x512xf32> -> vector<8x512xf32>
    %93 = arith.maximumf %89, %92 : vector<8x512xf32>
    %c0_102 = arith.constant 0 : index
    %c0_103 = arith.constant 0 : index
    %c0_104 = arith.constant 0 : index
    %94 = vector.load %arg8[%c0_102, %c0_103, %c0_104] : memref<2x512x256xf32, #tpu.memory_space<vmem>>, vector<1x512x256xf32>
    %95 = vector.shape_cast %94 : vector<1x512x256xf32> to vector<512x256xf32>
    %cst_105 = arith.constant dense<0.000000e+00> : vector<8x256xf32>
    %96 = tpu.matmul %93, %95, %cst_105 {dimension_numbers = #tpu.dot_dimension_numbers<[1], [0], [0], [1], [0, 0, 1, 1], [], []>} : vector<8x512xf32>, vector<512x256xf32>, vector<8x256xf32> -> vector<8x256xf32>
    %c1_106 = arith.constant 1 : index
    %c0_107 = arith.constant 0 : index
    %c0_108 = arith.constant 0 : index
    %97 = vector.load %arg8[%c1_106, %c0_107, %c0_108] : memref<2x512x256xf32, #tpu.memory_space<vmem>>, vector<1x512x256xf32>
    %98 = vector.shape_cast %97 : vector<1x512x256xf32> to vector<512x256xf32>
    %cst_109 = arith.constant dense<0.000000e+00> : vector<8x256xf32>
    %99 = tpu.matmul %93, %98, %cst_109 {dimension_numbers = #tpu.dot_dimension_numbers<[1], [0], [0], [1], [0, 0, 1, 1], [], []>} : vector<8x512xf32>, vector<512x256xf32>, vector<8x256xf32> -> vector<8x256xf32>
    %100 = arith.maximumf %96, %99 : vector<8x256xf32>
    %c0_110 = arith.constant 0 : index
    %c0_111 = arith.constant 0 : index
    %c0_112 = arith.constant 0 : index
    %101 = vector.load %arg9[%c0_110, %c0_111, %c0_112] : memref<4x2x8xf32, #tpu.memory_space<vmem>>, vector<1x2x8xf32>
    %102 = vector.shape_cast %101 : vector<1x2x8xf32> to vector<2x8xf32>
    %cst_113 = arith.constant dense<0.000000e+00> : vector<2x256xf32>
    %103 = tpu.matmul %102, %100, %cst_113 {dimension_numbers = #tpu.dot_dimension_numbers<[1], [0], [0], [1], [0, 0, 1, 1], [], []>} : vector<2x8xf32>, vector<8x256xf32>, vector<2x256xf32> -> vector<2x256xf32>
    %c0_114 = arith.constant 0 : index
    %c0_115 = arith.constant 0 : index
    %c0_116 = arith.constant 0 : index
    %104 = vector.load %arg10[%c0_114, %c0_115, %c0_116] : memref<4x256x512xf32, #tpu.memory_space<vmem>>, vector<1x256x512xf32>
    %105 = vector.shape_cast %104 : vector<1x256x512xf32> to vector<256x512xf32>
    %cst_117 = arith.constant dense<0.000000e+00> : vector<2x512xf32>
    %106 = tpu.matmul %103, %105, %cst_117 {dimension_numbers = #tpu.dot_dimension_numbers<[1], [0], [0], [1], [0, 0, 1, 1], [], []>} : vector<2x256xf32>, vector<256x512xf32>, vector<2x512xf32> -> vector<2x512xf32>
    %c1_118 = arith.constant 1 : index
    %c0_119 = arith.constant 0 : index
    %c0_120 = arith.constant 0 : index
    %107 = vector.load %arg9[%c1_118, %c0_119, %c0_120] : memref<4x2x8xf32, #tpu.memory_space<vmem>>, vector<1x2x8xf32>
    %108 = vector.shape_cast %107 : vector<1x2x8xf32> to vector<2x8xf32>
    %cst_121 = arith.constant dense<0.000000e+00> : vector<2x256xf32>
    %109 = tpu.matmul %108, %100, %cst_121 {dimension_numbers = #tpu.dot_dimension_numbers<[1], [0], [0], [1], [0, 0, 1, 1], [], []>} : vector<2x8xf32>, vector<8x256xf32>, vector<2x256xf32> -> vector<2x256xf32>
    %c1_122 = arith.constant 1 : index
    %c0_123 = arith.constant 0 : index
    %c0_124 = arith.constant 0 : index
    %110 = vector.load %arg10[%c1_122, %c0_123, %c0_124] : memref<4x256x512xf32, #tpu.memory_space<vmem>>, vector<1x256x512xf32>
    %111 = vector.shape_cast %110 : vector<1x256x512xf32> to vector<256x512xf32>
    %cst_125 = arith.constant dense<0.000000e+00> : vector<2x512xf32>
    %112 = tpu.matmul %109, %111, %cst_125 {dimension_numbers = #tpu.dot_dimension_numbers<[1], [0], [0], [1], [0, 0, 1, 1], [], []>} : vector<2x256xf32>, vector<256x512xf32>, vector<2x512xf32> -> vector<2x512xf32>
    %113 = arith.addf %106, %112 : vector<2x512xf32>
    %c2_126 = arith.constant 2 : index
    %c0_127 = arith.constant 0 : index
    %c0_128 = arith.constant 0 : index
    %114 = vector.load %arg9[%c2_126, %c0_127, %c0_128] : memref<4x2x8xf32, #tpu.memory_space<vmem>>, vector<1x2x8xf32>
    %115 = vector.shape_cast %114 : vector<1x2x8xf32> to vector<2x8xf32>
    %cst_129 = arith.constant dense<0.000000e+00> : vector<2x256xf32>
    %116 = tpu.matmul %115, %100, %cst_129 {dimension_numbers = #tpu.dot_dimension_numbers<[1], [0], [0], [1], [0, 0, 1, 1], [], []>} : vector<2x8xf32>, vector<8x256xf32>, vector<2x256xf32> -> vector<2x256xf32>
    %c2_130 = arith.constant 2 : index
    %c0_131 = arith.constant 0 : index
    %c0_132 = arith.constant 0 : index
    %117 = vector.load %arg10[%c2_130, %c0_131, %c0_132] : memref<4x256x512xf32, #tpu.memory_space<vmem>>, vector<1x256x512xf32>
    %118 = vector.shape_cast %117 : vector<1x256x512xf32> to vector<256x512xf32>
    %cst_133 = arith.constant dense<0.000000e+00> : vector<2x512xf32>
    %119 = tpu.matmul %116, %118, %cst_133 {dimension_numbers = #tpu.dot_dimension_numbers<[1], [0], [0], [1], [0, 0, 1, 1], [], []>} : vector<2x256xf32>, vector<256x512xf32>, vector<2x512xf32> -> vector<2x512xf32>
    %120 = arith.addf %113, %119 : vector<2x512xf32>
    %c3_134 = arith.constant 3 : index
    %c0_135 = arith.constant 0 : index
    %c0_136 = arith.constant 0 : index
    %121 = vector.load %arg9[%c3_134, %c0_135, %c0_136] : memref<4x2x8xf32, #tpu.memory_space<vmem>>, vector<1x2x8xf32>
    %122 = vector.shape_cast %121 : vector<1x2x8xf32> to vector<2x8xf32>
    %cst_137 = arith.constant dense<0.000000e+00> : vector<2x256xf32>
    %123 = tpu.matmul %122, %100, %cst_137 {dimension_numbers = #tpu.dot_dimension_numbers<[1], [0], [0], [1], [0, 0, 1, 1], [], []>} : vector<2x8xf32>, vector<8x256xf32>, vector<2x256xf32> -> vector<2x256xf32>
    %c3_138 = arith.constant 3 : index
    %c0_139 = arith.constant 0 : index
    %c0_140 = arith.constant 0 : index
    %124 = vector.load %arg10[%c3_138, %c0_139, %c0_140] : memref<4x256x512xf32, #tpu.memory_space<vmem>>, vector<1x256x512xf32>
    %125 = vector.shape_cast %124 : vector<1x256x512xf32> to vector<256x512xf32>
    %cst_141 = arith.constant dense<0.000000e+00> : vector<2x512xf32>
    %126 = tpu.matmul %123, %125, %cst_141 {dimension_numbers = #tpu.dot_dimension_numbers<[1], [0], [0], [1], [0, 0, 1, 1], [], []>} : vector<2x256xf32>, vector<256x512xf32>, vector<2x512xf32> -> vector<2x512xf32>
    %127 = arith.addf %120, %126 : vector<2x512xf32>
    %cst_142 = arith.constant 0.000000e+00 : f32
    %128 = vector.broadcast %cst_142 : f32 to vector<2x512xf32>
    %129 = arith.maximumf %127, %128 : vector<2x512xf32>
    %c0_143 = arith.constant 0 : index
    %c0_144 = arith.constant 0 : index
    %130 = vector.load %arg11[%c0_143, %c0_144] : memref<512x10xf32, #tpu.memory_space<vmem>>, vector<512x10xf32>
    %cst_145 = arith.constant dense<0.000000e+00> : vector<2x10xf32>
    %131 = tpu.matmul %129, %130, %cst_145 {dimension_numbers = #tpu.dot_dimension_numbers<[1], [0], [0], [1], [0, 0, 1, 1], [], []>} : vector<2x512xf32>, vector<512x10xf32>, vector<2x10xf32> -> vector<2x10xf32>
    %c0_146 = arith.constant 0 : index
    %c0_147 = arith.constant 0 : index
    %132 = vector.load %arg12[%c0_146, %c0_147] : memref<2x10xf32, #tpu.memory_space<vmem>>, vector<2x10xf32>
    tpu.vector_store %arg12[%c0_146, %c0_147], %131 {strides = array<i32>} : memref<2x10xf32, #tpu.memory_space<vmem>>, vector<2x10xf32>,
    return
  }
}

</mosaic_0001>

<bundles_post_ra>
// kernel: lenet5_forward.1
= control target key start
LH: loop header
LB: loop body
LE: loop exit
PB: predicated region body
PF: predicated region fallthrough
CT: control target
= control target key end

     0   :  { %17 = vsyncpa [#allocation3], 0  ;;  %s16048_s0 = inlined_call_operand.hbm [shape: f32[56,28], index: 0, kind: input, shape index: {}]   ;;  %s16049_s1 = inlined_call_operand.hbm [shape: f32[5,48,56], index: 1, kind: input, shape index: {}]   ;;  %s16050_s2 = inlined_call_operand.hbm [shape: f32[5,28,768], index: 2, kind: input, shape index: {}]   ;;  %s16051_s3 = inlined_call_operand.hbm [shape: f32[2,24,48], index: 3, kind: input, shape index: {}]   ;;  %s16052_s4 = inlined_call_operand.hbm [shape: f32[2,768,384], index: 4, kind: input, shape index: {}]   ;;  %s16053_s5 = inlined_call_operand.hbm [shape: f32[5,16,24], index: 5, kind: input, shape index: {}]   ;;  %s16054_s6 = inlined_call_operand.hbm [shape: f32[5,384,512], index: 6, kind: input, shape index: {}]   ;;  %s16055_s7 = inlined_call_operand.hbm [shape: f32[2,8,16], index: 7, kind: input, shape index: {}]   ;;  %s16056_s8 = inlined_call_operand.hbm [shape: f32[2,512,256], index: 8, kind: input, shape index: {}]   ;;  %s16057_s9 = inlined_call_operand.hbm [shape: f32[4,2,8], index: 9, kind: input, shape index: {}]   ;;  %s16058_s10 = inlined_call_operand.hbm [shape: f32[4,256,512], index: 10, kind: input, shape index: {}]   ;;  %s16059_s11 = inlined_call_operand.vmem [shape: f32[512,10], index: 11, kind: input, shape index: {}]   ;;  %s16060_s12 = inlined_call_operand.hbm [shape: f32[2,10], index: 12, kind: output, shape index: {}]  }
   0x1   :  { %18 = vsyncpa [#allocation6], 0 }
   0x2   :  { %19 = vsyncpa [#allocation9], 0 }
   0x3   :  { %20 = vsyncpa [#allocation12], 0 }
   0x4   :  { %21 = vsyncpa [#allocation15], 0 }
   0x5   :  { %22 = vsyncpa [#allocation18], 0 }
   0x6   :  { %23 = vsyncpa [#allocation4], 0  ;;  %s14703_s21 = smov [#allocation5]   ;;  %s14704_s23 = smov [#allocation8]  }
   0x7   :  { %s41_s22 = sshll.u32 %s14703_s21, 4  ;;  %s65_s24 = sshll.u32 %s14704_s23, 4  ;;  %s42_s22 = int_to_ptr.vmem [resolvable:$true] %s41_s22  ;;  %s14793_s24 = int_to_ptr.vmem [resolvable:$true] %s65_s24 }
   0x8   :  { %s14425_s27 = scalar_lea.hbm %s16049_s1, 3840 }
   0x9   :  { %p14426_p0 = scmp.ne.s32.totalorder %s16049_s1, %s14425_s27  ;;  %p14429_p1 = scmp.lt.u32.totalorder %s14425_s27, %s16049_s1 }
   0xb   :  { %p14431_p2 = pnand %p14429_p1, %p14426_p0 }
   0xd   :  { %14434 = shalt.err (!%p14431_p2)
}
   0xe   :  { %s14435_s14 = scalar_lea.vmem %s42_s22, 3840  ;;  %p14440_p4 = scmp.lt.s32.totalorder %s42_s22, %s42_s22 }
   0xf   :  { %p14436_p3 = scmp.ne.s32.totalorder %s42_s22, %s14435_s14  ;;  %p14441_p5 = scmp.lt.s32.totalorder %s14435_s14, %s14435_s14 }
  0x11   :  { %p14442_p6 = por %p14441_p5, %p14440_p4 }
  0x13   :  { %p14443_p7 = pnand %p14442_p6, %p14436_p3 }
  0x15   :  { %14446 = shalt.err (!%p14443_p7)
}
  0x16   :  { %s14705_s15 = smov 128   ;;  %s14706_s16 = smov 8  }
  0x17   :  { %47 = dma.hbm_to_vmem [thread:$0]  %s16049_s1, 3840, %s42_s22, [#allocation6], %s14705_s15, %s14705_s15, %s14706_s16  }
  0x18   :  { %s14447_s21 = scalar_lea.hbm %s16051_s3, 768 }
  0x19   :  { %p14448_p8 = scmp.ne.s32.totalorder %s16051_s3, %s14447_s21  ;;  %p14451_p9 = scmp.lt.u32.totalorder %s14447_s21, %s16051_s3 }
  0x1b   :  { %p14453_p10 = pnand %p14451_p9, %p14448_p8 }
  0x1d   :  { %14456 = shalt.err (!%p14453_p10)
}
  0x1e   :  { %s14457_s28 = scalar_lea.vmem %s14793_s24, 768  ;;  %p14462_p12 = scmp.lt.s32.totalorder %s14793_s24, %s14793_s24 }
  0x1f   :  { %p14458_p11 = scmp.ne.s32.totalorder %s14793_s24, %s14457_s28  ;;  %p14463_p13 = scmp.lt.s32.totalorder %s14457_s28, %s14457_s28 }
  0x21   :  { %p14464_p0 = por %p14463_p13, %p14462_p12 }
  0x23   :  { %p14465_p1 = pnand %p14464_p0, %p14458_p11 }
  0x25   :  { %14468 = shalt.err (!%p14465_p1)
}
  0x26   :  { %71 = dma.hbm_to_vmem [thread:$0]  %s16051_s3, 768, %s14793_s24, [#allocation9], %s14705_s15, %s14705_s15, %s14706_s16  }
  0x27   :  { %s14707_s29 = smov [#allocation11]   ;;  %s14708_s13 = smov [#allocation14]  }
  0x28   :  { %s89_s30 = sshll.u32 %s14707_s29, 4  ;;  %s113_s14 = sshll.u32 %s14708_s13, 4  ;;  %s90_s30 = int_to_ptr.vmem [resolvable:$true] %s89_s30  ;;  %s14830_s14 = int_to_ptr.vmem [resolvable:$true] %s113_s14 }
  0x29   :  { %s14469_s19 = scalar_lea.hbm %s16053_s5, 1280 }
  0x2a   :  { %p14470_p2 = scmp.ne.s32.totalorder %s16053_s5, %s14469_s19  ;;  %p14473_p3 = scmp.lt.u32.totalorder %s14469_s19, %s16053_s5 }
  0x2c   :  { %p14475_p4 = pnand %p14473_p3, %p14470_p2 }
  0x2e   :  { %14478 = shalt.err (!%p14475_p4)
}
  0x2f   :  { %s14479_s3 = scalar_lea.vmem %s90_s30, 1280  ;;  %p14484_p6 = scmp.lt.s32.totalorder %s90_s30, %s90_s30 }
  0x30   :  { %p14480_p5 = scmp.ne.s32.totalorder %s90_s30, %s14479_s3  ;;  %p14485_p7 = scmp.lt.s32.totalorder %s14479_s3, %s14479_s3 }
  0x32   :  { %p14486_p8 = por %p14485_p7, %p14484_p6 }
  0x34   :  { %p14487_p9 = pnand %p14486_p8, %p14480_p5 }
  0x36   :  { %14490 = shalt.err (!%p14487_p9)
}
  0x37   :  { %95 = dma.hbm_to_vmem [thread:$0]  %s16053_s5, 1280, %s90_s30, [#allocation12], %s14705_s15, %s14705_s15, %s14706_s16  }
  0x38   :  { %s14491_s1 = scalar_lea.hbm %s16055_s7, 256 }
  0x39   :  { %p14492_p10 = scmp.ne.s32.totalorder %s16055_s7, %s14491_s1  ;;  %p14495_p11 = scmp.lt.u32.totalorder %s14491_s1, %s16055_s7 }
  0x3b   :  { %p14497_p12 = pnand %p14495_p11, %p14492_p10 }
  0x3d   :  { %14500 = shalt.err (!%p14497_p12)
}
  0x3e   :  { %s14501_s18 = scalar_lea.vmem %s14830_s14, 256  ;;  %p14506_p0 = scmp.lt.s32.totalorder %s14830_s14, %s14830_s14 }
  0x3f   :  { %p14502_p13 = scmp.ne.s32.totalorder %s14830_s14, %s14501_s18  ;;  %p14507_p1 = scmp.lt.s32.totalorder %s14501_s18, %s14501_s18 }
  0x41   :  { %p14508_p2 = por %p14507_p1, %p14506_p0 }
  0x43   :  { %p14509_p3 = pnand %p14508_p2, %p14502_p13 }
  0x45   :  { %14512 = shalt.err (!%p14509_p3)
}
  0x46   :  { %119 = dma.hbm_to_vmem [thread:$0]  %s16055_s7, 256, %s14830_s14, [#allocation15], %s14705_s15, %s14705_s15, %s14706_s16  }
  0x47   :  { %s14709_s19 = smov [#allocation17]   ;;  %s14513_s25 = scalar_lea.hbm %s16057_s9, 128 }
  0x48   :  { %s137_s20 = sshll.u32 %s14709_s19, 4  ;;  %p14514_p4 = scmp.ne.s32.totalorder %s16057_s9, %s14513_s25  ;;  %s138_s20 = int_to_ptr.vmem [resolvable:$true] %s137_s20 }
  0x49   :  { %p14517_p5 = scmp.lt.u32.totalorder %s14513_s25, %s16057_s9 }
  0x4b   :  { %p14519_p6 = pnand %p14517_p5, %p14514_p4 }
  0x4d   :  { %14522 = shalt.err (!%p14519_p6)
}
  0x4e   :  { %s14523_s28 = scalar_lea.vmem %s138_s20, 128  ;;  %p14528_p8 = scmp.lt.s32.totalorder %s138_s20, %s138_s20 }
  0x4f   :  { %p14524_p7 = scmp.ne.s32.totalorder %s138_s20, %s14523_s28  ;;  %p14529_p9 = scmp.lt.s32.totalorder %s14523_s28, %s14523_s28 }
  0x51   :  { %p14530_p10 = por %p14529_p9, %p14528_p8 }
  0x53   :  { %p14531_p11 = pnand %p14530_p10, %p14524_p7 }
  0x55   :  { %14534 = shalt.err (!%p14531_p11)
}
  0x56   :  { %s14710_s7 = smov 32   ;;  %s14711_s14 = smov 2  }
  0x57   :  { %143 = dma.hbm_to_vmem [thread:$0]  %s16057_s9, 128, %s138_s20, [#allocation18], %s14710_s7, %s14710_s7, %s14711_s14  }
  0x58   :  { %s14712_s29 = smov [#allocation2]   ;;  %s14713_s17 = smov [#allocation7]  }
  0x59   :  { %s29_s13 = sshll.u32 %s14712_s29, 4  ;;  %s53_s18 = sshll.u32 %s14713_s17, 4  ;;  %s30_s13 = int_to_ptr.vmem [resolvable:$true] %s29_s13  ;;  %s54_s18 = int_to_ptr.vmem [resolvable:$true] %s53_s18 }
  0x5a   :  { %s14535_s19 = scalar_lea.hbm %s16048_s0, 896 }
  0x5b   :  { %p14536_p12 = scmp.ne.s32.totalorder %s16048_s0, %s14535_s19  ;;  %p14539_p13 = scmp.lt.u32.totalorder %s14535_s19, %s16048_s0 }
  0x5d   :  { %p14541_p0 = pnand %p14539_p13, %p14536_p12 }
  0x5f   :  { %14544 = shalt.err (!%p14541_p0)
}
  0x60   :  { %s14545_s9 = scalar_lea.vmem %s30_s13, 896  ;;  %p14550_p2 = scmp.lt.s32.totalorder %s30_s13, %s30_s13 }
  0x61   :  { %p14546_p1 = scmp.ne.s32.totalorder %s30_s13, %s14545_s9  ;;  %p14551_p3 = scmp.lt.s32.totalorder %s14545_s9, %s14545_s9 }
  0x63   :  { %p14552_p4 = por %p14551_p3, %p14550_p2 }
  0x65   :  { %p14553_p5 = pnand %p14552_p4, %p14546_p1 }
  0x67   :  { %14556 = shalt.err (!%p14553_p5)
}
  0x68   :  { %35 = dma.hbm_to_vmem [thread:$0]  %s16048_s0, 896, %s30_s13, [#allocation3], %s14705_s15, %s14705_s15, %s14706_s16  }
  0x69   :  { %s14557_s28 = scalar_lea.hbm %s16050_s2, 15360 }
  0x6a   :  { %p14558_p6 = scmp.ne.s32.totalorder %s16050_s2, %s14557_s28  ;;  %p14561_p7 = scmp.lt.u32.totalorder %s14557_s28, %s16050_s2 }
  0x6c   :  { %p14563_p8 = pnand %p14561_p7, %p14558_p6 }
  0x6e   :  { %14566 = shalt.err (!%p14563_p8)
}
  0x6f   :  { %s14567_s17 = scalar_lea.vmem %s54_s18, 15360  ;;  %p14572_p10 = scmp.lt.s32.totalorder %s54_s18, %s54_s18 }
  0x70   :  { %p14568_p9 = scmp.ne.s32.totalorder %s54_s18, %s14567_s17  ;;  %p14573_p11 = scmp.lt.s32.totalorder %s14567_s17, %s14567_s17 }
  0x72   :  { %p14574_p12 = por %p14573_p11, %p14572_p10 }
  0x74   :  { %p14575_p13 = pnand %p14574_p12, %p14568_p9 }
  0x76   :  { %14578 = shalt.err (!%p14575_p13)
}
  0x77   :  { %s14714_s0 = smov 768   ;;  %s14715_s15 = smov 48  }
  0x78   :  { %59 = dma.hbm_to_vmem [thread:$0]  %s16050_s2, 15360, %s54_s18, [#allocation6], %s14714_s0, %s14714_s0, %s14715_s15  }
  0x79   :  { %s14716_s5 = smov [#allocation10]   ;;  %s14579_s23 = scalar_lea.hbm %s16052_s4, 73728 }
  0x7a   :  { %s77_s30 = sshll.u32 %s14716_s5, 4  ;;  %p14580_p0 = scmp.ne.s32.totalorder %s16052_s4, %s14579_s23  ;;  %s78_s30 = int_to_ptr.vmem [resolvable:$true] %s77_s30 }
  0x7b   :  { %p14583_p1 = scmp.lt.u32.totalorder %s14579_s23, %s16052_s4 }
  0x7d   :  { %p14585_p2 = pnand %p14583_p1, %p14580_p0 }
  0x7f   :  { %14588 = shalt.err (!%p14585_p2)
}
  0x80   :  { %s14589_s24 = scalar_lea.vmem %s78_s30, 73728  ;;  %p14594_p4 = scmp.lt.s32.totalorder %s78_s30, %s78_s30 }
  0x81   :  { %p14590_p3 = scmp.ne.s32.totalorder %s78_s30, %s14589_s24  ;;  %p14595_p5 = scmp.lt.s32.totalorder %s14589_s24, %s14589_s24 }
  0x83   :  { %p14596_p6 = por %p14595_p5, %p14594_p4 }
  0x85   :  { %p14597_p7 = pnand %p14596_p6, %p14590_p3 }
  0x87   :  { %14600 = shalt.err (!%p14597_p7)
}
  0x88   :  { %s14717_s2 = smov 384   ;;  %s14718_s18 = smov 24  }
  0x89   :  { %83 = dma.hbm_to_vmem [thread:$0]  %s16052_s4, 73728, %s78_s30, [#allocation9], %s14717_s2, %s14717_s2, %s14718_s18  }
  0x8a   :  { %s14719_s28 = smov [#allocation13]   ;;  %s14720_s1 = smov [#allocation16]  }
  0x8b   :  { %s101_s14 = sshll.u32 %s14719_s28, 4  ;;  %s125_s22 = sshll.u32 %s14720_s1, 4  ;;  %s102_s14 = int_to_ptr.vmem [resolvable:$true] %s101_s14  ;;  %s126_s22 = int_to_ptr.vmem [resolvable:$true] %s125_s22 }
  0x8c   :  { %s14601_s0 = scalar_lea.hbm %s16054_s6, 122880 }
  0x8d   :  { %p14602_p8 = scmp.ne.s32.totalorder %s16054_s6, %s14601_s0  ;;  %p14605_p9 = scmp.lt.u32.totalorder %s14601_s0, %s16054_s6 }
  0x8f   :  { %p14607_p10 = pnand %p14605_p9, %p14602_p8 }
  0x91   :  { %14610 = shalt.err (!%p14607_p10)
}
  0x92   :  { %s14611_s4 = scalar_lea.vmem %s102_s14, 122880  ;;  %p14616_p12 = scmp.lt.s32.totalorder %s102_s14, %s102_s14 }
  0x93   :  { %p14612_p11 = scmp.ne.s32.totalorder %s102_s14, %s14611_s4  ;;  %p14617_p13 = scmp.lt.s32.totalorder %s14611_s4, %s14611_s4 }
  0x95   :  { %p14618_p0 = por %p14617_p13, %p14616_p12 }
  0x97   :  { %p14619_p1 = pnand %p14618_p0, %p14612_p11 }
  0x99   :  { %14622 = shalt.err (!%p14619_p1)
}
  0x9a   :  { %s14721_s30 = smov 512   ;;  %s14623_s3 = scalar_lea.hbm %s16056_s8, 32768 }
  0x9b   :  { %107 = dma.hbm_to_vmem [thread:$0]  %s16054_s6, 122880, %s102_s14, [#allocation12], %s14721_s30, %s14721_s30, %s14710_s7  }
  0x9c   :  { %p14624_p2 = scmp.ne.s32.totalorder %s16056_s8, %s14623_s3  ;;  %p14627_p3 = scmp.lt.u32.totalorder %s14623_s3, %s16056_s8 }
  0x9e   :  { %p14629_p4 = pnand %p14627_p3, %p14624_p2 }
  0xa0   :  { %14632 = shalt.err (!%p14629_p4)
}
  0xa1   :  { %s14633_s18 = scalar_lea.vmem %s126_s22, 32768  ;;  %p14638_p6 = scmp.lt.s32.totalorder %s126_s22, %s126_s22 }
  0xa2   :  { %p14634_p5 = scmp.ne.s32.totalorder %s126_s22, %s14633_s18  ;;  %p14639_p7 = scmp.lt.s32.totalorder %s14633_s18, %s14633_s18 }
  0xa4   :  { %p14640_p8 = por %p14639_p7, %p14638_p6 }
  0xa6   :  { %p14641_p9 = pnand %p14640_p8, %p14634_p5 }
  0xa8   :  { %14644 = shalt.err (!%p14641_p9)
}
  0xa9   :  { %s14722_s6 = smov 256   ;;  %s14723_s26 = smov 16  }
  0xaa   :  { %131 = dma.hbm_to_vmem [thread:$0]  %s16056_s8, 32768, %s126_s22, [#allocation15], %s14722_s6, %s14722_s6, %s14723_s26  }
  0xab   :  { %s14724_s14 = smov [#allocation19]   ;;  %s14645_s0 = scalar_lea.hbm %s16058_s10, 65536 }
  0xac   :  { %s149_s1 = sshll.u32 %s14724_s14, 4  ;;  %p14646_p10 = scmp.ne.s32.totalorder %s16058_s10, %s14645_s0  ;;  %s150_s1 = int_to_ptr.vmem [resolvable:$true] %s149_s1 }
  0xad   :  { %p14649_p11 = scmp.lt.u32.totalorder %s14645_s0, %s16058_s10 }
  0xaf   :  { %p14651_p12 = pnand %p14649_p11, %p14646_p10 }
  0xb1   :  { %14654 = shalt.err (!%p14651_p12)
}
  0xb2   :  { %s14655_s4 = scalar_lea.vmem %s150_s1, 65536  ;;  %p14660_p0 = scmp.lt.s32.totalorder %s150_s1, %s150_s1 }
  0xb3   :  { %p14656_p13 = scmp.ne.s32.totalorder %s150_s1, %s14655_s4  ;;  %p14661_p1 = scmp.lt.s32.totalorder %s14655_s4, %s14655_s4 }
  0xb5   :  { %p14662_p2 = por %p14661_p1, %p14660_p0 }
  0xb7   :  { %p14663_p3 = pnand %p14662_p2, %p14656_p13 }
  0xb9   :  { %14666 = shalt.err (!%p14663_p3)
}
  0xba   :  { %155 = dma.hbm_to_vmem [thread:$0]  %s16058_s10, 65536, %s150_s1, [#allocation18], %s14721_s30, %s14721_s30, %s14710_s7  }
  0xbb   :  { %14689 = dma.done.wait [#allocation3], 896  }
  0xbc   :  { %14690 = vsyncadd [#allocation3], 4294966400 }
  0xbd   :  { %14691 = dma.done.wait [#allocation6], 19200  }
  0xbe   :  { %14692 = vsyncadd [#allocation6], 4294948096 }
  0xbf   :  { %14693 = dma.done.wait [#allocation9], 74496  }
  0xc0   :  { %14694 = vsyncadd [#allocation9], 4294892800 }
  0xc1   :  { %14695 = dma.done.wait [#allocation12], 124160  }
  0xc2   :  { %14696 = vsyncadd [#allocation12], 4294843136 }
  0xc3   :  { %14697 = dma.done.wait [#allocation15], 33024  }
  0xc4   :  { %14698 = vsyncadd [#allocation15], 4294934272 }
  0xc5   :  { %14699 = dma.done.wait [#allocation18], 65664  }
  0xc6   :  { %14700 = vsyncadd [#allocation18], 4294901632  ;;  %v191_v0 = vld [vmem:[#allocation2] sm:$0xff]  ;;  %v192_v1 = vld [vmem:[#allocation2 + $0x8] sm:$0xff]  ;;  %vm204_vm0 = vcmask 457728   ;;  %vm506_vm1 = vcmask 1043456  }
  0xc7   :  { %v193_v2 = vld [vmem:[#allocation2 + $0x10] sm:$0xff]  ;;  %v14962_v3 = vpack.c.bf16 %v192_v1, %v191_v0  ;;  %v194_v4 = vld [vmem:[#allocation2 + $0x18] sm:$0xff]  ;;  %v195_v6 = vld [vmem:[#allocation2 + $0x20] sm:$0xff]  ;;  %vm14725_vm2 = vmmov 1   ;;  %v14726_v47 = vmov 0.0   ;;  %vm487_vm4 = vcmask 228352  }
  0xc8   :  { %v14964_v5 = vpack.c.bf16 %v194_v4, %v193_v2  ;;  %v196_v7 = vld [vmem:[#allocation2 + $0x28] sm:$0xff]  ;;  %v198_v9 = vld [vmem:[#allocation5] sm:$0xff]  ;;  %v14979_v11 = vld [vmem:[#allocation2 + $0x30] sm:$0xff]  ;;  %vm2766_vm5 = vcmask 392192   ;;  %vm4871_vm6 = vcmask 195584   ;;  %vm8211_vm7 = vcmask 130048  }
  0xc9   :  { %v343_v8 = vld [vmem:[#allocation5 + $0x30] sm:$0xff]  ;;  %11451 = vmatprep.subr.bf16.mxu1 %v14962_v3  ;;  %11439 = vmatprep.subr.bf16.mxu0 %v14962_v3  ;;  %v14971_v10 = vpack.c.bf16 %v196_v7, %v195_v6  ;;  %v464_v12 = vld [vmem:[#allocation7 + $0xc8] sm:$0xff]  ;;  %v470_v13 = vld [vmem:[#allocation7 + $0xf8] sm:$0xff]  ;;  %vm9052_vm8 = vcmask 64512   ;;  %vm10654_vm9 = vcmask 74752  }
  0xca   :  { %11315 = vmatprep.mubr.msk.f32.mxu1 %vm204_vm0, %v343_v8  ;;  %11453 = vmatpush3.bf16.msra.mxu1 %v14962_v3  ;;  %v466_v14 = vld [vmem:[#allocation7 + $0xd8] sm:$0xff]  ;;  %v472_v15 = vld [vmem:[#allocation7 + $0x108] sm:$0xff]  ;;  %v463_v16 = vld [vmem:[#allocation7 + $0xc0] sm:$0xff]  ;;  %v11462_v24 = vpack.c.bf16 %v470_v13, %v464_v12 }
  0xcb   :  { %11455 = vmatprep.subr.bf16.mxu1 %v14964_v5  ;;  %11441 = vmatpush3.bf16.msra.mxu0 %v14962_v3  ;;  %v469_v17 = vld [vmem:[#allocation7 + $0xf0] sm:$0xff]  ;;  %v344_v18 = vld [vmem:[#allocation5 + $0x38] sm:$0xff]  ;;  %v482_v20 = vld [vmem:[#allocation7 + $0x158] sm:$0xf]  ;;  %v11472_v25 = vpack.c.bf16 %v472_v15, %v466_v14 }
  0xcc   :  { %11443 = vmatprep.subr.bf16.mxu0 %v14964_v5  ;;  %11292 = vmatprep.mubr.msk.f32.mxu0 %vm204_vm0, %v198_v9  ;;  %v476_v19 = vld [vmem:[#allocation7 + $0x128] sm:$0xff]  ;;  %v345_v21 = vld [vmem:[#allocation5 + $0x40] sm:$0xff]  ;;  %v199_v22 = vld [vmem:[#allocation5 + $0x8] sm:$0xff]  ;;  %v11464_v26 = vpack.c.bf16 %v469_v17, %v463_v16 }
  0xcd   :  { %v200_v23 = vld [vmem:[#allocation5 + $0x10] sm:$0xff]  ;;  %v465_v27 = vld [vmem:[#allocation7 + $0xd0] sm:$0xff]  ;;  %v478_v29 = vld [vmem:[#allocation7 + $0x138] sm:$0xff]  ;;  %v11466_v30 = vpack.c.bf16 %v482_v20, %v476_v19 }
  0xce   :  { %11457 = vmatpush3.bf16.msra.mxu1 %v14964_v5  ;;  %v471_v28 = vld [vmem:[#allocation7 + $0x100] sm:$0xff]  ;;  %v484_v31 = vld [vmem:[#allocation7 + $0x168] sm:$0xf]  ;;  %v481_v33 = vld [vmem:[#allocation7 + $0x150] sm:$0xf] }
  0xcf   :  { %11459 = vmatprep.subr.bf16.mxu1 %v14971_v10  ;;  %11445 = vmatpush3.bf16.msra.mxu0 %v14964_v5  ;;  %v475_v32 = vld [vmem:[#allocation7 + $0x120] sm:$0xff]  ;;  %v346_v34 = vld [vmem:[#allocation5 + $0x48] sm:$0xff]  ;;  %vm14992_vm3 = vmpackc.low %vm506_vm1, %vm14725_vm2  ;;  %v11474_v38 = vpack.c.bf16 %v471_v28, %v465_v27  ;;  %v11476_v40 = vpack.c.bf16 %v484_v31, %v478_v29 }
  0xd0   :  { %11447 = vmatprep.subr.bf16.mxu0 %v14971_v10  ;;  %v347_v36 = vld [vmem:[#allocation5 + $0x50] sm:$0xff]  ;;  %v201_v37 = vld [vmem:[#allocation5 + $0x18] sm:$0xff]  ;;  %v202_v39 = vld [vmem:[#allocation5 + $0x20] sm:$0xff]  ;;  %v11469_v41 = vpack.c.bf16 %v481_v33, %v475_v32 }
  0xd1   :  { %v477_v42 = vld [vmem:[#allocation7 + $0x130] sm:$0xff]  ;;  %v483_v43 = vld [vmem:[#allocation7 + $0x160] sm:$0xf]  ;;  %v348_v44 = vld [vmem:[#allocation5 + $0x58] sm:$0xff] }
  0xd2   :  { %11461 = vmatpush3.bf16.msra.mxu1 %v14971_v10  ;;  %v203_v45 = vld [vmem:[#allocation5 + $0x28] sm:$0xff]  ;;  %v11479_v46 = vpack.c.bf16 %v483_v43, %v477_v42  ;;  %v327_v49 = vld [vmem:[#allocation7 + $0x48] sm:$0xff]  ;;  %v320_v54 = vld [vmem:[#allocation7 + $0x10] sm:$0xff] }
  0xd3   :  { %11313 = vmatprep.subr.mxu1 %v14979_v11  ;;  %11449 = vmatpush3.bf16.msra.mxu0 %v14971_v10  ;;  %v321_v48 = vld [vmem:[#allocation7 + $0x18] sm:$0xff]  ;;  %v468_v51 = vld [vmem:[#allocation7 + $0xe8] sm:$0xff]  ;;  %v326_v55 = vld [vmem:[#allocation7 + $0x40] sm:$0xff] }
  0xd4   :  { %11290 = vmatprep.subr.mxu0 %v14979_v11  ;;  %v11502_v50 = vpack.c.bf16 %v327_v49, %v321_v48  ;;  %v474_v52 = vld [vmem:[#allocation7 + $0x118] sm:$0xff]  ;;  %v467_v57 = vld [vmem:[#allocation7 + $0xe0] sm:$0xff]  ;;  %v473_v58 = vld [vmem:[#allocation7 + $0x110] sm:$0xff]  ;;  %v11504_v63 = vpack.c.bf16 %v326_v55, %v320_v54 }
  0xd5   :  { %v11482_v53 = vpack.c.bf16 %v474_v52, %v468_v51  ;;  %v333_v56 = vld [vmem:[#allocation7 + $0x78] sm:$0xff]  ;;  %v339_v59 = vld [vmem:[#allocation7 + $0xa8] sm:$0xf]  ;;  %v11484_v0 = vpack.c.bf16 %v473_v58, %v467_v57  ;;  %v338_v1 = vld [vmem:[#allocation7 + $0xa0] sm:$0xf] }
  0xd6   :  { %11314 = vmatpush3.msra.mxu1 %v14979_v11  ;;  %v480_v60 = vld [vmem:[#allocation7 + $0x148] sm:$0xff]  ;;  %v486_v61 = vld [vmem:[#allocation7 + $0x178] sm:$0xf]  ;;  %v11506_v4 = vpack.c.bf16 %v339_v59, %v333_v56  ;;  %v332_v6 = vld [vmem:[#allocation7 + $0x70] sm:$0xff] }
  0xd7   :  { %11316 = vmatmul.mubr.msk.f32.vlgmr.msra.gmra.mrb[0].mxu1 %vm204_vm0, %v344_v18  ;;  %11291 = vmatpush3.msra.mxu0 %v14979_v11  ;;  %v11486_v7 = vpack.c.bf16 %v486_v61, %v480_v60  ;;  %v479_v9 = vld [vmem:[#allocation7 + $0x140] sm:$0xff]  ;;  %v485_v12 = vld [vmem:[#allocation7 + $0x170] sm:$0xf]  ;;  %v319_v14 = vld [vmem:[#allocation7 + $0x8] sm:$0xff]  ;;  %v11509_v17 = vpack.c.bf16 %v338_v1, %v332_v6 }
  0xd8   :  { %11318 = vmatprep.mubr.msk.f32.mxu1 %vm204_vm0, %v345_v21  ;;  %11293 = vmatmul.mubr.msk.f32.vlgmr.msra.gmra.mrb[0].mxu0 %vm204_vm0, %v199_v22  ;;  %v325_v15 = vld [vmem:[#allocation7 + $0x38] sm:$0xff]  ;;  %v11489_v18 = vpack.c.bf16 %v485_v12, %v479_v9  ;;  %v318_v27 = vld [vmem:[#allocation7] sm:$0xff]  ;;  %v324_v28 = vld [vmem:[#allocation7 + $0x30] sm:$0xff] }
  0xd9   :  { %11295 = vmatprep.mubr.msk.f32.mxu0 %vm204_vm0, %v200_v23  ;;  %11463 = vmatprep.subr.bf16.mxu0 %v11462_v24  ;;  %v11492_v21 = vpack.c.bf16 %v325_v15, %v319_v14  ;;  %v331_v29 = vld [vmem:[#allocation7 + $0x68] sm:$0xff]  ;;  %v11494_v31 = vpack.c.bf16 %v324_v28, %v318_v27  ;;  %v330_v33 = vld [vmem:[#allocation7 + $0x60] sm:$0xff]  ;;  %v1168_v43 = vld [vmem:[#allocation5 + $0x60] sm:$0xff] }
  0xda   :  { %11473 = vmatprep.subr.bf16.mxu1 %v11472_v25  ;;  %11465 = vmatpush1.bf16.msra.mxu0 %v11464_v26  ;;  %v1290_v48 = vld [vmem:[#allocation7 + $0x190] sm:$0xff]  ;;  %v1296_v49 = vld [vmem:[#allocation7 + $0x1c0] sm:$0xff]  ;;  %v1303_v51 = vld [vmem:[#allocation7 + $0x1f8] sm:$0xff] }
  0xdb   :  { %11319 = vmatmul.mubr.msk.f32.gmra.mrb[2].mxu1 %vm204_vm0, %v346_v34  ;;  %11468 = vmatprep.subr.msk.bf16.mxu0 %vm14992_vm3, %v11466_v30  ;;  %v337_v30 = vld [vmem:[#allocation7 + $0x98] sm:$0xf]  ;;  %v336_v34 = vld [vmem:[#allocation7 + $0x90] sm:$0xf]  ;;  %v1309_v52 = vld [vmem:[#allocation7 + $0x228] sm:$0xf]  ;;  %v11546_v57 = vpack.c.bf16 %v1296_v49, %v1290_v48 }
  0xdc   :  { %11321 = vmatprep.mubr.msk.f32.mxu1 %vm204_vm0, %v347_v36  ;;  %11296 = vmatmul.mubr.msk.f32.gmra.mrb[2].mxu0 %vm204_vm0, %v201_v37  ;;  %v11496_v32 = vpack.c.bf16 %v337_v30, %v331_v29  ;;  %v323_v36 = vld [vmem:[#allocation7 + $0x28] sm:$0xff]  ;;  %v329_v37 = vld [vmem:[#allocation7 + $0x58] sm:$0xff]  ;;  %v1170_v54 = vld [vmem:[#allocation5 + $0x70] sm:$0xff]  ;;  %v11548_v60 = vpack.c.bf16 %v1309_v52, %v1303_v51 }
  0xdd   :  { %11298 = vmatprep.mubr.msk.f32.mxu0 %vm204_vm0, %v202_v39  ;;  %11475 = vmatpush1.bf16.msra.mxu1 %v11474_v38  ;;  %v11499_v38 = vpack.c.bf16 %v336_v34, %v330_v33  ;;  %v11512_v39 = vpack.c.bf16 %v329_v37, %v323_v36  ;;  %v334_v56 = vld [vmem:[#allocation7 + $0x80] sm:$0xff]  ;;  %v340_v59 = vld [vmem:[#allocation7 + $0xb0] sm:$0xf]  ;;  %v1171_v1 = vld [vmem:[#allocation5 + $0x78] sm:$0xff] }
  0xde   :  { %11478 = vmatprep.subr.msk.bf16.mxu1 %vm14992_vm3, %v11476_v40  ;;  %11471 = vmatpush1.bf16.msk.msra.mxu0 %vm14992_vm3, %v11469_v41  ;;  %v1291_v40 = vld [vmem:[#allocation7 + $0x198] sm:$0xff]  ;;  %v1297_v41 = vld [vmem:[#allocation7 + $0x1c8] sm:$0xff]  ;;  %v1302_v61 = vld [vmem:[#allocation7 + $0x1f0] sm:$0xff] }
  0xdf   :  { %11322 = vmatmul.mubr.msk.f32.gmra.mrb[4].mxu1 %vm204_vm0, %v348_v44  ;;  %11483 = vmatprep.subr.bf16.mxu0 %v11482_v53  ;;  %v11544_v42 = vpack.c.bf16 %v1297_v41, %v1291_v40  ;;  %v322_v44 = vld [vmem:[#allocation7 + $0x20] sm:$0xff]  ;;  %v1169_v53 = vld [vmem:[#allocation5 + $0x68] sm:$0xff]  ;;  %v1294_v14 = vld [vmem:[#allocation7 + $0x1b0] sm:$0xff] }
  0xe0   :  { %11299 = vmatmul.mubr.msk.f32.gmra.mrb[4].mxu0 %vm204_vm0, %v203_v45  ;;  %690 = vmatprep.mubr.f32.mxu1 %v14726_v47  ;;  %v328_v45 = vld [vmem:[#allocation7 + $0x50] sm:$0xff]  ;;  %v1173_v9 = vld [vmem:[#allocation5 + $0x88] sm:$0xff]  ;;  %v1288_v12 = vld [vmem:[#allocation7 + $0x180] sm:$0xff] }
  0xe1   :  { %11481 = vmatpush1.bf16.msk.msra.mxu1 %vm14992_vm3, %v11479_v46  ;;  %589 = vmatprep.mubr.f32.mxu0 %v14726_v47  ;;  %v335_v46 = vld [vmem:[#allocation7 + $0x88] sm:$0xff]  ;;  %v11514_v55 = vpack.c.bf16 %v328_v45, %v322_v44  ;;  %v1298_v27 = vld [vmem:[#allocation7 + $0x1d0] sm:$0xff]  ;;  %v1815_v34 = vld [vmem:[#allocation7 + $0x278] sm:$0xff] }
  0xe2   :  { %11503 = vmatprep.subr.bf16.mxu1 %v11502_v50  ;;  %v341_v50 = vld [vmem:[#allocation7 + $0xb8] sm:$0xf]  ;;  %v1301_v15 = vld [vmem:[#allocation7 + $0x1e8] sm:$0xff]  ;;  %v1310_v33 = vld [vmem:[#allocation7 + $0x230] sm:$0xf] }
  0xe3   :  { %v11516_v58 = vpack.c.bf16 %v341_v50, %v335_v46  ;;  %v1305_v28 = vld [vmem:[#allocation7 + $0x208] sm:$0xff]  ;;  %v1688_v45 = vld [vmem:[#allocation5 + $0x90] sm:$0xff]  ;;  %v1814_v48 = vld [vmem:[#allocation7 + $0x270] sm:$0xff] }
  0xe4   :  { %v1808_v46 = vld [vmem:[#allocation7 + $0x240] sm:$0xff]  ;;  %v1810_v49 = vld [vmem:[#allocation7 + $0x250] sm:$0xff]  ;;  %v1821_v51 = vld [vmem:[#allocation7 + $0x2a8] sm:$0xff] }
  0xe5   :  { %v1816_v50 = vld [vmem:[#allocation7 + $0x280] sm:$0xff]  ;;  %v1827_v52 = vld [vmem:[#allocation7 + $0x2d8] sm:$0xf] }
  0xe6   :  { %v3306_v35 = vld [vmem:[#allocation10 + $0x8] sm:$0xff] }
 0x1aa   :  { %v15013_v62 = vpop.f32.mrb[0].mxu1 }
 0x1ab   :  { %v433_v2 = vpop.f32.mrb[1].mxu1  ;;  %v15015_v8 = vpop.f32.mrb[0].mxu0 }
 0x1ac   :  { %10690 = vmatmul.mubr.msk.f32.vlgmr.msra.gmra.mrb[6].mxu0 %vm487_vm4, %v433_v2  ;;  %10698 = vmatmul.mubr.msk.f32.vlgmr.msra.gmra.mrb[6].mxu1 %vm487_vm4, %v433_v2  ;;  %v15019_v13 = vpop.f32.mrb[1].mxu0 }
 0x1ad   :  { %595 = vmatprep.mubr.f32.mxu0 %v14726_v47  ;;  %696 = vmatprep.mubr.f32.mxu1 %v14726_v47 }
 0x1ae   :  { %v15023_v16 = vpop.f32.mrb[2].mxu1  ;;  %11505 = vmatpush1.bf16.msra.mxu1 %v11504_v63  ;;  %11485 = vmatpush1.bf16.msra.mxu0 %v11484_v0  ;;  %v1289_v63 = vld [vmem:[#allocation7 + $0x188] sm:$0xff]  ;;  %v1295_v0 = vld [vmem:[#allocation7 + $0x1b8] sm:$0xff] }
 0x1af   :  { %v443_v19 = vpop.f32.mrb[3].mxu1  ;;  %11508 = vmatprep.subr.msk.bf16.mxu1 %vm14992_vm3, %v11506_v4  ;;  %11488 = vmatprep.subr.msk.bf16.mxu0 %vm14992_vm3, %v11486_v7  ;;  %v15029_v20 = vpop.f32.mrb[2].mxu0  ;;  %v11519_v4 = vpack.c.bf16 %v340_v59, %v334_v56  ;;  %v11534_v7 = vpack.c.bf16 %v1295_v0, %v1289_v63  ;;  %v1690_v56 = vld [vmem:[#allocation5 + $0xa0] sm:$0xff]  ;;  %v1820_v59 = vld [vmem:[#allocation7 + $0x2a0] sm:$0xff] }
 0x1b0   :  { %10691 = vmatmul.mubr.msk.f32.gmra.mrb[8].mxu0 %vm487_vm4, %v15013_v62  ;;  %10699 = vmatmul.mubr.msk.f32.gmra.mrb[8].mxu1 %vm487_vm4, %v15013_v62  ;;  %v15035_v22 = vpop.f32.mrb[3].mxu0  ;;  %v1822_v63 = vld [vmem:[#allocation7 + $0x2b0] sm:$0xff]  ;;  %v1828_v0 = vld [vmem:[#allocation7 + $0x2e0] sm:$0xf] }
 0x1b1   :  { %601 = vmatprep.mubr.f32.mxu0 %v14726_v47  ;;  %702 = vmatprep.mubr.f32.mxu1 %v14726_v47 }
 0x1b2   :  { %v15039_v23 = vpop.f32.mrb[4].mxu1  ;;  %11511 = vmatpush1.bf16.msk.msra.mxu1 %vm14992_vm3, %v11509_v17  ;;  %11491 = vmatpush1.bf16.msk.msra.mxu0 %vm14992_vm3, %v11489_v18  ;;  %v11536_v17 = vpack.c.bf16 %v1294_v14, %v1288_v12  ;;  %v1819_v12 = vld [vmem:[#allocation7 + $0x298] sm:$0xff] }
 0x1b3   :  { %v15045_v24 = vpop.f32.mrb[5].mxu1  ;;  %11523 = vmatprep.subr.bf16.mxu1 %v14962_v3  ;;  %v15048_v25 = vpop.f32.mrb[4].mxu0  ;;  %11493 = vmatprep.subr.bf16.mxu0 %v11492_v21  ;;  %v1306_v21 = vld [vmem:[#allocation7 + $0x210] sm:$0xf] }
 0x1b4   :  { %10692 = vmatmul.mubr.msk.f32.gmra.mrb[10].mxu0 %vm487_vm4, %v443_v19  ;;  %10700 = vmatmul.mubr.msk.f32.gmra.mrb[10].mxu1 %vm487_vm4, %v443_v19  ;;  %v15052_v26 = vpop.f32.mrb[5].mxu0 }
 0x1b5   :  { %607 = vmatprep.mubr.f32.mxu0 %v14726_v47  ;;  %708 = vmatprep.mubr.f32.mxu1 %v14726_v47 }
 0x1b8   :  { %10693 = vmatmul.mubr.msk.f32.gmra.mrb[12].mxu0 %vm487_vm4, %v15023_v16  ;;  %10701 = vmatmul.mubr.msk.f32.gmra.mrb[12].mxu1 %vm487_vm4, %v15023_v16 }
 0x1b9   :  { %613 = vmatprep.mubr.f32.mxu0 %v14726_v47  ;;  %714 = vmatprep.mubr.f32.mxu1 %v14726_v47 }
 0x1bc   :  { %10694 = vmatmul.mubr.msk.f32.gmra.mrb[14].mxu0 %vm487_vm4, %v15045_v24  ;;  %10702 = vmatmul.mubr.msk.f32.gmra.mrb[14].mxu1 %vm487_vm4, %v15045_v24 }
 0x1bd   :  { %619 = vmatprep.mubr.f32.mxu0 %v14726_v47  ;;  %720 = vmatprep.mubr.f32.mxu1 %v14726_v47 }
 0x1c0   :  { %10695 = vmatmul.mubr.msk.f32.gmra.mrb[16].mxu0 %vm487_vm4, %v15039_v23  ;;  %10703 = vmatmul.mubr.msk.f32.gmra.mrb[16].mxu1 %vm487_vm4, %v15039_v23 }
 0x1c1   :  { %791 = vmatprep.mubr.f32.mxu0 %v14726_v47  ;;  %1029 = vmatprep.mubr.f32.mxu1 %v14726_v47 }
 0x1c4   :  { %10706 = vmatmul.mubr.msk.f32.vlgmr.msra.gmra.mrb[18].mxu0 %vm487_vm4, %v433_v2  ;;  %10722 = vmatmul.mubr.msk.f32.vlgmr.msra.gmra.mrb[6].mxu1 %vm487_vm4, %v15019_v13  ;;  %v1172_v2 = vld [vmem:[#allocation5 + $0x80] sm:$0xff] }
 0x1c5   :  { %797 = vmatprep.mubr.f32.mxu0 %v14726_v47  ;;  %1035 = vmatprep.mubr.f32.mxu1 %v14726_v47 }
 0x1c6   :  { %11525 = vmatpush3.bf16.msra.mxu1 %v14962_v3  ;;  %11495 = vmatpush1.bf16.msra.mxu0 %v11494_v31 }
 0x1c7   :  { %11527 = vmatprep.subr.bf16.mxu1 %v14964_v5  ;;  %11498 = vmatprep.subr.msk.bf16.mxu0 %vm14992_vm3, %v11496_v32  ;;  %v1304_v32 = vld [vmem:[#allocation7 + $0x200] sm:$0xff] }
 0x1c8   :  { %10707 = vmatmul.mubr.msk.f32.gmra.mrb[20].mxu0 %vm487_vm4, %v15013_v62  ;;  %10723 = vmatmul.mubr.msk.f32.gmra.mrb[8].mxu1 %vm487_vm4, %v15015_v8  ;;  %v1308_v62 = vld [vmem:[#allocation7 + $0x220] sm:$0xf]  ;;  %v11561_v37 = vpack.c.bf16 %v1310_v33, %v1304_v32  ;;  %v2337_v32 = vld [vmem:[#allocation7 + $0x348] sm:$0xff] }
 0x1c9   :  { %803 = vmatprep.mubr.f32.mxu0 %v14726_v47  ;;  %1041 = vmatprep.mubr.f32.mxu1 %v14726_v47  ;;  %v11551_v6 = vpack.c.bf16 %v1308_v62, %v1302_v61  ;;  %v1826_v62 = vld [vmem:[#allocation7 + $0x2d0] sm:$0xf]  ;;  %v2328_v33 = vld [vmem:[#allocation7 + $0x300] sm:$0xff] }
 0x1ca   :  { %11529 = vmatpush3.bf16.msra.mxu1 %v14964_v5  ;;  %11501 = vmatpush1.bf16.msk.msra.mxu0 %vm14992_vm3, %v11499_v38 }
 0x1cb   :  { %11531 = vmatprep.subr.bf16.mxu1 %v14971_v10  ;;  %11513 = vmatprep.subr.bf16.mxu0 %v11512_v39 }
 0x1cc   :  { %10708 = vmatmul.mubr.msk.f32.gmra.mrb[22].mxu0 %vm487_vm4, %v443_v19  ;;  %10724 = vmatmul.mubr.msk.f32.gmra.mrb[10].mxu1 %vm487_vm4, %v15035_v22  ;;  %v1300_v19 = vld [vmem:[#allocation7 + $0x1e0] sm:$0xff] }
 0x1cd   :  { %809 = vmatprep.mubr.f32.mxu0 %v14726_v47  ;;  %1047 = vmatprep.mubr.f32.mxu1 %v14726_v47 }
 0x1ce   :  { %11533 = vmatpush3.bf16.msra.mxu1 %v14971_v10 }
 0x1cf   :  { %11336 = vmatprep.subr.mxu1 %v14979_v11 }
 0x1d0   :  { %10709 = vmatmul.mubr.msk.f32.gmra.mrb[24].mxu0 %vm487_vm4, %v15023_v16  ;;  %10725 = vmatmul.mubr.msk.f32.gmra.mrb[12].mxu1 %vm487_vm4, %v15029_v20  ;;  %v1307_v16 = vld [vmem:[#allocation7 + $0x218] sm:$0xf] }
 0x1d1   :  { %815 = vmatprep.mubr.f32.mxu0 %v14726_v47  ;;  %1053 = vmatprep.mubr.f32.mxu1 %v14726_v47  ;;  %v11538_v18 = vpack.c.bf16 %v1307_v16, %v1301_v15  ;;  %v1812_v15 = vld [vmem:[#allocation7 + $0x260] sm:$0xff]  ;;  %v1818_v16 = vld [vmem:[#allocation7 + $0x290] sm:$0xff] }
 0x1d2   :  { %11337 = vmatpush3.msra.mxu1 %v14979_v11 }
 0x1d3   :  { %11545 = vmatprep.subr.bf16.mxu1 %v11544_v42  ;;  %v1811_v42 = vld [vmem:[#allocation7 + $0x258] sm:$0xff] }
 0x1d4   :  { %10710 = vmatmul.mubr.msk.f32.gmra.mrb[26].mxu0 %vm487_vm4, %v15045_v24  ;;  %10726 = vmatmul.mubr.msk.f32.gmra.mrb[14].mxu1 %vm487_vm4, %v15052_v26  ;;  %v1292_v24 = vld [vmem:[#allocation7 + $0x1a0] sm:$0xff] }
 0x1d5   :  { %821 = vmatprep.mubr.f32.mxu0 %v14726_v47  ;;  %1059 = vmatprep.mubr.f32.mxu1 %v14726_v47  ;;  %v11556_v30 = vpack.c.bf16 %v1298_v27, %v1292_v24  ;;  %v2329_v24 = vld [vmem:[#allocation7 + $0x308] sm:$0xff]  ;;  %v2335_v27 = vld [vmem:[#allocation7 + $0x338] sm:$0xff] }
 0x1d8   :  { %10711 = vmatmul.mubr.msk.f32.gmra.mrb[28].mxu0 %vm487_vm4, %v15039_v23  ;;  %10727 = vmatmul.mubr.msk.f32.gmra.mrb[16].mxu1 %vm487_vm4, %v15048_v25  ;;  %v11541_v23 = vpack.c.bf16 %v1306_v21, %v1300_v19  ;;  %v11598_v21 = vpack.c.bf16 %v1818_v16, %v1812_v15  ;;  %v3309_v16 = vld [vmem:[#allocation10 + $0x20] sm:$0xff] }
 0x1d9   :  { %928 = vmatprep.mubr.f32.mxu0 %v14726_v47  ;;  %11338 = vmatprep.mubr.msk.f32.mxu1 %vm204_vm0, %v1168_v43  ;;  %v1817_v43 = vld [vmem:[#allocation7 + $0x288] sm:$0xff] }
 0x1da   :  { %v11586_v44 = vpack.c.bf16 %v1817_v43, %v1811_v42  ;;  %v2340_v43 = vld [vmem:[#allocation7 + $0x360] sm:$0xff] }
 0x1dc   :  { %10714 = vmatmul.mubr.msk.f32.vlgmr.msra.gmra.mrb[6].mxu0 %vm487_vm4, %v15019_v13  ;;  %11339 = vmatmul.mubr.msk.f32.vlgmr.msra.gmra.mrb[18].mxu1 %vm204_vm0, %v1169_v53  ;;  %v1823_v53 = vld [vmem:[#allocation7 + $0x2b8] sm:$0xff] }
 0x1dd   :  { %934 = vmatprep.mubr.f32.mxu0 %v14726_v47  ;;  %11341 = vmatprep.mubr.msk.f32.mxu1 %vm204_vm0, %v1170_v54  ;;  %v1829_v54 = vld [vmem:[#allocation7 + $0x2e8] sm:$0xf] }
 0x1de   :  { %11515 = vmatpush1.bf16.msra.mxu0 %v11514_v55  ;;  %11547 = vmatpush1.bf16.msra.mxu1 %v11546_v57  ;;  %v1689_v55 = vld [vmem:[#allocation5 + $0x98] sm:$0xff]  ;;  %v11578_v57 = vpack.c.bf16 %v1814_v48, %v1808_v46  ;;  %v11590_v61 = vpack.c.bf16 %v1829_v54, %v1823_v53  ;;  %v2346_v46 = vld [vmem:[#allocation7 + $0x390] sm:$0xf] }
 0x1df   :  { %11518 = vmatprep.subr.msk.bf16.mxu0 %vm14992_vm3, %v11516_v58  ;;  %11550 = vmatprep.subr.msk.bf16.mxu1 %vm14992_vm3, %v11548_v60  ;;  %v11588_v58 = vpack.c.bf16 %v1816_v50, %v1810_v49  ;;  %v11580_v60 = vpack.c.bf16 %v1827_v52, %v1821_v51  ;;  %v2342_v49 = vld [vmem:[#allocation7 + $0x370] sm:$0xff]  ;;  %v2348_v50 = vld [vmem:[#allocation7 + $0x3a0] sm:$0xf]  ;;  %v2211_v51 = vld [vmem:[#allocation5 + $0xd8] sm:$0xff]  ;;  %v11625_v53 = vpack.c.bf16 %v2346_v46, %v2340_v43 }
 0x1e0   :  { %10715 = vmatmul.mubr.msk.f32.gmra.mrb[8].mxu0 %vm487_vm4, %v15015_v8  ;;  %11342 = vmatmul.mubr.msk.f32.gmra.mrb[20].mxu1 %vm204_vm0, %v1171_v1  ;;  %v1691_v1 = vld [vmem:[#allocation5 + $0xa8] sm:$0xff]  ;;  %v2212_v52 = vld [vmem:[#allocation5 + $0xe0] sm:$0xff]  ;;  %v11635_v54 = vpack.c.bf16 %v2348_v50, %v2342_v49  ;;  %v3335_v43 = vld [vmem:[#allocation10 + $0xf0] sm:$0xff] }
 0x1e1   :  { %940 = vmatprep.mubr.f32.mxu0 %v14726_v47  ;;  %11344 = vmatprep.mubr.msk.f32.mxu1 %vm204_vm0, %v1172_v2  ;;  %v1692_v2 = vld [vmem:[#allocation5 + $0xb0] sm:$0xff] }
 0x1e2   :  { %11521 = vmatpush1.bf16.msk.msra.mxu0 %vm14992_vm3, %v11519_v4  ;;  %11553 = vmatpush1.bf16.msk.msra.mxu1 %vm14992_vm3, %v11551_v6  ;;  %v11583_v4 = vpack.c.bf16 %v1826_v62, %v1820_v59  ;;  %v11593_v6 = vpack.c.bf16 %v1828_v0, %v1822_v63  ;;  %v2332_v59 = vld [vmem:[#allocation7 + $0x320] sm:$0xff]  ;;  %v2351_v62 = vld [vmem:[#allocation7 + $0x3b8] sm:$0xf] }
 0x1e3   :  { %11535 = vmatprep.subr.bf16.mxu0 %v11534_v7  ;;  %11565 = vmatprep.subr.bf16.mxu1 %v14962_v3  ;;  %v1693_v7 = vld [vmem:[#allocation5 + $0xb8] sm:$0xff] }
 0x1e4   :  { %10716 = vmatmul.mubr.msk.f32.gmra.mrb[10].mxu0 %vm487_vm4, %v15035_v22  ;;  %11345 = vmatmul.mubr.msk.f32.gmra.mrb[22].mxu1 %vm204_vm0, %v1173_v9  ;;  %v1813_v9 = vld [vmem:[#allocation7 + $0x268] sm:$0xff] }
 0x1e5   :  { %946 = vmatprep.mubr.f32.mxu0 %v14726_v47  ;;  %1513 = vmatprep.mubr.f32.mxu1 %v14726_v47  ;;  %v11596_v14 = vpack.c.bf16 %v1819_v12, %v1813_v9 }
 0x1e8   :  { %10717 = vmatmul.mubr.msk.f32.gmra.mrb[12].mxu0 %vm487_vm4, %v15029_v20 }
 0x1e9   :  { %952 = vmatprep.mubr.f32.mxu0 %v14726_v47 }
 0x1ec   :  { %10718 = vmatmul.mubr.msk.f32.gmra.mrb[14].mxu0 %vm487_vm4, %v15052_v26 }
 0x1ed   :  { %958 = vmatprep.mubr.f32.mxu0 %v14726_v47 }
 0x1f0   :  { %10719 = vmatmul.mubr.msk.f32.gmra.mrb[16].mxu0 %vm487_vm4, %v15048_v25 }
 0x1f1   :  { %1130 = vmatprep.mubr.f32.mxu0 %v14726_v47 }
 0x1f4   :  { %10730 = vmatmul.mubr.msk.f32.vlgmr.msra.gmra.mrb[18].mxu0 %vm487_vm4, %v15019_v13  ;;  %v1299_v13 = vld [vmem:[#allocation7 + $0x1d8] sm:$0xff] }
 0x1f5   :  { %1136 = vmatprep.mubr.f32.mxu0 %v14726_v47  ;;  %11537 = vmatpush1.bf16.msra.mxu0 %v11536_v17  ;;  %v1825_v17 = vld [vmem:[#allocation7 + $0x2c8] sm:$0xff] }
 0x1f6   :  { %11540 = vmatprep.subr.msk.bf16.mxu0 %vm14992_vm3, %v11538_v18  ;;  %v1831_v18 = vld [vmem:[#allocation7 + $0x2f8] sm:$0xf] }
 0x1f8   :  { %10731 = vmatmul.mubr.msk.f32.gmra.mrb[20].mxu0 %vm487_vm4, %v15015_v8  ;;  %v1293_v8 = vld [vmem:[#allocation7 + $0x1a8] sm:$0xff] }
 0x1f9   :  { %1142 = vmatprep.mubr.f32.mxu0 %v14726_v47  ;;  %11543 = vmatpush1.bf16.msk.msra.mxu0 %vm14992_vm3, %v11541_v23 }
 0x1fc   :  { %10732 = vmatmul.mubr.msk.f32.gmra.mrb[22].mxu0 %vm487_vm4, %v15035_v22  ;;  %v11554_v22 = vpack.c.bf16 %v1299_v13, %v1293_v8  ;;  %v11600_v8 = vpack.c.bf16 %v1831_v18, %v1825_v17  ;;  %v1824_v13 = vld [vmem:[#allocation7 + $0x2c0] sm:$0xff]  ;;  %v3305_v17 = vld [vmem:[#allocation10] sm:$0xff]  ;;  %v11720_v18 = vpack.c.bf16 %v3309_v16, %v3306_v35 }
 0x1fd   :  { %1148 = vmatprep.mubr.f32.mxu0 %v14726_v47 }
 0x1fe   :  { %11555 = vmatprep.subr.bf16.mxu0 %v11554_v22  ;;  %v1830_v22 = vld [vmem:[#allocation7 + $0x2f0] sm:$0xf] }
 0x200   :  { %10733 = vmatmul.mubr.msk.f32.gmra.mrb[24].mxu0 %vm487_vm4, %v15029_v20  ;;  %v1311_v20 = vld [vmem:[#allocation7 + $0x238] sm:$0xf] }
 0x201   :  { %1154 = vmatprep.mubr.f32.mxu0 %v14726_v47 }
 0x204   :  { %10734 = vmatmul.mubr.msk.f32.gmra.mrb[26].mxu0 %vm487_vm4, %v15052_v26  ;;  %v11558_v26 = vpack.c.bf16 %v1311_v20, %v1305_v28  ;;  %v11603_v20 = vpack.c.bf16 %v1830_v22, %v1824_v13  ;;  %v3311_v22 = vld [vmem:[#allocation10 + $0x30] sm:$0xff] }
 0x205   :  { %1160 = vmatprep.mubr.f32.mxu0 %v14726_v47 }
 0x208   :  { %10735 = vmatmul.mubr.msk.f32.gmra.mrb[28].mxu0 %vm487_vm4, %v15048_v25  ;;  %v1809_v25 = vld [vmem:[#allocation7 + $0x248] sm:$0xff] }
 0x209   :  { %1412 = vmatprep.mubr.f32.mxu0 %v14726_v47  ;;  %v11576_v39 = vpack.c.bf16 %v1815_v34, %v1809_v25  ;;  %v2334_v25 = vld [vmem:[#allocation7 + $0x330] sm:$0xff]  ;;  %v2341_v34 = vld [vmem:[#allocation7 + $0x368] sm:$0xff] }
 0x20a   :  { %v11620_v42 = vpack.c.bf16 %v2334_v25, %v2328_v33  ;;  %v3326_v33 = vld [vmem:[#allocation10 + $0xa8] sm:$0xff] }
 0x20b   :  { %v3330_v25 = vld [vmem:[#allocation10 + $0xc8] sm:$0xff] }
 0x2af   :  { %v15174_v29 = vpop.f32.mrb[18].mxu1 }
 0x2b0   :  { %v15176_v31 = vpop.f32.mrb[19].mxu1 }
 0x2b1   :  { %10744 = vmatmul.mubr.msk.f32.vlgmr.msra.gmra.mrb[6].mxu0 %vm487_vm4, %v15176_v31  ;;  %10752 = vmatmul.mubr.msk.f32.vlgmr.msra.gmra.mrb[6].mxu1 %vm487_vm4, %v15176_v31 }
 0x2b2   :  { %1418 = vmatprep.mubr.f32.mxu0 %v14726_v47  ;;  %1519 = vmatprep.mubr.f32.mxu1 %v14726_v47 }
 0x2b3   :  { %v15184_v36 = vpop.f32.mrb[20].mxu1  ;;  %11567 = vmatpush3.bf16.msra.mxu1 %v14962_v3  ;;  %11557 = vmatpush1.bf16.msra.mxu0 %v11556_v30  ;;  %v11618_v30 = vpack.c.bf16 %v2335_v27, %v2329_v24  ;;  %v3314_v24 = vld [vmem:[#allocation10 + $0x48] sm:$0xff] }
 0x2b4   :  { %v15187_v38 = vpop.f32.mrb[21].mxu1  ;;  %11569 = vmatprep.subr.bf16.mxu1 %v14964_v5  ;;  %11560 = vmatprep.subr.msk.bf16.mxu0 %vm14992_vm3, %v11558_v26  ;;  %v2331_v26 = vld [vmem:[#allocation7 + $0x318] sm:$0xff] }
 0x2b5   :  { %10745 = vmatmul.mubr.msk.f32.gmra.mrb[8].mxu0 %vm487_vm4, %v15174_v29  ;;  %10753 = vmatmul.mubr.msk.f32.gmra.mrb[8].mxu1 %vm487_vm4, %v15174_v29  ;;  %v3318_v27 = vld [vmem:[#allocation10 + $0x68] sm:$0xff] }
 0x2b6   :  { %1424 = vmatprep.mubr.f32.mxu0 %v14726_v47  ;;  %1525 = vmatprep.mubr.f32.mxu1 %v14726_v47 }
 0x2b7   :  { %11571 = vmatpush3.bf16.msra.mxu1 %v14964_v5  ;;  %v15199_v40 = vpop.f32.mrb[22].mxu1  ;;  %11563 = vmatpush1.bf16.msk.msra.mxu0 %vm14992_vm3, %v11561_v37  ;;  %v2336_v37 = vld [vmem:[#allocation7 + $0x340] sm:$0xff] }
 0x2b8   :  { %v15203_v41 = vpop.f32.mrb[23].mxu1  ;;  %11573 = vmatprep.subr.bf16.mxu1 %v14971_v10  ;;  %11577 = vmatprep.subr.bf16.mxu0 %v11576_v39  ;;  %v2349_v39 = vld [vmem:[#allocation7 + $0x3a8] sm:$0xf] }
 0x2b9   :  { %10746 = vmatmul.mubr.msk.f32.gmra.mrb[10].mxu0 %vm487_vm4, %v15187_v38  ;;  %10754 = vmatmul.mubr.msk.f32.gmra.mrb[10].mxu1 %vm487_vm4, %v15187_v38 }
 0x2ba   :  { %1430 = vmatprep.mubr.f32.mxu0 %v14726_v47  ;;  %1531 = vmatprep.mubr.f32.mxu1 %v14726_v47 }
 0x2bb   :  { %11575 = vmatpush3.bf16.msra.mxu1 %v14971_v10 }
 0x2bc   :  { %11359 = vmatprep.subr.mxu1 %v14979_v11 }
 0x2bd   :  { %10747 = vmatmul.mubr.msk.f32.gmra.mrb[12].mxu0 %vm487_vm4, %v15184_v36  ;;  %10755 = vmatmul.mubr.msk.f32.gmra.mrb[12].mxu1 %vm487_vm4, %v15184_v36 }
 0x2be   :  { %1436 = vmatprep.mubr.f32.mxu0 %v14726_v47  ;;  %1537 = vmatprep.mubr.f32.mxu1 %v14726_v47 }
 0x2bf   :  { %11360 = vmatpush3.msra.mxu1 %v14979_v11 }
 0x2c0   :  { %11587 = vmatprep.subr.bf16.mxu1 %v11586_v44 }
 0x2c1   :  { %10748 = vmatmul.mubr.msk.f32.gmra.mrb[14].mxu0 %vm487_vm4, %v15203_v41  ;;  %10756 = vmatmul.mubr.msk.f32.gmra.mrb[14].mxu1 %vm487_vm4, %v15203_v41 }
 0x2c2   :  { %1442 = vmatprep.mubr.f32.mxu0 %v14726_v47  ;;  %1543 = vmatprep.mubr.f32.mxu1 %v14726_v47 }
 0x2c5   :  { %10749 = vmatmul.mubr.msk.f32.gmra.mrb[16].mxu0 %vm487_vm4, %v15199_v40  ;;  %10757 = vmatmul.mubr.msk.f32.gmra.mrb[16].mxu1 %vm487_vm4, %v15199_v40 }
 0x2c6   :  { %1614 = vmatprep.mubr.f32.mxu0 %v14726_v47  ;;  %11361 = vmatprep.mubr.msk.f32.mxu1 %vm204_vm0, %v1688_v45 }
 0x2c9   :  { %10760 = vmatmul.mubr.msk.f32.vlgmr.msra.gmra.mrb[18].mxu0 %vm487_vm4, %v15176_v31  ;;  %11362 = vmatmul.mubr.msk.f32.vlgmr.msra.gmra.mrb[24].mxu1 %vm204_vm0, %v1689_v55  ;;  %v2213_v55 = vld [vmem:[#allocation5 + $0xe8] sm:$0xff] }
 0x2ca   :  { %1620 = vmatprep.mubr.f32.mxu0 %v14726_v47  ;;  %11364 = vmatprep.mubr.msk.f32.mxu1 %vm204_vm0, %v1690_v56  ;;  %v2333_v56 = vld [vmem:[#allocation7 + $0x328] sm:$0xff] }
 0x2cb   :  { %11579 = vmatpush1.bf16.msra.mxu0 %v11578_v57  ;;  %11589 = vmatpush1.bf16.msra.mxu1 %v11588_v58  ;;  %v2339_v57 = vld [vmem:[#allocation7 + $0x358] sm:$0xff] }
 0x2cc   :  { %11582 = vmatprep.subr.msk.bf16.mxu0 %vm14992_vm3, %v11580_v60  ;;  %11592 = vmatprep.subr.msk.bf16.mxu1 %vm14992_vm3, %v11590_v61  ;;  %v11638_v58 = vpack.c.bf16 %v2339_v57, %v2333_v56  ;;  %v2338_v60 = vld [vmem:[#allocation7 + $0x350] sm:$0xff]  ;;  %v2345_v61 = vld [vmem:[#allocation7 + $0x388] sm:$0xff] }
 0x2cd   :  { %10761 = vmatmul.mubr.msk.f32.gmra.mrb[20].mxu0 %vm487_vm4, %v15174_v29  ;;  %11365 = vmatmul.mubr.msk.f32.gmra.mrb[26].mxu1 %vm204_vm0, %v1691_v1  ;;  %v11640_v0 = vpack.c.bf16 %v2338_v60, %v2332_v59 }
 0x2ce   :  { %1626 = vmatprep.mubr.f32.mxu0 %v14726_v47  ;;  %11367 = vmatprep.mubr.msk.f32.mxu1 %vm204_vm0, %v1692_v2  ;;  %v11642_v2 = vpack.c.bf16 %v2351_v62, %v2345_v61 }
 0x2cf   :  { %11585 = vmatpush1.bf16.msk.msra.mxu0 %vm14992_vm3, %v11583_v4  ;;  %11595 = vmatpush1.bf16.msk.msra.mxu1 %vm14992_vm3, %v11593_v6  ;;  %v2344_v4 = vld [vmem:[#allocation7 + $0x380] sm:$0xff]  ;;  %v2350_v6 = vld [vmem:[#allocation7 + $0x3b0] sm:$0xf] }
 0x2d0   :  { %11607 = vmatprep.subr.bf16.mxu1 %v14962_v3  ;;  %11597 = vmatprep.subr.bf16.mxu0 %v11596_v14  ;;  %v11645_v9 = vpack.c.bf16 %v2350_v6, %v2344_v4 }
 0x2d1   :  { %10762 = vmatmul.mubr.msk.f32.gmra.mrb[22].mxu0 %vm487_vm4, %v15187_v38  ;;  %11368 = vmatmul.mubr.msk.f32.gmra.mrb[28].mxu1 %vm204_vm0, %v1693_v7  ;;  %v2343_v38 = vld [vmem:[#allocation7 + $0x378] sm:$0xff] }
 0x2d2   :  { %1632 = vmatprep.mubr.f32.mxu0 %v14726_v47  ;;  %2033 = vmatprep.mubr.f32.mxu1 %v14726_v47  ;;  %v11632_v48 = vpack.c.bf16 %v2349_v39, %v2343_v38  ;;  %v3332_v38 = vld [vmem:[#allocation10 + $0xd8] sm:$0xff] }
 0x2d3   :  { %v3336_v39 = vld [vmem:[#allocation10 + $0xf8] sm:$0xff] }
 0x2d5   :  { %10763 = vmatmul.mubr.msk.f32.gmra.mrb[24].mxu0 %vm487_vm4, %v15184_v36  ;;  %v2330_v36 = vld [vmem:[#allocation7 + $0x310] sm:$0xff] }
 0x2d6   :  { %1638 = vmatprep.mubr.f32.mxu0 %v14726_v47  ;;  %v11630_v44 = vpack.c.bf16 %v2336_v37, %v2330_v36 }
 0x2d9   :  { %10764 = vmatmul.mubr.msk.f32.gmra.mrb[26].mxu0 %vm487_vm4, %v15203_v41  ;;  %v2210_v41 = vld [vmem:[#allocation5 + $0xd0] sm:$0xff] }
 0x2da   :  { %1644 = vmatprep.mubr.f32.mxu0 %v14726_v47 }
 0x2dd   :  { %10765 = vmatmul.mubr.msk.f32.gmra.mrb[28].mxu0 %vm487_vm4, %v15199_v40  ;;  %v2209_v40 = vld [vmem:[#allocation5 + $0xc8] sm:$0xff] }
 0x2de   :  { %1932 = vmatprep.mubr.f32.mxu0 %v14726_v47 }
 0x39c   :  { %v15266_v19 = vpop.f32.mrb[24].mxu1 }
 0x39d   :  { %v15268_v23 = vpop.f32.mrb[25].mxu1 }
 0x39e   :  { %10774 = vmatmul.mubr.msk.f32.vlgmr.msra.gmra.mrb[6].mxu0 %vm487_vm4, %v15268_v23  ;;  %10782 = vmatmul.mubr.msk.f32.vlgmr.msra.gmra.mrb[6].mxu1 %vm487_vm4, %v15268_v23 }
 0x39f   :  { %1938 = vmatprep.mubr.f32.mxu0 %v14726_v47  ;;  %2039 = vmatprep.mubr.f32.mxu1 %v14726_v47 }
 0x3a0   :  { %v15276_v28 = vpop.f32.mrb[26].mxu1  ;;  %11609 = vmatpush3.bf16.msra.mxu1 %v14962_v3  ;;  %11599 = vmatpush1.bf16.msra.mxu0 %v11598_v21  ;;  %v3312_v21 = vld [vmem:[#allocation10 + $0x38] sm:$0xff] }
 0x3a1   :  { %v15279_v29 = vpop.f32.mrb[27].mxu1  ;;  %11611 = vmatprep.subr.bf16.mxu1 %v14964_v5  ;;  %11602 = vmatprep.subr.msk.bf16.mxu0 %vm14992_vm3, %v11600_v8 }
 0x3a2   :  { %10775 = vmatmul.mubr.msk.f32.gmra.mrb[8].mxu0 %vm487_vm4, %v15266_v19  ;;  %10783 = vmatmul.mubr.msk.f32.gmra.mrb[8].mxu1 %vm487_vm4, %v15266_v19 }
 0x3a3   :  { %1944 = vmatprep.mubr.f32.mxu0 %v14726_v47  ;;  %2045 = vmatprep.mubr.f32.mxu1 %v14726_v47 }
 0x3a4   :  { %11613 = vmatpush3.bf16.msra.mxu1 %v14964_v5  ;;  %v15291_v3 = vpop.f32.mrb[28].mxu1  ;;  %11605 = vmatpush1.bf16.msk.msra.mxu0 %vm14992_vm3, %v11603_v20  ;;  %v11628_v5 = vpack.c.bf16 %v2337_v32, %v2331_v26  ;;  %v11726_v20 = vpack.c.bf16 %v3314_v24, %v3311_v22  ;;  %v3327_v26 = vld [vmem:[#allocation10 + $0xb0] sm:$0xff] }
 0x3a5   :  { %v15295_v31 = vpop.f32.mrb[29].mxu1  ;;  %11615 = vmatprep.subr.bf16.mxu1 %v14971_v10  ;;  %11619 = vmatprep.subr.bf16.mxu0 %v11618_v30  ;;  %v3317_v30 = vld [vmem:[#allocation10 + $0x60] sm:$0xff] }
 0x3a6   :  { %10776 = vmatmul.mubr.msk.f32.gmra.mrb[10].mxu0 %vm487_vm4, %v15279_v29  ;;  %10784 = vmatmul.mubr.msk.f32.gmra.mrb[10].mxu1 %vm487_vm4, %v15279_v29 }
 0x3a7   :  { %1950 = vmatprep.mubr.f32.mxu0 %v14726_v47  ;;  %2051 = vmatprep.mubr.f32.mxu1 %v14726_v47 }
 0x3a8   :  { %11617 = vmatpush3.bf16.msra.mxu1 %v14971_v10  ;;  %v2208_v10 = vld [vmem:[#allocation5 + $0xc0] sm:$0xff] }
 0x3a9   :  { %11382 = vmatprep.subr.mxu1 %v14979_v11 }
 0x3aa   :  { %10777 = vmatmul.mubr.msk.f32.gmra.mrb[12].mxu0 %vm487_vm4, %v15276_v28  ;;  %10785 = vmatmul.mubr.msk.f32.gmra.mrb[12].mxu1 %vm487_vm4, %v15276_v28 }
 0x3ab   :  { %1956 = vmatprep.mubr.f32.mxu0 %v14726_v47  ;;  %2057 = vmatprep.mubr.f32.mxu1 %v14726_v47 }
 0x3ac   :  { %11383 = vmatpush3.msra.mxu1 %v14979_v11  ;;  %v2347_v11 = vld [vmem:[#allocation7 + $0x398] sm:$0xf] }
 0x3ad   :  { %11629 = vmatprep.subr.bf16.mxu1 %v11628_v5  ;;  %v11622_v45 = vpack.c.bf16 %v2347_v11, %v2341_v34  ;;  %v3333_v34 = vld [vmem:[#allocation10 + $0xe0] sm:$0xff] }
 0x3ae   :  { %10778 = vmatmul.mubr.msk.f32.gmra.mrb[14].mxu0 %vm487_vm4, %v15295_v31  ;;  %10786 = vmatmul.mubr.msk.f32.gmra.mrb[14].mxu1 %vm487_vm4, %v15295_v31  ;;  %v11736_v37 = vpack.c.bf16 %v3333_v34, %v3330_v25  ;;  %v3329_v11 = vld [vmem:[#allocation10 + $0xc0] sm:$0xff] }
 0x3af   :  { %1962 = vmatprep.mubr.f32.mxu0 %v14726_v47  ;;  %2063 = vmatprep.mubr.f32.mxu1 %v14726_v47 }
 0x3b2   :  { %10779 = vmatmul.mubr.msk.f32.gmra.mrb[16].mxu0 %vm487_vm4, %v15291_v3  ;;  %10787 = vmatmul.mubr.msk.f32.gmra.mrb[16].mxu1 %vm487_vm4, %v15291_v3 }
 0x3b3   :  { %2134 = vmatprep.mubr.f32.mxu0 %v14726_v47  ;;  %11384 = vmatprep.mubr.msk.f32.mxu1 %vm204_vm0, %v2208_v10  ;;  %v3323_v10 = vld [vmem:[#allocation10 + $0x90] sm:$0xff] }
 0x3b4   :  { %v11734_v36 = vpack.c.bf16 %v3326_v33, %v3323_v10 }
 0x3b6   :  { %10790 = vmatmul.mubr.msk.f32.vlgmr.msra.gmra.mrb[18].mxu0 %vm487_vm4, %v15268_v23  ;;  %11385 = vmatmul.mubr.msk.f32.vlgmr.msra.gmra.mrb[30].mxu1 %vm204_vm0, %v2209_v40  ;;  %v3315_v23 = vld [vmem:[#allocation10 + $0x50] sm:$0xff] }
 0x3b7   :  { %2140 = vmatprep.mubr.f32.mxu0 %v14726_v47  ;;  %11387 = vmatprep.mubr.msk.f32.mxu1 %vm204_vm0, %v2210_v41  ;;  %v11724_v13 = vpack.c.bf16 %v3315_v23, %v3312_v21  ;;  %v3339_v40 = vld [vmem:[#allocation10 + $0x110] sm:$0xff]  ;;  %v11738_v41 = vpack.c.bf16 %v3332_v38, %v3329_v11 }
 0x3b8   :  { %11621 = vmatpush1.bf16.msra.mxu0 %v11620_v42  ;;  %11631 = vmatpush1.bf16.msra.mxu1 %v11630_v44  ;;  %v11740_v42 = vpack.c.bf16 %v3339_v40, %v3336_v39  ;;  %v3338_v44 = vld [vmem:[#allocation10 + $0x108] sm:$0xff] }
 0x3b9   :  { %11624 = vmatprep.subr.msk.bf16.mxu0 %vm14992_vm3, %v11622_v45  ;;  %11634 = vmatprep.subr.msk.bf16.mxu1 %vm14992_vm3, %v11632_v48  ;;  %v11742_v45 = vpack.c.bf16 %v3338_v44, %v3335_v43 }
 0x3ba   :  { %10791 = vmatmul.mubr.msk.f32.gmra.mrb[20].mxu0 %vm487_vm4, %v15266_v19  ;;  %11388 = vmatmul.mubr.msk.f32.gmra.mrb[32].mxu1 %vm204_vm0, %v2211_v51  ;;  %v3308_v19 = vld [vmem:[#allocation10 + $0x18] sm:$0xff] }
 0x3bb   :  { %2146 = vmatprep.mubr.f32.mxu0 %v14726_v47  ;;  %11390 = vmatprep.mubr.msk.f32.mxu1 %vm204_vm0, %v2212_v52  ;;  %v11722_v8 = vpack.c.bf16 %v3308_v19, %v3305_v17 }
 0x3bc   :  { %11627 = vmatpush1.bf16.msk.msra.mxu0 %vm14992_vm3, %v11625_v53  ;;  %11637 = vmatpush1.bf16.msk.msra.mxu1 %vm14992_vm3, %v11635_v54 }
 0x3bd   :  { %11639 = vmatprep.subr.bf16.mxu0 %v11638_v58 }
 0x3be   :  { %10792 = vmatmul.mubr.msk.f32.gmra.mrb[22].mxu0 %vm487_vm4, %v15279_v29  ;;  %11391 = vmatmul.mubr.msk.f32.gmra.mrb[34].mxu1 %vm204_vm0, %v2213_v55 }
 0x3bf   :  { %2152 = vmatprep.mubr.f32.mxu0 %v14726_v47  ;;  %2553 = vmatprep.mubr.f32.mxu1 %v14726_v47 }
 0x3c2   :  { %10793 = vmatmul.mubr.msk.f32.gmra.mrb[24].mxu0 %vm487_vm4, %v15276_v28  ;;  %v3321_v28 = vld [vmem:[#allocation10 + $0x80] sm:$0xff] }
 0x3c3   :  { %2158 = vmatprep.mubr.f32.mxu0 %v14726_v47  ;;  %v11728_v29 = vpack.c.bf16 %v3321_v28, %v3318_v27 }
 0x3c6   :  { %10794 = vmatmul.mubr.msk.f32.gmra.mrb[26].mxu0 %vm487_vm4, %v15295_v31  ;;  %v3324_v31 = vld [vmem:[#allocation10 + $0x98] sm:$0xff] }
 0x3c7   :  { %2164 = vmatprep.mubr.f32.mxu0 %v14726_v47  ;;  %v11732_v5 = vpack.c.bf16 %v3327_v26, %v3324_v31 }
 0x3ca   :  { %10795 = vmatmul.mubr.msk.f32.gmra.mrb[28].mxu0 %vm487_vm4, %v15291_v3  ;;  %v3320_v3 = vld [vmem:[#allocation10 + $0x78] sm:$0xff] }
 0x3cb   :  { %2452 = vmatprep.mubr.f32.mxu0 %v14726_v47  ;;  %v11730_v32 = vpack.c.bf16 %v3320_v3, %v3317_v30 }
 0x489   :  { %v11386_v63 = vpop.f32.mrb[30].mxu1 }
 0x48a   :  { %v2298_v1 = vpop.f32.mrb[31].mxu1 }
 0x48b   :  { %10804 = vmatmul.mubr.msk.f32.vlgmr.msra.gmra.mrb[6].mxu0 %vm487_vm4, %v2298_v1  ;;  %10812 = vmatmul.mubr.msk.f32.vlgmr.msra.gmra.mrb[6].mxu1 %vm487_vm4, %v2298_v1 }
 0x48c   :  { %2458 = vmatprep.mubr.f32.mxu0 %v14726_v47  ;;  %2559 = vmatprep.mubr.f32.mxu1 %v14726_v47 }
 0x48d   :  { %v11389_v7 = vpop.f32.mrb[32].mxu1  ;;  %11641 = vmatpush1.bf16.msra.mxu0 %v11640_v0 }
 0x48e   :  { %v2308_v12 = vpop.f32.mrb[33].mxu1  ;;  %11644 = vmatprep.subr.msk.bf16.mxu0 %vm14992_vm3, %v11642_v2 }
 0x48f   :  { %10805 = vmatmul.mubr.msk.f32.gmra.mrb[8].mxu0 %vm487_vm4, %v11386_v63  ;;  %10813 = vmatmul.mubr.msk.f32.gmra.mrb[8].mxu1 %vm487_vm4, %v11386_v63 }
 0x490   :  { %2464 = vmatprep.mubr.f32.mxu0 %v14726_v47  ;;  %2565 = vmatprep.mubr.f32.mxu1 %v14726_v47 }
 0x491   :  { %v11392_v14 = vpop.f32.mrb[34].mxu1  ;;  %11647 = vmatpush1.bf16.msk.msra.mxu0 %vm14992_vm3, %v11645_v9 }
 0x492   :  { %v2318_v15 = vpop.f32.mrb[35].mxu1  ;;  %11721 = vmatprep.subr.bf16.mxu0 %v11720_v18 }
 0x493   :  { %10806 = vmatmul.mubr.msk.f32.gmra.mrb[10].mxu0 %vm487_vm4, %v2308_v12  ;;  %10814 = vmatmul.mubr.msk.f32.gmra.mrb[10].mxu1 %vm487_vm4, %v2308_v12 }
 0x494   :  { %2470 = vmatprep.mubr.f32.mxu0 %v14726_v47  ;;  %2571 = vmatprep.mubr.f32.mxu1 %v14726_v47 }
 0x497   :  { %10807 = vmatmul.mubr.msk.f32.gmra.mrb[12].mxu0 %vm487_vm4, %v11389_v7  ;;  %10815 = vmatmul.mubr.msk.f32.gmra.mrb[12].mxu1 %vm487_vm4, %v11389_v7 }
 0x498   :  { %2476 = vmatprep.mubr.f32.mxu0 %v14726_v47  ;;  %2577 = vmatprep.mubr.f32.mxu1 %v14726_v47 }
 0x49b   :  { %10808 = vmatmul.mubr.msk.f32.gmra.mrb[14].mxu0 %vm487_vm4, %v2318_v15  ;;  %10816 = vmatmul.mubr.msk.f32.gmra.mrb[14].mxu1 %vm487_vm4, %v2318_v15 }
 0x49c   :  { %2482 = vmatprep.mubr.f32.mxu0 %v14726_v47  ;;  %2583 = vmatprep.mubr.f32.mxu1 %v14726_v47 }
 0x49f   :  { %10809 = vmatmul.mubr.msk.f32.gmra.mrb[16].mxu0 %vm487_vm4, %v11392_v14  ;;  %10817 = vmatmul.mubr.msk.f32.gmra.mrb[16].mxu1 %vm487_vm4, %v11392_v14 }
 0x4a0   :  { %2654 = vmatprep.mubr.f32.mxu0 %v14726_v47  ;;  %2840 = vmatprep.mubr.f32.mxu1 %v14726_v47 }
 0x4a3   :  { %10820 = vmatmul.mubr.msk.f32.vlgmr.msra.gmra.mrb[18].mxu0 %vm487_vm4, %v2298_v1 }
 0x4a4   :  { %2660 = vmatprep.mubr.f32.mxu0 %v14726_v47  ;;  %11723 = vmatpush1.bf16.msra.mxu0 %v11722_v8 }
 0x4a5   :  { %11725 = vmatprep.subr.bf16.mxu0 %v11724_v13 }
 0x4a7   :  { %10821 = vmatmul.mubr.msk.f32.gmra.mrb[20].mxu0 %vm487_vm4, %v11386_v63 }
 0x4a8   :  { %2666 = vmatprep.mubr.f32.mxu0 %v14726_v47  ;;  %11727 = vmatpush1.bf16.msra.mxu0 %v11726_v20 }
 0x4a9   :  { %11729 = vmatprep.subr.bf16.mxu0 %v11728_v29 }
 0x4ab   :  { %10822 = vmatmul.mubr.msk.f32.gmra.mrb[22].mxu0 %vm487_vm4, %v2308_v12 }
 0x4ac   :  { %2672 = vmatprep.mubr.f32.mxu0 %v14726_v47  ;;  %11731 = vmatpush1.bf16.msra.mxu0 %v11730_v32 }
 0x4ad   :  { %11733 = vmatprep.subr.bf16.mxu0 %v11732_v5 }
 0x4af   :  { %10823 = vmatmul.mubr.msk.f32.gmra.mrb[24].mxu0 %vm487_vm4, %v11389_v7 }
 0x4b0   :  { %2678 = vmatprep.mubr.f32.mxu0 %v14726_v47  ;;  %11735 = vmatpush1.bf16.msra.mxu0 %v11734_v36 }
 0x4b1   :  { %11737 = vmatprep.subr.bf16.mxu0 %v11736_v37 }
 0x4b3   :  { %10824 = vmatmul.mubr.msk.f32.gmra.mrb[26].mxu0 %vm487_vm4, %v2318_v15 }
 0x4b4   :  { %2684 = vmatprep.mubr.f32.mxu0 %v14726_v47  ;;  %11739 = vmatpush1.bf16.msra.mxu0 %v11738_v41 }
 0x4b5   :  { %11741 = vmatprep.subr.bf16.mxu0 %v11740_v42 }
 0x4b7   :  { %10825 = vmatmul.mubr.msk.f32.gmra.mrb[28].mxu0 %vm487_vm4, %v11392_v14 }
 0x4b8   :  { %11743 = vmatpush1.bf16.msra.mxu0 %v11742_v45  ;;  %v2763_v45 = vld [vmem:[#allocation8] sm:$0xff] }
 0x55e   :  { %v2454_v46 = vpop.f32.mrb[6].mxu0  ;;  %v2555_v48 = vpop.f32.mrb[6].mxu1 }
 0x55f   :  { %v2456_v49 = vpop.f32.mrb[7].mxu0  ;;  %v2557_v50 = vpop.f32.mrb[7].mxu1  ;;  %v2727_v53 = vmax.f32 %v2454_v46, 0.0  ;;  %v2729_v54 = vmax.f32 %v2555_v48, 0.0 }
 0x560   :  { %v2728_v59 = vmax.f32 %v2456_v49, 0.0  ;;  %v2730_v60 = vmax.f32 %v2557_v50, 0.0 }
 0x562   :  { %v2460_v51 = vpop.f32.mrb[8].mxu0  ;;  %v2561_v52 = vpop.f32.mrb[8].mxu1 }
 0x563   :  { %v2733_v55 = vmax.f32 %v2460_v51, 0.0  ;;  %v2735_v56 = vmax.f32 %v2561_v52, 0.0  ;;  %v2462_v57 = vpop.f32.mrb[9].mxu0  ;;  %v2563_v58 = vpop.f32.mrb[9].mxu1 }
 0x564   :  { %v2734_v61 = vmax.f32 %v2462_v57, 0.0  ;;  %v2736_v62 = vmax.f32 %v2563_v58, 0.0  ;;  %v2765_v58 = vld [vmem:[#allocation8 + $0x10] sm:$0xff] }
 0x565   :  { %v15396_v63 = vpack.c.bf16 %v2733_v55, %v2727_v53  ;;  %v15398_v0 = vpack.c.bf16 %v2735_v56, %v2729_v54  ;;  %v2764_v54 = vld [vmem:[#allocation8 + $0x8] sm:$0xff] }
 0x566   :  { %v15400_v1 = vpack.c.bf16 %v2734_v61, %v2728_v59  ;;  %v15402_v2 = vpack.c.bf16 %v2736_v62, %v2730_v60  ;;  %v2466_v4 = vpop.f32.mrb[10].mxu0  ;;  %v2567_v6 = vpop.f32.mrb[10].mxu1 }
 0x567   :  { %v2468_v7 = vpop.f32.mrb[11].mxu0  ;;  %v2569_v9 = vpop.f32.mrb[11].mxu1  ;;  %v2739_v15 = vmax.f32 %v2466_v4, 0.0  ;;  %v2741_v35 = vmax.f32 %v2567_v6, 0.0 }
 0x568   :  { %11649 = vmatprep.subr.bf16.mxu1 %v15400_v1  ;;  %v2740_v21 = vmax.f32 %v2468_v7, 0.0  ;;  %v2742_v23 = vmax.f32 %v2569_v9, 0.0 }
 0x569   :  { %11651 = vmatpush1.bf16.msra.mxu1 %v15396_v63 }
 0x56a   :  { %v2472_v12 = vpop.f32.mrb[12].mxu0  ;;  %v2573_v14 = vpop.f32.mrb[12].mxu1 }
 0x56b   :  { %v2745_v16 = vmax.f32 %v2472_v12, 0.0  ;;  %v2747_v17 = vmax.f32 %v2573_v14, 0.0  ;;  %v2474_v18 = vpop.f32.mrb[13].mxu0  ;;  %v2575_v19 = vpop.f32.mrb[13].mxu1 }
 0x56c   :  { %v2746_v8 = vmax.f32 %v2474_v18, 0.0  ;;  %v2748_v13 = vmax.f32 %v2575_v19, 0.0 }
 0x56d   :  { %v15406_v22 = vpack.c.bf16 %v2745_v16, %v2739_v15  ;;  %v15408_v24 = vpack.c.bf16 %v2747_v17, %v2741_v35 }
 0x56e   :  { %v15410_v27 = vpack.c.bf16 %v2746_v8, %v2740_v21  ;;  %v15412_v28 = vpack.c.bf16 %v2748_v13, %v2742_v23  ;;  %v2478_v20 = vpop.f32.mrb[14].mxu0  ;;  %v2579_v29 = vpop.f32.mrb[14].mxu1  ;;  %v3028_v8 = vld [vmem:[#allocation8 + $0x28] sm:$0xff] }
 0x56f   :  { %v2480_v30 = vpop.f32.mrb[15].mxu0  ;;  %v2581_v3 = vpop.f32.mrb[15].mxu1  ;;  %v2751_v32 = vmax.f32 %v2478_v20, 0.0  ;;  %v2753_v5 = vmax.f32 %v2579_v29, 0.0  ;;  %v3351_v20 = vld [vmem:[#allocation10 + $0x170] sm:$0xff] }
 0x570   :  { %11653 = vmatprep.subr.bf16.mxu1 %v15410_v27  ;;  %v2752_v36 = vmax.f32 %v2480_v30, 0.0  ;;  %v2754_v37 = vmax.f32 %v2581_v3, 0.0  ;;  %v3347_v30 = vld [vmem:[#allocation10 + $0x150] sm:$0xff]  ;;  %v3350_v3 = vld [vmem:[#allocation10 + $0x168] sm:$0xff] }
 0x571   :  { %11655 = vmatpush1.bf16.msra.mxu1 %v15406_v22 }
 0x572   :  { %v2484_v31 = vpop.f32.mrb[16].mxu0  ;;  %v2585_v26 = vpop.f32.mrb[16].mxu1 }
 0x573   :  { %v2757_v10 = vmax.f32 %v2484_v31, 0.0  ;;  %v2759_v33 = vmax.f32 %v2585_v26, 0.0  ;;  %v2486_v25 = vpop.f32.mrb[17].mxu0  ;;  %v2587_v34 = vpop.f32.mrb[17].mxu1  ;;  %v11750_v31 = vpack.c.bf16 %v3350_v3, %v3347_v30  ;;  %v3354_v26 = vld [vmem:[#allocation10 + $0x188] sm:$0xff]  ;;  %v3384_v30 = vld [vmem:[#allocation10 + $0x278] sm:$0xff] }
 0x574   :  { %v2758_v11 = vmax.f32 %v2486_v25, 0.0  ;;  %v2760_v38 = vmax.f32 %v2587_v34, 0.0  ;;  %v3353_v25 = vld [vmem:[#allocation10 + $0x180] sm:$0xff]  ;;  %v3356_v34 = vld [vmem:[#allocation10 + $0x198] sm:$0xff]  ;;  %v3387_v3 = vld [vmem:[#allocation10 + $0x290] sm:$0xff] }
 0x575   :  { %v15416_v39 = vpack.c.bf16 %v2757_v10, %v2751_v32  ;;  %v15418_v40 = vpack.c.bf16 %v2759_v33, %v2753_v5  ;;  %v3357_v32 = vld [vmem:[#allocation10 + $0x1a0] sm:$0xff]  ;;  %v3355_v5 = vld [vmem:[#allocation10 + $0x190] sm:$0xff]  ;;  %v3358_v33 = vld [vmem:[#allocation10 + $0x1a8] sm:$0xff] }
 0x576   :  { %v15420_v41 = vpack.c.bf16 %v2758_v11, %v2752_v36  ;;  %v15422_v42 = vpack.c.bf16 %v2760_v38, %v2754_v37  ;;  %v2656_v43 = vpop.f32.mrb[18].mxu0  ;;  %v11752_v10 = vpack.c.bf16 %v3357_v32, %v3354_v26  ;;  %v11912_v36 = vpack.c.bf16 %v3358_v33, %v3355_v5  ;;  %v3307_v11 = vld [vmem:[#allocation10 + $0x10] sm:$0xff]  ;;  %v3310_v38 = vld [vmem:[#allocation10 + $0x28] sm:$0xff]  ;;  %v3388_v32 = vld [vmem:[#allocation10 + $0x298] sm:$0xff] }
 0x577   :  { %v2658_v44 = vpop.f32.mrb[19].mxu0  ;;  %v2731_v48 = vmax.f32 %v2656_v43, 0.0  ;;  %v11754_v37 = vpack.c.bf16 %v3356_v34, %v3353_v25  ;;  %v11772_v26 = vpack.c.bf16 %v3387_v3, %v3384_v30  ;;  %v3383_v5 = vld [vmem:[#allocation10 + $0x270] sm:$0xff]  ;;  %v3337_v34 = vld [vmem:[#allocation10 + $0x100] sm:$0xff]  ;;  %v3406_v30 = vld [vmem:[#allocation10 + $0x328] sm:$0xff] }
 0x578   :  { %11657 = vmatprep.subr.bf16.mxu1 %v15420_v41  ;;  %v2732_v51 = vmax.f32 %v2658_v44, 0.0  ;;  %v3364_v44 = vld [vmem:[#allocation10 + $0x1d8] sm:$0xff] }
 0x579   :  { %11659 = vmatpush1.bf16.msra.mxu1 %v15416_v39  ;;  %v3408_v3 = vld [vmem:[#allocation10 + $0x338] sm:$0xff] }
 0x57a   :  { %v2662_v46 = vpop.f32.mrb[20].mxu0  ;;  %11661 = vmatprep.subr.bf16.mxu1 %v15402_v2 }
 0x57b   :  { %v2737_v49 = vmax.f32 %v2662_v46, 0.0  ;;  %v2664_v50 = vpop.f32.mrb[21].mxu0  ;;  %v3362_v46 = vld [vmem:[#allocation10 + $0x1c8] sm:$0xff] }
 0x57c   :  { %v2738_v52 = vmax.f32 %v2664_v50, 0.0  ;;  %10826 = vmatmul.mubr.msk.f32.vlgmr.msra.gmra.mrb[36].mxu1 %vm2766_vm5, %v2763_v45  ;;  %v3313_v50 = vld [vmem:[#allocation10 + $0x40] sm:$0xff] }
 0x57d   :  { %v15428_v53 = vpack.c.bf16 %v2737_v49, %v2731_v48  ;;  %11663 = vmatpush1.bf16.msra.mxu1 %v15398_v0  ;;  %2846 = vmatprep.mubr.f32.mxu1 %v14726_v47 }
 0x57e   :  { %v15432_v55 = vpack.c.bf16 %v2738_v52, %v2732_v51  ;;  %v2668_v56 = vpop.f32.mrb[22].mxu0  ;;  %11665 = vmatprep.subr.bf16.mxu1 %v15412_v28  ;;  %v3316_v51 = vld [vmem:[#allocation10 + $0x58] sm:$0xff] }
 0x57f   :  { %v2670_v57 = vpop.f32.mrb[23].mxu0  ;;  %v2743_v60 = vmax.f32 %v2668_v56, 0.0  ;;  %v11918_v52 = vpack.c.bf16 %v3316_v51, %v3313_v50  ;;  %v3396_v50 = vld [vmem:[#allocation10 + $0x2d8] sm:$0xff]  ;;  %v3399_v51 = vld [vmem:[#allocation10 + $0x2f0] sm:$0xff] }
 0x580   :  { %10827 = vmatmul.mubr.msk.f32.gmra.mrb[38].mxu1 %vm2766_vm5, %v2764_v54  ;;  %v2744_v4 = vmax.f32 %v2670_v57, 0.0  ;;  %v3370_v57 = vld [vmem:[#allocation10 + $0x208] sm:$0xff] }
 0x581   :  { %11667 = vmatpush1.bf16.msra.mxu1 %v15408_v24  ;;  %2852 = vmatprep.mubr.f32.mxu1 %v14726_v47 }
 0x582   :  { %v2674_v59 = vpop.f32.mrb[24].mxu0  ;;  %11669 = vmatprep.subr.bf16.mxu1 %v15422_v42 }
 0x583   :  { %v2749_v61 = vmax.f32 %v2674_v59, 0.0  ;;  %v2676_v62 = vpop.f32.mrb[25].mxu0  ;;  %v3368_v59 = vld [vmem:[#allocation10 + $0x1f8] sm:$0xff] }
 0x584   :  { %v2750_v6 = vmax.f32 %v2676_v62, 0.0  ;;  %10828 = vmatmul.mubr.msk.f32.gmra.mrb[40].mxu1 %vm2766_vm5, %v2765_v58  ;;  %v3319_v62 = vld [vmem:[#allocation10 + $0x70] sm:$0xff] }
 0x585   :  { %v11678_v7 = vpack.c.bf16 %v2749_v61, %v2743_v60  ;;  %11671 = vmatpush1.bf16.msra.mxu1 %v15418_v40  ;;  %2923 = vmatprep.mubr.f32.mxu1 %v14726_v47 }
 0x586   :  { %v11676_v9 = vpack.c.bf16 %v2750_v6, %v2744_v4  ;;  %v2680_v12 = vpop.f32.mrb[26].mxu0  ;;  %11673 = vmatprep.subr.bf16.mxu1 %v15432_v55  ;;  %v3322_v4 = vld [vmem:[#allocation10 + $0x88] sm:$0xff] }
 0x587   :  { %v2682_v14 = vpop.f32.mrb[27].mxu0  ;;  %v2755_v35 = vmax.f32 %v2680_v12, 0.0  ;;  %v11922_v6 = vpack.c.bf16 %v3322_v4, %v3319_v62  ;;  %v3373_v12 = vld [vmem:[#allocation10 + $0x220] sm:$0xff]  ;;  %v3402_v62 = vld [vmem:[#allocation10 + $0x308] sm:$0xff] }
 0x588   :  { %10829 = vmatmul.mubr.msk.f32.vlgmr.msra.gmra.mrb[42].mxu1 %vm2766_vm5, %v2763_v45  ;;  %v2756_v18 = vmax.f32 %v2682_v14, 0.0  ;;  %v3405_v4 = vld [vmem:[#allocation10 + $0x320] sm:$0xff] }
 0x589   :  { %11675 = vmatpush1.bf16.msra.mxu1 %v15428_v53  ;;  %2929 = vmatprep.mubr.f32.mxu1 %v14726_v47 }
 0x58a   :  { %v2686_v15 = vpop.f32.mrb[28].mxu0  ;;  %11677 = vmatprep.subr.bf16.mxu1 %v11676_v9 }
 0x58b   :  { %v2761_v16 = vmax.f32 %v2686_v15, 0.0  ;;  %v2688_v17 = vpop.f32.mrb[29].mxu0  ;;  %v3376_v15 = vld [vmem:[#allocation10 + $0x238] sm:$0xff] }
 0x58c   :  { %v2762_v19 = vmax.f32 %v2688_v17, 0.0  ;;  %10830 = vmatmul.mubr.msk.f32.gmra.mrb[44].mxu1 %vm2766_vm5, %v2764_v54  ;;  %v11924_v17 = vpack.c.bf16 %v3376_v15, %v3373_v12 }
 0x58d   :  { %v11682_v21 = vpack.c.bf16 %v2761_v16, %v2755_v35  ;;  %11679 = vmatpush1.bf16.msra.mxu1 %v11678_v7  ;;  %2935 = vmatprep.mubr.f32.mxu1 %v14726_v47  ;;  %v3371_v35 = vld [vmem:[#allocation10 + $0x210] sm:$0xff]  ;;  %v3374_v16 = vld [vmem:[#allocation10 + $0x228] sm:$0xff] }
 0x58e   :  { %v11680_v23 = vpack.c.bf16 %v2762_v19, %v2756_v18  ;;  %v11766_v18 = vpack.c.bf16 %v3374_v16, %v3371_v35  ;;  %v3325_v19 = vld [vmem:[#allocation10 + $0xa0] sm:$0xff] }
 0x590   :  { %10831 = vmatmul.mubr.msk.f32.gmra.mrb[46].mxu1 %vm2766_vm5, %v2765_v58  ;;  %11681 = vmatprep.subr.bf16.mxu1 %v11680_v23 }
 0x591   :  { %11683 = vmatpush1.bf16.msra.mxu1 %v11682_v21  ;;  %3006 = vmatprep.mubr.f32.mxu1 %v14726_v47 }
 0x592   :  { %11685 = vmatprep.subr.bf16.mxu1 %v15400_v1  ;;  %v3026_v1 = vld [vmem:[#allocation8 + $0x18] sm:$0xff] }
 0x594   :  { %10832 = vmatmul.mubr.msk.f32.vlgmr.msra.gmra.mrb[48].mxu1 %vm2766_vm5, %v2763_v45  ;;  %v3359_v45 = vld [vmem:[#allocation10 + $0x1b0] sm:$0xff] }
 0x595   :  { %11687 = vmatpush1.bf16.msra.mxu1 %v15396_v63  ;;  %3012 = vmatprep.mubr.f32.mxu1 %v14726_v47  ;;  %v3027_v63 = vld [vmem:[#allocation8 + $0x20] sm:$0xff]  ;;  %v11758_v49 = vpack.c.bf16 %v3362_v46, %v3359_v45 }
 0x596   :  { %11689 = vmatprep.subr.bf16.mxu1 %v15410_v27  ;;  %v3343_v46 = vld [vmem:[#allocation10 + $0x130] sm:$0xff] }
 0x598   :  { %10833 = vmatmul.mubr.msk.f32.gmra.mrb[50].mxu1 %vm2766_vm5, %v2764_v54  ;;  %v3369_v54 = vld [vmem:[#allocation10 + $0x200] sm:$0xff] }
 0x599   :  { %11691 = vmatpush1.bf16.msra.mxu1 %v15406_v22  ;;  %3018 = vmatprep.mubr.f32.mxu1 %v14726_v47  ;;  %v3341_v22 = vld [vmem:[#allocation10 + $0x120] sm:$0xff] }
 0x59a   :  { %11693 = vmatprep.subr.bf16.mxu1 %v15420_v41  ;;  %v3363_v41 = vld [vmem:[#allocation10 + $0x1d0] sm:$0xff] }
 0x59c   :  { %10834 = vmatmul.mubr.msk.f32.gmra.mrb[52].mxu1 %vm2766_vm5, %v2765_v58  ;;  %v3365_v58 = vld [vmem:[#allocation10 + $0x1e0] sm:$0xff] }
 0x59d   :  { %11695 = vmatpush1.bf16.msra.mxu1 %v15416_v39  ;;  %3102 = vmatprep.mubr.f32.mxu1 %v14726_v47  ;;  %v11914_v39 = vpack.c.bf16 %v3310_v38, %v3307_v11  ;;  %v11762_v61 = vpack.c.bf16 %v3368_v59, %v3365_v58  ;;  %v3390_v11 = vld [vmem:[#allocation10 + $0x2a8] sm:$0xff]  ;;  %v3393_v38 = vld [vmem:[#allocation10 + $0x2c0] sm:$0xff] }
 0x59e   :  { %11697 = vmatprep.subr.bf16.mxu1 %v15402_v2  ;;  %v3345_v2 = vld [vmem:[#allocation10 + $0x140] sm:$0xff] }
 0x59f   :  { %v3349_v59 = vld [vmem:[#allocation10 + $0x160] sm:$0xff] }
 0x5a0   :  { %10835 = vmatmul.mubr.msk.f32.vlgmr.msra.gmra.mrb[54].mxu1 %vm2766_vm5, %v3026_v1 }
 0x5a1   :  { %11699 = vmatpush1.bf16.msra.mxu1 %v15398_v0  ;;  %3108 = vmatprep.mubr.f32.mxu1 %v14726_v47  ;;  %v3342_v0 = vld [vmem:[#allocation10 + $0x128] sm:$0xff] }
 0x5a2   :  { %11701 = vmatprep.subr.bf16.mxu1 %v15412_v28  ;;  %v11744_v13 = vpack.c.bf16 %v3345_v2, %v3342_v0  ;;  %v3348_v28 = vld [vmem:[#allocation10 + $0x158] sm:$0xff]  ;;  %v3382_v2 = vld [vmem:[#allocation10 + $0x268] sm:$0xff] }
 0x5a3   :  { %v11748_v29 = vpack.c.bf16 %v3351_v20, %v3348_v28  ;;  %v3331_v28 = vld [vmem:[#allocation10 + $0xd0] sm:$0xff]  ;;  %v3334_v20 = vld [vmem:[#allocation10 + $0xe8] sm:$0xff] }
 0x5a4   :  { %10836 = vmatmul.mubr.msk.f32.gmra.mrb[56].mxu1 %vm2766_vm5, %v3027_v63  ;;  %11745 = vmatprep.subr.bf16.mxu0 %v11744_v13  ;;  %v3377_v13 = vld [vmem:[#allocation10 + $0x240] sm:$0xff] }
 0x5a5   :  { %11703 = vmatpush1.bf16.msra.mxu1 %v15408_v24  ;;  %3114 = vmatprep.mubr.f32.mxu1 %v14726_v47  ;;  %v3344_v24 = vld [vmem:[#allocation10 + $0x138] sm:$0xff] }
 0x5a6   :  { %11705 = vmatprep.subr.bf16.mxu1 %v15422_v42  ;;  %v11746_v27 = vpack.c.bf16 %v3344_v24, %v3341_v22  ;;  %v3361_v42 = vld [vmem:[#allocation10 + $0x1c0] sm:$0xff]  ;;  %v3380_v22 = vld [vmem:[#allocation10 + $0x258] sm:$0xff] }
 0x5a7   :  { %v11916_v48 = vpack.c.bf16 %v3364_v44, %v3361_v42  ;;  %v3389_v42 = vld [vmem:[#allocation10 + $0x2a0] sm:$0xff] }
 0x5a8   :  { %10837 = vmatmul.mubr.msk.f32.gmra.mrb[58].mxu1 %vm2766_vm5, %v3028_v8  ;;  %11747 = vmatpush1.bf16.msra.mxu0 %v11746_v27  ;;  %v11770_v27 = vpack.c.bf16 %v3380_v22, %v3377_v13 }
 0x5a9   :  { %11707 = vmatpush1.bf16.msra.mxu1 %v15418_v40  ;;  %3185 = vmatprep.mubr.f32.mxu1 %v14726_v47  ;;  %v3360_v40 = vld [vmem:[#allocation10 + $0x1b8] sm:$0xff] }
 0x5aa   :  { %11709 = vmatprep.subr.bf16.mxu1 %v15432_v55  ;;  %11749 = vmatprep.subr.bf16.mxu0 %v11748_v29  ;;  %v11756_v43 = vpack.c.bf16 %v3363_v41, %v3360_v40  ;;  %v3367_v55 = vld [vmem:[#allocation10 + $0x1f0] sm:$0xff]  ;;  %v11930_v29 = vpack.c.bf16 %v3334_v20, %v3331_v28  ;;  %v11776_v40 = vpack.c.bf16 %v3393_v38, %v3390_v11  ;;  %v3394_v41 = vld [vmem:[#allocation10 + $0x2c8] sm:$0xff]  ;;  %v3401_v28 = vld [vmem:[#allocation10 + $0x300] sm:$0xff] }
 0x5ab   :  { %v11920_v60 = vpack.c.bf16 %v3370_v57, %v3367_v55  ;;  %v3395_v55 = vld [vmem:[#allocation10 + $0x2d0] sm:$0xff]  ;;  %v3404_v20 = vld [vmem:[#allocation10 + $0x318] sm:$0xff]  ;;  %v3410_v11 = vld [vmem:[#allocation10 + $0x348] sm:$0xff] }
 0x5ac   :  { %10838 = vmatmul.mubr.msk.f32.vlgmr.msra.gmra.mrb[60].mxu1 %vm2766_vm5, %v3026_v1  ;;  %11751 = vmatpush1.bf16.msra.mxu0 %v11750_v31  ;;  %v3385_v31 = vld [vmem:[#allocation10 + $0x280] sm:$0xff] }
 0x5ad   :  { %11711 = vmatpush1.bf16.msra.mxu1 %v15428_v53  ;;  %3191 = vmatprep.mubr.f32.mxu1 %v14726_v47  ;;  %v3366_v53 = vld [vmem:[#allocation10 + $0x1e8] sm:$0xff]  ;;  %v11932_v33 = vpack.c.bf16 %v3388_v32, %v3385_v31  ;;  %v3457_v32 = vld [vmem:[#allocation10 + $0x4c0] sm:$0xff] }
 0x5ae   :  { %11713 = vmatprep.subr.bf16.mxu1 %v11676_v9  ;;  %11753 = vmatprep.subr.bf16.mxu0 %v11752_v10  ;;  %v11760_v56 = vpack.c.bf16 %v3369_v54, %v3366_v53  ;;  %v3375_v9 = vld [vmem:[#allocation10 + $0x230] sm:$0xff]  ;;  %v3386_v10 = vld [vmem:[#allocation10 + $0x288] sm:$0xff]  ;;  %v11780_v53 = vpack.c.bf16 %v3399_v51, %v3396_v50  ;;  %v3400_v54 = vld [vmem:[#allocation10 + $0x2f8] sm:$0xff] }
 0x5af   :  { %v11774_v25 = vpack.c.bf16 %v3386_v10, %v3383_v5  ;;  %v3460_v5 = vld [vmem:[#allocation10 + $0x4d8] sm:$0xff] }
 0x5b0   :  { %10839 = vmatmul.mubr.msk.f32.gmra.mrb[62].mxu1 %vm2766_vm5, %v3027_v63  ;;  %11755 = vmatpush1.bf16.msra.mxu0 %v11754_v37 }
 0x5b1   :  { %11715 = vmatpush1.bf16.msra.mxu1 %v11678_v7  ;;  %3197 = vmatprep.mubr.f32.mxu1 %v14726_v47  ;;  %v3372_v7 = vld [vmem:[#allocation10 + $0x218] sm:$0xff] }
 0x5b2   :  { %11717 = vmatprep.subr.bf16.mxu1 %v11680_v23  ;;  %11757 = vmatprep.subr.bf16.mxu0 %v11756_v43  ;;  %v11764_v14 = vpack.c.bf16 %v3375_v9, %v3372_v7  ;;  %v3392_v43 = vld [vmem:[#allocation10 + $0x2b8] sm:$0xff]  ;;  %v11784_v7 = vpack.c.bf16 %v3405_v4, %v3402_v62  ;;  %v3454_v9 = vld [vmem:[#allocation10 + $0x4a8] sm:$0xff]  ;;  %v3469_v62 = vld [vmem:[#allocation10 + $0x520] sm:$0xff] }
 0x5b3   :  { %v11778_v45 = vpack.c.bf16 %v3392_v43, %v3389_v42  ;;  %v3414_v42 = vld [vmem:[#allocation10 + $0x368] sm:$0xff]  ;;  %v3472_v4 = vld [vmem:[#allocation10 + $0x538] sm:$0xff] }
 0x5b4   :  { %10840 = vmatmul.mubr.msk.f32.gmra.mrb[64].mxu1 %vm2766_vm5, %v3028_v8  ;;  %11759 = vmatpush1.bf16.msra.mxu0 %v11758_v49 }
 0x5b5   :  { %11719 = vmatpush1.bf16.msra.mxu1 %v11682_v21  ;;  %3268 = vmatprep.mubr.f32.mxu1 %v14726_v47  ;;  %v3328_v21 = vld [vmem:[#allocation10 + $0xb8] sm:$0xff] }
 0x5b6   :  { %11913 = vmatprep.subr.bf16.mxu1 %v11912_v36  ;;  %11761 = vmatprep.subr.bf16.mxu0 %v11760_v56  ;;  %v11926_v23 = vpack.c.bf16 %v3328_v21, %v3325_v19  ;;  %v3340_v36 = vld [vmem:[#allocation10 + $0x118] sm:$0xff]  ;;  %v3398_v56 = vld [vmem:[#allocation10 + $0x2e8] sm:$0xff] }
 0x5b7   :  { %v11934_v37 = vpack.c.bf16 %v3340_v36, %v3337_v34  ;;  %v11782_v58 = vpack.c.bf16 %v3398_v56, %v3395_v55  ;;  %v11786_v34 = vpack.c.bf16 %v3404_v20, %v3401_v28  ;;  %v11956_v28 = vpack.c.bf16 %v3472_v4, %v3469_v62  ;;  %v3424_v20 = vld [vmem:[#allocation10 + $0x3b8] sm:$0xff] }
 0x5b8   :  { %10841 = vmatmul.mubr.msk.f32.vlgmr.msra.gmra.mrb[66].mxu1 %vm2766_vm5, %v3026_v1  ;;  %11763 = vmatpush1.bf16.msra.mxu0 %v11762_v61  ;;  %v3378_v1 = vld [vmem:[#allocation10 + $0x248] sm:$0xff] }
 0x5b9   :  { %3274 = vmatprep.mubr.f32.mxu1 %v14726_v47  ;;  %11915 = vmatpush3.bf16.msra.mxu1 %v11914_v39  ;;  %v3391_v39 = vld [vmem:[#allocation10 + $0x2b0] sm:$0xff] }
 0x5ba   :  { %11917 = vmatprep.subr.bf16.mxu1 %v11916_v48  ;;  %11765 = vmatprep.subr.bf16.mxu0 %v11764_v14  ;;  %v11936_v44 = vpack.c.bf16 %v3394_v41, %v3391_v39  ;;  %v3346_v48 = vld [vmem:[#allocation10 + $0x148] sm:$0xff]  ;;  %v11948_v39 = vpack.c.bf16 %v3460_v5, %v3457_v32  ;;  %v3412_v41 = vld [vmem:[#allocation10 + $0x358] sm:$0xff] }
 0x5bb   :  { %v11938_v49 = vpack.c.bf16 %v3346_v48, %v3343_v46  ;;  %v3466_v46 = vld [vmem:[#allocation10 + $0x508] sm:$0xff] }
 0x5bc   :  { %10842 = vmatmul.mubr.msk.f32.gmra.mrb[68].mxu1 %vm2766_vm5, %v3027_v63  ;;  %11767 = vmatpush1.bf16.msra.mxu0 %v11766_v18  ;;  %v3381_v63 = vld [vmem:[#allocation10 + $0x260] sm:$0xff] }
 0x5bd   :  { %3280 = vmatprep.mubr.f32.mxu1 %v14726_v47  ;;  %11919 = vmatpush3.bf16.msra.mxu1 %v11918_v52  ;;  %v11768_v0 = vpack.c.bf16 %v3381_v63, %v3378_v1  ;;  %v3397_v52 = vld [vmem:[#allocation10 + $0x2e0] sm:$0xff] }
 0x5be   :  { %11921 = vmatprep.subr.bf16.mxu1 %v11920_v60  ;;  %v11940_v57 = vpack.c.bf16 %v3400_v54, %v3397_v52  ;;  %v3352_v60 = vld [vmem:[#allocation10 + $0x178] sm:$0xff] }
 0x5bf   :  { %11769 = vmatprep.subr.bf16.mxu0 %v11768_v0  ;;  %v11942_v61 = vpack.c.bf16 %v3352_v60, %v3349_v59  ;;  %v3416_v54 = vld [vmem:[#allocation10 + $0x378] sm:$0xff] }
 0x5c0   :  { %10843 = vmatmul.mubr.msk.f32.gmra.mrb[70].mxu1 %vm2766_vm5, %v3028_v8  ;;  %v3379_v8 = vld [vmem:[#allocation10 + $0x250] sm:$0xff]  ;;  %11771 = vmatpush1.bf16.msra.mxu0 %v11770_v27  ;;  %v3420_v59 = vld [vmem:[#allocation10 + $0x398] sm:$0xff] }
 0x5c1   :  { %11923 = vmatpush3.bf16.msra.mxu1 %v11922_v6  ;;  %v11928_v24 = vpack.c.bf16 %v3382_v2, %v3379_v8  ;;  %11773 = vmatprep.subr.bf16.mxu0 %v11772_v26  ;;  %v3451_v6 = vld [vmem:[#allocation10 + $0x490] sm:$0xff] }
 0x5c2   :  { %11925 = vmatprep.subr.bf16.mxu1 %v11924_v17  ;;  %v11944_v12 = vpack.c.bf16 %v3454_v9, %v3451_v6  ;;  %v3411_v26 = vld [vmem:[#allocation10 + $0x350] sm:$0xff] }
 0x5c3   :  { %v11788_v38 = vpack.c.bf16 %v3411_v26, %v3408_v3  ;;  %v3475_v3 = vld [vmem:[#allocation10 + $0x550] sm:$0xff] }
 0x5c4   :  { %11775 = vmatpush1.bf16.msra.mxu0 %v11774_v25 }
 0x5c5   :  { %11927 = vmatpush3.bf16.msra.mxu1 %v11926_v23  ;;  %11777 = vmatprep.subr.bf16.mxu0 %v11776_v40  ;;  %v3409_v40 = vld [vmem:[#allocation10 + $0x340] sm:$0xff] }
 0x5c6   :  { %11929 = vmatprep.subr.bf16.mxu1 %v11928_v24  ;;  %v11950_v52 = vpack.c.bf16 %v3412_v41, %v3409_v40  ;;  %v3432_v40 = vld [vmem:[#allocation10 + $0x3f8] sm:$0xff] }
 0x5c8   :  { %11779 = vmatpush1.bf16.msra.mxu0 %v11778_v45  ;;  %v3463_v45 = vld [vmem:[#allocation10 + $0x4f0] sm:$0xff] }
 0x5c9   :  { %11931 = vmatpush3.bf16.msra.mxu1 %v11930_v29  ;;  %11781 = vmatprep.subr.bf16.mxu0 %v11780_v53  ;;  %v3403_v29 = vld [vmem:[#allocation10 + $0x310] sm:$0xff]  ;;  %v3413_v53 = vld [vmem:[#allocation10 + $0x360] sm:$0xff]  ;;  %v11952_v56 = vpack.c.bf16 %v3466_v46, %v3463_v45 }
 0x5ca   :  { %11933 = vmatprep.subr.bf16.mxu1 %v11932_v33  ;;  %v11946_v36 = vpack.c.bf16 %v3406_v30, %v3403_v29  ;;  %v3426_v29 = vld [vmem:[#allocation10 + $0x3c8] sm:$0xff] }
 0x5cc   :  { %11783 = vmatpush1.bf16.msra.mxu0 %v11782_v58  ;;  %v3418_v58 = vld [vmem:[#allocation10 + $0x388] sm:$0xff] }
 0x5cd   :  { %11935 = vmatpush3.bf16.msra.mxu1 %v11934_v37  ;;  %11785 = vmatprep.subr.bf16.mxu0 %v11784_v7  ;;  %v3407_v37 = vld [vmem:[#allocation10 + $0x330] sm:$0xff] }
 0x5ce   :  { %11937 = vmatprep.subr.bf16.mxu1 %v11936_v44  ;;  %v3417_v44 = vld [vmem:[#allocation10 + $0x380] sm:$0xff]  ;;  %v11790_v51 = vpack.c.bf16 %v3410_v11, %v3407_v37  ;;  %v3428_v37 = vld [vmem:[#allocation10 + $0x3d8] sm:$0xff] }
 0x5cf   :  { %v11792_v55 = vpack.c.bf16 %v3417_v44, %v3414_v42  ;;  %v3481_v42 = vld [vmem:[#allocation10 + $0x580] sm:$0xff] }
 0x5d1   :  { %11939 = vmatpush3.bf16.msra.mxu1 %v11938_v49 }
 0x5d2   :  { %11941 = vmatprep.subr.bf16.mxu1 %v11940_v57  ;;  %v3415_v57 = vld [vmem:[#allocation10 + $0x370] sm:$0xff] }
 0x5d5   :  { %11943 = vmatpush3.bf16.msra.mxu1 %v11942_v61  ;;  %v3423_v61 = vld [vmem:[#allocation10 + $0x3b0] sm:$0xff] }
 0x5d6   :  { %11945 = vmatprep.subr.bf16.mxu1 %v11944_v12  ;;  %v11794_v12 = vpack.c.bf16 %v3416_v54, %v3413_v53  ;;  %v3434_v53 = vld [vmem:[#allocation10 + $0x408] sm:$0xff] }
 0x64f   :  { %v2842_v14 = vpop.f32.mrb[36].mxu1 }
 0x650   :  { %v2844_v15 = vpop.f32.mrb[37].mxu1 }
 0x653   :  { %v2848_v35 = vpop.f32.mrb[38].mxu1 }
 0x654   :  { %v2850_v16 = vpop.f32.mrb[39].mxu1 }
 0x657   :  { %v15487_v17 = vpop.f32.mrb[40].mxu1 }
 0x658   :  { %v15489_v18 = vpop.f32.mrb[41].mxu1 }
 0x65b   :  { %v15491_v19 = vpop.f32.mrb[42].mxu1 }
 0x65c   :  { %v15493_v21 = vpop.f32.mrb[43].mxu1 }
 0x65f   :  { %v15495_v23 = vpop.f32.mrb[44].mxu1 }
 0x660   :  { %v15497_v1 = vpop.f32.mrb[45].mxu1 }
 0x663   :  { %v15499_v63 = vpop.f32.mrb[46].mxu1 }
 0x664   :  { %v15501_v8 = vpop.f32.mrb[47].mxu1 }
 0x667   :  { %v15503_v0 = vpop.f32.mrb[48].mxu1 }
 0x668   :  { %v15505_v2 = vpop.f32.mrb[49].mxu1 }
 0x66b   :  { %v15507_v13 = vpop.f32.mrb[50].mxu1 }
 0x66c   :  { %v15509_v22 = vpop.f32.mrb[51].mxu1 }
 0x66f   :  { %v15511_v24 = vpop.f32.mrb[52].mxu1 }
 0x670   :  { %v15513_v27 = vpop.f32.mrb[53].mxu1 }
 0x673   :  { %v3104_v31 = vpop.f32.mrb[54].mxu1 }
 0x674   :  { %v15515_v10 = vmax.f32 %v2842_v14, %v3104_v31  ;;  %v3106_v33 = vpop.f32.mrb[55].mxu1  ;;  %v11954_v14 = vpack.c.bf16 %v3418_v58, %v3415_v57  ;;  %v3478_v31 = vld [vmem:[#allocation10 + $0x568] sm:$0xff]  ;;  %v3436_v57 = vld [vmem:[#allocation10 + $0x418] sm:$0xff] }
 0x675   :  { %v15517_v25 = vmax.f32 %v2844_v15, %v3106_v33  ;;  %v3419_v15 = vld [vmem:[#allocation10 + $0x390] sm:$0xff]  ;;  %v3438_v58 = vld [vmem:[#allocation10 + $0x428] sm:$0xff] }
 0x677   :  { %v3110_v43 = vpop.f32.mrb[56].mxu1  ;;  %3657 = vmatprep.mubr.f32.mxu0 %v15517_v25  ;;  %3906 = vmatprep.mubr.f32.mxu1 %v15517_v25 }
 0x678   :  { %v15521_v48 = vmax.f32 %v2848_v35, %v3110_v43  ;;  %v3112_v49 = vpop.f32.mrb[57].mxu1  ;;  %3658 = vmatmul.mubr.f32.vlgmr.msra.gmra.mrb[30].mxu0 %v15515_v10  ;;  %3907 = vmatmul.mubr.f32.vlgmr.msra.gmra.mrb[72].mxu1 %v15515_v10  ;;  %v3422_v35 = vld [vmem:[#allocation10 + $0x3a8] sm:$0xff]  ;;  %v3484_v43 = vld [vmem:[#allocation10 + $0x598] sm:$0xff] }
 0x679   :  { %v15525_v50 = vmax.f32 %v2850_v16, %v3112_v49  ;;  %11787 = vmatpush1.bf16.msra.mxu0 %v11786_v34  ;;  %11947 = vmatpush3.bf16.msra.mxu1 %v11946_v36  ;;  %v11796_v16 = vpack.c.bf16 %v3423_v61, %v3420_v59  ;;  %v11798_v33 = vpack.c.bf16 %v3422_v35, %v3419_v15  ;;  %v3425_v36 = vld [vmem:[#allocation10 + $0x3c0] sm:$0xff]  ;;  %v3490_v61 = vld [vmem:[#allocation10 + $0x5c8] sm:$0xff]  ;;  %v3440_v15 = vld [vmem:[#allocation10 + $0x438] sm:$0xff] }
 0x67a   :  { %11789 = vmatprep.subr.bf16.mxu0 %v11788_v38  ;;  %11949 = vmatprep.subr.bf16.mxu1 %v11948_v39  ;;  %v11960_v38 = vpack.c.bf16 %v3478_v31, %v3475_v3  ;;  %v3430_v39 = vld [vmem:[#allocation10 + $0x3e8] sm:$0xff]  ;;  %v11802_v49 = vpack.c.bf16 %v3428_v37, %v3425_v36 }
 0x67b   :  { %v3116_v60 = vpop.f32.mrb[58].mxu1  ;;  %3663 = vmatprep.mubr.f32.mxu0 %v15525_v50  ;;  %3911 = vmatprep.mubr.f32.mxu1 %v15525_v50  ;;  %v3446_v36 = vld [vmem:[#allocation10 + $0x468] sm:$0xff] }
 0x67c   :  { %v15530_v6 = vmax.f32 %v15487_v17, %v3116_v60  ;;  %v3118_v7 = vpop.f32.mrb[59].mxu1  ;;  %3664 = vmatmul.mubr.f32.gmra.mrb[32].mxu0 %v15521_v48  ;;  %3912 = vmatmul.mubr.f32.gmra.mrb[74].mxu1 %v15521_v48  ;;  %v3421_v17 = vld [vmem:[#allocation10 + $0x3a0] sm:$0xff]  ;;  %v3487_v60 = vld [vmem:[#allocation10 + $0x5b0] sm:$0xff] }
 0x67d   :  { %v15535_v9 = vmax.f32 %v15489_v18, %v3118_v7  ;;  %11791 = vmatpush1.bf16.msra.mxu0 %v11790_v51  ;;  %11951 = vmatpush3.bf16.msra.mxu1 %v11950_v52  ;;  %v3429_v18 = vld [vmem:[#allocation10 + $0x3e0] sm:$0xff]  ;;  %v11958_v34 = vpack.c.bf16 %v3424_v20, %v3421_v17  ;;  %v3431_v52 = vld [vmem:[#allocation10 + $0x3f0] sm:$0xff]  ;;  %v3442_v17 = vld [vmem:[#allocation10 + $0x448] sm:$0xff] }
 0x67e   :  { %11793 = vmatprep.subr.bf16.mxu0 %v11792_v55  ;;  %11953 = vmatprep.subr.bf16.mxu1 %v11952_v56  ;;  %v11800_v11 = vpack.c.bf16 %v3429_v18, %v3426_v29  ;;  %v11964_v55 = vpack.c.bf16 %v3484_v43, %v3481_v42  ;;  %v3433_v56 = vld [vmem:[#allocation10 + $0x400] sm:$0xff]  ;;  %v11806_v7 = vpack.c.bf16 %v3434_v53, %v3431_v52  ;;  %v3444_v20 = vld [vmem:[#allocation10 + $0x458] sm:$0xff] }
 0x67f   :  { %v3187_v30 = vpop.f32.mrb[60].mxu1  ;;  %3669 = vmatprep.mubr.f32.mxu0 %v15535_v9  ;;  %3916 = vmatprep.mubr.f32.mxu1 %v15535_v9  ;;  %v3496_v18 = vld [vmem:[#allocation10 + $0x5f8] sm:$0xff]  ;;  %v3449_v53 = vld [vmem:[#allocation10 + $0x480] sm:$0xff] }
 0x680   :  { %v15540_v26 = vmax.f32 %v15491_v19, %v3187_v30  ;;  %v3189_v32 = vpop.f32.mrb[61].mxu1  ;;  %3670 = vmatmul.mubr.f32.gmra.mrb[34].mxu0 %v15530_v6  ;;  %3917 = vmatmul.mubr.f32.gmra.mrb[76].mxu1 %v15530_v6  ;;  %v3427_v19 = vld [vmem:[#allocation10 + $0x3d0] sm:$0xff]  ;;  %v3493_v30 = vld [vmem:[#allocation10 + $0x5e0] sm:$0xff] }
 0x681   :  { %v15545_v5 = vmax.f32 %v15493_v21, %v3189_v32  ;;  %11795 = vmatpush1.bf16.msra.mxu0 %v11794_v12  ;;  %11955 = vmatpush3.bf16.msra.mxu1 %v11954_v14  ;;  %v3435_v21 = vld [vmem:[#allocation10 + $0x410] sm:$0xff]  ;;  %v11962_v51 = vpack.c.bf16 %v3430_v39, %v3427_v19  ;;  %v11966_v12 = vpack.c.bf16 %v3436_v57, %v3433_v56  ;;  %v3437_v14 = vld [vmem:[#allocation10 + $0x420] sm:$0xff]  ;;  %v3448_v19 = vld [vmem:[#allocation10 + $0x478] sm:$0xff] }
 0x682   :  { %11797 = vmatprep.subr.bf16.mxu0 %v11796_v16  ;;  %11957 = vmatprep.subr.bf16.mxu1 %v11956_v28  ;;  %v11804_v54 = vpack.c.bf16 %v3435_v21, %v3432_v40  ;;  %v11968_v16 = vpack.c.bf16 %v3490_v61, %v3487_v60  ;;  %v3439_v28 = vld [vmem:[#allocation10 + $0x430] sm:$0xff]  ;;  %v11810_v32 = vpack.c.bf16 %v3440_v15, %v3437_v14  ;;  %v3450_v39 = vld [vmem:[#allocation10 + $0x488] sm:$0xff]  ;;  %v3556_v60 = vld [vmem:[#allocation10 + $0x7d8] sm:$0xff] }
 0x683   :  { %v3193_v41 = vpop.f32.mrb[62].mxu1  ;;  %3740 = vmatprep.mubr.f32.mxu0 %v15545_v5  ;;  %3986 = vmatprep.mubr.f32.mxu1 %v15545_v5  ;;  %v3550_v21 = vld [vmem:[#allocation10 + $0x7a8] sm:$0xff]  ;;  %v3455_v14 = vld [vmem:[#allocation10 + $0x4b0] sm:$0xff] }
 0x684   :  { %v15550_v44 = vmax.f32 %v15495_v23, %v3193_v41  ;;  %v3195_v45 = vpop.f32.mrb[63].mxu1  ;;  %v3441_v23 = vld [vmem:[#allocation10 + $0x440] sm:$0xff]  ;;  %v3547_v41 = vld [vmem:[#allocation10 + $0x790] sm:$0xff]  ;;  %v3502_v57 = vld [vmem:[#allocation10 + $0x628] sm:$0xff] }
 0x685   :  { %v15553_v46 = vmax.f32 %v15497_v1, %v3195_v45  ;;  %11799 = vmatpush1.bf16.msra.mxu0 %v11798_v33  ;;  %11959 = vmatpush3.bf16.msra.mxu1 %v11958_v34  ;;  %v11808_v35 = vpack.c.bf16 %v3441_v23, %v3438_v58  ;;  %v11970_v33 = vpack.c.bf16 %v3442_v17, %v3439_v28  ;;  %v3443_v34 = vld [vmem:[#allocation10 + $0x450] sm:$0xff]  ;;  %v3456_v58 = vld [vmem:[#allocation10 + $0x4b8] sm:$0xff]  ;;  %v3553_v23 = vld [vmem:[#allocation10 + $0x7c0] sm:$0xff] }
 0x686   :  { %11801 = vmatprep.subr.bf16.mxu0 %v11800_v11  ;;  %11961 = vmatprep.subr.bf16.mxu1 %v11960_v38  ;;  %v11972_v11 = vpack.c.bf16 %v3496_v18, %v3493_v30  ;;  %v3445_v38 = vld [vmem:[#allocation10 + $0x460] sm:$0xff]  ;;  %v11814_v45 = vpack.c.bf16 %v3446_v36, %v3443_v34  ;;  %v11976_v52 = vpack.c.bf16 %v3550_v21, %v3547_v41  ;;  %v3458_v15 = vld [vmem:[#allocation10 + $0x4c8] sm:$0xff]  ;;  %v3508_v28 = vld [vmem:[#allocation10 + $0x658] sm:$0xff] }
 0x687   :  { %v3199_v59 = vpop.f32.mrb[64].mxu1  ;;  %v3465_v17 = vld [vmem:[#allocation10 + $0x500] sm:$0xff]  ;;  %v3514_v34 = vld [vmem:[#allocation10 + $0x688] sm:$0xff]  ;;  %v3468_v36 = vld [vmem:[#allocation10 + $0x518] sm:$0xff] }
 0x688   :  { %v15556_v1 = vmax.f32 %v15499_v63, %v3199_v59  ;;  %v3201_v62 = vpop.f32.mrb[65].mxu1  ;;  %v3447_v63 = vld [vmem:[#allocation10 + $0x470] sm:$0xff]  ;;  %v3461_v18 = vld [vmem:[#allocation10 + $0x4e0] sm:$0xff]  ;;  %v3470_v41 = vld [vmem:[#allocation10 + $0x528] sm:$0xff] }
 0x689   :  { %v15559_v4 = vmax.f32 %v15501_v8, %v3201_v62  ;;  %11803 = vmatpush1.bf16.msra.mxu0 %v11802_v49  ;;  %11963 = vmatpush3.bf16.msra.mxu1 %v11962_v51  ;;  %v11812_v37 = vpack.c.bf16 %v3447_v63, %v3444_v20  ;;  %v11974_v49 = vpack.c.bf16 %v3448_v19, %v3445_v38  ;;  %v3559_v20 = vld [vmem:[#allocation10 + $0x7f0] sm:$0xff]  ;;  %v3568_v38 = vld [vmem:[#allocation10 + $0x838] sm:$0xff]  ;;  %v3517_v21 = vld [vmem:[#allocation10 + $0x6a0] sm:$0xff] }
 0x68a   :  { %11805 = vmatprep.subr.bf16.mxu0 %v11804_v54  ;;  %11965 = vmatprep.subr.bf16.mxu1 %v11964_v55  ;;  %v3452_v54 = vld [vmem:[#allocation10 + $0x498] sm:$0xff]  ;;  %v3499_v55 = vld [vmem:[#allocation10 + $0x610] sm:$0xff] }
 0x68b   :  { %v3270_v29 = vpop.f32.mrb[66].mxu1  ;;  %v11818_v62 = vpack.c.bf16 %v3452_v54, %v3449_v53  ;;  %v3574_v53 = vld [vmem:[#allocation10 + $0x868] sm:$0xff] }
 0x68c   :  { %v15562_v8 = vmax.f32 %v15503_v0, %v3270_v29  ;;  %v3272_v3 = vpop.f32.mrb[67].mxu1  ;;  %v3453_v0 = vld [vmem:[#allocation10 + $0x4a0] sm:$0xff]  ;;  %v3562_v29 = vld [vmem:[#allocation10 + $0x808] sm:$0xff] }
 0x68d   :  { %v15565_v31 = vmax.f32 %v15505_v2, %v3272_v3  ;;  %11807 = vmatpush1.bf16.msra.mxu0 %v11806_v7  ;;  %11967 = vmatpush3.bf16.msra.mxu1 %v11966_v12  ;;  %v11816_v51 = vpack.c.bf16 %v3453_v0, %v3450_v39  ;;  %v11978_v7 = vpack.c.bf16 %v3502_v57, %v3499_v55  ;;  %v3464_v3 = vld [vmem:[#allocation10 + $0x4f8] sm:$0xff]  ;;  %v3467_v0 = vld [vmem:[#allocation10 + $0x510] sm:$0xff]  ;;  %v3473_v57 = vld [vmem:[#allocation10 + $0x540] sm:$0xff] }
 0x68e   :  { %11809 = vmatprep.subr.bf16.mxu0 %v11808_v35  ;;  %11969 = vmatprep.subr.bf16.mxu1 %v11968_v16  ;;  %v3505_v35 = vld [vmem:[#allocation10 + $0x640] sm:$0xff]  ;;  %v11980_v16 = vpack.c.bf16 %v3556_v60, %v3553_v23  ;;  %v11826_v19 = vpack.c.bf16 %v3464_v3, %v3461_v18  ;;  %v11830_v54 = vpack.c.bf16 %v3470_v41, %v3467_v0  ;;  %v3526_v23 = vld [vmem:[#allocation10 + $0x6e8] sm:$0xff]  ;;  %v3480_v60 = vld [vmem:[#allocation10 + $0x578] sm:$0xff] }
 0x68f   :  { %v3276_v40 = vpop.f32.mrb[68].mxu1  ;;  %v11982_v63 = vpack.c.bf16 %v3508_v28, %v3505_v35  ;;  %v3482_v28 = vld [vmem:[#allocation10 + $0x588] sm:$0xff] }
 0x690   :  { %v15568_v2 = vmax.f32 %v15507_v13, %v3276_v40  ;;  %v3278_v42 = vpop.f32.mrb[69].mxu1  ;;  %v3459_v13 = vld [vmem:[#allocation10 + $0x4d0] sm:$0xff] }
 0x691   :  { %v15571_v43 = vmax.f32 %v15509_v22, %v3278_v42  ;;  %11811 = vmatpush1.bf16.msra.mxu0 %v11810_v32  ;;  %11971 = vmatpush3.bf16.msra.mxu1 %v11970_v33  ;;  %v11820_v12 = vpack.c.bf16 %v3459_v13, %v3456_v58  ;;  %v3511_v32 = vld [vmem:[#allocation10 + $0x670] sm:$0xff]  ;;  %v11984_v33 = vpack.c.bf16 %v3562_v29, %v3559_v20  ;;  %v3476_v58 = vld [vmem:[#allocation10 + $0x558] sm:$0xff]  ;;  %v3486_v29 = vld [vmem:[#allocation10 + $0x5a8] sm:$0xff] }
 0x692   :  { %11813 = vmatprep.subr.bf16.mxu0 %v11812_v37  ;;  %11973 = vmatprep.subr.bf16.mxu1 %v11972_v11  ;;  %v3471_v37 = vld [vmem:[#allocation10 + $0x530] sm:$0xff]  ;;  %v3565_v11 = vld [vmem:[#allocation10 + $0x820] sm:$0xff]  ;;  %v11986_v39 = vpack.c.bf16 %v3514_v34, %v3511_v32  ;;  %v3532_v20 = vld [vmem:[#allocation10 + $0x718] sm:$0xff] }
 0x693   :  { %v3282_v56 = vpop.f32.mrb[70].mxu1  ;;  %v11828_v40 = vpack.c.bf16 %v3471_v37, %v3468_v36  ;;  %v11988_v42 = vpack.c.bf16 %v3568_v38, %v3565_v11  ;;  %v3523_v13 = vld [vmem:[#allocation10 + $0x6d0] sm:$0xff]  ;;  %v3488_v34 = vld [vmem:[#allocation10 + $0x5b8] sm:$0xff]  ;;  %v3538_v11 = vld [vmem:[#allocation10 + $0x748] sm:$0xff] }
 0x694   :  { %v15574_v59 = vmax.f32 %v15511_v24, %v3282_v56  ;;  %v3284_v22 = vpop.f32.mrb[71].mxu1  ;;  %v3462_v24 = vld [vmem:[#allocation10 + $0x4e8] sm:$0xff]  ;;  %v3535_v36 = vld [vmem:[#allocation10 + $0x730] sm:$0xff]  ;;  %v3492_v38 = vld [vmem:[#allocation10 + $0x5d8] sm:$0xff] }
 0x695   :  { %v15577_v61 = vmax.f32 %v15513_v27, %v3284_v22  ;;  %11815 = vmatpush1.bf16.msra.mxu0 %v11814_v45  ;;  %11975 = vmatpush3.bf16.msra.mxu1 %v11974_v49  ;;  %v11822_v27 = vpack.c.bf16 %v3458_v15, %v3455_v14  ;;  %v11824_v30 = vpack.c.bf16 %v3465_v17, %v3462_v24  ;;  %v3520_v45 = vld [vmem:[#allocation10 + $0x6b8] sm:$0xff]  ;;  %v3474_v49 = vld [vmem:[#allocation10 + $0x548] sm:$0xff]  ;;  %v3529_v24 = vld [vmem:[#allocation10 + $0x700] sm:$0xff] }
 0x696   :  { %11817 = vmatprep.subr.bf16.mxu0 %v11816_v51  ;;  %11977 = vmatprep.subr.bf16.mxu1 %v11976_v52  ;;  %v3477_v51 = vld [vmem:[#allocation10 + $0x560] sm:$0xff]  ;;  %v3571_v52 = vld [vmem:[#allocation10 + $0x850] sm:$0xff]  ;;  %v11990_v55 = vpack.c.bf16 %v3520_v45, %v3517_v21  ;;  %v11834_v14 = vpack.c.bf16 %v3476_v58, %v3473_v57  ;;  %v11994_v15 = vpack.c.bf16 %v3526_v23, %v3523_v13  ;;  %v3494_v45 = vld [vmem:[#allocation10 + $0x5e8] sm:$0xff] }
 0x697   :  { %v11832_v56 = vpack.c.bf16 %v3477_v51, %v3474_v49  ;;  %v11992_v22 = vpack.c.bf16 %v3574_v53, %v3571_v52  ;;  %v11998_v3 = vpack.c.bf16 %v3532_v20, %v3529_v24  ;;  %v12002_v41 = vpack.c.bf16 %v3538_v11, %v3535_v36  ;;  %v3541_v49 = vld [vmem:[#allocation10 + $0x760] sm:$0xff]  ;;  %v3544_v52 = vld [vmem:[#allocation10 + $0x778] sm:$0xff]  ;;  %v3498_v53 = vld [vmem:[#allocation10 + $0x608] sm:$0xff] }
 0x698   :  { %3987 = vmatmul.mubr.f32.vlgmr.msra.gmra.mrb[78].mxu1 %v15540_v26  ;;  %v12006_v58 = vpack.c.bf16 %v3544_v52, %v3541_v49  ;;  %v3497_v23 = vld [vmem:[#allocation10 + $0x600] sm:$0xff]  ;;  %v3506_v20 = vld [vmem:[#allocation10 + $0x648] sm:$0xff]  ;;  %v3512_v11 = vld [vmem:[#allocation10 + $0x678] sm:$0xff] }
 0x699   :  { %11819 = vmatpush1.bf16.msra.mxu0 %v11818_v62  ;;  %3991 = vmatprep.mubr.f32.mxu1 %v15553_v46  ;;  %v3483_v62 = vld [vmem:[#allocation10 + $0x590] sm:$0xff]  ;;  %v3518_v52 = vld [vmem:[#allocation10 + $0x6a8] sm:$0xff] }
 0x69a   :  { %11979 = vmatpush3.bf16.msra.mxu1 %v11978_v7  ;;  %11821 = vmatprep.subr.bf16.mxu0 %v11820_v12  ;;  %v3577_v7 = vld [vmem:[#allocation10 + $0x880] sm:$0xff]  ;;  %v3580_v12 = vld [vmem:[#allocation10 + $0x898] sm:$0xff]  ;;  %v11836_v35 = vpack.c.bf16 %v3483_v62, %v3480_v60 }
 0x69b   :  { %11981 = vmatprep.subr.bf16.mxu1 %v11980_v16  ;;  %v3479_v16 = vld [vmem:[#allocation10 + $0x570] sm:$0xff]  ;;  %v11996_v17 = vpack.c.bf16 %v3580_v12, %v3577_v7  ;;  %v3500_v60 = vld [vmem:[#allocation10 + $0x618] sm:$0xff]  ;;  %v4083_v62 = vld [vmem:[#allocation10 + $0x900] sm:$0xff] }
 0x69c   :  { %3992 = vmatmul.mubr.f32.gmra.mrb[80].mxu1 %v15550_v44  ;;  %v11838_v18 = vpack.c.bf16 %v3482_v28, %v3479_v16  ;;  %v4086_v7 = vld [vmem:[#allocation10 + $0x918] sm:$0xff]  ;;  %v11850_v16 = vpack.c.bf16 %v3500_v60, %v3497_v23 }
 0x69d   :  { %11823 = vmatpush1.bf16.msra.mxu0 %v11822_v27  ;;  %3996 = vmatprep.mubr.f32.mxu1 %v15559_v4  ;;  %v3489_v27 = vld [vmem:[#allocation10 + $0x5c0] sm:$0xff]  ;;  %v3504_v12 = vld [vmem:[#allocation10 + $0x638] sm:$0xff]  ;;  %v12010_v28 = vpack.c.bf16 %v4086_v7, %v4083_v62 }
 0x69e   :  { %11983 = vmatpush3.bf16.msra.mxu1 %v11982_v63  ;;  %11825 = vmatprep.subr.bf16.mxu0 %v11824_v30  ;;  %v3583_v63 = vld [vmem:[#allocation10 + $0x8b0] sm:$0xff]  ;;  %v3586_v30 = vld [vmem:[#allocation10 + $0x8c8] sm:$0xff]  ;;  %v11840_v32 = vpack.c.bf16 %v3489_v27, %v3486_v29  ;;  %v3521_v62 = vld [vmem:[#allocation10 + $0x6c0] sm:$0xff] }
 0x69f   :  { %11985 = vmatprep.subr.bf16.mxu1 %v11984_v33  ;;  %v3485_v33 = vld [vmem:[#allocation10 + $0x5a0] sm:$0xff]  ;;  %v12000_v37 = vpack.c.bf16 %v3586_v30, %v3583_v63  ;;  %v4089_v29 = vld [vmem:[#allocation10 + $0x930] sm:$0xff]  ;;  %v4092_v63 = vld [vmem:[#allocation10 + $0x948] sm:$0xff] }
 0x6a0   :  { %3997 = vmatmul.mubr.f32.gmra.mrb[82].mxu1 %v15556_v1  ;;  %v11842_v0 = vpack.c.bf16 %v3488_v34, %v3485_v33  ;;  %v3510_v30 = vld [vmem:[#allocation10 + $0x668] sm:$0xff]  ;;  %v12014_v34 = vpack.c.bf16 %v4092_v63, %v4089_v29  ;;  %v3524_v7 = vld [vmem:[#allocation10 + $0x6d8] sm:$0xff] }
 0x6a1   :  { %11827 = vmatpush1.bf16.msra.mxu0 %v11826_v19  ;;  %4066 = vmatprep.mubr.f32.mxu1 %v15565_v31  ;;  %v3495_v19 = vld [vmem:[#allocation10 + $0x5f0] sm:$0xff]  ;;  %v3530_v63 = vld [vmem:[#allocation10 + $0x708] sm:$0xff] }
 0x6a2   :  { %11987 = vmatpush3.bf16.msra.mxu1 %v11986_v39  ;;  %11829 = vmatprep.subr.bf16.mxu0 %v11828_v40  ;;  %v3589_v39 = vld [vmem:[#allocation10 + $0x8e0] sm:$0xff]  ;;  %v3592_v40 = vld [vmem:[#allocation10 + $0x8f8] sm:$0xff]  ;;  %v11844_v21 = vpack.c.bf16 %v3495_v19, %v3492_v38 }
 0x6a3   :  { %11989 = vmatprep.subr.bf16.mxu1 %v11988_v42  ;;  %v3491_v42 = vld [vmem:[#allocation10 + $0x5d0] sm:$0xff]  ;;  %v12004_v51 = vpack.c.bf16 %v3592_v40, %v3589_v39  ;;  %v4095_v38 = vld [vmem:[#allocation10 + $0x960] sm:$0xff]  ;;  %v4098_v39 = vld [vmem:[#allocation10 + $0x978] sm:$0xff] }
 0x6a4   :  { %v11846_v57 = vpack.c.bf16 %v3494_v45, %v3491_v42  ;;  %v3516_v40 = vld [vmem:[#allocation10 + $0x698] sm:$0xff]  ;;  %v12018_v45 = vpack.c.bf16 %v4098_v39, %v4095_v38 }
 0x6a5   :  { %11831 = vmatpush1.bf16.msra.mxu0 %v11830_v54  ;;  %v3501_v54 = vld [vmem:[#allocation10 + $0x620] sm:$0xff]  ;;  %v3536_v39 = vld [vmem:[#allocation10 + $0x738] sm:$0xff] }
 0x6a6   :  { %11991 = vmatpush3.bf16.msra.mxu1 %v11990_v55  ;;  %11833 = vmatprep.subr.bf16.mxu0 %v11832_v56  ;;  %v4084_v55 = vld [vmem:[#allocation10 + $0x908] sm:$0xff]  ;;  %v4087_v56 = vld [vmem:[#allocation10 + $0x920] sm:$0xff]  ;;  %v11848_v13 = vpack.c.bf16 %v3501_v54, %v3498_v53  ;;  %v4101_v53 = vld [vmem:[#allocation10 + $0x990] sm:$0xff] }
 0x6a7   :  { %11993 = vmatprep.subr.bf16.mxu1 %v11992_v22  ;;  %v12008_v22 = vpack.c.bf16 %v4087_v56, %v4084_v55  ;;  %v4104_v55 = vld [vmem:[#allocation10 + $0x9a8] sm:$0xff] }
 0x6a8   :  { %v3522_v56 = vld [vmem:[#allocation10 + $0x6c8] sm:$0xff]  ;;  %v12022_v23 = vpack.c.bf16 %v4104_v55, %v4101_v53 }
 0x6a9   :  { %11835 = vmatpush1.bf16.msra.mxu0 %v11834_v14  ;;  %v3507_v14 = vld [vmem:[#allocation10 + $0x650] sm:$0xff]  ;;  %v3542_v55 = vld [vmem:[#allocation10 + $0x768] sm:$0xff] }
 0x6aa   :  { %11995 = vmatpush3.bf16.msra.mxu1 %v11994_v15  ;;  %11837 = vmatprep.subr.bf16.mxu0 %v11836_v35  ;;  %v4090_v15 = vld [vmem:[#allocation10 + $0x938] sm:$0xff]  ;;  %v4093_v35 = vld [vmem:[#allocation10 + $0x950] sm:$0xff]  ;;  %v11852_v24 = vpack.c.bf16 %v3507_v14, %v3504_v12  ;;  %v4107_v12 = vld [vmem:[#allocation10 + $0x9c0] sm:$0xff] }
 0x6ab   :  { %11997 = vmatprep.subr.bf16.mxu1 %v11996_v17  ;;  %v3503_v17 = vld [vmem:[#allocation10 + $0x630] sm:$0xff]  ;;  %v12012_v27 = vpack.c.bf16 %v4093_v35, %v4090_v15  ;;  %v4110_v15 = vld [vmem:[#allocation10 + $0x9d8] sm:$0xff] }
 0x6ac   :  { %v11854_v33 = vpack.c.bf16 %v3506_v20, %v3503_v17  ;;  %v3528_v35 = vld [vmem:[#allocation10 + $0x6f8] sm:$0xff]  ;;  %v11866_v17 = vpack.c.bf16 %v3524_v7, %v3521_v62  ;;  %v12026_v20 = vpack.c.bf16 %v4110_v15, %v4107_v12 }
 0x6ad   :  { %11839 = vmatpush1.bf16.msra.mxu0 %v11838_v18  ;;  %v3513_v18 = vld [vmem:[#allocation10 + $0x680] sm:$0xff]  ;;  %v3548_v15 = vld [vmem:[#allocation10 + $0x798] sm:$0xff] }
 0x6ae   :  { %11999 = vmatpush3.bf16.msra.mxu1 %v11998_v3  ;;  %11841 = vmatprep.subr.bf16.mxu0 %v11840_v32  ;;  %v4096_v3 = vld [vmem:[#allocation10 + $0x968] sm:$0xff]  ;;  %v4099_v32 = vld [vmem:[#allocation10 + $0x980] sm:$0xff]  ;;  %v11856_v36 = vpack.c.bf16 %v3513_v18, %v3510_v30  ;;  %v4113_v30 = vld [vmem:[#allocation10 + $0x9f0] sm:$0xff] }
 0x6af   :  { %12001 = vmatprep.subr.bf16.mxu1 %v12000_v37  ;;  %v3509_v37 = vld [vmem:[#allocation10 + $0x660] sm:$0xff]  ;;  %v12016_v19 = vpack.c.bf16 %v4099_v32, %v4096_v3  ;;  %v4116_v3 = vld [vmem:[#allocation10 + $0xa08] sm:$0xff] }
 0x6b0   :  { %v11858_v42 = vpack.c.bf16 %v3512_v11, %v3509_v37  ;;  %v3534_v32 = vld [vmem:[#allocation10 + $0x728] sm:$0xff]  ;;  %v12030_v11 = vpack.c.bf16 %v4116_v3, %v4113_v30 }
 0x6b1   :  { %11843 = vmatpush1.bf16.msra.mxu0 %v11842_v0  ;;  %v3519_v0 = vld [vmem:[#allocation10 + $0x6b0] sm:$0xff]  ;;  %v3554_v3 = vld [vmem:[#allocation10 + $0x7c8] sm:$0xff] }
 0x6b2   :  { %12003 = vmatpush3.bf16.msra.mxu1 %v12002_v41  ;;  %11845 = vmatprep.subr.bf16.mxu0 %v11844_v21  ;;  %v4102_v41 = vld [vmem:[#allocation10 + $0x998] sm:$0xff]  ;;  %v4105_v21 = vld [vmem:[#allocation10 + $0x9b0] sm:$0xff]  ;;  %v11860_v49 = vpack.c.bf16 %v3519_v0, %v3516_v40  ;;  %v4119_v40 = vld [vmem:[#allocation10 + $0xa20] sm:$0xff] }
 0x6b3   :  { %12005 = vmatprep.subr.bf16.mxu1 %v12004_v51  ;;  %v3515_v51 = vld [vmem:[#allocation10 + $0x690] sm:$0xff]  ;;  %v12020_v54 = vpack.c.bf16 %v4105_v21, %v4102_v41  ;;  %v4122_v41 = vld [vmem:[#allocation10 + $0xa38] sm:$0xff] }
 0x6b4   :  { %v3540_v21 = vld [vmem:[#allocation10 + $0x758] sm:$0xff] }
 0x6b5   :  { %11847 = vmatpush1.bf16.msra.mxu0 %v11846_v57  ;;  %v3525_v57 = vld [vmem:[#allocation10 + $0x6e0] sm:$0xff] }
 0x6b6   :  { %12007 = vmatpush3.bf16.msra.mxu1 %v12006_v58  ;;  %11849 = vmatprep.subr.bf16.mxu0 %v11848_v13  ;;  %v4108_v58 = vld [vmem:[#allocation10 + $0x9c8] sm:$0xff]  ;;  %v4111_v13 = vld [vmem:[#allocation10 + $0x9e0] sm:$0xff]  ;;  %v11864_v60 = vpack.c.bf16 %v3525_v57, %v3522_v56  ;;  %v4125_v56 = vld [vmem:[#allocation10 + $0xa50] sm:$0xff] }
 0x6b7   :  { %12009 = vmatprep.subr.bf16.mxu1 %v12008_v22  ;;  %v11862_v22 = vpack.c.bf16 %v3518_v52, %v3515_v51  ;;  %v12024_v14 = vpack.c.bf16 %v4111_v13, %v4108_v58  ;;  %v12034_v52 = vpack.c.bf16 %v4122_v41, %v4119_v40  ;;  %v4128_v58 = vld [vmem:[#allocation10 + $0xa68] sm:$0xff]  ;;  %v3560_v41 = vld [vmem:[#allocation10 + $0x7f8] sm:$0xff] }
 0x6b8   :  { %3741 = vmatmul.mubr.f32.vlgmr.msra.gmra.mrb[30].mxu0 %v15540_v26  ;;  %v3546_v13 = vld [vmem:[#allocation10 + $0x788] sm:$0xff]  ;;  %v12038_v7 = vpack.c.bf16 %v4128_v58, %v4125_v56 }
 0x6b9   :  { %4067 = vmatmul.mubr.f32.vlgmr.msra.gmra.mrb[84].mxu1 %v15562_v8  ;;  %3746 = vmatprep.mubr.f32.mxu0 %v15553_v46  ;;  %v3566_v58 = vld [vmem:[#allocation10 + $0x828] sm:$0xff] }
 0x6ba   :  { %11851 = vmatpush1.bf16.msra.mxu0 %v11850_v16  ;;  %4071 = vmatprep.mubr.f32.mxu1 %v15571_v43  ;;  %v3531_v16 = vld [vmem:[#allocation10 + $0x710] sm:$0xff] }
 0x6bb   :  { %12011 = vmatpush1.bf16.msra.mxu1 %v12010_v28  ;;  %11853 = vmatprep.subr.bf16.mxu0 %v11852_v24  ;;  %v4114_v28 = vld [vmem:[#allocation10 + $0x9f8] sm:$0xff]  ;;  %v4117_v24 = vld [vmem:[#allocation10 + $0xa10] sm:$0xff]  ;;  %v11868_v29 = vpack.c.bf16 %v3531_v16, %v3528_v35  ;;  %v4131_v35 = vld [vmem:[#allocation10 + $0xa80] sm:$0xff] }
 0x6bc   :  { %3747 = vmatmul.mubr.f32.gmra.mrb[32].mxu0 %v15550_v44  ;;  %12013 = vmatprep.subr.bf16.mxu1 %v12012_v27  ;;  %v3527_v27 = vld [vmem:[#allocation10 + $0x6f0] sm:$0xff]  ;;  %v12028_v18 = vpack.c.bf16 %v4117_v24, %v4114_v28  ;;  %v4134_v28 = vld [vmem:[#allocation10 + $0xa98] sm:$0xff] }
 0x6bd   :  { %4072 = vmatmul.mubr.f32.gmra.mrb[86].mxu1 %v15568_v2  ;;  %3752 = vmatprep.mubr.f32.mxu0 %v15559_v4  ;;  %v11870_v37 = vpack.c.bf16 %v3530_v63, %v3527_v27  ;;  %v3552_v24 = vld [vmem:[#allocation10 + $0x7b8] sm:$0xff]  ;;  %v12042_v63 = vpack.c.bf16 %v4134_v28, %v4131_v35 }
 0x6be   :  { %11855 = vmatpush1.bf16.msra.mxu0 %v11854_v33  ;;  %4076 = vmatprep.mubr.f32.mxu1 %v15577_v61  ;;  %v3537_v33 = vld [vmem:[#allocation10 + $0x740] sm:$0xff]  ;;  %v3572_v28 = vld [vmem:[#allocation10 + $0x858] sm:$0xff] }
 0x6bf   :  { %12015 = vmatpush1.bf16.msra.mxu1 %v12014_v34  ;;  %11857 = vmatprep.subr.bf16.mxu0 %v11856_v36  ;;  %v4120_v34 = vld [vmem:[#allocation10 + $0xa28] sm:$0xff]  ;;  %v4123_v36 = vld [vmem:[#allocation10 + $0xa40] sm:$0xff]  ;;  %v11872_v38 = vpack.c.bf16 %v3537_v33, %v3534_v32  ;;  %v4137_v32 = vld [vmem:[#allocation10 + $0xab0] sm:$0xff] }
 0x6c0   :  { %3753 = vmatmul.mubr.f32.gmra.mrb[34].mxu0 %v15556_v1  ;;  %12017 = vmatprep.subr.bf16.mxu1 %v12016_v19  ;;  %v3533_v19 = vld [vmem:[#allocation10 + $0x720] sm:$0xff]  ;;  %v12032_v0 = vpack.c.bf16 %v4123_v36, %v4120_v34  ;;  %v4140_v34 = vld [vmem:[#allocation10 + $0xac8] sm:$0xff] }
 0x6c1   :  { %4077 = vmatmul.mubr.f32.gmra.mrb[88].mxu1 %v15574_v59  ;;  %3823 = vmatprep.mubr.f32.mxu0 %v15565_v31  ;;  %v11874_v51 = vpack.c.bf16 %v3536_v39, %v3533_v19  ;;  %v3558_v36 = vld [vmem:[#allocation10 + $0x7e8] sm:$0xff]  ;;  %v12046_v39 = vpack.c.bf16 %v4140_v34, %v4137_v32 }
 0x6c2   :  { %11859 = vmatpush1.bf16.msra.mxu0 %v11858_v42  ;;  %4435 = vmatprep.mubr.f32.mxu1 %v15517_v25  ;;  %v3543_v42 = vld [vmem:[#allocation10 + $0x770] sm:$0xff]  ;;  %v3578_v34 = vld [vmem:[#allocation10 + $0x888] sm:$0xff] }
 0x6c3   :  { %12019 = vmatpush1.bf16.msra.mxu1 %v12018_v45  ;;  %11861 = vmatprep.subr.bf16.mxu0 %v11860_v49  ;;  %v4126_v45 = vld [vmem:[#allocation10 + $0xa58] sm:$0xff]  ;;  %v4129_v49 = vld [vmem:[#allocation10 + $0xa70] sm:$0xff]  ;;  %v11876_v53 = vpack.c.bf16 %v3543_v42, %v3540_v21  ;;  %v4143_v21 = vld [vmem:[#allocation10 + $0xae0] sm:$0xff] }
 0x6c4   :  { %12021 = vmatprep.subr.bf16.mxu1 %v12020_v54  ;;  %v3539_v54 = vld [vmem:[#allocation10 + $0x750] sm:$0xff]  ;;  %v12036_v57 = vpack.c.bf16 %v4129_v49, %v4126_v45  ;;  %v4146_v45 = vld [vmem:[#allocation10 + $0xaf8] sm:$0xff] }
 0x6c5   :  { %v11878_v62 = vpack.c.bf16 %v3542_v55, %v3539_v54  ;;  %v3564_v49 = vld [vmem:[#allocation10 + $0x818] sm:$0xff]  ;;  %v12050_v55 = vpack.c.bf16 %v4146_v45, %v4143_v21 }
 0x6c6   :  { %11863 = vmatpush1.bf16.msra.mxu0 %v11862_v22  ;;  %v3549_v22 = vld [vmem:[#allocation10 + $0x7a0] sm:$0xff]  ;;  %v3584_v45 = vld [vmem:[#allocation10 + $0x8b8] sm:$0xff] }
 0x6c7   :  { %12023 = vmatpush1.bf16.msra.mxu1 %v12022_v23  ;;  %11865 = vmatprep.subr.bf16.mxu0 %v11864_v60  ;;  %v4132_v23 = vld [vmem:[#allocation10 + $0xa88] sm:$0xff]  ;;  %v4135_v60 = vld [vmem:[#allocation10 + $0xaa0] sm:$0xff]  ;;  %v11880_v12 = vpack.c.bf16 %v3549_v22, %v3546_v13  ;;  %v4149_v13 = vld [vmem:[#allocation10 + $0xb10] sm:$0xff] }
 0x6c8   :  { %12025 = vmatprep.subr.bf16.mxu1 %v12024_v14  ;;  %v3545_v14 = vld [vmem:[#allocation10 + $0x780] sm:$0xff]  ;;  %v12040_v16 = vpack.c.bf16 %v4135_v60, %v4132_v23  ;;  %v4152_v23 = vld [vmem:[#allocation10 + $0xb28] sm:$0xff] }
 0x6c9   :  { %v11882_v27 = vpack.c.bf16 %v3548_v15, %v3545_v14  ;;  %v3570_v60 = vld [vmem:[#allocation10 + $0x848] sm:$0xff]  ;;  %v12054_v15 = vpack.c.bf16 %v4152_v23, %v4149_v13 }
 0x6ca   :  { %11867 = vmatpush1.bf16.msra.mxu0 %v11866_v17  ;;  %v3555_v17 = vld [vmem:[#allocation10 + $0x7d0] sm:$0xff]  ;;  %v3590_v23 = vld [vmem:[#allocation10 + $0x8e8] sm:$0xff] }
 0x6cb   :  { %12027 = vmatpush1.bf16.msra.mxu1 %v12026_v20  ;;  %11869 = vmatprep.subr.bf16.mxu0 %v11868_v29  ;;  %v4138_v20 = vld [vmem:[#allocation10 + $0xab8] sm:$0xff]  ;;  %v4141_v29 = vld [vmem:[#allocation10 + $0xad0] sm:$0xff]  ;;  %v11884_v30 = vpack.c.bf16 %v3555_v17, %v3552_v24  ;;  %v4155_v24 = vld [vmem:[#allocation10 + $0xb40] sm:$0xff] }
 0x6cc   :  { %12029 = vmatprep.subr.bf16.mxu1 %v12028_v18  ;;  %v3551_v18 = vld [vmem:[#allocation10 + $0x7b0] sm:$0xff]  ;;  %v12044_v33 = vpack.c.bf16 %v4141_v29, %v4138_v20  ;;  %v4158_v20 = vld [vmem:[#allocation10 + $0xb58] sm:$0xff] }
 0x6cd   :  { %v11886_v19 = vpack.c.bf16 %v3554_v3, %v3551_v18  ;;  %v3576_v29 = vld [vmem:[#allocation10 + $0x878] sm:$0xff]  ;;  %v12058_v3 = vpack.c.bf16 %v4158_v20, %v4155_v24  ;;  %v4179_v20 = vld [vmem:[#allocation10 + $0xc00] sm:$0xff] }
 0x6ce   :  { %11871 = vmatpush1.bf16.msra.mxu0 %v11870_v37  ;;  %v3561_v37 = vld [vmem:[#allocation10 + $0x800] sm:$0xff] }
 0x6cf   :  { %12031 = vmatpush1.bf16.msra.mxu1 %v12030_v11  ;;  %11873 = vmatprep.subr.bf16.mxu0 %v11872_v38  ;;  %v4144_v11 = vld [vmem:[#allocation10 + $0xae8] sm:$0xff]  ;;  %v4147_v38 = vld [vmem:[#allocation10 + $0xb00] sm:$0xff]  ;;  %v11888_v40 = vpack.c.bf16 %v3561_v37, %v3558_v36  ;;  %v4161_v36 = vld [vmem:[#allocation10 + $0xb70] sm:$0xff] }
 0x6d0   :  { %12033 = vmatprep.subr.bf16.mxu1 %v12032_v0  ;;  %v3557_v0 = vld [vmem:[#allocation10 + $0x7e0] sm:$0xff]  ;;  %v12048_v42 = vpack.c.bf16 %v4147_v38, %v4144_v11  ;;  %v4164_v11 = vld [vmem:[#allocation10 + $0xb88] sm:$0xff] }
 0x6d1   :  { %v11890_v54 = vpack.c.bf16 %v3560_v41, %v3557_v0  ;;  %v3582_v38 = vld [vmem:[#allocation10 + $0x8a8] sm:$0xff]  ;;  %v12062_v41 = vpack.c.bf16 %v4164_v11, %v4161_v36 }
 0x6d2   :  { %11875 = vmatpush1.bf16.msra.mxu0 %v11874_v51  ;;  %v3567_v51 = vld [vmem:[#allocation10 + $0x830] sm:$0xff]  ;;  %v4188_v11 = vld [vmem:[#allocation10 + $0xc48] sm:$0xff] }
 0x6d3   :  { %12035 = vmatpush1.bf16.msra.mxu1 %v12034_v52  ;;  %11877 = vmatprep.subr.bf16.mxu0 %v11876_v53  ;;  %v4150_v52 = vld [vmem:[#allocation10 + $0xb18] sm:$0xff]  ;;  %v4153_v53 = vld [vmem:[#allocation10 + $0xb30] sm:$0xff]  ;;  %v11892_v56 = vpack.c.bf16 %v3567_v51, %v3564_v49  ;;  %v4167_v49 = vld [vmem:[#allocation10 + $0xba0] sm:$0xff] }
 0x6d4   :  { %12037 = vmatprep.subr.bf16.mxu1 %v12036_v57  ;;  %v3563_v57 = vld [vmem:[#allocation10 + $0x810] sm:$0xff]  ;;  %v12052_v22 = vpack.c.bf16 %v4153_v53, %v4150_v52  ;;  %v4170_v52 = vld [vmem:[#allocation10 + $0xbb8] sm:$0xff] }
 0x6d5   :  { %v11894_v14 = vpack.c.bf16 %v3566_v58, %v3563_v57  ;;  %v3588_v53 = vld [vmem:[#allocation10 + $0x8d8] sm:$0xff]  ;;  %v12066_v58 = vpack.c.bf16 %v4170_v52, %v4167_v49 }
 0x6d6   :  { %11879 = vmatpush1.bf16.msra.mxu0 %v11878_v62  ;;  %v3573_v62 = vld [vmem:[#allocation10 + $0x860] sm:$0xff]  ;;  %v4194_v52 = vld [vmem:[#allocation10 + $0xc78] sm:$0xff] }
 0x6d7   :  { %12039 = vmatpush1.bf16.msra.mxu1 %v12038_v7  ;;  %11881 = vmatprep.subr.bf16.mxu0 %v11880_v12  ;;  %v4156_v7 = vld [vmem:[#allocation10 + $0xb48] sm:$0xff]  ;;  %v4159_v12 = vld [vmem:[#allocation10 + $0xb60] sm:$0xff]  ;;  %v11896_v35 = vpack.c.bf16 %v3573_v62, %v3570_v60  ;;  %v4173_v60 = vld [vmem:[#allocation10 + $0xbd0] sm:$0xff] }
 0x6d8   :  { %12041 = vmatprep.subr.bf16.mxu1 %v12040_v16  ;;  %v3569_v16 = vld [vmem:[#allocation10 + $0x840] sm:$0xff]  ;;  %v12056_v17 = vpack.c.bf16 %v4159_v12, %v4156_v7  ;;  %v4176_v7 = vld [vmem:[#allocation10 + $0xbe8] sm:$0xff]  ;;  %v4133_v12 = vld [vmem:[#allocation10 + $0xa90] sm:$0xff] }
 0x6d9   :  { %v11898_v18 = vpack.c.bf16 %v3572_v28, %v3569_v16  ;;  %v12070_v28 = vpack.c.bf16 %v4176_v7, %v4173_v60  ;;  %v4200_v7 = vld [vmem:[#allocation10 + $0xca8] sm:$0xff] }
 0x6da   :  { %11883 = vmatpush1.bf16.msra.mxu0 %v11882_v27  ;;  %v3579_v27 = vld [vmem:[#allocation10 + $0x890] sm:$0xff] }
 0x6db   :  { %12043 = vmatpush1.bf16.msra.mxu1 %v12042_v63  ;;  %11885 = vmatprep.subr.bf16.mxu0 %v11884_v30  ;;  %v4162_v63 = vld [vmem:[#allocation10 + $0xb78] sm:$0xff]  ;;  %v4165_v30 = vld [vmem:[#allocation10 + $0xb90] sm:$0xff]  ;;  %v11900_v32 = vpack.c.bf16 %v3579_v27, %v3576_v29 }
 0x6dc   :  { %12045 = vmatprep.subr.bf16.mxu1 %v12044_v33  ;;  %v3575_v33 = vld [vmem:[#allocation10 + $0x870] sm:$0xff]  ;;  %v12060_v37 = vpack.c.bf16 %v4165_v30, %v4162_v63  ;;  %v4182_v29 = vld [vmem:[#allocation10 + $0xc18] sm:$0xff]  ;;  %v4088_v63 = vld [vmem:[#allocation10 + $0x928] sm:$0xff] }
 0x6dd   :  { %v11902_v0 = vpack.c.bf16 %v3578_v34, %v3575_v33  ;;  %v4085_v27 = vld [vmem:[#allocation10 + $0x910] sm:$0xff]  ;;  %v4186_v30 = vld [vmem:[#allocation10 + $0xc38] sm:$0xff]  ;;  %v12074_v33 = vpack.c.bf16 %v4182_v29, %v4179_v20 }
 0x6de   :  { %11887 = vmatpush1.bf16.msra.mxu0 %v11886_v19  ;;  %v3585_v19 = vld [vmem:[#allocation10 + $0x8c0] sm:$0xff]  ;;  %v12202_v34 = vpack.c.bf16 %v4088_v63, %v4085_v27  ;;  %v4206_v63 = vld [vmem:[#allocation10 + $0xcd8] sm:$0xff] }
 0x6df   :  { %12047 = vmatpush1.bf16.msra.mxu1 %v12046_v39  ;;  %11889 = vmatprep.subr.bf16.mxu0 %v11888_v40  ;;  %v4168_v39 = vld [vmem:[#allocation10 + $0xba8] sm:$0xff]  ;;  %v4171_v40 = vld [vmem:[#allocation10 + $0xbc0] sm:$0xff]  ;;  %v11904_v21 = vpack.c.bf16 %v3585_v19, %v3582_v38 }
 0x6e0   :  { %12049 = vmatprep.subr.bf16.mxu1 %v12048_v42  ;;  %v3581_v42 = vld [vmem:[#allocation10 + $0x8a0] sm:$0xff]  ;;  %v12064_v51 = vpack.c.bf16 %v4171_v40, %v4168_v39  ;;  %v4094_v39 = vld [vmem:[#allocation10 + $0x958] sm:$0xff]  ;;  %v4192_v40 = vld [vmem:[#allocation10 + $0xc68] sm:$0xff] }
 0x6e1   :  { %v11906_v57 = vpack.c.bf16 %v3584_v45, %v3581_v42  ;;  %v4091_v38 = vld [vmem:[#allocation10 + $0x940] sm:$0xff] }
 0x6e2   :  { %11891 = vmatpush1.bf16.msra.mxu0 %v11890_v54  ;;  %v3591_v54 = vld [vmem:[#allocation10 + $0x8f0] sm:$0xff]  ;;  %v12206_v45 = vpack.c.bf16 %v4094_v39, %v4091_v38  ;;  %v4203_v27 = vld [vmem:[#allocation10 + $0xcc0] sm:$0xff] }
 0x6e3   :  { %12051 = vmatpush1.bf16.msra.mxu1 %v12050_v55  ;;  %11893 = vmatprep.subr.bf16.mxu0 %v11892_v56  ;;  %v4174_v55 = vld [vmem:[#allocation10 + $0xbd8] sm:$0xff]  ;;  %v4177_v56 = vld [vmem:[#allocation10 + $0xbf0] sm:$0xff]  ;;  %v11908_v13 = vpack.c.bf16 %v3591_v54, %v3588_v53  ;;  %v4115_v39 = vld [vmem:[#allocation10 + $0xa00] sm:$0xff] }
 0x6e4   :  { %12053 = vmatprep.subr.bf16.mxu1 %v12052_v22  ;;  %v3587_v22 = vld [vmem:[#allocation10 + $0x8d0] sm:$0xff]  ;;  %v12068_v62 = vpack.c.bf16 %v4177_v56, %v4174_v55  ;;  %v4100_v55 = vld [vmem:[#allocation10 + $0x988] sm:$0xff]  ;;  %v4198_v56 = vld [vmem:[#allocation10 + $0xc98] sm:$0xff] }
 0x6e5   :  { %v11910_v16 = vpack.c.bf16 %v3590_v23, %v3587_v22  ;;  %v4097_v53 = vld [vmem:[#allocation10 + $0x970] sm:$0xff] }
 0x6e6   :  { %11895 = vmatpush1.bf16.msra.mxu0 %v11894_v14  ;;  %v4136_v14 = vld [vmem:[#allocation10 + $0xaa8] sm:$0xff]  ;;  %v12210_v23 = vpack.c.bf16 %v4100_v55, %v4097_v53  ;;  %v4209_v38 = vld [vmem:[#allocation10 + $0xcf0] sm:$0xff]  ;;  %v4215_v53 = vld [vmem:[#allocation10 + $0xd20] sm:$0xff] }
 0x6e7   :  { %12055 = vmatpush1.bf16.msra.mxu1 %v12054_v15  ;;  %11897 = vmatprep.subr.bf16.mxu0 %v11896_v35  ;;  %v4180_v15 = vld [vmem:[#allocation10 + $0xc08] sm:$0xff]  ;;  %v4183_v35 = vld [vmem:[#allocation10 + $0xc20] sm:$0xff]  ;;  %v12200_v24 = vpack.c.bf16 %v4136_v14, %v4133_v12  ;;  %v4121_v55 = vld [vmem:[#allocation10 + $0xa30] sm:$0xff] }
 0x6e8   :  { %12057 = vmatprep.subr.bf16.mxu1 %v12056_v17  ;;  %v12072_v17 = vpack.c.bf16 %v4183_v35, %v4180_v15  ;;  %v4103_v12 = vld [vmem:[#allocation10 + $0x9a0] sm:$0xff]  ;;  %v4106_v15 = vld [vmem:[#allocation10 + $0x9b8] sm:$0xff]  ;;  %v4204_v35 = vld [vmem:[#allocation10 + $0xcc8] sm:$0xff] }
 0x6e9   :  { %v12214_v20 = vpack.c.bf16 %v4106_v15, %v4103_v12  ;;  %v4221_v12 = vld [vmem:[#allocation10 + $0xd50] sm:$0xff]  ;;  %v4127_v15 = vld [vmem:[#allocation10 + $0xa60] sm:$0xff] }
 0x6ea   :  { %11899 = vmatpush1.bf16.msra.mxu0 %v11898_v18  ;;  %v4189_v18 = vld [vmem:[#allocation10 + $0xc50] sm:$0xff] }
 0x6eb   :  { %12059 = vmatpush1.bf16.msra.mxu1 %v12058_v3  ;;  %11901 = vmatprep.subr.bf16.mxu0 %v11900_v32  ;;  %v4139_v3 = vld [vmem:[#allocation10 + $0xac0] sm:$0xff]  ;;  %v4142_v32 = vld [vmem:[#allocation10 + $0xad8] sm:$0xff]  ;;  %v12076_v36 = vpack.c.bf16 %v4189_v18, %v4186_v30  ;;  %v4109_v30 = vld [vmem:[#allocation10 + $0x9d0] sm:$0xff] }
 0x6ec   :  { %12061 = vmatprep.subr.bf16.mxu1 %v12060_v37  ;;  %v4185_v37 = vld [vmem:[#allocation10 + $0xc30] sm:$0xff]  ;;  %v12204_v19 = vpack.c.bf16 %v4142_v32, %v4139_v3  ;;  %v4112_v3 = vld [vmem:[#allocation10 + $0x9e8] sm:$0xff]  ;;  %v4210_v32 = vld [vmem:[#allocation10 + $0xcf8] sm:$0xff] }
 0x6ed   :  { %v12078_v42 = vpack.c.bf16 %v4188_v11, %v4185_v37  ;;  %v12218_v37 = vpack.c.bf16 %v4112_v3, %v4109_v30  ;;  %v4227_v30 = vld [vmem:[#allocation10 + $0xd80] sm:$0xff] }
 0x6ee   :  { %11903 = vmatpush1.bf16.msra.mxu0 %v11902_v0  ;;  %v4195_v0 = vld [vmem:[#allocation10 + $0xc80] sm:$0xff] }
 0x6ef   :  { %12063 = vmatpush1.bf16.msra.mxu1 %v12062_v41  ;;  %11905 = vmatprep.subr.bf16.mxu0 %v11904_v21  ;;  %v4145_v41 = vld [vmem:[#allocation10 + $0xaf0] sm:$0xff]  ;;  %v4148_v21 = vld [vmem:[#allocation10 + $0xb08] sm:$0xff]  ;;  %v12080_v49 = vpack.c.bf16 %v4195_v0, %v4192_v40  ;;  %v4118_v0 = vld [vmem:[#allocation10 + $0xa18] sm:$0xff] }
 0x6f0   :  { %12065 = vmatprep.subr.bf16.mxu1 %v12064_v51  ;;  %v4191_v51 = vld [vmem:[#allocation10 + $0xc60] sm:$0xff]  ;;  %v12208_v54 = vpack.c.bf16 %v4148_v21, %v4145_v41  ;;  %v4216_v41 = vld [vmem:[#allocation10 + $0xd28] sm:$0xff] }
 0x6f1   :  { %v12082_v22 = vpack.c.bf16 %v4194_v52, %v4191_v51  ;;  %v4219_v21 = vld [vmem:[#allocation10 + $0xd40] sm:$0xff]  ;;  %v12222_v51 = vpack.c.bf16 %v4118_v0, %v4115_v39  ;;  %v4236_v39 = vld [vmem:[#allocation10 + $0xdc8] sm:$0xff] }
 0x6f2   :  { %11907 = vmatpush1.bf16.msra.mxu0 %v11906_v57  ;;  %v4201_v57 = vld [vmem:[#allocation10 + $0xcb0] sm:$0xff]  ;;  %v12096_v52 = vpack.c.bf16 %v4219_v21, %v4216_v41  ;;  %v4187_v41 = vld [vmem:[#allocation10 + $0xc40] sm:$0xff]  ;;  %v4190_v21 = vld [vmem:[#allocation10 + $0xc58] sm:$0xff] }
 0x6f3   :  { %12067 = vmatpush1.bf16.msra.mxu1 %v12066_v58  ;;  %11909 = vmatprep.subr.bf16.mxu0 %v11908_v13  ;;  %v4151_v58 = vld [vmem:[#allocation10 + $0xb20] sm:$0xff]  ;;  %v4154_v13 = vld [vmem:[#allocation10 + $0xb38] sm:$0xff]  ;;  %v12084_v60 = vpack.c.bf16 %v4201_v57, %v4198_v56  ;;  %v4124_v57 = vld [vmem:[#allocation10 + $0xa48] sm:$0xff] }
 0x6f4   :  { %12069 = vmatprep.subr.bf16.mxu1 %v12068_v62  ;;  %v4197_v62 = vld [vmem:[#allocation10 + $0xc90] sm:$0xff]  ;;  %v12212_v14 = vpack.c.bf16 %v4154_v13, %v4151_v58  ;;  %v4222_v58 = vld [vmem:[#allocation10 + $0xd58] sm:$0xff] }
 0x6f5   :  { %v4225_v13 = vld [vmem:[#allocation10 + $0xd70] sm:$0xff] }
 0x6f6   :  { %11911 = vmatpush1.bf16.msra.mxu0 %v11910_v16  ;;  %v4207_v16 = vld [vmem:[#allocation10 + $0xce0] sm:$0xff] }
 0x6f7   :  { %12071 = vmatpush1.bf16.msra.mxu1 %v12070_v28  ;;  %12201 = vmatprep.subr.bf16.mxu0 %v12200_v24  ;;  %v4157_v28 = vld [vmem:[#allocation10 + $0xb50] sm:$0xff]  ;;  %v4160_v24 = vld [vmem:[#allocation10 + $0xb68] sm:$0xff]  ;;  %v12088_v29 = vpack.c.bf16 %v4207_v16, %v4204_v35  ;;  %v4130_v16 = vld [vmem:[#allocation10 + $0xa78] sm:$0xff] }
 0x6f8   :  { %12073 = vmatprep.subr.bf16.mxu1 %v12072_v17  ;;  %v12086_v17 = vpack.c.bf16 %v4200_v7, %v4197_v62  ;;  %v12216_v18 = vpack.c.bf16 %v4160_v24, %v4157_v28  ;;  %v12226_v62 = vpack.c.bf16 %v4124_v57, %v4121_v55  ;;  %v12100_v7 = vpack.c.bf16 %v4225_v13, %v4222_v58  ;;  %v4228_v28 = vld [vmem:[#allocation10 + $0xd88] sm:$0xff]  ;;  %v4231_v24 = vld [vmem:[#allocation10 + $0xda0] sm:$0xff]  ;;  %v4242_v55 = vld [vmem:[#allocation10 + $0xdf8] sm:$0xff] }
 0x6f9   :  { %3824 = vmatmul.mubr.f32.vlgmr.msra.gmra.mrb[30].mxu0 %v15562_v8  ;;  %v4193_v58 = vld [vmem:[#allocation10 + $0xc70] sm:$0xff]  ;;  %v4196_v13 = vld [vmem:[#allocation10 + $0xc88] sm:$0xff] }
 0x6fa   :  { %4436 = vmatmul.mubr.f32.vlgmr.msra.gmra.mrb[90].mxu1 %v15515_v10  ;;  %3829 = vmatprep.mubr.f32.mxu0 %v15571_v43 }
 0x6fb   :  { %4441 = vmatprep.mubr.f32.mxu1 %v15525_v50  ;;  %12075 = vmatpush1.bf16.msra.mxu1 %v12074_v33  ;;  %v4213_v33 = vld [vmem:[#allocation10 + $0xd10] sm:$0xff] }
 0x6fc   :  { %12203 = vmatpush3.bf16.msra.mxu0 %v12202_v34  ;;  %12077 = vmatprep.subr.bf16.mxu1 %v12076_v36  ;;  %v4163_v34 = vld [vmem:[#allocation10 + $0xb80] sm:$0xff]  ;;  %v12090_v36 = vpack.c.bf16 %v4206_v63, %v4203_v27  ;;  %v12092_v11 = vpack.c.bf16 %v4213_v33, %v4210_v32  ;;  %v12230_v27 = vpack.c.bf16 %v4130_v16, %v4127_v15  ;;  %v4181_v32 = vld [vmem:[#allocation10 + $0xc10] sm:$0xff]  ;;  %v4184_v33 = vld [vmem:[#allocation10 + $0xc28] sm:$0xff] }
 0x6fd   :  { %3830 = vmatmul.mubr.f32.gmra.mrb[32].mxu0 %v15568_v2  ;;  %12205 = vmatprep.subr.bf16.mxu0 %v12204_v19  ;;  %v4212_v19 = vld [vmem:[#allocation10 + $0xd08] sm:$0xff]  ;;  %v12104_v63 = vpack.c.bf16 %v4231_v24, %v4228_v28  ;;  %v4202_v16 = vld [vmem:[#allocation10 + $0xcb8] sm:$0xff]  ;;  %v4255_v24 = vld [vmem:[#allocation10 + $0xe60] sm:$0xff] }
 0x6fe   :  { %4442 = vmatmul.mubr.f32.gmra.mrb[92].mxu1 %v15521_v48  ;;  %3835 = vmatprep.mubr.f32.mxu0 %v15577_v61  ;;  %v4252_v28 = vld [vmem:[#allocation10 + $0xe48] sm:$0xff] }
 0x6ff   :  { %4447 = vmatprep.mubr.f32.mxu1 %v15535_v9  ;;  %12079 = vmatpush1.bf16.msra.mxu1 %v12078_v42  ;;  %v4169_v42 = vld [vmem:[#allocation10 + $0xbb0] sm:$0xff] }
 0x700   :  { %12207 = vmatpush3.bf16.msra.mxu0 %v12206_v45  ;;  %12081 = vmatprep.subr.bf16.mxu1 %v12080_v49  ;;  %v4172_v45 = vld [vmem:[#allocation10 + $0xbc8] sm:$0xff]  ;;  %v12094_v49 = vpack.c.bf16 %v4212_v19, %v4209_v38  ;;  %v12234_v38 = vpack.c.bf16 %v4184_v33, %v4181_v32  ;;  %v4233_v19 = vld [vmem:[#allocation10 + $0xdb0] sm:$0xff]  ;;  %v4258_v32 = vld [vmem:[#allocation10 + $0xe78] sm:$0xff] }
 0x701   :  { %3836 = vmatmul.mubr.f32.gmra.mrb[34].mxu0 %v15574_v59  ;;  %12209 = vmatprep.subr.bf16.mxu0 %v12208_v54  ;;  %v4218_v54 = vld [vmem:[#allocation10 + $0xd38] sm:$0xff]  ;;  %v12224_v56 = vpack.c.bf16 %v4172_v45, %v4169_v42  ;;  %v4240_v42 = vld [vmem:[#allocation10 + $0xde8] sm:$0xff]  ;;  %v4243_v45 = vld [vmem:[#allocation10 + $0xe00] sm:$0xff] }
 0x702   :  { %4448 = vmatmul.mubr.f32.gmra.mrb[94].mxu1 %v15530_v6  ;;  %4684 = vmatprep.mubr.f32.mxu0 %v15517_v25  ;;  %v4166_v25 = vld [vmem:[#allocation10 + $0xb98] sm:$0xff]  ;;  %v4261_v33 = vld [vmem:[#allocation10 + $0xe90] sm:$0xff] }
 0x703   :  { %12083 = vmatpush1.bf16.msra.mxu1 %v12082_v22  ;;  %4518 = vmatprep.mubr.f32.mxu1 %v15545_v5  ;;  %v12220_v40 = vpack.c.bf16 %v4166_v25, %v4163_v34  ;;  %v4175_v22 = vld [vmem:[#allocation10 + $0xbe0] sm:$0xff]  ;;  %v4234_v34 = vld [vmem:[#allocation10 + $0xdb8] sm:$0xff]  ;;  %v4237_v25 = vld [vmem:[#allocation10 + $0xdd0] sm:$0xff] }
 0x704   :  { %12211 = vmatpush3.bf16.msra.mxu0 %v12210_v23  ;;  %12085 = vmatprep.subr.bf16.mxu1 %v12084_v60  ;;  %v4178_v23 = vld [vmem:[#allocation10 + $0xbf8] sm:$0xff]  ;;  %v12098_v60 = vpack.c.bf16 %v4218_v54, %v4215_v53  ;;  %v12238_v53 = vpack.c.bf16 %v4190_v21, %v4187_v41  ;;  %v4239_v54 = vld [vmem:[#allocation10 + $0xde0] sm:$0xff]  ;;  %v4265_v41 = vld [vmem:[#allocation10 + $0xeb0] sm:$0xff] }
 0x705   :  { %12213 = vmatprep.subr.bf16.mxu0 %v12212_v14  ;;  %v4224_v14 = vld [vmem:[#allocation10 + $0xd68] sm:$0xff]  ;;  %v12228_v35 = vpack.c.bf16 %v4178_v23, %v4175_v22  ;;  %v4246_v22 = vld [vmem:[#allocation10 + $0xe18] sm:$0xff]  ;;  %v4249_v23 = vld [vmem:[#allocation10 + $0xe30] sm:$0xff] }
 0x706   :  { %v12116_v15 = vpack.c.bf16 %v4249_v23, %v4246_v22  ;;  %v4268_v21 = vld [vmem:[#allocation10 + $0xec8] sm:$0xff] }
 0x707   :  { %12087 = vmatpush1.bf16.msra.mxu1 %v12086_v17  ;;  %v4229_v17 = vld [vmem:[#allocation10 + $0xd90] sm:$0xff] }
 0x708   :  { %12215 = vmatpush3.bf16.msra.mxu0 %v12214_v20  ;;  %12089 = vmatprep.subr.bf16.mxu1 %v12088_v29  ;;  %v4232_v20 = vld [vmem:[#allocation10 + $0xda8] sm:$0xff]  ;;  %v12102_v29 = vpack.c.bf16 %v4224_v14, %v4221_v12  ;;  %v4199_v14 = vld [vmem:[#allocation10 + $0xca0] sm:$0xff] }
 0x709   :  { %12217 = vmatprep.subr.bf16.mxu0 %v12216_v18  ;;  %v4230_v18 = vld [vmem:[#allocation10 + $0xd98] sm:$0xff]  ;;  %v12232_v3 = vpack.c.bf16 %v4232_v20, %v4229_v17  ;;  %v4248_v12 = vld [vmem:[#allocation10 + $0xe28] sm:$0xff]  ;;  %v4253_v17 = vld [vmem:[#allocation10 + $0xe50] sm:$0xff] }
 0x70a   :  { %v4256_v20 = vld [vmem:[#allocation10 + $0xe68] sm:$0xff] }
 0x70b   :  { %12091 = vmatpush1.bf16.msra.mxu1 %v12090_v36  ;;  %v4235_v36 = vld [vmem:[#allocation10 + $0xdc0] sm:$0xff] }
 0x70c   :  { %12219 = vmatpush3.bf16.msra.mxu0 %v12218_v37  ;;  %12093 = vmatprep.subr.bf16.mxu1 %v12092_v11  ;;  %v4238_v37 = vld [vmem:[#allocation10 + $0xdd8] sm:$0xff]  ;;  %v12106_v11 = vpack.c.bf16 %v4230_v18, %v4227_v30  ;;  %v4205_v30 = vld [vmem:[#allocation10 + $0xcd0] sm:$0xff]  ;;  %v12248_v18 = vpack.c.bf16 %v4256_v20, %v4253_v17 }
 0x70d   :  { %12221 = vmatprep.subr.bf16.mxu0 %v12220_v40  ;;  %v12108_v40 = vpack.c.bf16 %v4237_v25, %v4234_v34  ;;  %v12236_v0 = vpack.c.bf16 %v4238_v37, %v4235_v36  ;;  %v4259_v34 = vld [vmem:[#allocation10 + $0xe80] sm:$0xff]  ;;  %v4262_v25 = vld [vmem:[#allocation10 + $0xe98] sm:$0xff]  ;;  %v12124_v37 = vpack.c.bf16 %v4261_v33, %v4258_v32 }
 0x70f   :  { %12095 = vmatpush1.bf16.msra.mxu1 %v12094_v49  ;;  %v4241_v49 = vld [vmem:[#allocation10 + $0xdf0] sm:$0xff] }
 0x710   :  { %12223 = vmatpush3.bf16.msra.mxu0 %v12222_v51  ;;  %12097 = vmatprep.subr.bf16.mxu1 %v12096_v52  ;;  %v4244_v51 = vld [vmem:[#allocation10 + $0xe08] sm:$0xff]  ;;  %v12110_v52 = vpack.c.bf16 %v4236_v39, %v4233_v19  ;;  %v12252_v19 = vpack.c.bf16 %v4262_v25, %v4259_v34  ;;  %v4214_v39 = vld [vmem:[#allocation10 + $0xd18] sm:$0xff]  ;;  %v4281_v25 = vld [vmem:[#allocation10 + $0xf30] sm:$0xff] }
 0x711   :  { %12225 = vmatprep.subr.bf16.mxu0 %v12224_v56  ;;  %v12112_v56 = vpack.c.bf16 %v4243_v45, %v4240_v42  ;;  %v12240_v57 = vpack.c.bf16 %v4244_v51, %v4241_v49  ;;  %v4263_v51 = vld [vmem:[#allocation10 + $0xea0] sm:$0xff] }
 0x713   :  { %12099 = vmatpush1.bf16.msra.mxu1 %v12098_v60  ;;  %v4247_v60 = vld [vmem:[#allocation10 + $0xe20] sm:$0xff] }
 0x714   :  { %12227 = vmatpush3.bf16.msra.mxu0 %v12226_v62  ;;  %12101 = vmatprep.subr.bf16.mxu1 %v12100_v7  ;;  %v4250_v62 = vld [vmem:[#allocation10 + $0xe38] sm:$0xff]  ;;  %v4245_v7 = vld [vmem:[#allocation10 + $0xe10] sm:$0xff] }
 0x715   :  { %12229 = vmatprep.subr.bf16.mxu0 %v12228_v35  ;;  %v12244_v35 = vpack.c.bf16 %v4250_v62, %v4247_v60  ;;  %v4269_v62 = vld [vmem:[#allocation10 + $0xed0] sm:$0xff] }
 0x717   :  { %12103 = vmatpush1.bf16.msra.mxu1 %v12102_v29  ;;  %v12120_v29 = vpack.c.bf16 %v4255_v24, %v4252_v28 }
 0x718   :  { %12231 = vmatpush3.bf16.msra.mxu0 %v12230_v27  ;;  %12105 = vmatprep.subr.bf16.mxu1 %v12104_v63  ;;  %v4251_v27 = vld [vmem:[#allocation10 + $0xe40] sm:$0xff]  ;;  %v4254_v63 = vld [vmem:[#allocation10 + $0xe58] sm:$0xff] }
 0x719   :  { %12233 = vmatprep.subr.bf16.mxu0 %v12232_v3  ;;  %v4208_v3 = vld [vmem:[#allocation10 + $0xce8] sm:$0xff] }
 0x71a   :  { %v12250_v36 = vpack.c.bf16 %v4208_v3, %v4205_v30  ;;  %v4285_v30 = vld [vmem:[#allocation10 + $0xf50] sm:$0xff]  ;;  %v4334_v3 = vld [vmem:[#allocation10 + $0x10d8] sm:$0xff] }
 0x71b   :  { %4685 = vmatmul.mubr.f32.vlgmr.msra.gmra.mrb[36].mxu0 %v15515_v10  ;;  %12107 = vmatpush1.bf16.msra.mxu1 %v12106_v11  ;;  %v12114_v10 = vpack.c.bf16 %v4242_v55, %v4239_v54  ;;  %v4260_v11 = vld [vmem:[#allocation10 + $0xe88] sm:$0xff]  ;;  %v12256_v54 = vpack.c.bf16 %v4268_v21, %v4265_v41  ;;  %v4287_v21 = vld [vmem:[#allocation10 + $0xf60] sm:$0xff] }
 0x71c   :  { %4689 = vmatprep.mubr.f32.mxu0 %v15525_v50  ;;  %12235 = vmatpush3.bf16.msra.mxu0 %v12234_v38  ;;  %v12242_v50 = vpack.c.bf16 %v4196_v13, %v4193_v58  ;;  %v4211_v38 = vld [vmem:[#allocation10 + $0xd00] sm:$0xff]  ;;  %v4220_v55 = vld [vmem:[#allocation10 + $0xd48] sm:$0xff]  ;;  %v4274_v13 = vld [vmem:[#allocation10 + $0xef8] sm:$0xff] }
 0x71d   :  { %12109 = vmatprep.subr.bf16.mxu1 %v12108_v40  ;;  %12237 = vmatprep.subr.bf16.mxu0 %v12236_v0  ;;  %v4264_v40 = vld [vmem:[#allocation10 + $0xea8] sm:$0xff]  ;;  %v4267_v0 = vld [vmem:[#allocation10 + $0xec0] sm:$0xff]  ;;  %v12254_v45 = vpack.c.bf16 %v4214_v39, %v4211_v38 }
 0x71e   :  { %v12128_v49 = vpack.c.bf16 %v4267_v0, %v4264_v40  ;;  %v4271_v58 = vld [vmem:[#allocation10 + $0xee0] sm:$0xff]  ;;  %v4340_v39 = vld [vmem:[#allocation10 + $0x1108] sm:$0xff] }
 0x71f   :  { %4690 = vmatmul.mubr.f32.gmra.mrb[38].mxu0 %v15521_v48  ;;  %12111 = vmatpush1.bf16.msra.mxu1 %v12110_v52  ;;  %v12118_v48 = vpack.c.bf16 %v4248_v12, %v4245_v7  ;;  %v4266_v52 = vld [vmem:[#allocation10 + $0xeb8] sm:$0xff]  ;;  %v12260_v7 = vpack.c.bf16 %v4274_v13, %v4271_v58  ;;  %v4291_v38 = vld [vmem:[#allocation10 + $0xf80] sm:$0xff]  ;;  %v4296_v58 = vld [vmem:[#allocation10 + $0xfa8] sm:$0xff] }
 0x720   :  { %4694 = vmatprep.mubr.f32.mxu0 %v15535_v9  ;;  %12239 = vmatpush3.bf16.msra.mxu0 %v12238_v53  ;;  %v12246_v9 = vpack.c.bf16 %v4202_v16, %v4199_v14  ;;  %v4217_v53 = vld [vmem:[#allocation10 + $0xd30] sm:$0xff]  ;;  %v12130_v22 = vpack.c.bf16 %v4266_v52, %v4263_v51  ;;  %v4226_v12 = vld [vmem:[#allocation10 + $0xd78] sm:$0xff]  ;;  %v4276_v14 = vld [vmem:[#allocation10 + $0xf08] sm:$0xff] }
 0x721   :  { %12113 = vmatprep.subr.bf16.mxu1 %v12112_v56  ;;  %12241 = vmatprep.subr.bf16.mxu0 %v12240_v57  ;;  %v4270_v56 = vld [vmem:[#allocation10 + $0xed8] sm:$0xff]  ;;  %v4273_v57 = vld [vmem:[#allocation10 + $0xef0] sm:$0xff]  ;;  %v12258_v23 = vpack.c.bf16 %v4220_v55, %v4217_v53  ;;  %v4328_v16 = vld [vmem:[#allocation10 + $0x10a8] sm:$0xff] }
 0x722   :  { %v12132_v60 = vpack.c.bf16 %v4273_v57, %v4270_v56  ;;  %v4294_v51 = vld [vmem:[#allocation10 + $0xf98] sm:$0xff]  ;;  %v4297_v52 = vld [vmem:[#allocation10 + $0xfb0] sm:$0xff]  ;;  %v4295_v13 = vld [vmem:[#allocation10 + $0xfa0] sm:$0xff] }
 0x723   :  { %4695 = vmatmul.mubr.f32.gmra.mrb[40].mxu0 %v15530_v6  ;;  %12115 = vmatpush1.bf16.msra.mxu1 %v12114_v10  ;;  %v12122_v6 = vpack.c.bf16 %v4254_v63, %v4251_v27  ;;  %v4272_v10 = vld [vmem:[#allocation10 + $0xee8] sm:$0xff]  ;;  %v4282_v63 = vld [vmem:[#allocation10 + $0xf38] sm:$0xff]  ;;  %v12148_v56 = vpack.c.bf16 %v4297_v52, %v4294_v51  ;;  %v4293_v57 = vld [vmem:[#allocation10 + $0xf90] sm:$0xff] }
 0x724   :  { %12243 = vmatpush3.bf16.msra.mxu0 %v12242_v50  ;;  %4764 = vmatprep.mubr.f32.mxu0 %v15545_v5  ;;  %v4257_v5 = vld [vmem:[#allocation10 + $0xe70] sm:$0xff]  ;;  %v4223_v50 = vld [vmem:[#allocation10 + $0xd60] sm:$0xff]  ;;  %v12134_v28 = vpack.c.bf16 %v4272_v10, %v4269_v62  ;;  %v4280_v27 = vld [vmem:[#allocation10 + $0xf28] sm:$0xff]  ;;  %v12140_v34 = vpack.c.bf16 %v4285_v30, %v4282_v63  ;;  %v12150_v10 = vpack.c.bf16 %v4296_v58, %v4293_v57 }
 0x725   :  { %12117 = vmatprep.subr.bf16.mxu1 %v12116_v15  ;;  %12245 = vmatprep.subr.bf16.mxu0 %v12244_v35  ;;  %v12126_v42 = vpack.c.bf16 %v4260_v11, %v4257_v5  ;;  %v4279_v15 = vld [vmem:[#allocation10 + $0xf20] sm:$0xff]  ;;  %v4325_v35 = vld [vmem:[#allocation10 + $0x1090] sm:$0xff]  ;;  %v12262_v24 = vpack.c.bf16 %v4226_v12, %v4223_v50  ;;  %v4286_v5 = vld [vmem:[#allocation10 + $0xf58] sm:$0xff] }
 0x726   :  { %v12136_v17 = vpack.c.bf16 %v4279_v15, %v4276_v14  ;;  %v12264_v20 = vpack.c.bf16 %v4328_v16, %v4325_v35  ;;  %v4288_v11 = vld [vmem:[#allocation10 + $0xf68] sm:$0xff]  ;;  %v4346_v53 = vld [vmem:[#allocation10 + $0x1138] sm:$0xff]  ;;  %v4299_v12 = vld [vmem:[#allocation10 + $0xfc0] sm:$0xff] }
 0x727   :  { %12119 = vmatpush1.bf16.msra.mxu1 %v12118_v48  ;;  %v4275_v48 = vld [vmem:[#allocation10 + $0xf00] sm:$0xff]  ;;  %v12144_v41 = vpack.c.bf16 %v4291_v38, %v4288_v11  ;;  %v4352_v62 = vld [vmem:[#allocation10 + $0x1168] sm:$0xff]  ;;  %v4302_v14 = vld [vmem:[#allocation10 + $0xfd8] sm:$0xff] }
 0x728   :  { %12247 = vmatpush3.bf16.msra.mxu0 %v12246_v9  ;;  %12121 = vmatprep.subr.bf16.mxu1 %v12120_v29  ;;  %v4278_v9 = vld [vmem:[#allocation10 + $0xf18] sm:$0xff]  ;;  %v4277_v29 = vld [vmem:[#allocation10 + $0xf10] sm:$0xff]  ;;  %v4304_v16 = vld [vmem:[#allocation10 + $0xfe8] sm:$0xff] }
 0x729   :  { %12249 = vmatprep.subr.bf16.mxu0 %v12248_v18  ;;  %v4331_v18 = vld [vmem:[#allocation10 + $0x10c0] sm:$0xff]  ;;  %v12138_v32 = vpack.c.bf16 %v4278_v9, %v4275_v48  ;;  %v12266_v33 = vpack.c.bf16 %v4280_v27, %v4277_v29  ;;  %v4301_v15 = vld [vmem:[#allocation10 + $0xfd0] sm:$0xff]  ;;  %v4308_v29 = vld [vmem:[#allocation10 + $0x1008] sm:$0xff] }
 0x72a   :  { %v4305_v9 = vld [vmem:[#allocation10 + $0xff0] sm:$0xff]  ;;  %v4307_v27 = vld [vmem:[#allocation10 + $0x1000] sm:$0xff]  ;;  %v4310_v30 = vld [vmem:[#allocation10 + $0x1018] sm:$0xff] }
 0x72b   :  { %12123 = vmatpush1.bf16.msra.mxu1 %v12122_v6  ;;  %v4284_v6 = vld [vmem:[#allocation10 + $0xf48] sm:$0xff]  ;;  %v4311_v11 = vld [vmem:[#allocation10 + $0x1020] sm:$0xff]  ;;  %v4314_v38 = vld [vmem:[#allocation10 + $0x1038] sm:$0xff] }
 0x72c   :  { %12251 = vmatpush3.bf16.msra.mxu0 %v12250_v36  ;;  %12125 = vmatprep.subr.bf16.mxu1 %v12124_v37  ;;  %v4283_v36 = vld [vmem:[#allocation10 + $0xf40] sm:$0xff]  ;;  %v12268_v37 = vpack.c.bf16 %v4334_v3, %v4331_v18  ;;  %v12142_v40 = vpack.c.bf16 %v4284_v6, %v4281_v25  ;;  %v4312_v18 = vld [vmem:[#allocation10 + $0x1028] sm:$0xff]  ;;  %v12158_v6 = vpack.c.bf16 %v4308_v29, %v4305_v9  ;;  %v4322_v57 = vld [vmem:[#allocation10 + $0x1078] sm:$0xff] }
 0x72d   :  { %12253 = vmatprep.subr.bf16.mxu0 %v12252_v19  ;;  %v4337_v19 = vld [vmem:[#allocation10 + $0x10f0] sm:$0xff]  ;;  %v12270_v0 = vpack.c.bf16 %v4286_v5, %v4283_v36  ;;  %v4315_v3 = vld [vmem:[#allocation10 + $0x1040] sm:$0xff]  ;;  %v4324_v58 = vld [vmem:[#allocation10 + $0x1088] sm:$0xff] }
 0x72e   :  { %v12160_v5 = vpack.c.bf16 %v4315_v3, %v4312_v18  ;;  %v4345_v9 = vld [vmem:[#allocation10 + $0x1130] sm:$0xff]  ;;  %v4348_v18 = vld [vmem:[#allocation10 + $0x1148] sm:$0xff]  ;;  %v4351_v3 = vld [vmem:[#allocation10 + $0x1160] sm:$0xff] }
 0x72f   :  { %12127 = vmatpush1.bf16.msra.mxu1 %v12126_v42  ;;  %v4290_v42 = vld [vmem:[#allocation10 + $0xf78] sm:$0xff] }
 0x730   :  { %12255 = vmatpush3.bf16.msra.mxu0 %v12254_v45  ;;  %12129 = vmatprep.subr.bf16.mxu1 %v12128_v49  ;;  %v4289_v45 = vld [vmem:[#allocation10 + $0xf70] sm:$0xff]  ;;  %v12272_v49 = vpack.c.bf16 %v4340_v39, %v4337_v19 }
 0x731   :  { %12257 = vmatprep.subr.bf16.mxu0 %v12256_v54  ;;  %v12146_v54 = vpack.c.bf16 %v4290_v42, %v4287_v21  ;;  %v4313_v19 = vld [vmem:[#allocation10 + $0x1030] sm:$0xff]  ;;  %v4367_v42 = vld [vmem:[#allocation10 + $0x11e0] sm:$0xff] }
 0x733   :  { %12131 = vmatpush1.bf16.msra.mxu1 %v12130_v22 }
 0x734   :  { %12259 = vmatpush3.bf16.msra.mxu0 %v12258_v23  ;;  %12133 = vmatprep.subr.bf16.mxu1 %v12132_v60  ;;  %v4300_v23 = vld [vmem:[#allocation10 + $0xfc8] sm:$0xff]  ;;  %v4303_v60 = vld [vmem:[#allocation10 + $0xfe0] sm:$0xff] }
 0x735   :  { %12261 = vmatprep.subr.bf16.mxu0 %v12260_v7  ;;  %v12152_v7 = vpack.c.bf16 %v4303_v60, %v4300_v23 }
 0x737   :  { %12135 = vmatpush1.bf16.msra.mxu1 %v12134_v28  ;;  %v4306_v28 = vld [vmem:[#allocation10 + $0xff8] sm:$0xff] }
 0x738   :  { %12263 = vmatpush3.bf16.msra.mxu0 %v12262_v24  ;;  %12137 = vmatprep.subr.bf16.mxu1 %v12136_v17  ;;  %v4355_v24 = vld [vmem:[#allocation10 + $0x1180] sm:$0xff]  ;;  %v4358_v17 = vld [vmem:[#allocation10 + $0x1198] sm:$0xff] }
 0x739   :  { %12265 = vmatprep.subr.bf16.mxu0 %v12264_v20  ;;  %v12154_v20 = vpack.c.bf16 %v4302_v14, %v4299_v12  ;;  %v12284_v63 = vpack.c.bf16 %v4358_v17, %v4355_v24  ;;  %v4333_v12 = vld [vmem:[#allocation10 + $0x10d0] sm:$0xff] }
 0x73a   :  { %4519 = vmatmul.mubr.f32.vlgmr.msra.gmra.mrb[90].mxu1 %v15540_v26 }
 0x73b   :  { %4765 = vmatmul.mubr.f32.vlgmr.msra.gmra.mrb[42].mxu0 %v15540_v26  ;;  %4524 = vmatprep.mubr.f32.mxu1 %v15553_v46  ;;  %v4292_v26 = vld [vmem:[#allocation10 + $0xf88] sm:$0xff] }
 0x73c   :  { %12139 = vmatpush1.bf16.msra.mxu1 %v12138_v32  ;;  %4769 = vmatprep.mubr.f32.mxu0 %v15553_v46  ;;  %v4343_v46 = vld [vmem:[#allocation10 + $0x1120] sm:$0xff]  ;;  %v12274_v55 = vpack.c.bf16 %v4292_v26, %v4289_v45  ;;  %v4370_v45 = vld [vmem:[#allocation10 + $0x11f8] sm:$0xff]  ;;  %v12162_v26 = vpack.c.bf16 %v4314_v38, %v4311_v11  ;;  %v4353_v38 = vld [vmem:[#allocation10 + $0x1170] sm:$0xff] }
 0x73d   :  { %12267 = vmatpush3.bf16.msra.mxu0 %v12266_v33  ;;  %12141 = vmatprep.subr.bf16.mxu1 %v12140_v34  ;;  %v12276_v22 = vpack.c.bf16 %v4346_v53, %v4343_v46  ;;  %v4361_v33 = vld [vmem:[#allocation10 + $0x11b0] sm:$0xff]  ;;  %v4364_v34 = vld [vmem:[#allocation10 + $0x11c8] sm:$0xff] }
 0x73e   :  { %4525 = vmatmul.mubr.f32.gmra.mrb[92].mxu1 %v15550_v44  ;;  %12269 = vmatprep.subr.bf16.mxu0 %v12268_v37  ;;  %v12286_v37 = vpack.c.bf16 %v4310_v30, %v4307_v27  ;;  %v12288_v39 = vpack.c.bf16 %v4364_v34, %v4361_v33  ;;  %v4317_v53 = vld [vmem:[#allocation10 + $0x1050] sm:$0xff]  ;;  %v4344_v30 = vld [vmem:[#allocation10 + $0x1128] sm:$0xff]  ;;  %v12184_v33 = vpack.c.bf16 %v4351_v3, %v4348_v18  ;;  %v4347_v34 = vld [vmem:[#allocation10 + $0x1140] sm:$0xff] }
 0x73f   :  { %4770 = vmatmul.mubr.f32.gmra.mrb[44].mxu0 %v15550_v44  ;;  %4530 = vmatprep.mubr.f32.mxu1 %v15559_v4  ;;  %v4298_v44 = vld [vmem:[#allocation10 + $0xfb8] sm:$0xff] }
 0x740   :  { %12143 = vmatpush1.bf16.msra.mxu1 %v12142_v40  ;;  %4774 = vmatprep.mubr.f32.mxu0 %v15559_v4  ;;  %v4349_v4 = vld [vmem:[#allocation10 + $0x1150] sm:$0xff]  ;;  %v12278_v50 = vpack.c.bf16 %v4298_v44, %v4295_v13  ;;  %v4316_v40 = vld [vmem:[#allocation10 + $0x1048] sm:$0xff]  ;;  %v4327_v13 = vld [vmem:[#allocation10 + $0x10a0] sm:$0xff] }
 0x741   :  { %12271 = vmatpush3.bf16.msra.mxu0 %v12270_v0  ;;  %12145 = vmatprep.subr.bf16.mxu1 %v12144_v41  ;;  %v12280_v35 = vpack.c.bf16 %v4352_v62, %v4349_v4  ;;  %v4318_v0 = vld [vmem:[#allocation10 + $0x1058] sm:$0xff]  ;;  %v4321_v41 = vld [vmem:[#allocation10 + $0x1070] sm:$0xff]  ;;  %v12290_v52 = vpack.c.bf16 %v4316_v40, %v4313_v19  ;;  %v12168_v62 = vpack.c.bf16 %v4327_v13, %v4324_v58  ;;  %v4356_v19 = vld [vmem:[#allocation10 + $0x1188] sm:$0xff] }
 0x742   :  { %4531 = vmatmul.mubr.f32.gmra.mrb[94].mxu1 %v15556_v1  ;;  %12273 = vmatprep.subr.bf16.mxu0 %v12272_v49  ;;  %v12164_v46 = vpack.c.bf16 %v4321_v41, %v4318_v0  ;;  %v4363_v40 = vld [vmem:[#allocation10 + $0x11c0] sm:$0xff]  ;;  %v4365_v13 = vld [vmem:[#allocation10 + $0x11d0] sm:$0xff] }
 0x743   :  { %4775 = vmatmul.mubr.f32.gmra.mrb[46].mxu0 %v15556_v1  ;;  %4601 = vmatprep.mubr.f32.mxu1 %v15565_v31  ;;  %v4309_v1 = vld [vmem:[#allocation10 + $0x1010] sm:$0xff] }
 0x744   :  { %12147 = vmatpush1.bf16.msra.mxu1 %v12146_v54  ;;  %4844 = vmatprep.mubr.f32.mxu0 %v15565_v31  ;;  %v12282_v31 = vpack.c.bf16 %v4304_v16, %v4301_v15  ;;  %v12156_v48 = vpack.c.bf16 %v4309_v1, %v4306_v28  ;;  %v4320_v54 = vld [vmem:[#allocation10 + $0x1068] sm:$0xff]  ;;  %v4339_v1 = vld [vmem:[#allocation10 + $0x1100] sm:$0xff] }
 0x745   :  { %12275 = vmatpush3.bf16.msra.mxu0 %v12274_v55  ;;  %12149 = vmatprep.subr.bf16.mxu1 %v12148_v56  ;;  %v4319_v55 = vld [vmem:[#allocation10 + $0x1060] sm:$0xff]  ;;  %v12292_v56 = vpack.c.bf16 %v4370_v45, %v4367_v42  ;;  %v12166_v23 = vpack.c.bf16 %v4320_v54, %v4317_v53  ;;  %v4332_v16 = vld [vmem:[#allocation10 + $0x10c8] sm:$0xff] }
 0x746   :  { %12277 = vmatprep.subr.bf16.mxu0 %v12276_v22  ;;  %v12294_v4 = vpack.c.bf16 %v4322_v57, %v4319_v55  ;;  %v4336_v28 = vld [vmem:[#allocation10 + $0x10e8] sm:$0xff] }
 0x747   :  { %v12176_v17 = vpack.c.bf16 %v4339_v1, %v4336_v28 }
 0x748   :  { %12151 = vmatpush1.bf16.msra.mxu1 %v12150_v10  ;;  %v4323_v10 = vld [vmem:[#allocation10 + $0x1080] sm:$0xff] }
 0x749   :  { %12279 = vmatpush3.bf16.msra.mxu0 %v12278_v50  ;;  %12153 = vmatprep.subr.bf16.mxu1 %v12152_v7  ;;  %v4326_v50 = vld [vmem:[#allocation10 + $0x1098] sm:$0xff] }
 0x74a   :  { %12281 = vmatprep.subr.bf16.mxu0 %v12280_v35  ;;  %v4330_v7 = vld [vmem:[#allocation10 + $0x10b8] sm:$0xff]  ;;  %v12170_v14 = vpack.c.bf16 %v4326_v50, %v4323_v10  ;;  %v4329_v35 = vld [vmem:[#allocation10 + $0x10b0] sm:$0xff] }
 0x74b   :  { %v10969_v32 = vpop.f32.mrb[72].mxu1  ;;  %v12172_v15 = vpack.c.bf16 %v4333_v12, %v4330_v7  ;;  %v12174_v24 = vpack.c.bf16 %v4332_v16, %v4329_v35 }
 0x74c   :  { %12155 = vmatpush1.bf16.msra.mxu1 %v12154_v20  ;;  %v10970_v25 = vpop.f32.mrb[73].mxu1  ;;  %v4335_v20 = vld [vmem:[#allocation10 + $0x10e0] sm:$0xff] }
 0x74d   :  { %12283 = vmatpush3.bf16.msra.mxu0 %v12282_v31  ;;  %12157 = vmatprep.subr.bf16.mxu1 %v12156_v48  ;;  %v15627_v36 = vadd.f32 %v10970_v25, %v10969_v32  ;;  %v4338_v31 = vld [vmem:[#allocation10 + $0x10f8] sm:$0xff] }
 0x74e   :  { %12285 = vmatprep.subr.bf16.mxu0 %v12284_v63  ;;  %v4342_v48 = vld [vmem:[#allocation10 + $0x1118] sm:$0xff]  ;;  %v12178_v29 = vpack.c.bf16 %v4338_v31, %v4335_v20  ;;  %v4341_v63 = vld [vmem:[#allocation10 + $0x1110] sm:$0xff]  ;;  %v15647_v31 = vld [vmem:[#allocation11] sm:$0xff] }
 0x74f   :  { %v10972_v21 = vpop.f32.mrb[74].mxu1  ;;  %v12180_v27 = vpack.c.bf16 %v4345_v9, %v4342_v48  ;;  %v12182_v32 = vpack.c.bf16 %v4344_v30, %v4341_v63  ;;  %v4350_v25 = vld [vmem:[#allocation10 + $0x1158] sm:$0xff] }
 0x750   :  { %12159 = vmatpush1.bf16.msra.mxu1 %v12158_v6  ;;  %v10973_v49 = vpop.f32.mrb[75].mxu1  ;;  %v4354_v6 = vld [vmem:[#allocation10 + $0x1178] sm:$0xff] }
 0x751   :  { %12287 = vmatpush3.bf16.msra.mxu0 %v12286_v37  ;;  %12161 = vmatprep.subr.bf16.mxu1 %v12160_v5  ;;  %v15629_v51 = vadd.f32 %v10973_v49, %v10972_v21  ;;  %v4357_v37 = vld [vmem:[#allocation10 + $0x1190] sm:$0xff]  ;;  %v12186_v5 = vpack.c.bf16 %v4350_v25, %v4347_v34  ;;  %v12190_v21 = vpack.c.bf16 %v4356_v19, %v4353_v38  ;;  %v4359_v49 = vld [vmem:[#allocation10 + $0x11a0] sm:$0xff] }
 0x752   :  { %12289 = vmatprep.subr.bf16.mxu0 %v12288_v39  ;;  %v12188_v11 = vpack.c.bf16 %v4357_v37, %v4354_v6  ;;  %v4360_v39 = vld [vmem:[#allocation10 + $0x11a8] sm:$0xff] }
 0x753   :  { %v10975_v22 = vpop.f32.mrb[76].mxu1  ;;  %v12192_v45 = vpack.c.bf16 %v4363_v40, %v4360_v39 }
 0x754   :  { %12163 = vmatpush1.bf16.msra.mxu1 %v12162_v26  ;;  %v10976_v44 = vpop.f32.mrb[77].mxu1  ;;  %v4362_v26 = vld [vmem:[#allocation10 + $0x11b8] sm:$0xff] }
 0x755   :  { %12291 = vmatpush3.bf16.msra.mxu0 %v12290_v52  ;;  %12165 = vmatprep.subr.bf16.mxu1 %v12164_v46  ;;  %v15631_v60 = vadd.f32 %v10976_v44, %v10975_v22  ;;  %v4366_v52 = vld [vmem:[#allocation10 + $0x11d8] sm:$0xff]  ;;  %v4369_v46 = vld [vmem:[#allocation10 + $0x11f0] sm:$0xff]  ;;  %v4368_v22 = vld [vmem:[#allocation10 + $0x11e8] sm:$0xff] }
 0x756   :  { %12293 = vmatprep.subr.bf16.mxu0 %v12292_v56  ;;  %v12194_v56 = vpack.c.bf16 %v4362_v26, %v4359_v49  ;;  %v12196_v58 = vpack.c.bf16 %v4369_v46, %v4366_v52 }
 0x758   :  { %12167 = vmatpush1.bf16.msra.mxu1 %v12166_v23 }
 0x759   :  { %12295 = vmatpush3.bf16.msra.mxu0 %v12294_v4  ;;  %12169 = vmatprep.subr.bf16.mxu1 %v12168_v62  ;;  %v12198_v62 = vpack.c.bf16 %v4368_v22, %v4365_v13  ;;  %v4870_v22 = vld [vmem:[#allocation11 + $0x8] sm:$0xff] }
 0x75c   :  { %4845 = vmatmul.mubr.f32.vlgmr.msra.gmra.mrb[48].mxu0 %v15562_v8  ;;  %12171 = vmatpush1.bf16.msra.mxu1 %v12170_v14 }
 0x75d   :  { %4849 = vmatprep.mubr.f32.mxu0 %v15571_v43  ;;  %12173 = vmatprep.subr.bf16.mxu1 %v12172_v15 }
 0x760   :  { %4850 = vmatmul.mubr.f32.gmra.mrb[50].mxu0 %v15568_v2  ;;  %12175 = vmatpush1.bf16.msra.mxu1 %v12174_v24 }
 0x761   :  { %4854 = vmatprep.mubr.f32.mxu0 %v15577_v61  ;;  %12177 = vmatprep.subr.bf16.mxu1 %v12176_v17 }
 0x764   :  { %4855 = vmatmul.mubr.f32.gmra.mrb[52].mxu0 %v15574_v59  ;;  %12179 = vmatpush1.bf16.msra.mxu1 %v12178_v29 }
 0x765   :  { %12181 = vmatprep.subr.bf16.mxu1 %v12180_v27  ;;  %4942 = vmatprep.mubr.f32.mxu0 %v14726_v47 }
 0x768   :  { %12183 = vmatpush1.bf16.msra.mxu1 %v12182_v32 }
 0x769   :  { %12185 = vmatprep.subr.bf16.mxu1 %v12184_v33 }
 0x76b   :  { %v11010_v0 = vpop.f32.mrb[78].mxu1 }
 0x76c   :  { %12187 = vmatpush1.bf16.msra.mxu1 %v12186_v5  ;;  %v11011_v41 = vpop.f32.mrb[79].mxu1 }
 0x76d   :  { %v11012_v42 = vadd.f32 %v11011_v41, %v11010_v0  ;;  %12189 = vmatprep.subr.bf16.mxu1 %v12188_v11 }
 0x76f   :  { %v3989_v53 = vadd.f32 %v11012_v42, %v15627_v36  ;;  %v11013_v54 = vpop.f32.mrb[80].mxu1 }
 0x770   :  { %12191 = vmatpush1.bf16.msra.mxu1 %v12190_v21  ;;  %v11014_v55 = vpop.f32.mrb[81].mxu1 }
 0x771   :  { %v11015_v57 = vadd.f32 %v11014_v55, %v11013_v54  ;;  %12193 = vmatprep.subr.bf16.mxu1 %v12192_v45 }
 0x773   :  { %v3994_v44 = vadd.f32 %v11015_v57, %v15629_v51  ;;  %v11016_v23 = vpop.f32.mrb[82].mxu1 }
 0x774   :  { %12195 = vmatpush1.bf16.msra.mxu1 %v12194_v56  ;;  %v11017_v4 = vpop.f32.mrb[83].mxu1 }
 0x775   :  { %v11018_v10 = vadd.f32 %v11017_v4, %v11016_v23  ;;  %12197 = vmatprep.subr.bf16.mxu1 %v12196_v58 }
 0x777   :  { %v3999_v50 = vadd.f32 %v11018_v10, %v15631_v60 }
 0x778   :  { %12199 = vmatpush1.bf16.msra.mxu1 %v12198_v62 }
 0x77b   :  { %4602 = vmatmul.mubr.f32.vlgmr.msra.gmra.mrb[90].mxu1 %v15562_v8 }
 0x77c   :  { %4607 = vmatprep.mubr.f32.mxu1 %v15571_v43 }
 0x77f   :  { %4608 = vmatmul.mubr.f32.gmra.mrb[92].mxu1 %v15568_v2 }
 0x780   :  { %4613 = vmatprep.mubr.f32.mxu1 %v15577_v61 }
 0x783   :  { %4614 = vmatmul.mubr.f32.gmra.mrb[94].mxu1 %v15574_v59 }
 0x784   :  { %11399 = vmatprep.mubr.msk.f32.mxu1 %vm4871_vm6, %v15647_v31 }
 0x78c   :  { %v11051_v36 = vpop.f32.mrb[84].mxu1 }
 0x78d   :  { %v11052_v51 = vpop.f32.mrb[85].mxu1 }
 0x78e   :  { %v11053_v7 = vadd.f32 %v11052_v51, %v11051_v36 }
 0x790   :  { %v4069_v12 = vadd.f32 %v11053_v7, %v3989_v53  ;;  %v11054_v14 = vpop.f32.mrb[86].mxu1 }
 0x791   :  { %v11055_v15 = vpop.f32.mrb[87].mxu1 }
 0x792   :  { %v11056_v35 = vadd.f32 %v11055_v15, %v11054_v14 }
 0x794   :  { %v4074_v16 = vadd.f32 %v11056_v35, %v3994_v44  ;;  %v11057_v60 = vpop.f32.mrb[88].mxu1 }
 0x795   :  { %v11058_v28 = vpop.f32.mrb[89].mxu1 }
 0x796   :  { %v11059_v1 = vadd.f32 %v11058_v28, %v11057_v60  ;;  %v5385_v60 = vld [vmem:[#allocation13 + $0x608] sm:$0xff] }
 0x797   :  { %v5389_v28 = vld [vmem:[#allocation13 + $0x628] sm:$0xff] }
 0x798   :  { %v4079_v8 = vadd.f32 %v11059_v1, %v3999_v50  ;;  %v5223_v1 = vld [vmem:[#allocation11 + $0x10] sm:$0xff] }
 0x7cc   :  { %v3825_v24 = vpop.f32.mrb[30].mxu0 }
 0x7cd   :  { %v3827_v43 = vpop.f32.mrb[31].mxu0 }
 0x7d0   :  { %v3831_v17 = vpop.f32.mrb[32].mxu0 }
 0x7d1   :  { %v3833_v2 = vpop.f32.mrb[33].mxu0 }
 0x7d4   :  { %v3837_v20 = vpop.f32.mrb[34].mxu0 }
 0x7d5   :  { %v3839_v61 = vpop.f32.mrb[35].mxu0 }
 0x7ee   :  { %v11092_v59 = vpop.f32.mrb[36].mxu0 }
 0x7ef   :  { %v11093_v48 = vpop.f32.mrb[37].mxu0 }
 0x7f0   :  { %v11094_v9 = vadd.f32 %v11093_v48, %v11092_v59  ;;  %v5224_v59 = vld [vmem:[#allocation11 + $0x18] sm:$0xff] }
 0x7f2   :  { %v11095_v29 = vpop.f32.mrb[38].mxu0 }
 0x7f3   :  { %v11096_v27 = vpop.f32.mrb[39].mxu0 }
 0x7f4   :  { %v11097_v63 = vadd.f32 %v11096_v27, %v11095_v29  ;;  %v5392_v29 = vld [vmem:[#allocation13 + $0x640] sm:$0xff] }
 0x7f5   :  { %v5396_v27 = vld [vmem:[#allocation13 + $0x660] sm:$0xff] }
 0x7f6   :  { %v11098_v30 = vpop.f32.mrb[40].mxu0 }
 0x7f7   :  { %v11099_v18 = vpop.f32.mrb[41].mxu0 }
 0x7f8   :  { %v11100_v3 = vadd.f32 %v11099_v18, %v11098_v30  ;;  %v5390_v30 = vld [vmem:[#allocation13 + $0x630] sm:$0xff] }
 0x80e   :  { %v11133_v32 = vpop.f32.mrb[42].mxu0 }
 0x80f   :  { %v11134_v33 = vpop.f32.mrb[43].mxu0 }
 0x810   :  { %v11135_v34 = vadd.f32 %v11134_v33, %v11133_v32  ;;  %v5405_v32 = vld [vmem:[#allocation13 + $0x6a8] sm:$0xff]  ;;  %v5399_v33 = vld [vmem:[#allocation13 + $0x678] sm:$0xff] }
 0x812   :  { %v4767_v25 = vadd.f32 %v11135_v34, %v11094_v9  ;;  %v11136_v6 = vpop.f32.mrb[44].mxu0  ;;  %v5386_v9 = vld [vmem:[#allocation13 + $0x610] sm:$0xff]  ;;  %v12318_v34 = vpack.c.bf16 %v5396_v27, %v5392_v29 }
 0x813   :  { %v11137_v37 = vpop.f32.mrb[45].mxu0 }
 0x814   :  { %v11138_v5 = vadd.f32 %v11137_v37, %v11136_v6  ;;  %v5394_v6 = vld [vmem:[#allocation13 + $0x650] sm:$0xff] }
 0x816   :  { %v4772_v11 = vadd.f32 %v11138_v5, %v11097_v63  ;;  %v11139_v38 = vpop.f32.mrb[46].mxu0  ;;  %v5400_v5 = vld [vmem:[#allocation13 + $0x680] sm:$0xff] }
 0x817   :  { %v11140_v19 = vpop.f32.mrb[47].mxu0 }
 0x818   :  { %v11141_v39 = vadd.f32 %v11140_v19, %v11139_v38  ;;  %v5398_v19 = vld [vmem:[#allocation13 + $0x670] sm:$0xff] }
 0x81a   :  { %v4777_v40 = vadd.f32 %v11141_v39, %v11100_v3  ;;  %v5401_v3 = vld [vmem:[#allocation13 + $0x688] sm:$0xff] }
 0x81b   :  { %v12320_v37 = vpack.c.bf16 %v5405_v32, %v5401_v3  ;;  %v5409_v39 = vld [vmem:[#allocation13 + $0x6c8] sm:$0xff]  ;;  %v5436_v3 = vld [vmem:[#allocation13 + $0x7a0] sm:$0xff] }
 0x82f   :  { %v11174_v0 = vpop.f32.mrb[48].mxu0 }
 0x830   :  { %v11175_v41 = vpop.f32.mrb[49].mxu0 }
 0x831   :  { %v11176_v21 = vadd.f32 %v11175_v41, %v11174_v0  ;;  %v5403_v0 = vld [vmem:[#allocation13 + $0x698] sm:$0xff] }
 0x832   :  { %v5407_v41 = vld [vmem:[#allocation13 + $0x6b8] sm:$0xff] }
 0x833   :  { %v4847_v42 = vadd.f32 %v11176_v21, %v4767_v25  ;;  %v11177_v45 = vpop.f32.mrb[50].mxu0  ;;  %v12410_v25 = vpack.c.bf16 %v5390_v30, %v5386_v9  ;;  %v5431_v9 = vld [vmem:[#allocation13 + $0x778] sm:$0xff] }
 0x834   :  { %v11178_v49 = vpop.f32.mrb[51].mxu0 }
 0x835   :  { %v4862_v26 = vmax.f32 %v4069_v12, %v4847_v42  ;;  %v11179_v52 = vadd.f32 %v11178_v49, %v11177_v45  ;;  %v12414_v42 = vpack.c.bf16 %v5398_v19, %v5394_v6  ;;  %v5402_v45 = vld [vmem:[#allocation13 + $0x690] sm:$0xff]  ;;  %v5439_v6 = vld [vmem:[#allocation13 + $0x7b8] sm:$0xff]  ;;  %v5440_v19 = vld [vmem:[#allocation13 + $0x7c0] sm:$0xff] }
 0x837   :  { %v4852_v46 = vadd.f32 %v11179_v52, %v4772_v11  ;;  %v11180_v53 = vpop.f32.mrb[52].mxu0  ;;  %v5404_v11 = vld [vmem:[#allocation13 + $0x6a0] sm:$0xff] }
 0x838   :  { %v11181_v54 = vpop.f32.mrb[53].mxu0  ;;  %v12322_v21 = vpack.c.bf16 %v5404_v11, %v5400_v5  ;;  %v5412_v52 = vld [vmem:[#allocation13 + $0x6e0] sm:$0xff]  ;;  %v5434_v11 = vld [vmem:[#allocation13 + $0x790] sm:$0xff] }
 0x839   :  { %v4865_v55 = vmax.f32 %v4074_v16, %v4852_v46  ;;  %v11182_v56 = vadd.f32 %v11181_v54, %v11180_v53  ;;  %v12416_v46 = vpack.c.bf16 %v5407_v41, %v5403_v0  ;;  %v5406_v53 = vld [vmem:[#allocation13 + $0x6b0] sm:$0xff]  ;;  %v5417_v54 = vld [vmem:[#allocation13 + $0x708] sm:$0xff] }
 0x83a   :  { %v5438_v0 = vld [vmem:[#allocation13 + $0x7b0] sm:$0xff]  ;;  %v5449_v41 = vld [vmem:[#allocation13 + $0x808] sm:$0xff] }
 0x83b   :  { %v15651_v57 = vpack.c.bf16 %v4865_v55, %v4862_v26  ;;  %v4857_v58 = vadd.f32 %v11182_v56, %v4777_v40  ;;  %v5413_v40 = vld [vmem:[#allocation13 + $0x6e8] sm:$0xff]  ;;  %v5408_v26 = vld [vmem:[#allocation13 + $0x6c0] sm:$0xff]  ;;  %v5411_v56 = vld [vmem:[#allocation13 + $0x6d8] sm:$0xff] }
 0x83c   :  { %v12324_v49 = vpack.c.bf16 %v5413_v40, %v5409_v39  ;;  %v5421_v55 = vld [vmem:[#allocation13 + $0x728] sm:$0xff]  ;;  %v5444_v39 = vld [vmem:[#allocation13 + $0x7e0] sm:$0xff] }
 0x83d   :  { %v15653_v13 = vmax.f32 %v4079_v8, %v4857_v58  ;;  %12301 = vmatprep.subr.bf16.mxu1 %v15651_v57  ;;  %v5384_v8 = vld [vmem:[#allocation13 + $0x600] sm:$0xff]  ;;  %v5415_v58 = vld [vmem:[#allocation13 + $0x6f8] sm:$0xff] }
 0x83e   :  { %12303 = vmatpush3.bf16.msra.mxu1 %v15651_v57 }
 0x83f   :  { %11397 = vmatprep.subr.mxu1 %v15653_v13 }
 0x842   :  { %11398 = vmatpush3.msra.mxu1 %v15653_v13 }
 0x843   :  { %11400 = vmatmul.mubr.msk.f32.vlgmr.msra.gmra.mrb[96].mxu1 %vm4871_vm6, %v4870_v22 }
 0x844   :  { %5295 = vmatprep.mubr.f32.mxu1 %v14726_v47 }
 0x84e   :  { %v4603_v44 = vpop.f32.mrb[90].mxu1 }
 0x84f   :  { %v4860_v23 = vmax.f32 %v3825_v24, %v4603_v44  ;;  %v4605_v4 = vpop.f32.mrb[91].mxu1  ;;  %v5388_v24 = vld [vmem:[#allocation13 + $0x620] sm:$0xff]  ;;  %v12418_v44 = vpack.c.bf16 %v5406_v53, %v5402_v45  ;;  %v5447_v45 = vld [vmem:[#allocation13 + $0x7f8] sm:$0xff] }
 0x850   :  { %v4861_v62 = vmax.f32 %v3827_v43, %v4605_v4  ;;  %v12312_v43 = vpack.c.bf16 %v5389_v28, %v5385_v60  ;;  %v12314_v48 = vpack.c.bf16 %v5388_v24, %v5384_v8  ;;  %v12328_v4 = vpack.c.bf16 %v5421_v55, %v5417_v54  ;;  %v5423_v60 = vld [vmem:[#allocation13 + $0x738] sm:$0xff]  ;;  %v5418_v8 = vld [vmem:[#allocation13 + $0x710] sm:$0xff]  ;;  %v5448_v53 = vld [vmem:[#allocation13 + $0x800] sm:$0xff] }
 0x851   :  { %v5452_v54 = vld [vmem:[#allocation13 + $0x820] sm:$0xff] }
 0x852   :  { %v4609_v10 = vpop.f32.mrb[92].mxu1 }
 0x853   :  { %v4863_v50 = vmax.f32 %v3831_v17, %v4609_v10  ;;  %v4611_v36 = vpop.f32.mrb[93].mxu1  ;;  %v5387_v17 = vld [vmem:[#allocation13 + $0x618] sm:$0xff]  ;;  %v5420_v10 = vld [vmem:[#allocation13 + $0x720] sm:$0xff] }
 0x854   :  { %v4864_v51 = vmax.f32 %v3833_v2, %v4611_v36  ;;  %v5391_v2 = vld [vmem:[#allocation13 + $0x638] sm:$0xff]  ;;  %v5414_v36 = vld [vmem:[#allocation13 + $0x6f0] sm:$0xff] }
 0x855   :  { %v15661_v7 = vpack.c.bf16 %v4863_v50, %v4860_v23  ;;  %v12408_v63 = vpack.c.bf16 %v5391_v2, %v5387_v17  ;;  %v5410_v23 = vld [vmem:[#allocation13 + $0x6d0] sm:$0xff]  ;;  %v12420_v50 = vpack.c.bf16 %v5415_v58, %v5411_v56  ;;  %v5428_v17 = vld [vmem:[#allocation13 + $0x760] sm:$0xff]  ;;  %v5457_v58 = vld [vmem:[#allocation13 + $0x848] sm:$0xff] }
 0x856   :  { %v15663_v12 = vpack.c.bf16 %v4864_v51, %v4861_v62  ;;  %v4615_v14 = vpop.f32.mrb[94].mxu1  ;;  %v5416_v62 = vld [vmem:[#allocation13 + $0x700] sm:$0xff]  ;;  %v5425_v51 = vld [vmem:[#allocation13 + $0x748] sm:$0xff]  ;;  %v5446_v56 = vld [vmem:[#allocation13 + $0x7f0] sm:$0xff] }
 0x857   :  { %v15665_v15 = vmax.f32 %v3837_v20, %v4615_v14  ;;  %v4617_v35 = vpop.f32.mrb[95].mxu1  ;;  %v5393_v20 = vld [vmem:[#allocation13 + $0x648] sm:$0xff]  ;;  %v12330_v28 = vpack.c.bf16 %v5420_v10, %v5416_v62  ;;  %v5450_v10 = vld [vmem:[#allocation13 + $0x810] sm:$0xff] }
 0x858   :  { %v15667_v16 = vmax.f32 %v3839_v61, %v4617_v35  ;;  %12297 = vmatprep.subr.bf16.mxu0 %v15663_v12  ;;  %12305 = vmatprep.subr.bf16.mxu1 %v15663_v12  ;;  %v5397_v61 = vld [vmem:[#allocation13 + $0x668] sm:$0xff]  ;;  %v5419_v35 = vld [vmem:[#allocation13 + $0x718] sm:$0xff] }
 0x859   :  { %12299 = vmatpush1.bf16.msra.mxu0 %v15661_v7  ;;  %12307 = vmatpush1.bf16.msra.mxu1 %v15661_v7  ;;  %v12316_v18 = vpack.c.bf16 %v5397_v61, %v5393_v20  ;;  %v5429_v14 = vld [vmem:[#allocation13 + $0x768] sm:$0xff]  ;;  %v12424_v2 = vpack.c.bf16 %v5423_v60, %v5419_v35  ;;  %v5422_v20 = vld [vmem:[#allocation13 + $0x730] sm:$0xff] }
 0x85a   :  { %4882 = vmatprep.subr.mxu0 %v15667_v16  ;;  %5235 = vmatprep.subr.mxu1 %v15667_v16  ;;  %v12332_v24 = vpack.c.bf16 %v5429_v14, %v5425_v51  ;;  %v5433_v61 = vld [vmem:[#allocation13 + $0x788] sm:$0xff]  ;;  %v12426_v27 = vpack.c.bf16 %v5422_v20, %v5418_v8  ;;  %v5460_v51 = vld [vmem:[#allocation13 + $0x860] sm:$0xff]  ;;  %v5454_v35 = vld [vmem:[#allocation13 + $0x830] sm:$0xff] }
 0x85b   :  { %v5465_v60 = vld [vmem:[#allocation13 + $0x888] sm:$0xff]  ;;  %v5463_v8 = vld [vmem:[#allocation13 + $0x878] sm:$0xff]  ;;  %v5464_v20 = vld [vmem:[#allocation13 + $0x880] sm:$0xff] }
 0x85d   :  { %4883 = vmatpush1.msra.mxu0 %v15665_v15  ;;  %5236 = vmatpush1.msra.mxu1 %v15665_v15 }
 0x85e   :  { %10848 = vmatmul.mubr.msk.f32.vlgmr.msra.gmra.mrb[98].mxu1 %vm4871_vm6, %v5223_v1  ;;  %12309 = vmatprep.subr.bf16.mxu0 %v15651_v57 }
 0x85f   :  { %10844 = vmatmul.mubr.msk.f32.vlgmr.msra.gmra.mrb[54].mxu0 %vm4871_vm6, %v15647_v31  ;;  %5301 = vmatprep.mubr.f32.mxu1 %v14726_v47  ;;  %v5395_v31 = vld [vmem:[#allocation13 + $0x658] sm:$0xff] }
 0x860   :  { %12311 = vmatpush3.bf16.msra.mxu0 %v15651_v57  ;;  %4948 = vmatprep.mubr.f32.mxu0 %v14726_v47  ;;  %v12412_v38 = vpack.c.bf16 %v5399_v33, %v5395_v31  ;;  %v5430_v31 = vld [vmem:[#allocation13 + $0x770] sm:$0xff]  ;;  %v5441_v33 = vld [vmem:[#allocation13 + $0x7c8] sm:$0xff] }
 0x861   :  { %11406 = vmatprep.subr.mxu0 %v15653_v13  ;;  %12313 = vmatprep.subr.bf16.mxu1 %v12312_v43  ;;  %v5424_v43 = vld [vmem:[#allocation13 + $0x740] sm:$0xff] }
 0x862   :  { %10849 = vmatmul.mubr.msk.f32.gmra.mrb[100].mxu1 %vm4871_vm6, %v5224_v59  ;;  %v12334_v29 = vpack.c.bf16 %v5428_v17, %v5424_v43  ;;  %v12442_v43 = vpack.c.bf16 %v5454_v35, %v5450_v10  ;;  %v5458_v17 = vld [vmem:[#allocation13 + $0x850] sm:$0xff]  ;;  %v5501_v35 = vld [vmem:[#allocation13 + $0x9a8] sm:$0xff] }
 0x863   :  { %10845 = vmatmul.mubr.msk.f32.gmra.mrb[56].mxu0 %vm4871_vm6, %v4870_v22  ;;  %12315 = vmatpush1.bf16.msra.mxu1 %v12314_v48  ;;  %v12326_v22 = vpack.c.bf16 %v5412_v52, %v5408_v26  ;;  %v5427_v48 = vld [vmem:[#allocation13 + $0x758] sm:$0xff]  ;;  %v12434_v26 = vpack.c.bf16 %v5438_v0, %v5434_v11  ;;  %v5442_v52 = vld [vmem:[#allocation13 + $0x7d0] sm:$0xff]  ;;  %v5480_v0 = vld [vmem:[#allocation13 + $0x900] sm:$0xff] }
 0x864   :  { %11407 = vmatpush3.msra.mxu0 %v15653_v13  ;;  %11408 = vmatprep.mubr.msk.f32.mxu0 %vm4871_vm6, %v5223_v1  ;;  %v12422_v1 = vpack.c.bf16 %v5414_v36, %v5410_v23  ;;  %v12428_v32 = vpack.c.bf16 %v5431_v9, %v5427_v48  ;;  %v5455_v23 = vld [vmem:[#allocation13 + $0x838] sm:$0xff]  ;;  %v12438_v62 = vpack.c.bf16 %v5446_v56, %v5442_v52  ;;  %v5456_v36 = vld [vmem:[#allocation13 + $0x840] sm:$0xff]  ;;  %v5462_v48 = vld [vmem:[#allocation13 + $0x870] sm:$0xff] }
 0x865   :  { %12409 = vmatprep.subr.bf16.mxu0 %v12408_v63  ;;  %12317 = vmatprep.subr.bf16.mxu1 %v12316_v18  ;;  %v5426_v63 = vld [vmem:[#allocation13 + $0x750] sm:$0xff]  ;;  %v5432_v18 = vld [vmem:[#allocation13 + $0x780] sm:$0xff]  ;;  %v5473_v9 = vld [vmem:[#allocation13 + $0x8c8] sm:$0xff] }
 0x866   :  { %v12430_v5 = vpack.c.bf16 %v5430_v31, %v5426_v63  ;;  %v5471_v63 = vld [vmem:[#allocation13 + $0x8b8] sm:$0xff]  ;;  %v5472_v31 = vld [vmem:[#allocation13 + $0x8c0] sm:$0xff] }
 0x867   :  { %11409 = vmatmul.mubr.msk.f32.vlgmr.msra.gmra.mrb[58].mxu0 %vm4871_vm6, %v5224_v59  ;;  %12319 = vmatpush1.bf16.msra.mxu1 %v12318_v34  ;;  %v5437_v59 = vld [vmem:[#allocation13 + $0x7a8] sm:$0xff]  ;;  %v5479_v11 = vld [vmem:[#allocation13 + $0x8f8] sm:$0xff]  ;;  %v5492_v56 = vld [vmem:[#allocation13 + $0x960] sm:$0xff] }
 0x868   :  { %12411 = vmatpush1.bf16.msra.mxu0 %v12410_v25  ;;  %12321 = vmatprep.subr.bf16.mxu1 %v12320_v37  ;;  %v12336_v30 = vpack.c.bf16 %v5437_v59, %v5433_v61  ;;  %v5445_v34 = vld [vmem:[#allocation13 + $0x7e8] sm:$0xff]  ;;  %v5435_v25 = vld [vmem:[#allocation13 + $0x798] sm:$0xff]  ;;  %v12338_v37 = vpack.c.bf16 %v5436_v3, %v5432_v18  ;;  %v5468_v61 = vld [vmem:[#allocation13 + $0x8a0] sm:$0xff]  ;;  %v12446_v18 = vpack.c.bf16 %v5462_v48, %v5458_v17 }
 0x869   :  { %12413 = vmatprep.subr.bf16.mxu0 %v12412_v38  ;;  %v12340_v38 = vpack.c.bf16 %v5445_v34, %v5441_v33  ;;  %v12432_v40 = vpack.c.bf16 %v5439_v6, %v5435_v25  ;;  %v5466_v3 = vld [vmem:[#allocation13 + $0x890] sm:$0xff]  ;;  %v5476_v33 = vld [vmem:[#allocation13 + $0x8e0] sm:$0xff]  ;;  %v5481_v6 = vld [vmem:[#allocation13 + $0x908] sm:$0xff] }
 0x86a   :  { %v5470_v25 = vld [vmem:[#allocation13 + $0x8b0] sm:$0xff]  ;;  %v5487_v52 = vld [vmem:[#allocation13 + $0x938] sm:$0xff]  ;;  %v5509_v48 = vld [vmem:[#allocation13 + $0x9e8] sm:$0xff] }
 0x86b   :  { %12323 = vmatpush1.bf16.msra.mxu1 %v12322_v21  ;;  %v5453_v21 = vld [vmem:[#allocation13 + $0x828] sm:$0xff] }
 0x86c   :  { %12415 = vmatpush1.bf16.msra.mxu0 %v12414_v42  ;;  %12325 = vmatprep.subr.bf16.mxu1 %v12324_v49  ;;  %v5443_v42 = vld [vmem:[#allocation13 + $0x7d8] sm:$0xff]  ;;  %v12342_v49 = vpack.c.bf16 %v5444_v39, %v5440_v19  ;;  %v12450_v19 = vpack.c.bf16 %v5470_v25, %v5466_v3  ;;  %v5474_v39 = vld [vmem:[#allocation13 + $0x8d0] sm:$0xff]  ;;  %v5513_v25 = vld [vmem:[#allocation13 + $0xa08] sm:$0xff] }
 0x86d   :  { %12417 = vmatprep.subr.bf16.mxu0 %v12416_v46  ;;  %v12344_v46 = vpack.c.bf16 %v5453_v21, %v5449_v41  ;;  %v12436_v55 = vpack.c.bf16 %v5447_v45, %v5443_v42  ;;  %v5484_v41 = vld [vmem:[#allocation13 + $0x920] sm:$0xff]  ;;  %v5478_v42 = vld [vmem:[#allocation13 + $0x8f0] sm:$0xff]  ;;  %v5489_v45 = vld [vmem:[#allocation13 + $0x948] sm:$0xff] }
 0x86f   :  { %12327 = vmatpush1.bf16.msra.mxu1 %v12326_v22  ;;  %v5461_v22 = vld [vmem:[#allocation13 + $0x868] sm:$0xff] }
 0x870   :  { %12419 = vmatpush1.bf16.msra.mxu0 %v12418_v44  ;;  %12329 = vmatprep.subr.bf16.mxu1 %v12328_v4  ;;  %v5451_v44 = vld [vmem:[#allocation13 + $0x818] sm:$0xff]  ;;  %v12346_v4 = vpack.c.bf16 %v5452_v54, %v5448_v53  ;;  %v12454_v53 = vpack.c.bf16 %v5478_v42, %v5474_v39  ;;  %v5521_v42 = vld [vmem:[#allocation13 + $0xa48] sm:$0xff] }
 0x871   :  { %12421 = vmatprep.subr.bf16.mxu0 %v12420_v50  ;;  %v12348_v50 = vpack.c.bf16 %v5461_v22, %v5457_v58  ;;  %v12440_v14 = vpack.c.bf16 %v5455_v23, %v5451_v44  ;;  %v5482_v22 = vld [vmem:[#allocation13 + $0x910] sm:$0xff]  ;;  %v5491_v23 = vld [vmem:[#allocation13 + $0x958] sm:$0xff] }
 0x872   :  { %v5486_v44 = vld [vmem:[#allocation13 + $0x930] sm:$0xff] }
 0x873   :  { %12331 = vmatpush1.bf16.msra.mxu1 %v12330_v28  ;;  %v5469_v28 = vld [vmem:[#allocation13 + $0x8a8] sm:$0xff]  ;;  %v12458_v10 = vpack.c.bf16 %v5486_v44, %v5482_v22  ;;  %v5522_v44 = vld [vmem:[#allocation13 + $0xa50] sm:$0xff] }
 0x874   :  { %12423 = vmatpush1.bf16.msra.mxu0 %v12422_v1  ;;  %12333 = vmatprep.subr.bf16.mxu1 %v12332_v24  ;;  %v5459_v1 = vld [vmem:[#allocation13 + $0x858] sm:$0xff]  ;;  %v12350_v24 = vpack.c.bf16 %v5460_v51, %v5456_v36  ;;  %v5490_v36 = vld [vmem:[#allocation13 + $0x950] sm:$0xff] }
 0x875   :  { %12425 = vmatprep.subr.bf16.mxu0 %v12424_v2  ;;  %v12352_v2 = vpack.c.bf16 %v5469_v28, %v5465_v60  ;;  %v12444_v59 = vpack.c.bf16 %v5463_v8, %v5459_v1  ;;  %v5494_v51 = vld [vmem:[#allocation13 + $0x970] sm:$0xff]  ;;  %v5499_v60 = vld [vmem:[#allocation13 + $0x998] sm:$0xff]  ;;  %v5496_v8 = vld [vmem:[#allocation13 + $0x980] sm:$0xff] }
 0x876   :  { %v5503_v1 = vld [vmem:[#allocation13 + $0x9b8] sm:$0xff] }
 0x877   :  { %12335 = vmatpush1.bf16.msra.mxu1 %v12334_v29  ;;  %v5477_v29 = vld [vmem:[#allocation13 + $0x8e8] sm:$0xff] }
 0x878   :  { %12427 = vmatpush1.bf16.msra.mxu0 %v12426_v27  ;;  %12337 = vmatprep.subr.bf16.mxu1 %v12336_v30  ;;  %v5467_v27 = vld [vmem:[#allocation13 + $0x898] sm:$0xff]  ;;  %v12354_v30 = vpack.c.bf16 %v5468_v61, %v5464_v20  ;;  %v5505_v20 = vld [vmem:[#allocation13 + $0x9c8] sm:$0xff]  ;;  %v12464_v61 = vpack.c.bf16 %v5503_v1, %v5499_v60  ;;  %v5528_v60 = vld [vmem:[#allocation13 + $0xa80] sm:$0xff] }
 0x879   :  { %12429 = vmatprep.subr.bf16.mxu0 %v12428_v32  ;;  %v12356_v32 = vpack.c.bf16 %v5477_v29, %v5473_v9  ;;  %v12448_v34 = vpack.c.bf16 %v5471_v63, %v5467_v27  ;;  %v5507_v9 = vld [vmem:[#allocation13 + $0x9d8] sm:$0xff]  ;;  %v12372_v29 = vpack.c.bf16 %v5509_v48, %v5505_v20  ;;  %v5504_v63 = vld [vmem:[#allocation13 + $0x9c0] sm:$0xff] }
 0x87a   :  { %v5511_v27 = vld [vmem:[#allocation13 + $0x9f8] sm:$0xff] }
 0x87b   :  { %12339 = vmatpush1.bf16.msra.mxu1 %v12338_v37  ;;  %v5485_v37 = vld [vmem:[#allocation13 + $0x928] sm:$0xff]  ;;  %v5539_v48 = vld [vmem:[#allocation13 + $0xad8] sm:$0xff] }
 0x87c   :  { %12431 = vmatpush1.bf16.msra.mxu0 %v12430_v5  ;;  %12341 = vmatprep.subr.bf16.mxu1 %v12340_v38  ;;  %v5475_v5 = vld [vmem:[#allocation13 + $0x8d8] sm:$0xff]  ;;  %v12358_v38 = vpack.c.bf16 %v5476_v33, %v5472_v31  ;;  %v5506_v31 = vld [vmem:[#allocation13 + $0x9d0] sm:$0xff] }
 0x87d   :  { %12433 = vmatprep.subr.bf16.mxu0 %v12432_v40  ;;  %v12360_v40 = vpack.c.bf16 %v5485_v37, %v5481_v6  ;;  %v12452_v21 = vpack.c.bf16 %v5479_v11, %v5475_v5  ;;  %v5510_v33 = vld [vmem:[#allocation13 + $0x9f0] sm:$0xff]  ;;  %v5517_v6 = vld [vmem:[#allocation13 + $0xa28] sm:$0xff]  ;;  %v5515_v37 = vld [vmem:[#allocation13 + $0xa18] sm:$0xff] }
 0x87e   :  { %v12376_v5 = vpack.c.bf16 %v5517_v6, %v5513_v25  ;;  %v5519_v11 = vld [vmem:[#allocation13 + $0xa38] sm:$0xff]  ;;  %v5549_v6 = vld [vmem:[#allocation13 + $0xb28] sm:$0xff] }
 0x87f   :  { %12343 = vmatpush1.bf16.msra.mxu1 %v12342_v49  ;;  %v5493_v49 = vld [vmem:[#allocation13 + $0x968] sm:$0xff] }
 0x880   :  { %12435 = vmatpush1.bf16.msra.mxu0 %v12434_v26  ;;  %12345 = vmatprep.subr.bf16.mxu1 %v12344_v46  ;;  %v5483_v26 = vld [vmem:[#allocation13 + $0x918] sm:$0xff]  ;;  %v12362_v46 = vpack.c.bf16 %v5484_v41, %v5480_v0  ;;  %v12364_v54 = vpack.c.bf16 %v5493_v49, %v5489_v45  ;;  %v5516_v0 = vld [vmem:[#allocation13 + $0xa20] sm:$0xff]  ;;  %v5514_v41 = vld [vmem:[#allocation13 + $0xa10] sm:$0xff] }
 0x881   :  { %12437 = vmatprep.subr.bf16.mxu0 %v12436_v55  ;;  %v5488_v55 = vld [vmem:[#allocation13 + $0x940] sm:$0xff]  ;;  %v12456_v58 = vpack.c.bf16 %v5487_v52, %v5483_v26  ;;  %v5525_v45 = vld [vmem:[#allocation13 + $0xa68] sm:$0xff]  ;;  %v5523_v49 = vld [vmem:[#allocation13 + $0xa58] sm:$0xff] }
 0x882   :  { %v5527_v26 = vld [vmem:[#allocation13 + $0xa78] sm:$0xff] }
 0x883   :  { %12347 = vmatpush1.bf16.msra.mxu1 %v12346_v4  ;;  %v5495_v4 = vld [vmem:[#allocation13 + $0x978] sm:$0xff]  ;;  %v12476_v22 = vpack.c.bf16 %v5527_v26, %v5523_v49  ;;  %v5550_v49 = vld [vmem:[#allocation13 + $0xb30] sm:$0xff]  ;;  %v5553_v26 = vld [vmem:[#allocation13 + $0xb48] sm:$0xff] }
 0x884   :  { %12439 = vmatpush1.bf16.msra.mxu0 %v12438_v62  ;;  %12349 = vmatprep.subr.bf16.mxu1 %v12348_v50  ;;  %v12366_v62 = vpack.c.bf16 %v5492_v56, %v5488_v55  ;;  %v12460_v50 = vpack.c.bf16 %v5495_v4, %v5491_v23  ;;  %v5524_v55 = vld [vmem:[#allocation13 + $0xa60] sm:$0xff]  ;;  %v5526_v23 = vld [vmem:[#allocation13 + $0xa70] sm:$0xff]  ;;  %v5529_v4 = vld [vmem:[#allocation13 + $0xa88] sm:$0xff] }
 0x885   :  { %12441 = vmatprep.subr.bf16.mxu0 %v12440_v14  ;;  %v5497_v14 = vld [vmem:[#allocation13 + $0x988] sm:$0xff] }
 0x886   :  { %v12368_v28 = vpack.c.bf16 %v5501_v35, %v5497_v14  ;;  %v12478_v35 = vpack.c.bf16 %v5526_v23, %v5522_v44  ;;  %v5554_v23 = vld [vmem:[#allocation13 + $0xb50] sm:$0xff] }
 0x887   :  { %12351 = vmatpush1.bf16.msra.mxu1 %v12350_v24  ;;  %v5500_v24 = vld [vmem:[#allocation13 + $0x9a0] sm:$0xff] }
 0x888   :  { %12443 = vmatpush1.bf16.msra.mxu0 %v12442_v43  ;;  %12353 = vmatprep.subr.bf16.mxu1 %v12352_v2  ;;  %v12462_v43 = vpack.c.bf16 %v5494_v51, %v5490_v36  ;;  %v12370_v17 = vpack.c.bf16 %v5500_v24, %v5496_v8  ;;  %v5498_v2 = vld [vmem:[#allocation13 + $0x990] sm:$0xff]  ;;  %v5535_v36 = vld [vmem:[#allocation13 + $0xab8] sm:$0xff] }
 0x889   :  { %12445 = vmatprep.subr.bf16.mxu0 %v12444_v59  ;;  %v5502_v59 = vld [vmem:[#allocation13 + $0x9b0] sm:$0xff] }
 0x88a   :  { %v12466_v3 = vpack.c.bf16 %v5502_v59, %v5498_v2  ;;  %v5537_v2 = vld [vmem:[#allocation13 + $0xac8] sm:$0xff] }
 0x88b   :  { %12355 = vmatpush1.bf16.msra.mxu1 %v12354_v30  ;;  %v5508_v30 = vld [vmem:[#allocation13 + $0x9e0] sm:$0xff]  ;;  %v5541_v59 = vld [vmem:[#allocation13 + $0xae8] sm:$0xff] }
 0x88c   :  { %12447 = vmatpush1.bf16.msra.mxu0 %v12446_v18  ;;  %12357 = vmatprep.subr.bf16.mxu1 %v12356_v32  ;;  %v12374_v18 = vpack.c.bf16 %v5508_v30, %v5504_v63  ;;  %v12468_v32 = vpack.c.bf16 %v5511_v27, %v5507_v9  ;;  %v5543_v9 = vld [vmem:[#allocation13 + $0xaf8] sm:$0xff]  ;;  %v5536_v30 = vld [vmem:[#allocation13 + $0xac0] sm:$0xff] }
 0x88d   :  { %12449 = vmatprep.subr.bf16.mxu0 %v12448_v34  ;;  %v12470_v34 = vpack.c.bf16 %v5510_v33, %v5506_v31  ;;  %v5538_v31 = vld [vmem:[#allocation13 + $0xad0] sm:$0xff] }
 0x88e   :  { %v5542_v33 = vld [vmem:[#allocation13 + $0xaf0] sm:$0xff] }
 0x88f   :  { %12359 = vmatpush1.bf16.msra.mxu1 %v12358_v38  ;;  %v12472_v38 = vpack.c.bf16 %v5519_v11, %v5515_v37  ;;  %v5547_v37 = vld [vmem:[#allocation13 + $0xb18] sm:$0xff] }
 0x890   :  { %12451 = vmatpush1.bf16.msra.mxu0 %v12450_v19  ;;  %12361 = vmatprep.subr.bf16.mxu1 %v12360_v40  ;;  %v5512_v40 = vld [vmem:[#allocation13 + $0xa00] sm:$0xff] }
 0x891   :  { %12453 = vmatprep.subr.bf16.mxu0 %v12452_v21  ;;  %v5518_v21 = vld [vmem:[#allocation13 + $0xa30] sm:$0xff] }
 0x893   :  { %12363 = vmatpush1.bf16.msra.mxu1 %v12362_v46  ;;  %v12378_v46 = vpack.c.bf16 %v5516_v0, %v5512_v40  ;;  %v12486_v40 = vpack.c.bf16 %v5542_v33, %v5538_v31  ;;  %v5544_v0 = vld [vmem:[#allocation13 + $0xb00] sm:$0xff]  ;;  %v5574_v31 = vld [vmem:[#allocation13 + $0xbf0] sm:$0xff]  ;;  %v5031_v33 = vld [vmem:[#allocation13 + $0x8] sm:$0xff] }
 0x894   :  { %12455 = vmatpush1.bf16.msra.mxu0 %v12454_v53  ;;  %12365 = vmatprep.subr.bf16.mxu1 %v12364_v54  ;;  %v12474_v53 = vpack.c.bf16 %v5518_v21, %v5514_v41  ;;  %v5520_v54 = vld [vmem:[#allocation13 + $0xa40] sm:$0xff] }
 0x895   :  { %12457 = vmatprep.subr.bf16.mxu0 %v12456_v58  ;;  %v12380_v58 = vpack.c.bf16 %v5525_v45, %v5521_v42  ;;  %v12382_v14 = vpack.c.bf16 %v5524_v55, %v5520_v54  ;;  %v5548_v41 = vld [vmem:[#allocation13 + $0xb20] sm:$0xff]  ;;  %v5546_v45 = vld [vmem:[#allocation13 + $0xb10] sm:$0xff] }
 0x896   :  { %v12394_v54 = vpack.c.bf16 %v5548_v41, %v5544_v0  ;;  %v12490_v55 = vpack.c.bf16 %v5550_v49, %v5546_v45  ;;  %v5036_v45 = vld [vmem:[#allocation13 + $0x30] sm:$0xff]  ;;  %v5039_v49 = vld [vmem:[#allocation13 + $0x48] sm:$0xff] }
 0x897   :  { %12367 = vmatpush1.bf16.msra.mxu1 %v12366_v62 }
 0x898   :  { %12459 = vmatpush1.bf16.msra.mxu0 %v12458_v10  ;;  %12369 = vmatprep.subr.bf16.mxu1 %v12368_v28  ;;  %v5533_v10 = vld [vmem:[#allocation13 + $0xaa8] sm:$0xff]  ;;  %v5532_v28 = vld [vmem:[#allocation13 + $0xaa0] sm:$0xff] }
 0x899   :  { %12461 = vmatprep.subr.bf16.mxu0 %v12460_v50  ;;  %v5531_v50 = vld [vmem:[#allocation13 + $0xa98] sm:$0xff]  ;;  %v12384_v8 = vpack.c.bf16 %v5533_v10, %v5529_v4  ;;  %v12386_v27 = vpack.c.bf16 %v5532_v28, %v5528_v60  ;;  %v5558_v4 = vld [vmem:[#allocation13 + $0xb70] sm:$0xff]  ;;  %v5561_v10 = vld [vmem:[#allocation13 + $0xb88] sm:$0xff] }
 0x89a   :  { %v12480_v24 = vpack.c.bf16 %v5535_v36, %v5531_v50  ;;  %v5565_v50 = vld [vmem:[#allocation13 + $0xba8] sm:$0xff]  ;;  %v5563_v36 = vld [vmem:[#allocation13 + $0xb98] sm:$0xff]  ;;  %v12494_v60 = vpack.c.bf16 %v5558_v4, %v5554_v23  ;;  %v5560_v28 = vld [vmem:[#allocation13 + $0xb80] sm:$0xff] }
 0x89b   :  { %12371 = vmatpush1.bf16.msra.mxu1 %v12370_v17  ;;  %v5534_v17 = vld [vmem:[#allocation13 + $0xab0] sm:$0xff]  ;;  %v5047_v4 = vld [vmem:[#allocation13 + $0x88] sm:$0xff] }
 0x89c   :  { %12463 = vmatpush1.bf16.msra.mxu0 %v12462_v43  ;;  %12373 = vmatprep.subr.bf16.mxu1 %v12372_v29  ;;  %v5530_v43 = vld [vmem:[#allocation13 + $0xa90] sm:$0xff] }
 0x89d   :  { %12465 = vmatprep.subr.bf16.mxu0 %v12464_v61  ;;  %v12482_v63 = vpack.c.bf16 %v5534_v17, %v5530_v43  ;;  %v5562_v43 = vld [vmem:[#allocation13 + $0xb90] sm:$0xff] }
 0x89e   :  { %v5566_v17 = vld [vmem:[#allocation13 + $0xbb0] sm:$0xff] }
 0x89f   :  { %12375 = vmatpush1.bf16.msra.mxu1 %v12374_v18  ;;  %v5540_v18 = vld [vmem:[#allocation13 + $0xae0] sm:$0xff]  ;;  %v5044_v23 = vld [vmem:[#allocation13 + $0x70] sm:$0xff] }
 0x8a0   :  { %12467 = vmatpush1.bf16.msra.mxu0 %v12466_v3  ;;  %12377 = vmatprep.subr.bf16.mxu1 %v12376_v5  ;;  %v12388_v3 = vpack.c.bf16 %v5541_v59, %v5537_v2  ;;  %v5551_v5 = vld [vmem:[#allocation13 + $0xb38] sm:$0xff]  ;;  %v5569_v2 = vld [vmem:[#allocation13 + $0xbc8] sm:$0xff] }
 0x8a1   :  { %12469 = vmatprep.subr.bf16.mxu0 %v12468_v32  ;;  %v12484_v32 = vpack.c.bf16 %v5543_v9, %v5539_v48  ;;  %v12488_v42 = vpack.c.bf16 %v5551_v5, %v5547_v37  ;;  %v5571_v59 = vld [vmem:[#allocation13 + $0xbd8] sm:$0xff] }
 0x8a2   :  { %v5575_v48 = vld [vmem:[#allocation13 + $0xbf8] sm:$0xff] }
 0x8a3   :  { %v5037_v37 = vld [vmem:[#allocation13 + $0x38] sm:$0xff] }
 0x8a4   :  { %12471 = vmatpush1.bf16.msra.mxu0 %v12470_v34  ;;  %v5545_v34 = vld [vmem:[#allocation13 + $0xb08] sm:$0xff] }
 0x8a5   :  { %12473 = vmatprep.subr.bf16.mxu0 %v12472_v38  ;;  %v12390_v38 = vpack.c.bf16 %v5540_v18, %v5536_v30  ;;  %v12392_v21 = vpack.c.bf16 %v5549_v6, %v5545_v34  ;;  %v5572_v30 = vld [vmem:[#allocation13 + $0xbe0] sm:$0xff]  ;;  %v5035_v34 = vld [vmem:[#allocation13 + $0x28] sm:$0xff]  ;;  %v5033_v6 = vld [vmem:[#allocation13 + $0x18] sm:$0xff] }
 0x8a6   :  { %v12504_v0 = vpack.c.bf16 %v5035_v34, %v5031_v33  ;;  %v12600_v41 = vpack.c.bf16 %v5037_v37, %v5033_v6  ;;  %v5069_v33 = vld [vmem:[#allocation13 + $0x138] sm:$0xff] }
 0x916   :  { %v15690_v19 = vpop.f32.mrb[96].mxu1 }
 0x917   :  { %v15692_v39 = vpop.f32.mrb[97].mxu1 }
 0x931   :  { %v5297_v52 = vpop.f32.mrb[98].mxu1 }
 0x932   :  { %v5299_v56 = vpop.f32.mrb[99].mxu1  ;;  %v15694_v62 = vpop.f32.mrb[54].mxu0 }
 0x933   :  { %5640 = vmatprep.mubr.f32.mxu1 %v5299_v56  ;;  %5794 = vmatprep.mubr.f32.mxu0 %v5299_v56  ;;  %v15696_v51 = vpop.f32.mrb[55].mxu0  ;;  %v5552_v56 = vld [vmem:[#allocation13 + $0xb40] sm:$0xff] }
 0x934   :  { %5641 = vmatmul.mubr.f32.vlgmr.msra.gmra.mrb[102].mxu1 %v5297_v52  ;;  %5795 = vmatmul.mubr.f32.vlgmr.msra.gmra.mrb[60].mxu0 %v5297_v52  ;;  %v5557_v52 = vld [vmem:[#allocation13 + $0xb68] sm:$0xff] }
 0x935   :  { %12379 = vmatpush1.bf16.msra.mxu1 %v12378_v46  ;;  %12475 = vmatpush1.bf16.msra.mxu0 %v12474_v53  ;;  %v5303_v1 = vpop.f32.mrb[100].mxu1  ;;  %v5555_v46 = vld [vmem:[#allocation13 + $0xb58] sm:$0xff] }
 0x936   :  { %12381 = vmatprep.subr.bf16.mxu1 %v12380_v58  ;;  %12477 = vmatprep.subr.bf16.mxu0 %v12476_v22  ;;  %v5305_v20 = vpop.f32.mrb[101].mxu1  ;;  %v15698_v61 = vpop.f32.mrb[56].mxu0  ;;  %v5559_v53 = vld [vmem:[#allocation13 + $0xb78] sm:$0xff]  ;;  %v5556_v58 = vld [vmem:[#allocation13 + $0xb60] sm:$0xff]  ;;  %v12396_v22 = vpack.c.bf16 %v5557_v52, %v5553_v26  ;;  %v5043_v26 = vld [vmem:[#allocation13 + $0x68] sm:$0xff] }
 0x937   :  { %5646 = vmatprep.mubr.f32.mxu1 %v5305_v20  ;;  %5800 = vmatprep.mubr.f32.mxu0 %v5305_v20  ;;  %v15700_v29 = vpop.f32.mrb[57].mxu0  ;;  %v12492_v44 = vpack.c.bf16 %v5559_v53, %v5555_v46  ;;  %v5573_v20 = vld [vmem:[#allocation13 + $0xbe8] sm:$0xff]  ;;  %v5041_v52 = vld [vmem:[#allocation13 + $0x58] sm:$0xff] }
 0x938   :  { %5647 = vmatmul.mubr.f32.gmra.mrb[104].mxu1 %v5303_v1  ;;  %5801 = vmatmul.mubr.f32.gmra.mrb[62].mxu0 %v5303_v1  ;;  %v5564_v1 = vld [vmem:[#allocation13 + $0xba0] sm:$0xff]  ;;  %v12404_v18 = vpack.c.bf16 %v5573_v20, %v5569_v2  ;;  %v5045_v46 = vld [vmem:[#allocation13 + $0x78] sm:$0xff] }
 0x939   :  { %12383 = vmatpush1.bf16.msra.mxu1 %v12382_v14  ;;  %12479 = vmatpush1.bf16.msra.mxu0 %v12478_v35  ;;  %v5567_v14 = vld [vmem:[#allocation13 + $0xbb8] sm:$0xff]  ;;  %v12398_v35 = vpack.c.bf16 %v5556_v58, %v5552_v56  ;;  %v12402_v9 = vpack.c.bf16 %v5564_v1, %v5560_v28  ;;  %v5042_v56 = vld [vmem:[#allocation13 + $0x60] sm:$0xff]  ;;  %v12508_v58 = vpack.c.bf16 %v5043_v26, %v5039_v49  ;;  %v5048_v1 = vld [vmem:[#allocation13 + $0x90] sm:$0xff] }
 0x93a   :  { %12385 = vmatprep.subr.bf16.mxu1 %v12384_v8  ;;  %12481 = vmatprep.subr.bf16.mxu0 %v12480_v24  ;;  %v15702_v25 = vpop.f32.mrb[58].mxu0  ;;  %v12400_v8 = vpack.c.bf16 %v5565_v50, %v5561_v10  ;;  %v12496_v24 = vpack.c.bf16 %v5567_v14, %v5563_v36  ;;  %v5051_v10 = vld [vmem:[#allocation13 + $0xa8] sm:$0xff]  ;;  %v5049_v50 = vld [vmem:[#allocation13 + $0x98] sm:$0xff]  ;;  %v5050_v28 = vld [vmem:[#allocation13 + $0xa0] sm:$0xff] }
 0x93b   :  { %v15704_v11 = vpop.f32.mrb[59].mxu0  ;;  %5717 = vmatprep.mubr.f32.mxu1 %v14726_v47  ;;  %5871 = vmatprep.mubr.f32.mxu0 %v14726_v47  ;;  %v5053_v36 = vld [vmem:[#allocation13 + $0xb8] sm:$0xff] }
 0x93c   :  { %v5057_v2 = vld [vmem:[#allocation13 + $0xd8] sm:$0xff] }
 0x93d   :  { %12387 = vmatpush1.bf16.msra.mxu1 %v12386_v27  ;;  %12483 = vmatpush1.bf16.msra.mxu0 %v12482_v63  ;;  %v12498_v27 = vpack.c.bf16 %v5566_v17, %v5562_v43  ;;  %v5568_v63 = vld [vmem:[#allocation13 + $0xbc0] sm:$0xff]  ;;  %v5052_v43 = vld [vmem:[#allocation13 + $0xb0] sm:$0xff]  ;;  %v5059_v17 = vld [vmem:[#allocation13 + $0xe8] sm:$0xff] }
 0x93e   :  { %12389 = vmatprep.subr.bf16.mxu1 %v12388_v3  ;;  %12485 = vmatprep.subr.bf16.mxu0 %v12484_v32  ;;  %v12500_v3 = vpack.c.bf16 %v5575_v48, %v5571_v59  ;;  %v5570_v32 = vld [vmem:[#allocation13 + $0xbd0] sm:$0xff]  ;;  %v12406_v5 = vpack.c.bf16 %v5572_v30, %v5568_v63  ;;  %v5061_v20 = vld [vmem:[#allocation13 + $0xf8] sm:$0xff]  ;;  %v12610_v48 = vpack.c.bf16 %v5052_v43, %v5048_v1  ;;  %v5058_v63 = vld [vmem:[#allocation13 + $0xe0] sm:$0xff] }
 0x93f   :  { %v5056_v30 = vld [vmem:[#allocation13 + $0xd0] sm:$0xff]  ;;  %v5087_v1 = vld [vmem:[#allocation13 + $0x1c8] sm:$0xff]  ;;  %v5093_v43 = vld [vmem:[#allocation13 + $0x1f8] sm:$0xff] }
 0x941   :  { %12391 = vmatpush1.bf16.msra.mxu1 %v12390_v38  ;;  %12487 = vmatpush1.bf16.msra.mxu0 %v12486_v40  ;;  %v12502_v38 = vpack.c.bf16 %v5574_v31, %v5570_v32  ;;  %v5030_v40 = vld [vmem:[#allocation13] sm:$0xff]  ;;  %v5063_v32 = vld [vmem:[#allocation13 + $0x108] sm:$0xff]  ;;  %v5065_v31 = vld [vmem:[#allocation13 + $0x118] sm:$0xff] }
 0x942   :  { %12393 = vmatprep.subr.bf16.mxu1 %v12392_v21  ;;  %12489 = vmatprep.subr.bf16.mxu0 %v12488_v42  ;;  %v5034_v21 = vld [vmem:[#allocation13 + $0x20] sm:$0xff]  ;;  %v5032_v42 = vld [vmem:[#allocation13 + $0x10] sm:$0xff] }
 0x943   :  { %v12506_v53 = vpack.c.bf16 %v5034_v21, %v5030_v40  ;;  %v12616_v40 = vpack.c.bf16 %v5069_v33, %v5065_v31  ;;  %v5075_v21 = vld [vmem:[#allocation13 + $0x168] sm:$0xff]  ;;  %v5094_v33 = vld [vmem:[#allocation13 + $0x200] sm:$0xff] }
 0x945   :  { %12395 = vmatpush1.bf16.msra.mxu1 %v12394_v54  ;;  %12491 = vmatpush1.bf16.msra.mxu0 %v12490_v55  ;;  %v12602_v54 = vpack.c.bf16 %v5036_v45, %v5032_v42  ;;  %v5038_v55 = vld [vmem:[#allocation13 + $0x40] sm:$0xff]  ;;  %v5073_v42 = vld [vmem:[#allocation13 + $0x158] sm:$0xff] }
 0x946   :  { %12397 = vmatprep.subr.bf16.mxu1 %v12396_v22  ;;  %12493 = vmatprep.subr.bf16.mxu0 %v12492_v44  ;;  %v12604_v22 = vpack.c.bf16 %v5045_v46, %v5041_v52  ;;  %v5040_v44 = vld [vmem:[#allocation13 + $0x50] sm:$0xff]  ;;  %v12510_v14 = vpack.c.bf16 %v5042_v56, %v5038_v55  ;;  %v5077_v45 = vld [vmem:[#allocation13 + $0x178] sm:$0xff]  ;;  %v5070_v46 = vld [vmem:[#allocation13 + $0x140] sm:$0xff] }
 0x947   :  { %v12620_v55 = vpack.c.bf16 %v5077_v45, %v5073_v42  ;;  %v5076_v56 = vld [vmem:[#allocation13 + $0x170] sm:$0xff]  ;;  %v5102_v45 = vld [vmem:[#allocation13 + $0x240] sm:$0xff] }
 0x949   :  { %12399 = vmatpush1.bf16.msra.mxu1 %v12398_v35  ;;  %12495 = vmatpush1.bf16.msra.mxu0 %v12494_v60  ;;  %v12606_v35 = vpack.c.bf16 %v5044_v23, %v5040_v44  ;;  %v5046_v60 = vld [vmem:[#allocation13 + $0x80] sm:$0xff]  ;;  %v5081_v44 = vld [vmem:[#allocation13 + $0x198] sm:$0xff] }
 0x94a   :  { %12401 = vmatprep.subr.bf16.mxu1 %v12400_v8  ;;  %12497 = vmatprep.subr.bf16.mxu0 %v12496_v24  ;;  %v12512_v8 = vpack.c.bf16 %v5051_v10, %v5047_v4  ;;  %v12608_v24 = vpack.c.bf16 %v5053_v36, %v5049_v50  ;;  %v12514_v59 = vpack.c.bf16 %v5050_v28, %v5046_v60  ;;  %v5085_v23 = vld [vmem:[#allocation13 + $0x1b8] sm:$0xff]  ;;  %v5078_v36 = vld [vmem:[#allocation13 + $0x180] sm:$0xff]  ;;  %v5084_v28 = vld [vmem:[#allocation13 + $0x1b0] sm:$0xff] }
 0x94b   :  { %v12624_v60 = vpack.c.bf16 %v5085_v23, %v5081_v44  ;;  %v5110_v23 = vld [vmem:[#allocation13 + $0x280] sm:$0xff] }
 0x94d   :  { %12403 = vmatpush1.bf16.msra.mxu1 %v12402_v9  ;;  %12499 = vmatpush1.bf16.msra.mxu0 %v12498_v27  ;;  %v5054_v27 = vld [vmem:[#allocation13 + $0xc0] sm:$0xff] }
 0x94e   :  { %12405 = vmatprep.subr.bf16.mxu1 %v12404_v18  ;;  %12501 = vmatprep.subr.bf16.mxu0 %v12500_v3  ;;  %v12612_v18 = vpack.c.bf16 %v5061_v20, %v5057_v2  ;;  %v5060_v3 = vld [vmem:[#allocation13 + $0xf0] sm:$0xff]  ;;  %v12518_v34 = vpack.c.bf16 %v5058_v63, %v5054_v27  ;;  %v5086_v20 = vld [vmem:[#allocation13 + $0x1c0] sm:$0xff]  ;;  %v5095_v63 = vld [vmem:[#allocation13 + $0x208] sm:$0xff] }
 0x94f   :  { %v12614_v6 = vpack.c.bf16 %v5060_v3, %v5056_v30  ;;  %v5092_v27 = vld [vmem:[#allocation13 + $0x1f0] sm:$0xff]  ;;  %v5099_v30 = vld [vmem:[#allocation13 + $0x228] sm:$0xff]  ;;  %v5101_v3 = vld [vmem:[#allocation13 + $0x238] sm:$0xff] }
 0x950   :  { %v12536_v31 = vpack.c.bf16 %v5099_v30, %v5095_v63 }
 0x951   :  { %12407 = vmatpush1.bf16.msra.mxu1 %v12406_v5  ;;  %12503 = vmatpush1.bf16.msra.mxu0 %v12502_v38  ;;  %v5066_v5 = vld [vmem:[#allocation13 + $0x120] sm:$0xff]  ;;  %v5064_v38 = vld [vmem:[#allocation13 + $0x110] sm:$0xff] }
 0x952   :  { %12505 = vmatprep.subr.bf16.mxu1 %v12504_v0  ;;  %12601 = vmatprep.subr.bf16.mxu0 %v12600_v41  ;;  %v5068_v0 = vld [vmem:[#allocation13 + $0x130] sm:$0xff]  ;;  %v5071_v41 = vld [vmem:[#allocation13 + $0x148] sm:$0xff] }
 0x953   :  { %v12618_v26 = vpack.c.bf16 %v5068_v0, %v5064_v38  ;;  %v12524_v52 = vpack.c.bf16 %v5075_v21, %v5071_v41  ;;  %v5107_v38 = vld [vmem:[#allocation13 + $0x268] sm:$0xff]  ;;  %v5109_v0 = vld [vmem:[#allocation13 + $0x278] sm:$0xff] }
 0x954   :  { %5718 = vmatmul.mubr.f32.vlgmr.msra.gmra.mrb[102].mxu1 %v15704_v11  ;;  %5872 = vmatmul.mubr.f32.vlgmr.msra.gmra.mrb[60].mxu0 %v15704_v11  ;;  %v5055_v11 = vld [vmem:[#allocation13 + $0xc8] sm:$0xff] }
 0x955   :  { %12507 = vmatpush1.bf16.msra.mxu1 %v12506_v53  ;;  %12603 = vmatpush1.bf16.msra.mxu0 %v12602_v54  ;;  %v12516_v9 = vpack.c.bf16 %v5059_v17, %v5055_v11  ;;  %v5074_v53 = vld [vmem:[#allocation13 + $0x160] sm:$0xff]  ;;  %v5072_v54 = vld [vmem:[#allocation13 + $0x150] sm:$0xff] }
 0x956   :  { %5723 = vmatprep.mubr.f32.mxu1 %v14726_v47  ;;  %5877 = vmatprep.mubr.f32.mxu0 %v14726_v47  ;;  %v12526_v4 = vpack.c.bf16 %v5074_v53, %v5070_v46  ;;  %v12622_v10 = vpack.c.bf16 %v5076_v56, %v5072_v54  ;;  %v5108_v46 = vld [vmem:[#allocation13 + $0x270] sm:$0xff]  ;;  %v5111_v53 = vld [vmem:[#allocation13 + $0x288] sm:$0xff]  ;;  %v5117_v56 = vld [vmem:[#allocation13 + $0x2b8] sm:$0xff] }
 0x957   :  { %12509 = vmatprep.subr.bf16.mxu1 %v12508_v58  ;;  %12605 = vmatprep.subr.bf16.mxu0 %v12604_v22  ;;  %v5079_v58 = vld [vmem:[#allocation13 + $0x188] sm:$0xff] }
 0x958   :  { %5724 = vmatmul.mubr.f32.gmra.mrb[104].mxu1 %v15702_v25  ;;  %5878 = vmatmul.mubr.f32.gmra.mrb[62].mxu0 %v15702_v25  ;;  %v5067_v25 = vld [vmem:[#allocation13 + $0x128] sm:$0xff] }
 0x959   :  { %12511 = vmatpush1.bf16.msra.mxu1 %v12510_v14  ;;  %5948 = vmatprep.mubr.f32.mxu1 %v15696_v51  ;;  %v12520_v37 = vpack.c.bf16 %v5067_v25, %v5063_v32  ;;  %v5083_v22 = vld [vmem:[#allocation13 + $0x1a8] sm:$0xff]  ;;  %v5082_v14 = vld [vmem:[#allocation13 + $0x1a0] sm:$0xff] }
 0x95a   :  { %12607 = vmatpush1.bf16.msra.mxu0 %v12606_v35  ;;  %6102 = vmatprep.mubr.f32.mxu0 %v15696_v51  ;;  %v5062_v51 = vld [vmem:[#allocation13 + $0x100] sm:$0xff]  ;;  %v12528_v50 = vpack.c.bf16 %v5083_v22, %v5079_v58  ;;  %v5080_v35 = vld [vmem:[#allocation13 + $0x190] sm:$0xff]  ;;  %v12530_v11 = vpack.c.bf16 %v5082_v14, %v5078_v36  ;;  %v5115_v54 = vld [vmem:[#allocation13 + $0x2a8] sm:$0xff] }
 0x95b   :  { %12513 = vmatprep.subr.bf16.mxu1 %v12512_v8  ;;  %12609 = vmatprep.subr.bf16.mxu0 %v12608_v24  ;;  %v12522_v49 = vpack.c.bf16 %v5066_v5, %v5062_v51  ;;  %v5091_v8 = vld [vmem:[#allocation13 + $0x1e8] sm:$0xff]  ;;  %v5089_v24 = vld [vmem:[#allocation13 + $0x1d8] sm:$0xff]  ;;  %v12626_v17 = vpack.c.bf16 %v5084_v28, %v5080_v35  ;;  %v5100_v51 = vld [vmem:[#allocation13 + $0x230] sm:$0xff]  ;;  %v12544_v44 = vpack.c.bf16 %v5115_v54, %v5111_v53 }
 0x95c   :  { %v12532_v2 = vpack.c.bf16 %v5091_v8, %v5087_v1  ;;  %v5103_v5 = vld [vmem:[#allocation13 + $0x248] sm:$0xff]  ;;  %v5116_v36 = vld [vmem:[#allocation13 + $0x2b0] sm:$0xff]  ;;  %v5125_v28 = vld [vmem:[#allocation13 + $0x2f8] sm:$0xff] }
 0x95d   :  { %12515 = vmatpush1.bf16.msra.mxu1 %v12514_v59  ;;  %v5090_v59 = vld [vmem:[#allocation13 + $0x1e0] sm:$0xff]  ;;  %v12540_v42 = vpack.c.bf16 %v5107_v38, %v5103_v5  ;;  %v5119_v14 = vld [vmem:[#allocation13 + $0x2c8] sm:$0xff] }
 0x95e   :  { %12611 = vmatpush1.bf16.msra.mxu0 %v12610_v48  ;;  %12517 = vmatprep.subr.bf16.mxu1 %v12516_v9  ;;  %v5088_v48 = vld [vmem:[#allocation13 + $0x1d0] sm:$0xff]  ;;  %v12628_v9 = vpack.c.bf16 %v5093_v43, %v5089_v24  ;;  %v12534_v32 = vpack.c.bf16 %v5090_v59, %v5086_v20  ;;  %v5123_v35 = vld [vmem:[#allocation13 + $0x2e8] sm:$0xff]  ;;  %v5118_v43 = vld [vmem:[#allocation13 + $0x2c0] sm:$0xff] }
 0x95f   :  { %12613 = vmatprep.subr.bf16.mxu0 %v12612_v18  ;;  %v5097_v18 = vld [vmem:[#allocation13 + $0x218] sm:$0xff]  ;;  %v12630_v25 = vpack.c.bf16 %v5092_v27, %v5088_v48  ;;  %v12548_v24 = vpack.c.bf16 %v5123_v35, %v5119_v14  ;;  %v5124_v20 = vld [vmem:[#allocation13 + $0x2f0] sm:$0xff]  ;;  %v5127_v59 = vld [vmem:[#allocation13 + $0x308] sm:$0xff] }
 0x960   :  { %v5131_v48 = vld [vmem:[#allocation13 + $0x328] sm:$0xff]  ;;  %v5133_v27 = vld [vmem:[#allocation13 + $0x338] sm:$0xff] }
 0x961   :  { %12519 = vmatpush1.bf16.msra.mxu1 %v12518_v34  ;;  %v5098_v34 = vld [vmem:[#allocation13 + $0x220] sm:$0xff] }
 0x962   :  { %12615 = vmatpush1.bf16.msra.mxu0 %v12614_v6  ;;  %12521 = vmatprep.subr.bf16.mxu1 %v12520_v37  ;;  %v5096_v6 = vld [vmem:[#allocation13 + $0x210] sm:$0xff]  ;;  %v12632_v37 = vpack.c.bf16 %v5101_v3, %v5097_v18  ;;  %v12538_v41 = vpack.c.bf16 %v5098_v34, %v5094_v33  ;;  %v12552_v18 = vpack.c.bf16 %v5131_v48, %v5127_v59  ;;  %v5126_v3 = vld [vmem:[#allocation13 + $0x300] sm:$0xff]  ;;  %v5135_v34 = vld [vmem:[#allocation13 + $0x348] sm:$0xff] }
 0x963   :  { %12617 = vmatprep.subr.bf16.mxu0 %v12616_v40  ;;  %v5105_v40 = vld [vmem:[#allocation13 + $0x258] sm:$0xff]  ;;  %v12634_v21 = vpack.c.bf16 %v5100_v51, %v5096_v6  ;;  %v5132_v33 = vld [vmem:[#allocation13 + $0x330] sm:$0xff]  ;;  %v5139_v6 = vld [vmem:[#allocation13 + $0x368] sm:$0xff] }
 0x964   :  { %v5141_v51 = vld [vmem:[#allocation13 + $0x378] sm:$0xff] }
 0x965   :  { %12523 = vmatpush1.bf16.msra.mxu1 %v12522_v49  ;;  %v5106_v49 = vld [vmem:[#allocation13 + $0x260] sm:$0xff] }
 0x966   :  { %12619 = vmatpush1.bf16.msra.mxu0 %v12618_v26  ;;  %12525 = vmatprep.subr.bf16.mxu1 %v12524_v52  ;;  %v5104_v26 = vld [vmem:[#allocation13 + $0x250] sm:$0xff]  ;;  %v12636_v52 = vpack.c.bf16 %v5109_v0, %v5105_v40  ;;  %v12542_v58 = vpack.c.bf16 %v5106_v49, %v5102_v45  ;;  %v12556_v40 = vpack.c.bf16 %v5139_v6, %v5135_v34  ;;  %v5134_v0 = vld [vmem:[#allocation13 + $0x340] sm:$0xff]  ;;  %v5143_v49 = vld [vmem:[#allocation13 + $0x388] sm:$0xff] }
 0x967   :  { %12621 = vmatprep.subr.bf16.mxu0 %v12620_v55  ;;  %v5113_v55 = vld [vmem:[#allocation13 + $0x298] sm:$0xff]  ;;  %v12638_v22 = vpack.c.bf16 %v5108_v46, %v5104_v26  ;;  %v5140_v45 = vld [vmem:[#allocation13 + $0x370] sm:$0xff]  ;;  %v5147_v26 = vld [vmem:[#allocation13 + $0x3a8] sm:$0xff] }
 0x968   :  { %v5149_v46 = vld [vmem:[#allocation13 + $0x3b8] sm:$0xff] }
 0x969   :  { %12527 = vmatpush1.bf16.msra.mxu1 %v12526_v4  ;;  %v5114_v4 = vld [vmem:[#allocation13 + $0x2a0] sm:$0xff] }
 0x96a   :  { %12623 = vmatpush1.bf16.msra.mxu0 %v12622_v10  ;;  %12529 = vmatprep.subr.bf16.mxu1 %v12528_v50  ;;  %v5112_v10 = vld [vmem:[#allocation13 + $0x290] sm:$0xff]  ;;  %v12640_v50 = vpack.c.bf16 %v5117_v56, %v5113_v55  ;;  %v12546_v1 = vpack.c.bf16 %v5114_v4, %v5110_v23  ;;  %v12560_v55 = vpack.c.bf16 %v5147_v26, %v5143_v49  ;;  %v5142_v56 = vld [vmem:[#allocation13 + $0x380] sm:$0xff]  ;;  %v5151_v4 = vld [vmem:[#allocation13 + $0x3c8] sm:$0xff] }
 0x96b   :  { %12625 = vmatprep.subr.bf16.mxu0 %v12624_v60  ;;  %v5121_v60 = vld [vmem:[#allocation13 + $0x2d8] sm:$0xff]  ;;  %v12642_v8 = vpack.c.bf16 %v5116_v36, %v5112_v10  ;;  %v5148_v23 = vld [vmem:[#allocation13 + $0x3b0] sm:$0xff]  ;;  %v5155_v10 = vld [vmem:[#allocation13 + $0x3e8] sm:$0xff] }
 0x96c   :  { %v5157_v36 = vld [vmem:[#allocation13 + $0x3f8] sm:$0xff] }
 0x96d   :  { %12531 = vmatpush1.bf16.msra.mxu1 %v12530_v11  ;;  %v5122_v11 = vld [vmem:[#allocation13 + $0x2e0] sm:$0xff] }
 0x96e   :  { %12627 = vmatpush1.bf16.msra.mxu0 %v12626_v17  ;;  %12533 = vmatprep.subr.bf16.mxu1 %v12532_v2  ;;  %v5120_v17 = vld [vmem:[#allocation13 + $0x2d0] sm:$0xff]  ;;  %v12644_v2 = vpack.c.bf16 %v5125_v28, %v5121_v60  ;;  %v12550_v63 = vpack.c.bf16 %v5122_v11, %v5118_v43  ;;  %v12564_v60 = vpack.c.bf16 %v5155_v10, %v5151_v4  ;;  %v5150_v28 = vld [vmem:[#allocation13 + $0x3c0] sm:$0xff]  ;;  %v5159_v11 = vld [vmem:[#allocation13 + $0x408] sm:$0xff] }
 0x96f   :  { %12629 = vmatprep.subr.bf16.mxu0 %v12628_v9  ;;  %v5129_v9 = vld [vmem:[#allocation13 + $0x318] sm:$0xff]  ;;  %v12646_v30 = vpack.c.bf16 %v5124_v20, %v5120_v17  ;;  %v5156_v43 = vld [vmem:[#allocation13 + $0x3f0] sm:$0xff]  ;;  %v5163_v17 = vld [vmem:[#allocation13 + $0x428] sm:$0xff] }
 0x970   :  { %v5165_v20 = vld [vmem:[#allocation13 + $0x438] sm:$0xff]  ;;  %v5182_v10 = vld [vmem:[#allocation13 + $0x4c0] sm:$0xff] }
 0x971   :  { %12535 = vmatpush1.bf16.msra.mxu1 %v12534_v32  ;;  %v5130_v32 = vld [vmem:[#allocation13 + $0x320] sm:$0xff] }
 0x972   :  { %12631 = vmatpush1.bf16.msra.mxu0 %v12630_v25  ;;  %12537 = vmatprep.subr.bf16.mxu1 %v12536_v31  ;;  %v5128_v25 = vld [vmem:[#allocation13 + $0x310] sm:$0xff]  ;;  %v12648_v31 = vpack.c.bf16 %v5133_v27, %v5129_v9  ;;  %v12554_v5 = vpack.c.bf16 %v5130_v32, %v5126_v3  ;;  %v12568_v9 = vpack.c.bf16 %v5163_v17, %v5159_v11  ;;  %v5167_v32 = vld [vmem:[#allocation13 + $0x448] sm:$0xff]  ;;  %v5190_v11 = vld [vmem:[#allocation13 + $0x500] sm:$0xff] }
 0x973   :  { %12633 = vmatprep.subr.bf16.mxu0 %v12632_v37  ;;  %v5137_v37 = vld [vmem:[#allocation13 + $0x358] sm:$0xff]  ;;  %v12650_v38 = vpack.c.bf16 %v5132_v33, %v5128_v25  ;;  %v5164_v3 = vld [vmem:[#allocation13 + $0x430] sm:$0xff]  ;;  %v5171_v25 = vld [vmem:[#allocation13 + $0x468] sm:$0xff] }
 0x974   :  { %v5173_v33 = vld [vmem:[#allocation13 + $0x478] sm:$0xff]  ;;  %v5194_v17 = vld [vmem:[#allocation13 + $0x520] sm:$0xff] }
 0x975   :  { %12539 = vmatpush1.bf16.msra.mxu1 %v12538_v41  ;;  %v5138_v41 = vld [vmem:[#allocation13 + $0x360] sm:$0xff] }
 0x976   :  { %12635 = vmatpush1.bf16.msra.mxu0 %v12634_v21  ;;  %12541 = vmatprep.subr.bf16.mxu1 %v12540_v42  ;;  %v5136_v21 = vld [vmem:[#allocation13 + $0x350] sm:$0xff]  ;;  %v12652_v42 = vpack.c.bf16 %v5141_v51, %v5137_v37  ;;  %v12558_v53 = vpack.c.bf16 %v5138_v41, %v5134_v0  ;;  %v12572_v37 = vpack.c.bf16 %v5171_v25, %v5167_v32  ;;  %v5166_v51 = vld [vmem:[#allocation13 + $0x440] sm:$0xff]  ;;  %v5175_v41 = vld [vmem:[#allocation13 + $0x488] sm:$0xff] }
 0x977   :  { %12637 = vmatprep.subr.bf16.mxu0 %v12636_v52  ;;  %v5145_v52 = vld [vmem:[#allocation13 + $0x398] sm:$0xff]  ;;  %v12654_v54 = vpack.c.bf16 %v5140_v45, %v5136_v21  ;;  %v5172_v0 = vld [vmem:[#allocation13 + $0x470] sm:$0xff]  ;;  %v5179_v21 = vld [vmem:[#allocation13 + $0x4a8] sm:$0xff] }
 0x978   :  { %v5181_v45 = vld [vmem:[#allocation13 + $0x4b8] sm:$0xff]  ;;  %v5198_v32 = vld [vmem:[#allocation13 + $0x540] sm:$0xff] }
 0x979   :  { %12543 = vmatpush1.bf16.msra.mxu1 %v12542_v58  ;;  %v5146_v58 = vld [vmem:[#allocation13 + $0x3a0] sm:$0xff] }
 0x97a   :  { %12639 = vmatpush1.bf16.msra.mxu0 %v12638_v22  ;;  %12545 = vmatprep.subr.bf16.mxu1 %v12544_v44  ;;  %v5144_v22 = vld [vmem:[#allocation13 + $0x390] sm:$0xff]  ;;  %v12656_v44 = vpack.c.bf16 %v5149_v46, %v5145_v52  ;;  %v12562_v14 = vpack.c.bf16 %v5146_v58, %v5142_v56  ;;  %v12576_v52 = vpack.c.bf16 %v5179_v21, %v5175_v41  ;;  %v5174_v46 = vld [vmem:[#allocation13 + $0x480] sm:$0xff]  ;;  %v5183_v56 = vld [vmem:[#allocation13 + $0x4c8] sm:$0xff] }
 0x97b   :  { %12641 = vmatprep.subr.bf16.mxu0 %v12640_v50  ;;  %v5153_v50 = vld [vmem:[#allocation13 + $0x3d8] sm:$0xff]  ;;  %v12658_v35 = vpack.c.bf16 %v5148_v23, %v5144_v22  ;;  %v5187_v58 = vld [vmem:[#allocation13 + $0x4e8] sm:$0xff]  ;;  %v5202_v25 = vld [vmem:[#allocation13 + $0x560] sm:$0xff] }
 0x97c   :  { %v5185_v22 = vld [vmem:[#allocation13 + $0x4d8] sm:$0xff]  ;;  %v12580_v4 = vpack.c.bf16 %v5187_v58, %v5183_v56  ;;  %v5206_v41 = vld [vmem:[#allocation13 + $0x580] sm:$0xff] }
 0x97d   :  { %12547 = vmatpush1.bf16.msra.mxu1 %v12546_v1  ;;  %v5154_v1 = vld [vmem:[#allocation13 + $0x3e0] sm:$0xff] }
 0x97e   :  { %12643 = vmatpush1.bf16.msra.mxu0 %v12642_v8  ;;  %12549 = vmatprep.subr.bf16.mxu1 %v12548_v24  ;;  %v5152_v8 = vld [vmem:[#allocation13 + $0x3d0] sm:$0xff]  ;;  %v12660_v24 = vpack.c.bf16 %v5157_v36, %v5153_v50  ;;  %v12566_v59 = vpack.c.bf16 %v5154_v1, %v5150_v28  ;;  %v5186_v50 = vld [vmem:[#allocation13 + $0x4e0] sm:$0xff]  ;;  %v5193_v28 = vld [vmem:[#allocation13 + $0x518] sm:$0xff] }
 0x97f   :  { %12645 = vmatprep.subr.bf16.mxu0 %v12644_v2  ;;  %v5161_v2 = vld [vmem:[#allocation13 + $0x418] sm:$0xff]  ;;  %v12662_v48 = vpack.c.bf16 %v5156_v43, %v5152_v8  ;;  %v5184_v36 = vld [vmem:[#allocation13 + $0x4d0] sm:$0xff]  ;;  %v12582_v8 = vpack.c.bf16 %v5186_v50, %v5182_v10  ;;  %v5210_v21 = vld [vmem:[#allocation13 + $0x5a0] sm:$0xff] }
 0x980   :  { %v12664_v27 = vpack.c.bf16 %v5165_v20, %v5161_v2  ;;  %v5197_v1 = vld [vmem:[#allocation13 + $0x538] sm:$0xff]  ;;  %v5192_v2 = vld [vmem:[#allocation13 + $0x510] sm:$0xff]  ;;  %v5214_v56 = vld [vmem:[#allocation13 + $0x5c0] sm:$0xff] }
 0x981   :  { %12551 = vmatpush1.bf16.msra.mxu1 %v12550_v63  ;;  %v5158_v63 = vld [vmem:[#allocation13 + $0x400] sm:$0xff]  ;;  %v12680_v20 = vpack.c.bf16 %v5197_v1, %v5193_v28  ;;  %v6355_v10 = vld [vmem:[#allocation13 + $0xc08] sm:$0xff]  ;;  %v6356_v28 = vld [vmem:[#allocation13 + $0xc10] sm:$0xff] }
 0x982   :  { %12647 = vmatpush1.bf16.msra.mxu0 %v12646_v30  ;;  %12553 = vmatprep.subr.bf16.mxu1 %v12552_v18  ;;  %v5162_v30 = vld [vmem:[#allocation13 + $0x420] sm:$0xff]  ;;  %v5160_v18 = vld [vmem:[#allocation13 + $0x410] sm:$0xff]  ;;  %v6359_v50 = vld [vmem:[#allocation13 + $0xc28] sm:$0xff] }
 0x983   :  { %12649 = vmatprep.subr.bf16.mxu0 %v12648_v31  ;;  %v5169_v31 = vld [vmem:[#allocation13 + $0x458] sm:$0xff]  ;;  %v12570_v34 = vpack.c.bf16 %v5162_v30, %v5158_v63  ;;  %v12666_v6 = vpack.c.bf16 %v5164_v3, %v5160_v18  ;;  %v12586_v30 = vpack.c.bf16 %v5194_v17, %v5190_v11  ;;  %v5218_v58 = vld [vmem:[#allocation13 + $0x5e0] sm:$0xff]  ;;  %v6360_v1 = vld [vmem:[#allocation13 + $0xc30] sm:$0xff] }
 0x984   :  { %v5205_v63 = vld [vmem:[#allocation13 + $0x578] sm:$0xff]  ;;  %v6193_v17 = vld [vmem:[#allocation11 + $0x20] sm:$0xff] }
 0x985   :  { %12555 = vmatpush1.bf16.msra.mxu1 %v12554_v5  ;;  %v5170_v5 = vld [vmem:[#allocation13 + $0x460] sm:$0xff]  ;;  %v6369_v11 = vld [vmem:[#allocation13 + $0xc78] sm:$0xff] }
 0x986   :  { %12651 = vmatpush1.bf16.msra.mxu0 %v12650_v38  ;;  %12557 = vmatprep.subr.bf16.mxu1 %v12556_v40  ;;  %v5168_v38 = vld [vmem:[#allocation13 + $0x450] sm:$0xff]  ;;  %v12668_v40 = vpack.c.bf16 %v5173_v33, %v5169_v31  ;;  %v12574_v49 = vpack.c.bf16 %v5170_v5, %v5166_v51  ;;  %v5209_v51 = vld [vmem:[#allocation13 + $0x598] sm:$0xff] }
 0x987   :  { %12653 = vmatprep.subr.bf16.mxu0 %v12652_v42  ;;  %v5177_v42 = vld [vmem:[#allocation13 + $0x498] sm:$0xff]  ;;  %v12670_v26 = vpack.c.bf16 %v5172_v0, %v5168_v38  ;;  %v5200_v31 = vld [vmem:[#allocation13 + $0x550] sm:$0xff]  ;;  %v12590_v38 = vpack.c.bf16 %v5202_v25, %v5198_v32 }
 0x988   :  { %v5213_v5 = vld [vmem:[#allocation13 + $0x5b8] sm:$0xff] }
 0x989   :  { %12559 = vmatpush1.bf16.msra.mxu1 %v12558_v53  ;;  %v5178_v53 = vld [vmem:[#allocation13 + $0x4a0] sm:$0xff]  ;;  %v6373_v32 = vld [vmem:[#allocation13 + $0xc98] sm:$0xff] }
 0x98a   :  { %12655 = vmatpush1.bf16.msra.mxu0 %v12654_v54  ;;  %12561 = vmatprep.subr.bf16.mxu1 %v12560_v55  ;;  %v5176_v54 = vld [vmem:[#allocation13 + $0x490] sm:$0xff]  ;;  %v12672_v55 = vpack.c.bf16 %v5181_v45, %v5177_v42  ;;  %v12688_v45 = vpack.c.bf16 %v5213_v5, %v5209_v51  ;;  %v6377_v25 = vld [vmem:[#allocation13 + $0xcb8] sm:$0xff] }
 0x98b   :  { %12657 = vmatprep.subr.bf16.mxu0 %v12656_v44  ;;  %v5189_v44 = vld [vmem:[#allocation13 + $0x4f8] sm:$0xff]  ;;  %v5208_v42 = vld [vmem:[#allocation13 + $0x590] sm:$0xff]  ;;  %v12808_v51 = vpack.c.bf16 %v6377_v25, %v6373_v32  ;;  %v6411_v25 = vld [vmem:[#allocation13 + $0xdc8] sm:$0xff] }
 0x98c   :  { %v6372_v5 = vld [vmem:[#allocation13 + $0xc90] sm:$0xff] }
 0x98d   :  { %12563 = vmatpush1.bf16.msra.mxu1 %v12562_v14  ;;  %v12676_v14 = vpack.c.bf16 %v5189_v44, %v5185_v22  ;;  %v5216_v44 = vld [vmem:[#allocation13 + $0x5d0] sm:$0xff] }
 0x98e   :  { %12659 = vmatpush1.bf16.msra.mxu0 %v12658_v35  ;;  %12565 = vmatprep.subr.bf16.mxu1 %v12564_v60  ;;  %v5188_v35 = vld [vmem:[#allocation13 + $0x4f0] sm:$0xff]  ;;  %v5191_v60 = vld [vmem:[#allocation13 + $0x508] sm:$0xff] }
 0x98f   :  { %12661 = vmatprep.subr.bf16.mxu0 %v12660_v24  ;;  %v12678_v24 = vpack.c.bf16 %v5188_v35, %v5184_v36  ;;  %v6357_v36 = vld [vmem:[#allocation13 + $0xc18] sm:$0xff]  ;;  %v6354_v35 = vld [vmem:[#allocation13 + $0xc00] sm:$0xff]  ;;  %v6408_v32 = vld [vmem:[#allocation13 + $0xdb0] sm:$0xff] }
 0x991   :  { %12567 = vmatpush1.bf16.msra.mxu1 %v12566_v59  ;;  %v5196_v59 = vld [vmem:[#allocation13 + $0x530] sm:$0xff] }
 0x992   :  { %12663 = vmatpush1.bf16.msra.mxu0 %v12662_v48  ;;  %12569 = vmatprep.subr.bf16.mxu1 %v12568_v9  ;;  %v5199_v48 = vld [vmem:[#allocation13 + $0x548] sm:$0xff]  ;;  %v12682_v18 = vpack.c.bf16 %v5196_v59, %v5192_v2  ;;  %v6194_v2 = vld [vmem:[#allocation11 + $0x28] sm:$0xff]  ;;  %v12802_v59 = vpack.c.bf16 %v6360_v1, %v6356_v28 }
 0x993   :  { %12665 = vmatprep.subr.bf16.mxu0 %v12664_v27  ;;  %v5203_v9 = vld [vmem:[#allocation13 + $0x568] sm:$0xff]  ;;  %v5201_v27 = vld [vmem:[#allocation13 + $0x558] sm:$0xff] }
 0x994   :  { %5949 = vmatmul.mubr.f32.vlgmr.msra.gmra.mrb[102].mxu1 %v15694_v62  ;;  %v12588_v3 = vpack.c.bf16 %v5203_v9, %v5199_v48  ;;  %v12684_v33 = vpack.c.bf16 %v5205_v63, %v5201_v27  ;;  %v6362_v48 = vld [vmem:[#allocation13 + $0xc40] sm:$0xff] }
 0x995   :  { %6103 = vmatmul.mubr.f32.vlgmr.msra.gmra.mrb[60].mxu0 %v15694_v62  ;;  %5954 = vmatprep.mubr.f32.mxu1 %v15700_v29  ;;  %v5180_v62 = vld [vmem:[#allocation13 + $0x4b0] sm:$0xff]  ;;  %v6366_v9 = vld [vmem:[#allocation13 + $0xc60] sm:$0xff] }
 0x996   :  { %12571 = vmatpush1.bf16.msra.mxu1 %v12570_v34  ;;  %6108 = vmatprep.mubr.f32.mxu0 %v15700_v29  ;;  %v12578_v29 = vpack.c.bf16 %v5178_v53, %v5174_v46  ;;  %v12674_v23 = vpack.c.bf16 %v5180_v62, %v5176_v54  ;;  %v5204_v34 = vld [vmem:[#allocation13 + $0x570] sm:$0xff]  ;;  %v5217_v46 = vld [vmem:[#allocation13 + $0x5d8] sm:$0xff]  ;;  %v12594_v54 = vpack.c.bf16 %v5210_v21, %v5206_v41 }
 0x997   :  { %12667 = vmatpush1.bf16.msra.mxu0 %v12666_v6  ;;  %12573 = vmatprep.subr.bf16.mxu1 %v12572_v37  ;;  %v5207_v6 = vld [vmem:[#allocation13 + $0x588] sm:$0xff]  ;;  %v5221_v53 = vld [vmem:[#allocation13 + $0x5f8] sm:$0xff] }
 0x998   :  { %5955 = vmatmul.mubr.f32.gmra.mrb[104].mxu1 %v15698_v61  ;;  %12669 = vmatprep.subr.bf16.mxu0 %v12668_v40  ;;  %v5211_v37 = vld [vmem:[#allocation13 + $0x5a8] sm:$0xff]  ;;  %v12686_v40 = vpack.c.bf16 %v5204_v34, %v5200_v31  ;;  %v12692_v22 = vpack.c.bf16 %v5221_v53, %v5217_v46  ;;  %v12710_v31 = vpack.c.bf16 %v6366_v9, %v6362_v48  ;;  %v6370_v34 = vld [vmem:[#allocation13 + $0xc80] sm:$0xff]  ;;  %v6381_v41 = vld [vmem:[#allocation13 + $0xcd8] sm:$0xff] }
 0x999   :  { %6109 = vmatmul.mubr.f32.gmra.mrb[62].mxu0 %v15698_v61  ;;  %6025 = vmatprep.mubr.f32.mxu1 %v14726_v47  ;;  %v5195_v61 = vld [vmem:[#allocation13 + $0x528] sm:$0xff]  ;;  %v12592_v0 = vpack.c.bf16 %v5211_v37, %v5207_v6  ;;  %v6374_v6 = vld [vmem:[#allocation13 + $0xca0] sm:$0xff]  ;;  %v6385_v21 = vld [vmem:[#allocation13 + $0xcf8] sm:$0xff] }
 0x99a   :  { %12575 = vmatpush1.bf16.msra.mxu1 %v12574_v49  ;;  %6179 = vmatprep.mubr.f32.mxu0 %v14726_v47  ;;  %v12584_v43 = vpack.c.bf16 %v5195_v61, %v5191_v60  ;;  %v5212_v49 = vld [vmem:[#allocation13 + $0x5b0] sm:$0xff]  ;;  %v6358_v60 = vld [vmem:[#allocation13 + $0xc20] sm:$0xff]  ;;  %v12704_v61 = vpack.c.bf16 %v6359_v50, %v6355_v10  ;;  %v12812_v46 = vpack.c.bf16 %v6385_v21, %v6381_v41  ;;  %v6409_v48 = vld [vmem:[#allocation13 + $0xdb8] sm:$0xff] }
 0x99b   :  { %12671 = vmatpush1.bf16.msra.mxu0 %v12670_v26  ;;  %12577 = vmatprep.subr.bf16.mxu1 %v12576_v52  ;;  %v5215_v26 = vld [vmem:[#allocation13 + $0x5c8] sm:$0xff]  ;;  %v6380_v53 = vld [vmem:[#allocation13 + $0xcd0] sm:$0xff] }
 0x99c   :  { %12673 = vmatprep.subr.bf16.mxu0 %v12672_v55  ;;  %v5219_v52 = vld [vmem:[#allocation13 + $0x5e8] sm:$0xff]  ;;  %v12690_v55 = vpack.c.bf16 %v5212_v49, %v5208_v42  ;;  %v12714_v42 = vpack.c.bf16 %v6374_v6, %v6370_v34  ;;  %v6378_v49 = vld [vmem:[#allocation13 + $0xcc0] sm:$0xff]  ;;  %v6388_v50 = vld [vmem:[#allocation13 + $0xd10] sm:$0xff] }
 0x99d   :  { %v12596_v62 = vpack.c.bf16 %v5219_v52, %v5215_v26  ;;  %v6382_v26 = vld [vmem:[#allocation13 + $0xce0] sm:$0xff]  ;;  %v6417_v34 = vld [vmem:[#allocation13 + $0xdf8] sm:$0xff]  ;;  %v6416_v41 = vld [vmem:[#allocation13 + $0xdf0] sm:$0xff] }
 0x99e   :  { %12579 = vmatpush1.bf16.msra.mxu1 %v12578_v29  ;;  %v5220_v29 = vld [vmem:[#allocation13 + $0x5f0] sm:$0xff]  ;;  %v6419_v21 = vld [vmem:[#allocation13 + $0xe08] sm:$0xff] }
 0x99f   :  { %12675 = vmatpush1.bf16.msra.mxu0 %v12674_v23  ;;  %12581 = vmatprep.subr.bf16.mxu1 %v12580_v4  ;;  %v12598_v23 = vpack.c.bf16 %v5218_v58, %v5214_v56  ;;  %v12694_v4 = vpack.c.bf16 %v5220_v29, %v5216_v44  ;;  %v6389_v56 = vld [vmem:[#allocation13 + $0xd18] sm:$0xff]  ;;  %v6386_v29 = vld [vmem:[#allocation13 + $0xd00] sm:$0xff] }
 0x9a0   :  { %12677 = vmatprep.subr.bf16.mxu0 %v12676_v14  ;;  %v6361_v14 = vld [vmem:[#allocation13 + $0xc38] sm:$0xff] }
 0x9a1   :  { %v6393_v58 = vld [vmem:[#allocation13 + $0xd38] sm:$0xff] }
 0x9a2   :  { %12583 = vmatpush1.bf16.msra.mxu1 %v12582_v8  ;;  %v6363_v8 = vld [vmem:[#allocation13 + $0xc48] sm:$0xff]  ;;  %v12816_v10 = vpack.c.bf16 %v6393_v58, %v6389_v56  ;;  %v6424_v56 = vld [vmem:[#allocation13 + $0xe30] sm:$0xff] }
 0x9a3   :  { %12679 = vmatpush1.bf16.msra.mxu0 %v12678_v24  ;;  %12585 = vmatprep.subr.bf16.mxu1 %v12584_v43  ;;  %v6367_v24 = vld [vmem:[#allocation13 + $0xc68] sm:$0xff]  ;;  %v6365_v43 = vld [vmem:[#allocation13 + $0xc58] sm:$0xff] }
 0x9a4   :  { %12681 = vmatprep.subr.bf16.mxu0 %v12680_v20  ;;  %v12706_v20 = vpack.c.bf16 %v6358_v60, %v6354_v35  ;;  %v12708_v27 = vpack.c.bf16 %v6367_v24, %v6363_v8  ;;  %v12804_v63 = vpack.c.bf16 %v6369_v11, %v6365_v43  ;;  %v6399_v35 = vld [vmem:[#allocation13 + $0xd68] sm:$0xff]  ;;  %v6397_v60 = vld [vmem:[#allocation13 + $0xd58] sm:$0xff]  ;;  %v6394_v8 = vld [vmem:[#allocation13 + $0xd40] sm:$0xff] }
 0x9a5   :  { %v6396_v11 = vld [vmem:[#allocation13 + $0xd50] sm:$0xff]  ;;  %v6427_v58 = vld [vmem:[#allocation13 + $0xe48] sm:$0xff] }
 0x9a6   :  { %12587 = vmatpush1.bf16.msra.mxu1 %v12586_v30  ;;  %v6364_v30 = vld [vmem:[#allocation13 + $0xc50] sm:$0xff] }
 0x9a7   :  { %12683 = vmatpush1.bf16.msra.mxu0 %v12682_v18  ;;  %12589 = vmatprep.subr.bf16.mxu1 %v12588_v3  ;;  %v6368_v18 = vld [vmem:[#allocation13 + $0xc70] sm:$0xff]  ;;  %v6375_v3 = vld [vmem:[#allocation13 + $0xca8] sm:$0xff] }
 0x9a8   :  { %12685 = vmatprep.subr.bf16.mxu0 %v12684_v33  ;;  %v12806_v33 = vpack.c.bf16 %v6368_v18, %v6364_v30  ;;  %v6406_v30 = vld [vmem:[#allocation13 + $0xda0] sm:$0xff] }
 0x9aa   :  { %12591 = vmatpush1.bf16.msra.mxu1 %v12590_v38  ;;  %v6376_v38 = vld [vmem:[#allocation13 + $0xcb0] sm:$0xff] }
 0x9ab   :  { %12687 = vmatpush1.bf16.msra.mxu0 %v12686_v40  ;;  %12593 = vmatprep.subr.bf16.mxu1 %v12592_v0  ;;  %v6379_v40 = vld [vmem:[#allocation13 + $0xcc8] sm:$0xff] }
 0x9ac   :  { %12689 = vmatprep.subr.bf16.mxu0 %v12688_v45  ;;  %v6383_v0 = vld [vmem:[#allocation13 + $0xce8] sm:$0xff]  ;;  %v12810_v45 = vpack.c.bf16 %v6376_v38, %v6372_v5  ;;  %v6414_v5 = vld [vmem:[#allocation13 + $0xde0] sm:$0xff] }
 0x9ad   :  { %v12716_v52 = vpack.c.bf16 %v6383_v0, %v6379_v40  ;;  %v6412_v0 = vld [vmem:[#allocation13 + $0xdd0] sm:$0xff] }
 0x9ae   :  { %12595 = vmatpush1.bf16.msra.mxu1 %v12594_v54  ;;  %v6384_v54 = vld [vmem:[#allocation13 + $0xcf0] sm:$0xff] }
 0x9af   :  { %12691 = vmatpush1.bf16.msra.mxu0 %v12690_v55  ;;  %12597 = vmatprep.subr.bf16.mxu1 %v12596_v62  ;;  %v6387_v55 = vld [vmem:[#allocation13 + $0xd08] sm:$0xff]  ;;  %v12814_v44 = vpack.c.bf16 %v6384_v54, %v6380_v53  ;;  %v6422_v53 = vld [vmem:[#allocation13 + $0xe20] sm:$0xff] }
 0x9b0   :  { %12693 = vmatprep.subr.bf16.mxu0 %v12692_v22  ;;  %v6391_v62 = vld [vmem:[#allocation13 + $0xd28] sm:$0xff]  ;;  %v12718_v22 = vpack.c.bf16 %v6382_v26, %v6378_v49  ;;  %v6425_v49 = vld [vmem:[#allocation13 + $0xe38] sm:$0xff] }
 0x9b2   :  { %12599 = vmatpush1.bf16.msra.mxu1 %v12598_v23  ;;  %v6390_v23 = vld [vmem:[#allocation13 + $0xd20] sm:$0xff] }
 0x9b3   :  { %12695 = vmatpush1.bf16.msra.mxu0 %v12694_v4  ;;  %12697 = vmatprep.subr.bf16.mxu1 %v15663_v12  ;;  %v12720_v4 = vpack.c.bf16 %v6391_v62, %v6387_v55  ;;  %v12722_v28 = vpack.c.bf16 %v6390_v23, %v6386_v29  ;;  %v6420_v62 = vld [vmem:[#allocation13 + $0xe10] sm:$0xff]  ;;  %v6433_v29 = vld [vmem:[#allocation13 + $0xe78] sm:$0xff] }
 0x9b4   :  { %12701 = vmatprep.subr.bf16.mxu0 %v15651_v57 }
 0x9b5   :  { %6026 = vmatmul.mubr.f32.vlgmr.msra.gmra.mrb[102].mxu1 %v15692_v39 }
 0x9b6   :  { %6180 = vmatmul.mubr.f32.vlgmr.msra.gmra.mrb[60].mxu0 %v15692_v39  ;;  %12699 = vmatpush1.bf16.msra.mxu1 %v15661_v7  ;;  %v12800_v39 = vpack.c.bf16 %v6361_v14, %v6357_v36  ;;  %v6392_v36 = vld [vmem:[#allocation13 + $0xd30] sm:$0xff]  ;;  %v6395_v14 = vld [vmem:[#allocation13 + $0xd48] sm:$0xff] }
 0x9b7   :  { %12703 = vmatpush3.bf16.msra.mxu0 %v15651_v57  ;;  %6205 = vmatprep.subr.mxu1 %v15667_v16  ;;  %v12818_v1 = vpack.c.bf16 %v6392_v36, %v6388_v50  ;;  %v12724_v24 = vpack.c.bf16 %v6399_v35, %v6395_v14  ;;  %v6430_v50 = vld [vmem:[#allocation13 + $0xe60] sm:$0xff]  ;;  %v6428_v35 = vld [vmem:[#allocation13 + $0xe50] sm:$0xff] }
 0x9b8   :  { %11415 = vmatprep.subr.mxu0 %v15653_v13  ;;  %6031 = vmatprep.mubr.f32.mxu1 %v14726_v47 }
 0x9b9   :  { %6185 = vmatprep.mubr.f32.mxu0 %v14726_v47  ;;  %6032 = vmatmul.mubr.f32.gmra.mrb[104].mxu1 %v15690_v19 }
 0x9ba   :  { %6186 = vmatmul.mubr.f32.gmra.mrb[62].mxu0 %v15690_v19  ;;  %6206 = vmatpush1.msra.mxu1 %v15665_v15  ;;  %v6371_v19 = vld [vmem:[#allocation13 + $0xc88] sm:$0xff] }
 0x9bb   :  { %11416 = vmatpush3.msra.mxu0 %v15653_v13  ;;  %6265 = vmatprep.mubr.f32.mxu1 %v14726_v47  ;;  %v12712_v37 = vpack.c.bf16 %v6375_v3, %v6371_v19  ;;  %v6404_v3 = vld [vmem:[#allocation13 + $0xd90] sm:$0xff] }
 0x9bc   :  { %11417 = vmatprep.mubr.msk.f32.mxu0 %vm4871_vm6, %v6193_v17  ;;  %12705 = vmatprep.subr.bf16.mxu1 %v12704_v61  ;;  %v6401_v61 = vld [vmem:[#allocation13 + $0xd78] sm:$0xff] }
 0x9bd   :  { %10852 = vmatmul.mubr.msk.f32.vlgmr.msra.gmra.mrb[106].mxu1 %vm4871_vm6, %v6193_v17  ;;  %12801 = vmatprep.subr.bf16.mxu0 %v12800_v39  ;;  %v6398_v39 = vld [vmem:[#allocation13 + $0xd60] sm:$0xff]  ;;  %v12820_v43 = vpack.c.bf16 %v6401_v61, %v6397_v60  ;;  %v6400_v17 = vld [vmem:[#allocation13 + $0xd70] sm:$0xff]  ;;  %v6435_v61 = vld [vmem:[#allocation13 + $0xe88] sm:$0xff] }
 0x9be   :  { %6271 = vmatprep.mubr.f32.mxu1 %v14726_v47  ;;  %11418 = vmatmul.mubr.msk.f32.vlgmr.msra.gmra.mrb[64].mxu0 %vm4871_vm6, %v6194_v2  ;;  %v12726_v9 = vpack.c.bf16 %v6398_v39, %v6394_v8  ;;  %v6432_v60 = vld [vmem:[#allocation13 + $0xe70] sm:$0xff]  ;;  %v6441_v8 = vld [vmem:[#allocation13 + $0xeb8] sm:$0xff] }
 0x9bf   :  { %12707 = vmatpush1.bf16.msra.mxu1 %v12706_v20  ;;  %12803 = vmatpush1.bf16.msra.mxu0 %v12802_v59  ;;  %v6407_v20 = vld [vmem:[#allocation13 + $0xda8] sm:$0xff]  ;;  %v6405_v59 = vld [vmem:[#allocation13 + $0xd98] sm:$0xff] }
 0x9c0   :  { %12709 = vmatprep.subr.bf16.mxu1 %v12708_v27  ;;  %12805 = vmatprep.subr.bf16.mxu0 %v12804_v63  ;;  %v12822_v27 = vpack.c.bf16 %v6400_v17, %v6396_v11  ;;  %v6402_v63 = vld [vmem:[#allocation13 + $0xd80] sm:$0xff]  ;;  %v12824_v19 = vpack.c.bf16 %v6409_v48, %v6405_v59  ;;  %v6440_v59 = vld [vmem:[#allocation13 + $0xeb0] sm:$0xff]  ;;  %v6443_v48 = vld [vmem:[#allocation13 + $0xec8] sm:$0xff] }
 0x9c1   :  { %10853 = vmatmul.mubr.msk.f32.gmra.mrb[108].mxu1 %vm4871_vm6, %v6194_v2  ;;  %v6403_v2 = vld [vmem:[#allocation13 + $0xd88] sm:$0xff]  ;;  %v12730_v6 = vpack.c.bf16 %v6406_v30, %v6402_v63  ;;  %v6438_v11 = vld [vmem:[#allocation13 + $0xea0] sm:$0xff]  ;;  %v6449_v63 = vld [vmem:[#allocation13 + $0xef8] sm:$0xff] }
 0x9c2   :  { %v12728_v18 = vpack.c.bf16 %v6407_v20, %v6403_v2  ;;  %v6436_v20 = vld [vmem:[#allocation13 + $0xe90] sm:$0xff] }
 0x9c3   :  { %12711 = vmatpush1.bf16.msra.mxu1 %v12710_v31  ;;  %12807 = vmatpush1.bf16.msra.mxu0 %v12806_v33  ;;  %v6415_v31 = vld [vmem:[#allocation13 + $0xde8] sm:$0xff]  ;;  %v6413_v33 = vld [vmem:[#allocation13 + $0xdd8] sm:$0xff] }
 0x9c4   :  { %12713 = vmatprep.subr.bf16.mxu1 %v12712_v37  ;;  %12809 = vmatprep.subr.bf16.mxu0 %v12808_v51  ;;  %v12826_v37 = vpack.c.bf16 %v6408_v32, %v6404_v3  ;;  %v6410_v51 = vld [vmem:[#allocation13 + $0xdc0] sm:$0xff]  ;;  %v12732_v38 = vpack.c.bf16 %v6415_v31, %v6411_v25  ;;  %v12828_v40 = vpack.c.bf16 %v6417_v34, %v6413_v33  ;;  %v6444_v31 = vld [vmem:[#allocation13 + $0xed0] sm:$0xff]  ;;  %v6451_v34 = vld [vmem:[#allocation13 + $0xf08] sm:$0xff] }
 0x9c5   :  { %v12734_v26 = vpack.c.bf16 %v6414_v5, %v6410_v51  ;;  %v6446_v3 = vld [vmem:[#allocation13 + $0xee0] sm:$0xff]  ;;  %v6448_v33 = vld [vmem:[#allocation13 + $0xef0] sm:$0xff]  ;;  %v6457_v51 = vld [vmem:[#allocation13 + $0xf38] sm:$0xff] }
 0x9c7   :  { %12715 = vmatpush1.bf16.msra.mxu1 %v12714_v42  ;;  %12811 = vmatpush1.bf16.msra.mxu0 %v12810_v45  ;;  %v6423_v42 = vld [vmem:[#allocation13 + $0xe28] sm:$0xff]  ;;  %v6421_v45 = vld [vmem:[#allocation13 + $0xe18] sm:$0xff] }
 0x9c8   :  { %12717 = vmatprep.subr.bf16.mxu1 %v12716_v52  ;;  %12813 = vmatprep.subr.bf16.mxu0 %v12812_v46  ;;  %v12830_v52 = vpack.c.bf16 %v6416_v41, %v6412_v0  ;;  %v6418_v46 = vld [vmem:[#allocation13 + $0xe00] sm:$0xff]  ;;  %v12736_v54 = vpack.c.bf16 %v6423_v42, %v6419_v21  ;;  %v12832_v55 = vpack.c.bf16 %v6425_v49, %v6421_v45  ;;  %v6452_v42 = vld [vmem:[#allocation13 + $0xf10] sm:$0xff]  ;;  %v6459_v49 = vld [vmem:[#allocation13 + $0xf48] sm:$0xff] }
 0x9c9   :  { %v12738_v23 = vpack.c.bf16 %v6422_v53, %v6418_v46  ;;  %v6454_v0 = vld [vmem:[#allocation13 + $0xf20] sm:$0xff]  ;;  %v6456_v45 = vld [vmem:[#allocation13 + $0xf30] sm:$0xff]  ;;  %v6465_v46 = vld [vmem:[#allocation13 + $0xf78] sm:$0xff] }
 0x9cb   :  { %12719 = vmatpush1.bf16.msra.mxu1 %v12718_v22  ;;  %12815 = vmatpush1.bf16.msra.mxu0 %v12814_v44  ;;  %v6431_v22 = vld [vmem:[#allocation13 + $0xe68] sm:$0xff]  ;;  %v6429_v44 = vld [vmem:[#allocation13 + $0xe58] sm:$0xff] }
 0x9cc   :  { %12721 = vmatprep.subr.bf16.mxu1 %v12720_v4  ;;  %12817 = vmatprep.subr.bf16.mxu0 %v12816_v10  ;;  %v12834_v4 = vpack.c.bf16 %v6424_v56, %v6420_v62  ;;  %v6426_v10 = vld [vmem:[#allocation13 + $0xe40] sm:$0xff]  ;;  %v12740_v36 = vpack.c.bf16 %v6431_v22, %v6427_v58  ;;  %v12836_v14 = vpack.c.bf16 %v6433_v29, %v6429_v44  ;;  %v6460_v22 = vld [vmem:[#allocation13 + $0xf50] sm:$0xff]  ;;  %v6467_v29 = vld [vmem:[#allocation13 + $0xf88] sm:$0xff] }
 0x9cd   :  { %v12742_v39 = vpack.c.bf16 %v6430_v50, %v6426_v10  ;;  %v6462_v62 = vld [vmem:[#allocation13 + $0xf60] sm:$0xff]  ;;  %v6464_v44 = vld [vmem:[#allocation13 + $0xf70] sm:$0xff]  ;;  %v6473_v10 = vld [vmem:[#allocation13 + $0xfb8] sm:$0xff] }
 0x9cf   :  { %12723 = vmatpush1.bf16.msra.mxu1 %v12722_v28  ;;  %12819 = vmatpush1.bf16.msra.mxu0 %v12818_v1  ;;  %v6439_v28 = vld [vmem:[#allocation13 + $0xea8] sm:$0xff]  ;;  %v6437_v1 = vld [vmem:[#allocation13 + $0xe98] sm:$0xff] }
 0x9d0   :  { %12725 = vmatprep.subr.bf16.mxu1 %v12724_v24  ;;  %12821 = vmatprep.subr.bf16.mxu0 %v12820_v43  ;;  %v12838_v24 = vpack.c.bf16 %v6432_v60, %v6428_v35  ;;  %v6434_v43 = vld [vmem:[#allocation13 + $0xe80] sm:$0xff]  ;;  %v12744_v17 = vpack.c.bf16 %v6439_v28, %v6435_v61  ;;  %v12840_v2 = vpack.c.bf16 %v6441_v8, %v6437_v1  ;;  %v6468_v28 = vld [vmem:[#allocation13 + $0xf90] sm:$0xff]  ;;  %v6475_v8 = vld [vmem:[#allocation13 + $0xfc8] sm:$0xff] }
 0x9d1   :  { %v12746_v30 = vpack.c.bf16 %v6438_v11, %v6434_v43  ;;  %v6470_v35 = vld [vmem:[#allocation13 + $0xfa0] sm:$0xff]  ;;  %v6472_v1 = vld [vmem:[#allocation13 + $0xfb0] sm:$0xff]  ;;  %v6481_v43 = vld [vmem:[#allocation13 + $0xff8] sm:$0xff] }
 0x9d3   :  { %12727 = vmatpush1.bf16.msra.mxu1 %v12726_v9  ;;  %12823 = vmatpush1.bf16.msra.mxu0 %v12822_v27  ;;  %v6447_v9 = vld [vmem:[#allocation13 + $0xee8] sm:$0xff]  ;;  %v6445_v27 = vld [vmem:[#allocation13 + $0xed8] sm:$0xff] }
 0x9d4   :  { %12729 = vmatprep.subr.bf16.mxu1 %v12728_v18  ;;  %12825 = vmatprep.subr.bf16.mxu0 %v12824_v19  ;;  %v12842_v18 = vpack.c.bf16 %v6440_v59, %v6436_v20  ;;  %v6442_v19 = vld [vmem:[#allocation13 + $0xec0] sm:$0xff]  ;;  %v12748_v32 = vpack.c.bf16 %v6447_v9, %v6443_v48  ;;  %v12844_v25 = vpack.c.bf16 %v6449_v63, %v6445_v27  ;;  %v6476_v9 = vld [vmem:[#allocation13 + $0xfd0] sm:$0xff] }
 0x9d5   :  { %v12750_v5 = vpack.c.bf16 %v6446_v3, %v6442_v19  ;;  %v6478_v48 = vld [vmem:[#allocation13 + $0xfe0] sm:$0xff]  ;;  %v6480_v27 = vld [vmem:[#allocation13 + $0xff0] sm:$0xff]  ;;  %v6487_v19 = vld [vmem:[#allocation13 + $0x1028] sm:$0xff] }
 0x9d6   :  { %v6485_v3 = vld [vmem:[#allocation13 + $0x1018] sm:$0xff] }
 0x9d7   :  { %12731 = vmatpush1.bf16.msra.mxu1 %v12730_v6  ;;  %12827 = vmatpush1.bf16.msra.mxu0 %v12826_v37  ;;  %v6455_v6 = vld [vmem:[#allocation13 + $0xf28] sm:$0xff]  ;;  %v6453_v37 = vld [vmem:[#allocation13 + $0xf18] sm:$0xff] }
 0x9d8   :  { %12733 = vmatprep.subr.bf16.mxu1 %v12732_v38  ;;  %12829 = vmatprep.subr.bf16.mxu0 %v12828_v40  ;;  %v12846_v38 = vpack.c.bf16 %v6448_v33, %v6444_v31  ;;  %v6450_v40 = vld [vmem:[#allocation13 + $0xf00] sm:$0xff]  ;;  %v12752_v41 = vpack.c.bf16 %v6455_v6, %v6451_v34  ;;  %v12848_v21 = vpack.c.bf16 %v6457_v51, %v6453_v37  ;;  %v6484_v6 = vld [vmem:[#allocation13 + $0x1010] sm:$0xff]  ;;  %v6491_v51 = vld [vmem:[#allocation13 + $0x1048] sm:$0xff] }
 0x9d9   :  { %v12754_v53 = vpack.c.bf16 %v6454_v0, %v6450_v40  ;;  %v6482_v33 = vld [vmem:[#allocation13 + $0x1000] sm:$0xff]  ;;  %v6488_v37 = vld [vmem:[#allocation13 + $0x1030] sm:$0xff]  ;;  %v6497_v40 = vld [vmem:[#allocation13 + $0x1078] sm:$0xff] }
 0x9da   :  { %v6486_v34 = vld [vmem:[#allocation13 + $0x1020] sm:$0xff] }
 0x9db   :  { %12735 = vmatpush1.bf16.msra.mxu1 %v12734_v26  ;;  %12831 = vmatpush1.bf16.msra.mxu0 %v12830_v52  ;;  %v6463_v26 = vld [vmem:[#allocation13 + $0xf68] sm:$0xff]  ;;  %v6461_v52 = vld [vmem:[#allocation13 + $0xf58] sm:$0xff] }
 0x9dc   :  { %12737 = vmatprep.subr.bf16.mxu1 %v12736_v54  ;;  %12833 = vmatprep.subr.bf16.mxu0 %v12832_v55  ;;  %v12850_v54 = vpack.c.bf16 %v6456_v45, %v6452_v42  ;;  %v6458_v55 = vld [vmem:[#allocation13 + $0xf40] sm:$0xff]  ;;  %v12756_v56 = vpack.c.bf16 %v6463_v26, %v6459_v49  ;;  %v12852_v58 = vpack.c.bf16 %v6465_v46, %v6461_v52  ;;  %v6492_v46 = vld [vmem:[#allocation13 + $0x1050] sm:$0xff] }
 0x9dd   :  { %v12758_v50 = vpack.c.bf16 %v6462_v62, %v6458_v55  ;;  %v6490_v42 = vld [vmem:[#allocation13 + $0x1040] sm:$0xff]  ;;  %v6503_v62 = vld [vmem:[#allocation13 + $0x10a8] sm:$0xff] }
 0x9de   :  { %v6494_v45 = vld [vmem:[#allocation13 + $0x1060] sm:$0xff] }
 0x9df   :  { %12739 = vmatpush1.bf16.msra.mxu1 %v12738_v23  ;;  %12835 = vmatpush1.bf16.msra.mxu0 %v12834_v4  ;;  %v6471_v23 = vld [vmem:[#allocation13 + $0xfa8] sm:$0xff]  ;;  %v6469_v4 = vld [vmem:[#allocation13 + $0xf98] sm:$0xff] }
 0x9e0   :  { %12741 = vmatprep.subr.bf16.mxu1 %v12740_v36  ;;  %12837 = vmatprep.subr.bf16.mxu0 %v12836_v14  ;;  %v12854_v36 = vpack.c.bf16 %v6464_v44, %v6460_v22  ;;  %v6466_v14 = vld [vmem:[#allocation13 + $0xf80] sm:$0xff]  ;;  %v12760_v60 = vpack.c.bf16 %v6471_v23, %v6467_v29  ;;  %v12856_v61 = vpack.c.bf16 %v6473_v10, %v6469_v4 }
 0x9e1   :  { %v12762_v11 = vpack.c.bf16 %v6470_v35, %v6466_v14  ;;  %v12774_v44 = vpack.c.bf16 %v6494_v45, %v6490_v42  ;;  %v6498_v23 = vld [vmem:[#allocation13 + $0x1080] sm:$0xff]  ;;  %v6500_v14 = vld [vmem:[#allocation13 + $0x1090] sm:$0xff] }
 0x9e2   :  { %v6502_v4 = vld [vmem:[#allocation13 + $0x10a0] sm:$0xff]  ;;  %v6504_v35 = vld [vmem:[#allocation13 + $0x10b0] sm:$0xff] }
 0x9e3   :  { %12743 = vmatpush1.bf16.msra.mxu1 %v12742_v39  ;;  %12839 = vmatpush1.bf16.msra.mxu0 %v12838_v24  ;;  %v6479_v39 = vld [vmem:[#allocation13 + $0xfe8] sm:$0xff]  ;;  %v6477_v24 = vld [vmem:[#allocation13 + $0xfd8] sm:$0xff]  ;;  %v6524_v42 = vld [vmem:[#allocation13 + $0x1150] sm:$0xff] }
 0x9e4   :  { %12745 = vmatprep.subr.bf16.mxu1 %v12744_v17  ;;  %12841 = vmatprep.subr.bf16.mxu0 %v12840_v2  ;;  %v12858_v17 = vpack.c.bf16 %v6472_v1, %v6468_v28  ;;  %v6474_v2 = vld [vmem:[#allocation13 + $0xfc0] sm:$0xff]  ;;  %v12764_v20 = vpack.c.bf16 %v6479_v39, %v6475_v8  ;;  %v12860_v59 = vpack.c.bf16 %v6481_v43, %v6477_v24  ;;  %v6511_v28 = vld [vmem:[#allocation13 + $0x10e8] sm:$0xff]  ;;  %v6509_v1 = vld [vmem:[#allocation13 + $0x10d8] sm:$0xff] }
 0x9e5   :  { %v12766_v63 = vpack.c.bf16 %v6478_v48, %v6474_v2  ;;  %v6513_v8 = vld [vmem:[#allocation13 + $0x10f8] sm:$0xff]  ;;  %v12778_v39 = vpack.c.bf16 %v6502_v4, %v6498_v23  ;;  %v12874_v24 = vpack.c.bf16 %v6504_v35, %v6500_v14  ;;  %v6506_v43 = vld [vmem:[#allocation13 + $0x10c0] sm:$0xff]  ;;  %v6515_v48 = vld [vmem:[#allocation13 + $0x1108] sm:$0xff] }
 0x9e6   :  { %v12876_v2 = vpack.c.bf16 %v6513_v8, %v6509_v1  ;;  %v6528_v45 = vld [vmem:[#allocation13 + $0x1170] sm:$0xff]  ;;  %v6539_v4 = vld [vmem:[#allocation13 + $0x11c8] sm:$0xff]  ;;  %v6542_v1 = vld [vmem:[#allocation13 + $0x11e0] sm:$0xff] }
 0x9e7   :  { %12747 = vmatpush1.bf16.msra.mxu1 %v12746_v30  ;;  %12843 = vmatpush1.bf16.msra.mxu0 %v12842_v18  ;;  %v12862_v30 = vpack.c.bf16 %v6480_v27, %v6476_v9  ;;  %v6483_v18 = vld [vmem:[#allocation13 + $0x1008] sm:$0xff]  ;;  %v6517_v27 = vld [vmem:[#allocation13 + $0x1118] sm:$0xff]  ;;  %v6536_v23 = vld [vmem:[#allocation13 + $0x11b0] sm:$0xff] }
 0x9e8   :  { %12749 = vmatprep.subr.bf16.mxu1 %v12748_v32  ;;  %12845 = vmatprep.subr.bf16.mxu0 %v12844_v25  ;;  %v12768_v32 = vpack.c.bf16 %v6487_v19, %v6483_v18  ;;  %v6489_v25 = vld [vmem:[#allocation13 + $0x1038] sm:$0xff]  ;;  %v6519_v9 = vld [vmem:[#allocation13 + $0x1128] sm:$0xff]  ;;  %v6514_v19 = vld [vmem:[#allocation13 + $0x1100] sm:$0xff] }
 0x9e9   :  { %v12864_v31 = vpack.c.bf16 %v6489_v25, %v6485_v3  ;;  %v6518_v3 = vld [vmem:[#allocation13 + $0x1120] sm:$0xff]  ;;  %v6540_v8 = vld [vmem:[#allocation13 + $0x11d0] sm:$0xff] }
 0x9eb   :  { %12751 = vmatpush1.bf16.msra.mxu1 %v12750_v5  ;;  %12847 = vmatpush1.bf16.msra.mxu0 %v12846_v38  ;;  %v6495_v5 = vld [vmem:[#allocation13 + $0x1068] sm:$0xff]  ;;  %v6493_v38 = vld [vmem:[#allocation13 + $0x1058] sm:$0xff] }
 0x9ec   :  { %12753 = vmatprep.subr.bf16.mxu1 %v12752_v41  ;;  %12849 = vmatprep.subr.bf16.mxu0 %v12848_v21  ;;  %v12770_v41 = vpack.c.bf16 %v6486_v34, %v6482_v33  ;;  %v12866_v21 = vpack.c.bf16 %v6488_v37, %v6484_v6  ;;  %v12772_v26 = vpack.c.bf16 %v6495_v5, %v6491_v51  ;;  %v6520_v33 = vld [vmem:[#allocation13 + $0x1130] sm:$0xff]  ;;  %v6523_v34 = vld [vmem:[#allocation13 + $0x1148] sm:$0xff]  ;;  %v6525_v37 = vld [vmem:[#allocation13 + $0x1158] sm:$0xff] }
 0x9ed   :  { %v12868_v52 = vpack.c.bf16 %v6497_v40, %v6493_v38  ;;  %v6527_v6 = vld [vmem:[#allocation13 + $0x1168] sm:$0xff]  ;;  %v6529_v51 = vld [vmem:[#allocation13 + $0x1178] sm:$0xff]  ;;  %v12786_v5 = vpack.c.bf16 %v6518_v3, %v6514_v19  ;;  %v6522_v40 = vld [vmem:[#allocation13 + $0x1140] sm:$0xff] }
 0x9ee   :  { %v7035_v19 = vld [vmem:[#allocation13 + $0x1258] sm:$0xff] }
 0x9ef   :  { %12755 = vmatpush1.bf16.msra.mxu1 %v12754_v53  ;;  %12851 = vmatpush1.bf16.msra.mxu0 %v12850_v54  ;;  %v6496_v53 = vld [vmem:[#allocation13 + $0x1070] sm:$0xff]  ;;  %v6499_v54 = vld [vmem:[#allocation13 + $0x1088] sm:$0xff]  ;;  %v7039_v3 = vld [vmem:[#allocation13 + $0x1278] sm:$0xff] }
 0x9f0   :  { %12757 = vmatprep.subr.bf16.mxu1 %v12756_v56  ;;  %12853 = vmatprep.subr.bf16.mxu0 %v12852_v58  ;;  %v6501_v56 = vld [vmem:[#allocation13 + $0x1098] sm:$0xff]  ;;  %v12870_v29 = vpack.c.bf16 %v6496_v53, %v6492_v46 }
 0x9f1   :  { %v6505_v58 = vld [vmem:[#allocation13 + $0x10b8] sm:$0xff] }
 0x9f2   :  { %v6537_v46 = vld [vmem:[#allocation13 + $0x11b8] sm:$0xff] }
 0x9f3   :  { %12759 = vmatpush1.bf16.msra.mxu1 %v12758_v50  ;;  %12855 = vmatpush1.bf16.msra.mxu0 %v12854_v36  ;;  %v12776_v50 = vpack.c.bf16 %v6503_v62, %v6499_v54  ;;  %v12872_v36 = vpack.c.bf16 %v6505_v58, %v6501_v56  ;;  %v12886_v54 = vpack.c.bf16 %v6528_v45, %v6524_v42  ;;  %v6530_v62 = vld [vmem:[#allocation13 + $0x1180] sm:$0xff] }
 0x9f4   :  { %12761 = vmatprep.subr.bf16.mxu1 %v12760_v60  ;;  %12857 = vmatprep.subr.bf16.mxu0 %v12856_v61  ;;  %v6507_v60 = vld [vmem:[#allocation13 + $0x10c8] sm:$0xff]  ;;  %v6534_v56 = vld [vmem:[#allocation13 + $0x11a0] sm:$0xff] }
 0x9f5   :  { %v12794_v14 = vpack.c.bf16 %v6534_v56, %v6530_v62  ;;  %v7053_v62 = vld [vmem:[#allocation13 + $0x12e8] sm:$0xff]  ;;  %v7051_v56 = vld [vmem:[#allocation13 + $0x12d8] sm:$0xff] }
 0x9f7   :  { %12763 = vmatpush1.bf16.msra.mxu1 %v12762_v11  ;;  %12859 = vmatpush1.bf16.msra.mxu0 %v12858_v17  ;;  %v6510_v11 = vld [vmem:[#allocation13 + $0x10e0] sm:$0xff]  ;;  %v12780_v17 = vpack.c.bf16 %v6511_v28, %v6507_v60 }
 0x9f8   :  { %12765 = vmatprep.subr.bf16.mxu1 %v12764_v20  ;;  %12861 = vmatprep.subr.bf16.mxu0 %v12860_v59  ;;  %v6508_v20 = vld [vmem:[#allocation13 + $0x10d0] sm:$0xff]  ;;  %v6538_v60 = vld [vmem:[#allocation13 + $0x11c0] sm:$0xff] }
 0x9f9   :  { %v6512_v59 = vld [vmem:[#allocation13 + $0x10f0] sm:$0xff] }
 0x9fa   :  { %v12878_v18 = vpack.c.bf16 %v6512_v59, %v6508_v20  ;;  %v7031_v20 = vld [vmem:[#allocation13 + $0x1238] sm:$0xff]  ;;  %v7024_v59 = vld [vmem:[#allocation13 + $0x1200] sm:$0xff] }
 0x9fb   :  { %12767 = vmatpush1.bf16.msra.mxu1 %v12766_v63  ;;  %12863 = vmatpush1.bf16.msra.mxu0 %v12862_v30  ;;  %v6521_v63 = vld [vmem:[#allocation13 + $0x1138] sm:$0xff]  ;;  %v12782_v30 = vpack.c.bf16 %v6510_v11, %v6506_v43  ;;  %v7025_v11 = vld [vmem:[#allocation13 + $0x1208] sm:$0xff] }
 0x9fc   :  { %12769 = vmatprep.subr.bf16.mxu1 %v12768_v32  ;;  %12865 = vmatprep.subr.bf16.mxu0 %v12864_v31  ;;  %v12784_v32 = vpack.c.bf16 %v6519_v9, %v6515_v48  ;;  %v12880_v25 = vpack.c.bf16 %v6521_v63, %v6517_v27  ;;  %v6516_v31 = vld [vmem:[#allocation13 + $0x1110] sm:$0xff]  ;;  %v7028_v48 = vld [vmem:[#allocation13 + $0x1220] sm:$0xff] }
 0x9fd   :  { %v12882_v38 = vpack.c.bf16 %v6520_v33, %v6516_v31  ;;  %v7026_v9 = vld [vmem:[#allocation13 + $0x1210] sm:$0xff]  ;;  %v12906_v31 = vpack.c.bf16 %v7028_v48, %v7024_v59  ;;  %v7069_v59 = vld [vmem:[#allocation13 + $0x1368] sm:$0xff]  ;;  %v7067_v48 = vld [vmem:[#allocation13 + $0x1358] sm:$0xff] }
 0x9fe   :  { %v7030_v63 = vld [vmem:[#allocation13 + $0x1230] sm:$0xff] }
 0x9ff   :  { %v13002_v33 = vpack.c.bf16 %v7030_v63, %v7026_v9  ;;  %v7071_v9 = vld [vmem:[#allocation13 + $0x1378] sm:$0xff] }
 0xa90   :  { %v6267_v0 = vpop.f32.mrb[106].mxu1 }
 0xa91   :  { %v6269_v49 = vpop.f32.mrb[107].mxu1  ;;  %v15744_v55 = vpop.f32.mrb[64].mxu0 }
 0xa92   :  { %6610 = vmatprep.mubr.f32.mxu1 %v6269_v49  ;;  %6764 = vmatprep.mubr.f32.mxu0 %v6269_v49  ;;  %v15746_v22 = vpop.f32.mrb[65].mxu0  ;;  %v6531_v49 = vld [vmem:[#allocation13 + $0x1188] sm:$0xff] }
 0xa93   :  { %6611 = vmatmul.mubr.f32.vlgmr.msra.gmra.mrb[102].mxu1 %v6267_v0  ;;  %6765 = vmatmul.mubr.f32.vlgmr.msra.gmra.mrb[60].mxu0 %v6267_v0  ;;  %v6526_v0 = vld [vmem:[#allocation13 + $0x1160] sm:$0xff] }
 0xa94   :  { %12771 = vmatpush1.bf16.msra.mxu1 %v12770_v41  ;;  %12867 = vmatpush1.bf16.msra.mxu0 %v12866_v21  ;;  %v6273_v10 = vpop.f32.mrb[108].mxu1  ;;  %v12788_v41 = vpack.c.bf16 %v6527_v6, %v6523_v34  ;;  %v12884_v21 = vpack.c.bf16 %v6529_v51, %v6525_v37  ;;  %v12790_v53 = vpack.c.bf16 %v6526_v0, %v6522_v40  ;;  %v7032_v6 = vld [vmem:[#allocation13 + $0x1240] sm:$0xff]  ;;  %v7034_v51 = vld [vmem:[#allocation13 + $0x1250] sm:$0xff]  ;;  %v7045_v40 = vld [vmem:[#allocation13 + $0x12a8] sm:$0xff] }
 0xa95   :  { %12773 = vmatprep.subr.bf16.mxu1 %v12772_v26  ;;  %12869 = vmatprep.subr.bf16.mxu0 %v12868_v52  ;;  %v6275_v61 = vpop.f32.mrb[109].mxu1  ;;  %v6535_v26 = vld [vmem:[#allocation13 + $0x11a8] sm:$0xff]  ;;  %v6533_v52 = vld [vmem:[#allocation13 + $0x1198] sm:$0xff]  ;;  %v7036_v37 = vld [vmem:[#allocation13 + $0x1260] sm:$0xff] }
 0xa96   :  { %6616 = vmatprep.mubr.f32.mxu1 %v6275_v61  ;;  %6770 = vmatprep.mubr.f32.mxu0 %v6275_v61  ;;  %v12792_v58 = vpack.c.bf16 %v6535_v26, %v6531_v49  ;;  %v7043_v0 = vld [vmem:[#allocation13 + $0x1298] sm:$0xff]  ;;  %v7040_v49 = vld [vmem:[#allocation13 + $0x1280] sm:$0xff] }
 0xa97   :  { %6617 = vmatmul.mubr.f32.gmra.mrb[104].mxu1 %v6273_v10  ;;  %6771 = vmatmul.mubr.f32.gmra.mrb[62].mxu0 %v6273_v10  ;;  %v6543_v10 = vld [vmem:[#allocation13 + $0x11e8] sm:$0xff]  ;;  %v7044_v26 = vld [vmem:[#allocation13 + $0x12a0] sm:$0xff] }
 0xa98   :  { %12775 = vmatpush1.bf16.msra.mxu1 %v12774_v44  ;;  %12871 = vmatpush1.bf16.msra.mxu0 %v12870_v29  ;;  %v12888_v44 = vpack.c.bf16 %v6537_v46, %v6533_v52  ;;  %v6532_v29 = vld [vmem:[#allocation13 + $0x1190] sm:$0xff]  ;;  %v12796_v61 = vpack.c.bf16 %v6543_v10, %v6539_v4  ;;  %v7048_v4 = vld [vmem:[#allocation13 + $0x12c0] sm:$0xff] }
 0xa99   :  { %12777 = vmatprep.subr.bf16.mxu1 %v12776_v50  ;;  %12873 = vmatprep.subr.bf16.mxu0 %v12872_v36  ;;  %v6541_v50 = vld [vmem:[#allocation13 + $0x11d8] sm:$0xff]  ;;  %v12890_v35 = vpack.c.bf16 %v6536_v23, %v6532_v29  ;;  %v7042_v52 = vld [vmem:[#allocation13 + $0x1290] sm:$0xff]  ;;  %v7052_v10 = vld [vmem:[#allocation13 + $0x12e0] sm:$0xff] }
 0xa9a   :  { %6687 = vmatprep.mubr.f32.mxu1 %v14726_v47  ;;  %6841 = vmatprep.mubr.f32.mxu0 %v14726_v47  ;;  %v6545_v36 = vld [vmem:[#allocation13 + $0x11f8] sm:$0xff] }
 0xa9b   :  { %v12892_v28 = vpack.c.bf16 %v6545_v36, %v6541_v50  ;;  %v7050_v50 = vld [vmem:[#allocation13 + $0x12d0] sm:$0xff] }
 0xa9c   :  { %12779 = vmatpush1.bf16.msra.mxu1 %v12778_v39  ;;  %12875 = vmatpush1.bf16.msra.mxu0 %v12874_v24  ;;  %v6544_v39 = vld [vmem:[#allocation13 + $0x11f0] sm:$0xff]  ;;  %v12798_v24 = vpack.c.bf16 %v6542_v1, %v6538_v60  ;;  %v7061_v60 = vld [vmem:[#allocation13 + $0x1328] sm:$0xff]  ;;  %v12918_v1 = vpack.c.bf16 %v7052_v10, %v7048_v4 }
 0xa9d   :  { %12781 = vmatprep.subr.bf16.mxu1 %v12780_v17  ;;  %12877 = vmatprep.subr.bf16.mxu0 %v12876_v2  ;;  %v12894_v43 = vpack.c.bf16 %v6544_v39, %v6540_v8  ;;  %v7029_v17 = vld [vmem:[#allocation13 + $0x1228] sm:$0xff]  ;;  %v7027_v2 = vld [vmem:[#allocation13 + $0x1218] sm:$0xff] }
 0xa9e   :  { %v12904_v27 = vpack.c.bf16 %v7029_v17, %v7025_v11  ;;  %v7058_v11 = vld [vmem:[#allocation13 + $0x1310] sm:$0xff] }
 0xaa0   :  { %12783 = vmatpush1.bf16.msra.mxu1 %v12782_v30  ;;  %12879 = vmatpush1.bf16.msra.mxu0 %v12878_v18  ;;  %v7033_v30 = vld [vmem:[#allocation13 + $0x1248] sm:$0xff] }
 0xaa1   :  { %12785 = vmatprep.subr.bf16.mxu1 %v12784_v32  ;;  %12881 = vmatprep.subr.bf16.mxu0 %v12880_v25  ;;  %v7037_v18 = vld [vmem:[#allocation13 + $0x1268] sm:$0xff]  ;;  %v6863_v32 = vld [vmem:[#allocation11 + $0x30] sm:$0xff] }
 0xaa2   :  { %v6864_v25 = vld [vmem:[#allocation11 + $0x38] sm:$0xff]  ;;  %v12908_v34 = vpack.c.bf16 %v7037_v18, %v7033_v30  ;;  %v7064_v30 = vld [vmem:[#allocation13 + $0x1340] sm:$0xff] }
 0xaa3   :  { %v7068_v18 = vld [vmem:[#allocation13 + $0x1360] sm:$0xff] }
 0xaa4   :  { %12787 = vmatpush1.bf16.msra.mxu1 %v12786_v5  ;;  %12883 = vmatpush1.bf16.msra.mxu0 %v12882_v38  ;;  %v7038_v5 = vld [vmem:[#allocation13 + $0x1270] sm:$0xff]  ;;  %v7041_v38 = vld [vmem:[#allocation13 + $0x1288] sm:$0xff] }
 0xaa5   :  { %12789 = vmatprep.subr.bf16.mxu1 %v12788_v41  ;;  %12885 = vmatprep.subr.bf16.mxu0 %v12884_v21  ;;  %v7047_v41 = vld [vmem:[#allocation13 + $0x12b8] sm:$0xff]  ;;  %v12910_v21 = vpack.c.bf16 %v7036_v37, %v7032_v6  ;;  %v13006_v42 = vpack.c.bf16 %v7038_v5, %v7034_v51  ;;  %v12912_v45 = vpack.c.bf16 %v7045_v40, %v7041_v38  ;;  %v7076_v5 = vld [vmem:[#allocation13 + $0x13a0] sm:$0xff]  ;;  %v7074_v38 = vld [vmem:[#allocation13 + $0x1390] sm:$0xff] }
 0xaa6   :  { %v13008_v46 = vpack.c.bf16 %v7047_v41, %v7043_v0  ;;  %v12926_v6 = vpack.c.bf16 %v7068_v18, %v7064_v30  ;;  %v7078_v0 = vld [vmem:[#allocation13 + $0x13b0] sm:$0xff]  ;;  %v7081_v41 = vld [vmem:[#allocation13 + $0x13c8] sm:$0xff] }
 0xaa8   :  { %12791 = vmatpush1.bf16.msra.mxu1 %v12790_v53  ;;  %12887 = vmatpush1.bf16.msra.mxu0 %v12886_v54  ;;  %v7046_v53 = vld [vmem:[#allocation13 + $0x12b0] sm:$0xff]  ;;  %v7049_v54 = vld [vmem:[#allocation13 + $0x12c8] sm:$0xff] }
 0xaa9   :  { %12793 = vmatprep.subr.bf16.mxu1 %v12792_v58  ;;  %12889 = vmatprep.subr.bf16.mxu0 %v12888_v44  ;;  %v7055_v58 = vld [vmem:[#allocation13 + $0x12f8] sm:$0xff]  ;;  %v12914_v44 = vpack.c.bf16 %v7044_v26, %v7040_v49  ;;  %v13010_v29 = vpack.c.bf16 %v7046_v53, %v7042_v52  ;;  %v12916_v23 = vpack.c.bf16 %v7053_v62, %v7049_v54  ;;  %v7084_v53 = vld [vmem:[#allocation13 + $0x13e0] sm:$0xff]  ;;  %v7082_v54 = vld [vmem:[#allocation13 + $0x13d0] sm:$0xff] }
 0xaaa   :  { %v13012_v36 = vpack.c.bf16 %v7055_v58, %v7051_v56  ;;  %v13026_v26 = vpack.c.bf16 %v7078_v0, %v7074_v38  ;;  %v7086_v56 = vld [vmem:[#allocation13 + $0x13f0] sm:$0xff]  ;;  %v7089_v58 = vld [vmem:[#allocation13 + $0x1408] sm:$0xff]  ;;  %v7116_v0 = vld [vmem:[#allocation13 + $0x14e0] sm:$0xff] }
 0xaab   :  { %v13030_v10 = vpack.c.bf16 %v7086_v56, %v7082_v54  ;;  %v7124_v56 = vld [vmem:[#allocation13 + $0x1520] sm:$0xff] }
 0xaac   :  { %12795 = vmatpush1.bf16.msra.mxu1 %v12794_v14  ;;  %12891 = vmatpush1.bf16.msra.mxu0 %v12890_v35  ;;  %v7054_v14 = vld [vmem:[#allocation13 + $0x12f0] sm:$0xff]  ;;  %v7057_v35 = vld [vmem:[#allocation13 + $0x1308] sm:$0xff] }
 0xaad   :  { %12797 = vmatprep.subr.bf16.mxu1 %v12796_v61  ;;  %12893 = vmatprep.subr.bf16.mxu0 %v12892_v28  ;;  %v7059_v61 = vld [vmem:[#allocation13 + $0x1318] sm:$0xff]  ;;  %v13014_v8 = vpack.c.bf16 %v7054_v14, %v7050_v50  ;;  %v12920_v39 = vpack.c.bf16 %v7061_v60, %v7057_v35  ;;  %v7092_v14 = vld [vmem:[#allocation13 + $0x1420] sm:$0xff]  ;;  %v7090_v35 = vld [vmem:[#allocation13 + $0x1410] sm:$0xff] }
 0xaae   :  { %v7063_v28 = vld [vmem:[#allocation13 + $0x1338] sm:$0xff] }
 0xaaf   :  { %v13016_v17 = vpack.c.bf16 %v7063_v28, %v7059_v61  ;;  %v7094_v61 = vld [vmem:[#allocation13 + $0x1430] sm:$0xff]  ;;  %v7097_v28 = vld [vmem:[#allocation13 + $0x1448] sm:$0xff] }
 0xab0   :  { %12799 = vmatpush1.bf16.msra.mxu1 %v12798_v24  ;;  %12895 = vmatpush1.bf16.msra.mxu0 %v12894_v43  ;;  %v7056_v24 = vld [vmem:[#allocation13 + $0x1300] sm:$0xff] }
 0xab1   :  { %12897 = vmatprep.subr.bf16.mxu1 %v15663_v12  ;;  %12901 = vmatprep.subr.bf16.mxu0 %v15651_v57  ;;  %v7060_v43 = vld [vmem:[#allocation13 + $0x1320] sm:$0xff] }
 0xab3   :  { %6688 = vmatmul.mubr.f32.vlgmr.msra.gmra.mrb[102].mxu1 %v15746_v22  ;;  %6842 = vmatmul.mubr.f32.vlgmr.msra.gmra.mrb[60].mxu0 %v15746_v22  ;;  %v13000_v22 = vpack.c.bf16 %v7031_v20, %v7027_v2  ;;  %v7062_v2 = vld [vmem:[#allocation13 + $0x1330] sm:$0xff]  ;;  %v7065_v20 = vld [vmem:[#allocation13 + $0x1348] sm:$0xff] }
 0xab4   :  { %12899 = vmatpush1.bf16.msra.mxu1 %v15661_v7  ;;  %12903 = vmatpush3.bf16.msra.mxu0 %v15651_v57  ;;  %v12924_v63 = vpack.c.bf16 %v7069_v59, %v7065_v20  ;;  %v7098_v20 = vld [vmem:[#allocation13 + $0x1450] sm:$0xff] }
 0xab5   :  { %6875 = vmatprep.subr.mxu1 %v15667_v16  ;;  %11424 = vmatprep.subr.mxu0 %v15653_v13 }
 0xab6   :  { %6693 = vmatprep.mubr.f32.mxu1 %v14726_v47  ;;  %6847 = vmatprep.mubr.f32.mxu0 %v14726_v47 }
 0xab7   :  { %6694 = vmatmul.mubr.f32.gmra.mrb[104].mxu1 %v15744_v55  ;;  %6848 = vmatmul.mubr.f32.gmra.mrb[62].mxu0 %v15744_v55  ;;  %v13004_v55 = vpack.c.bf16 %v7039_v3, %v7035_v19  ;;  %v7066_v19 = vld [vmem:[#allocation13 + $0x1350] sm:$0xff]  ;;  %v13020_v3 = vpack.c.bf16 %v7071_v9, %v7067_v48  ;;  %v7105_v9 = vld [vmem:[#allocation13 + $0x1488] sm:$0xff] }
 0xab8   :  { %6876 = vmatpush1.msra.mxu1 %v15665_v15  ;;  %11425 = vmatpush3.msra.mxu0 %v15653_v13  ;;  %v7102_v48 = vld [vmem:[#allocation13 + $0x1470] sm:$0xff] }
 0xab9   :  { %6935 = vmatprep.mubr.f32.mxu1 %v14726_v47  ;;  %11426 = vmatprep.mubr.msk.f32.mxu0 %vm4871_vm6, %v6863_v32  ;;  %v13038_v18 = vpack.c.bf16 %v7102_v48, %v7098_v20  ;;  %v7140_v48 = vld [vmem:[#allocation13 + $0x15a0] sm:$0xff] }
 0xaba   :  { %12905 = vmatprep.subr.bf16.mxu1 %v12904_v27  ;;  %13001 = vmatprep.subr.bf16.mxu0 %v13000_v22  ;;  %v12922_v27 = vpack.c.bf16 %v7060_v43, %v7056_v24  ;;  %v13018_v22 = vpack.c.bf16 %v7062_v2, %v7058_v11  ;;  %v13034_v43 = vpack.c.bf16 %v7094_v61, %v7090_v35  ;;  %v7100_v2 = vld [vmem:[#allocation13 + $0x1460] sm:$0xff] }
 0xabb   :  { %10856 = vmatmul.mubr.msk.f32.vlgmr.msra.gmra.mrb[110].mxu1 %vm4871_vm6, %v6863_v32  ;;  %11427 = vmatmul.mubr.msk.f32.vlgmr.msra.gmra.mrb[66].mxu0 %vm4871_vm6, %v6864_v25  ;;  %v7070_v32 = vld [vmem:[#allocation13 + $0x1370] sm:$0xff]  ;;  %v7132_v61 = vld [vmem:[#allocation13 + $0x1560] sm:$0xff] }
 0xabc   :  { %6941 = vmatprep.mubr.f32.mxu1 %v14726_v47  ;;  %12907 = vmatpush1.bf16.msra.mxu1 %v12906_v31  ;;  %v7077_v31 = vld [vmem:[#allocation13 + $0x13a8] sm:$0xff]  ;;  %v13022_v37 = vpack.c.bf16 %v7070_v32, %v7066_v19  ;;  %v7108_v32 = vld [vmem:[#allocation13 + $0x14a0] sm:$0xff] }
 0xabd   :  { %13003 = vmatpush1.bf16.msra.mxu0 %v13002_v33  ;;  %12909 = vmatprep.subr.bf16.mxu1 %v12908_v34  ;;  %v7075_v33 = vld [vmem:[#allocation13 + $0x1398] sm:$0xff] }
 0xabe   :  { %13005 = vmatprep.subr.bf16.mxu0 %v13004_v55  ;;  %v7079_v34 = vld [vmem:[#allocation13 + $0x13b8] sm:$0xff]  ;;  %v7072_v55 = vld [vmem:[#allocation13 + $0x1380] sm:$0xff] }
 0xabf   :  { %10857 = vmatmul.mubr.msk.f32.gmra.mrb[112].mxu1 %vm4871_vm6, %v6864_v25  ;;  %v7073_v25 = vld [vmem:[#allocation13 + $0x1388] sm:$0xff]  ;;  %v13024_v40 = vpack.c.bf16 %v7079_v34, %v7075_v33  ;;  %v12930_v49 = vpack.c.bf16 %v7076_v5, %v7072_v55  ;;  %v7110_v33 = vld [vmem:[#allocation13 + $0x14b0] sm:$0xff] }
 0xac0   :  { %12911 = vmatpush1.bf16.msra.mxu1 %v12910_v21  ;;  %v12928_v51 = vpack.c.bf16 %v7077_v31, %v7073_v25  ;;  %v7085_v21 = vld [vmem:[#allocation13 + $0x13e8] sm:$0xff]  ;;  %v7106_v25 = vld [vmem:[#allocation13 + $0x1490] sm:$0xff] }
 0xac1   :  { %13007 = vmatpush1.bf16.msra.mxu0 %v13006_v42  ;;  %12913 = vmatprep.subr.bf16.mxu1 %v12912_v45  ;;  %v7083_v42 = vld [vmem:[#allocation13 + $0x13d8] sm:$0xff]  ;;  %v12932_v52 = vpack.c.bf16 %v7085_v21, %v7081_v41  ;;  %v7113_v34 = vld [vmem:[#allocation13 + $0x14c8] sm:$0xff]  ;;  %v13042_v5 = vpack.c.bf16 %v7110_v33, %v7106_v25  ;;  %v7114_v41 = vld [vmem:[#allocation13 + $0x14d0] sm:$0xff] }
 0xac2   :  { %13009 = vmatprep.subr.bf16.mxu0 %v13008_v46  ;;  %v7087_v45 = vld [vmem:[#allocation13 + $0x13f8] sm:$0xff]  ;;  %v7080_v46 = vld [vmem:[#allocation13 + $0x13c0] sm:$0xff] }
 0xac3   :  { %v13028_v62 = vpack.c.bf16 %v7087_v45, %v7083_v42  ;;  %v12934_v4 = vpack.c.bf16 %v7084_v53, %v7080_v46  ;;  %v7118_v42 = vld [vmem:[#allocation13 + $0x14f0] sm:$0xff]  ;;  %v7121_v45 = vld [vmem:[#allocation13 + $0x1508] sm:$0xff]  ;;  %v7148_v33 = vld [vmem:[#allocation13 + $0x15e0] sm:$0xff] }
 0xac4   :  { %12915 = vmatpush1.bf16.msra.mxu1 %v12914_v44  ;;  %v7093_v44 = vld [vmem:[#allocation13 + $0x1428] sm:$0xff]  ;;  %v13046_v53 = vpack.c.bf16 %v7118_v42, %v7114_v41  ;;  %v7159_v41 = vld [vmem:[#allocation13 + $0x1638] sm:$0xff]  ;;  %v7152_v42 = vld [vmem:[#allocation13 + $0x1600] sm:$0xff] }
 0xac5   :  { %13011 = vmatpush1.bf16.msra.mxu0 %v13010_v29  ;;  %12917 = vmatprep.subr.bf16.mxu1 %v12916_v23  ;;  %v7091_v29 = vld [vmem:[#allocation13 + $0x1418] sm:$0xff]  ;;  %v12936_v50 = vpack.c.bf16 %v7093_v44, %v7089_v58  ;;  %v7122_v58 = vld [vmem:[#allocation13 + $0x1510] sm:$0xff] }
 0xac6   :  { %13013 = vmatprep.subr.bf16.mxu0 %v13012_v36  ;;  %v7095_v23 = vld [vmem:[#allocation13 + $0x1438] sm:$0xff]  ;;  %v7088_v36 = vld [vmem:[#allocation13 + $0x1400] sm:$0xff] }
 0xac7   :  { %v13032_v60 = vpack.c.bf16 %v7095_v23, %v7091_v29  ;;  %v12938_v24 = vpack.c.bf16 %v7092_v14, %v7088_v36  ;;  %v7126_v29 = vld [vmem:[#allocation13 + $0x1530] sm:$0xff]  ;;  %v7129_v23 = vld [vmem:[#allocation13 + $0x1548] sm:$0xff] }
 0xac8   :  { %12919 = vmatpush1.bf16.msra.mxu1 %v12918_v1  ;;  %v7101_v1 = vld [vmem:[#allocation13 + $0x1468] sm:$0xff]  ;;  %v13050_v14 = vpack.c.bf16 %v7126_v29, %v7122_v58  ;;  %v7164_v29 = vld [vmem:[#allocation13 + $0x1660] sm:$0xff] }
 0xac9   :  { %13015 = vmatpush1.bf16.msra.mxu0 %v13014_v8  ;;  %12921 = vmatprep.subr.bf16.mxu1 %v12920_v39  ;;  %v7099_v8 = vld [vmem:[#allocation13 + $0x1458] sm:$0xff]  ;;  %v12940_v11 = vpack.c.bf16 %v7101_v1, %v7097_v28  ;;  %v7130_v28 = vld [vmem:[#allocation13 + $0x1550] sm:$0xff] }
 0xaca   :  { %13017 = vmatprep.subr.bf16.mxu0 %v13016_v17  ;;  %v7103_v39 = vld [vmem:[#allocation13 + $0x1478] sm:$0xff]  ;;  %v7096_v17 = vld [vmem:[#allocation13 + $0x1440] sm:$0xff] }
 0xacb   :  { %v13036_v59 = vpack.c.bf16 %v7103_v39, %v7099_v8  ;;  %v12942_v30 = vpack.c.bf16 %v7100_v2, %v7096_v17  ;;  %v7134_v8 = vld [vmem:[#allocation13 + $0x1570] sm:$0xff]  ;;  %v7137_v39 = vld [vmem:[#allocation13 + $0x1588] sm:$0xff] }
 0xacc   :  { %12923 = vmatpush1.bf16.msra.mxu1 %v12922_v27  ;;  %v7109_v27 = vld [vmem:[#allocation13 + $0x14a8] sm:$0xff]  ;;  %v13054_v2 = vpack.c.bf16 %v7134_v8, %v7130_v28  ;;  %v7171_v28 = vld [vmem:[#allocation13 + $0x1698] sm:$0xff] }
 0xacd   :  { %13019 = vmatpush1.bf16.msra.mxu0 %v13018_v22  ;;  %12925 = vmatprep.subr.bf16.mxu1 %v12924_v63  ;;  %v7107_v22 = vld [vmem:[#allocation13 + $0x1498] sm:$0xff]  ;;  %v12944_v19 = vpack.c.bf16 %v7109_v27, %v7105_v9  ;;  %v7138_v9 = vld [vmem:[#allocation13 + $0x1590] sm:$0xff] }
 0xace   :  { %13021 = vmatprep.subr.bf16.mxu0 %v13020_v3  ;;  %v7111_v63 = vld [vmem:[#allocation13 + $0x14b8] sm:$0xff]  ;;  %v7104_v3 = vld [vmem:[#allocation13 + $0x1480] sm:$0xff] }
 0xacf   :  { %v13040_v31 = vpack.c.bf16 %v7111_v63, %v7107_v22  ;;  %v12946_v55 = vpack.c.bf16 %v7108_v32, %v7104_v3  ;;  %v7142_v22 = vld [vmem:[#allocation13 + $0x15b0] sm:$0xff]  ;;  %v7145_v63 = vld [vmem:[#allocation13 + $0x15c8] sm:$0xff] }
 0xad0   :  { %12927 = vmatpush1.bf16.msra.mxu1 %v12926_v6  ;;  %v7117_v6 = vld [vmem:[#allocation13 + $0x14e8] sm:$0xff]  ;;  %v13058_v32 = vpack.c.bf16 %v7142_v22, %v7138_v9  ;;  %v7179_v22 = vld [vmem:[#allocation13 + $0x16d8] sm:$0xff] }
 0xad1   :  { %13023 = vmatpush1.bf16.msra.mxu0 %v13022_v37  ;;  %12929 = vmatprep.subr.bf16.mxu1 %v12928_v51  ;;  %v7115_v37 = vld [vmem:[#allocation13 + $0x14d8] sm:$0xff]  ;;  %v12948_v38 = vpack.c.bf16 %v7117_v6, %v7113_v34  ;;  %v7146_v6 = vld [vmem:[#allocation13 + $0x15d0] sm:$0xff] }
 0xad2   :  { %13025 = vmatprep.subr.bf16.mxu0 %v13024_v40  ;;  %v7119_v51 = vld [vmem:[#allocation13 + $0x14f8] sm:$0xff]  ;;  %v7112_v40 = vld [vmem:[#allocation13 + $0x14c0] sm:$0xff] }
 0xad3   :  { %v13044_v21 = vpack.c.bf16 %v7119_v51, %v7115_v37  ;;  %v12950_v46 = vpack.c.bf16 %v7116_v0, %v7112_v40  ;;  %v7150_v37 = vld [vmem:[#allocation13 + $0x15f0] sm:$0xff]  ;;  %v7155_v40 = vld [vmem:[#allocation13 + $0x1618] sm:$0xff] }
 0xad4   :  { %12931 = vmatpush1.bf16.msra.mxu1 %v12930_v49  ;;  %v7125_v49 = vld [vmem:[#allocation13 + $0x1528] sm:$0xff] }
 0xad5   :  { %13027 = vmatpush1.bf16.msra.mxu0 %v13026_v26  ;;  %12933 = vmatprep.subr.bf16.mxu1 %v12932_v52  ;;  %v7123_v26 = vld [vmem:[#allocation13 + $0x1518] sm:$0xff]  ;;  %v12952_v54 = vpack.c.bf16 %v7125_v49, %v7121_v45  ;;  %v7156_v45 = vld [vmem:[#allocation13 + $0x1620] sm:$0xff]  ;;  %v7154_v49 = vld [vmem:[#allocation13 + $0x1610] sm:$0xff] }
 0xad6   :  { %13029 = vmatprep.subr.bf16.mxu0 %v13028_v62  ;;  %v7127_v52 = vld [vmem:[#allocation13 + $0x1538] sm:$0xff]  ;;  %v7120_v62 = vld [vmem:[#allocation13 + $0x1500] sm:$0xff] }
 0xad7   :  { %v13048_v44 = vpack.c.bf16 %v7127_v52, %v7123_v26  ;;  %v12954_v36 = vpack.c.bf16 %v7124_v56, %v7120_v62  ;;  %v7158_v26 = vld [vmem:[#allocation13 + $0x1630] sm:$0xff]  ;;  %v7161_v52 = vld [vmem:[#allocation13 + $0x1648] sm:$0xff]  ;;  %v12970_v56 = vpack.c.bf16 %v7156_v45, %v7152_v42 }
 0xad8   :  { %12935 = vmatpush1.bf16.msra.mxu1 %v12934_v4  ;;  %v7133_v4 = vld [vmem:[#allocation13 + $0x1568] sm:$0xff]  ;;  %v13066_v58 = vpack.c.bf16 %v7158_v26, %v7154_v49  ;;  %v7190_v42 = vld [vmem:[#allocation13 + $0x1730] sm:$0xff]  ;;  %v7195_v26 = vld [vmem:[#allocation13 + $0x1758] sm:$0xff] }
 0xad9   :  { %13031 = vmatpush1.bf16.msra.mxu0 %v13030_v10  ;;  %12937 = vmatprep.subr.bf16.mxu1 %v12936_v50  ;;  %v7131_v10 = vld [vmem:[#allocation13 + $0x1558] sm:$0xff]  ;;  %v12956_v35 = vpack.c.bf16 %v7133_v4, %v7129_v23  ;;  %v7193_v45 = vld [vmem:[#allocation13 + $0x1748] sm:$0xff] }
 0xada   :  { %13033 = vmatprep.subr.bf16.mxu0 %v13032_v60  ;;  %v7135_v50 = vld [vmem:[#allocation13 + $0x1578] sm:$0xff]  ;;  %v7128_v60 = vld [vmem:[#allocation13 + $0x1540] sm:$0xff]  ;;  %v7197_v49 = vld [vmem:[#allocation13 + $0x1768] sm:$0xff] }
 0xadb   :  { %v13052_v1 = vpack.c.bf16 %v7135_v50, %v7131_v10  ;;  %v12958_v17 = vpack.c.bf16 %v7132_v61, %v7128_v60  ;;  %v7173_v61 = vld [vmem:[#allocation13 + $0x16a8] sm:$0xff] }
 0xadc   :  { %12939 = vmatpush1.bf16.msra.mxu1 %v12938_v24  ;;  %v7141_v24 = vld [vmem:[#allocation13 + $0x15a8] sm:$0xff] }
 0xadd   :  { %13035 = vmatpush1.bf16.msra.mxu0 %v13034_v43  ;;  %12941 = vmatprep.subr.bf16.mxu1 %v12940_v11  ;;  %v7139_v43 = vld [vmem:[#allocation13 + $0x1598] sm:$0xff]  ;;  %v12960_v20 = vpack.c.bf16 %v7141_v24, %v7137_v39  ;;  %v7168_v24 = vld [vmem:[#allocation13 + $0x1680] sm:$0xff] }
 0xade   :  { %13037 = vmatprep.subr.bf16.mxu0 %v13036_v59  ;;  %v7143_v11 = vld [vmem:[#allocation13 + $0x15b8] sm:$0xff]  ;;  %v7136_v59 = vld [vmem:[#allocation13 + $0x1580] sm:$0xff] }
 0xadf   :  { %v13056_v27 = vpack.c.bf16 %v7143_v11, %v7139_v43  ;;  %v12962_v3 = vpack.c.bf16 %v7140_v48, %v7136_v59  ;;  %v7172_v43 = vld [vmem:[#allocation13 + $0x16a0] sm:$0xff]  ;;  %v7174_v59 = vld [vmem:[#allocation13 + $0x16b0] sm:$0xff]  ;;  %v7177_v48 = vld [vmem:[#allocation13 + $0x16c8] sm:$0xff] }
 0xae0   :  { %12943 = vmatpush1.bf16.msra.mxu1 %v12942_v30  ;;  %v7149_v30 = vld [vmem:[#allocation13 + $0x15e8] sm:$0xff] }
 0xae1   :  { %13039 = vmatpush1.bf16.msra.mxu0 %v13038_v18  ;;  %12945 = vmatprep.subr.bf16.mxu1 %v12944_v19  ;;  %v7147_v18 = vld [vmem:[#allocation13 + $0x15d8] sm:$0xff]  ;;  %v12964_v25 = vpack.c.bf16 %v7149_v30, %v7145_v63  ;;  %v12978_v30 = vpack.c.bf16 %v7172_v43, %v7168_v24  ;;  %v7206_v24 = vld [vmem:[#allocation13 + $0x17b0] sm:$0xff]  ;;  %v7209_v43 = vld [vmem:[#allocation13 + $0x17c8] sm:$0xff] }
 0xae2   :  { %13041 = vmatprep.subr.bf16.mxu0 %v13040_v31  ;;  %v7151_v19 = vld [vmem:[#allocation13 + $0x15f8] sm:$0xff]  ;;  %v7144_v31 = vld [vmem:[#allocation13 + $0x15c0] sm:$0xff] }
 0xae3   :  { %v13060_v34 = vpack.c.bf16 %v7151_v19, %v7147_v18  ;;  %v12966_v51 = vpack.c.bf16 %v7148_v33, %v7144_v31  ;;  %v7183_v63 = vld [vmem:[#allocation13 + $0x16f8] sm:$0xff]  ;;  %v7176_v19 = vld [vmem:[#allocation13 + $0x16c0] sm:$0xff]  ;;  %v7178_v31 = vld [vmem:[#allocation13 + $0x16d0] sm:$0xff] }
 0xae4   :  { %12947 = vmatpush1.bf16.msra.mxu1 %v12946_v55  ;;  %v13062_v55 = vpack.c.bf16 %v7150_v37, %v7146_v6  ;;  %v7182_v33 = vld [vmem:[#allocation13 + $0x16f0] sm:$0xff]  ;;  %v7189_v6 = vld [vmem:[#allocation13 + $0x1728] sm:$0xff]  ;;  %v7187_v37 = vld [vmem:[#allocation13 + $0x1718] sm:$0xff] }
 0xae5   :  { %13043 = vmatpush1.bf16.msra.mxu0 %v13042_v5  ;;  %12949 = vmatprep.subr.bf16.mxu1 %v12948_v38  ;;  %v7153_v5 = vld [vmem:[#allocation13 + $0x1608] sm:$0xff] }
 0xae6   :  { %13045 = vmatprep.subr.bf16.mxu0 %v13044_v21  ;;  %v7157_v38 = vld [vmem:[#allocation13 + $0x1628] sm:$0xff]  ;;  %v13064_v21 = vpack.c.bf16 %v7159_v41, %v7155_v40  ;;  %v7188_v40 = vld [vmem:[#allocation13 + $0x1720] sm:$0xff] }
 0xae7   :  { %v12968_v0 = vpack.c.bf16 %v7157_v38, %v7153_v5  ;;  %v13078_v5 = vpack.c.bf16 %v7182_v33, %v7178_v31  ;;  %v7184_v38 = vld [vmem:[#allocation13 + $0x1700] sm:$0xff]  ;;  %v7701_v31 = vld [vmem:[#allocation13 + $0x1838] sm:$0xff] }
 0xae8   :  { %12951 = vmatpush1.bf16.msra.mxu1 %v12950_v46  ;;  %v7165_v46 = vld [vmem:[#allocation13 + $0x1668] sm:$0xff]  ;;  %v7694_v33 = vld [vmem:[#allocation13 + $0x1800] sm:$0xff] }
 0xae9   :  { %13047 = vmatpush1.bf16.msra.mxu0 %v13046_v53  ;;  %12953 = vmatprep.subr.bf16.mxu1 %v12952_v54  ;;  %v7163_v53 = vld [vmem:[#allocation13 + $0x1658] sm:$0xff]  ;;  %v12972_v10 = vpack.c.bf16 %v7165_v46, %v7161_v52  ;;  %v12986_v46 = vpack.c.bf16 %v7188_v40, %v7184_v38 }
 0xaea   :  { %13049 = vmatprep.subr.bf16.mxu0 %v13048_v44  ;;  %v7167_v54 = vld [vmem:[#allocation13 + $0x1678] sm:$0xff]  ;;  %v7160_v44 = vld [vmem:[#allocation13 + $0x1640] sm:$0xff] }
 0xaeb   :  { %v13068_v50 = vpack.c.bf16 %v7167_v54, %v7163_v53  ;;  %v12974_v8 = vpack.c.bf16 %v7164_v29, %v7160_v44  ;;  %v7199_v52 = vld [vmem:[#allocation13 + $0x1778] sm:$0xff]  ;;  %v7192_v54 = vld [vmem:[#allocation13 + $0x1740] sm:$0xff]  ;;  %v7194_v44 = vld [vmem:[#allocation13 + $0x1750] sm:$0xff] }
 0xaec   :  { %12955 = vmatpush1.bf16.msra.mxu1 %v12954_v36  ;;  %v7162_v36 = vld [vmem:[#allocation13 + $0x1650] sm:$0xff] }
 0xaed   :  { %13051 = vmatpush1.bf16.msra.mxu0 %v13050_v14  ;;  %12957 = vmatprep.subr.bf16.mxu1 %v12956_v35  ;;  %v7166_v14 = vld [vmem:[#allocation13 + $0x1670] sm:$0xff]  ;;  %v7169_v35 = vld [vmem:[#allocation13 + $0x1688] sm:$0xff] }
 0xaee   :  { %13053 = vmatprep.subr.bf16.mxu0 %v13052_v1  ;;  %v7175_v1 = vld [vmem:[#allocation13 + $0x16b8] sm:$0xff]  ;;  %v13070_v39 = vpack.c.bf16 %v7166_v14, %v7162_v36  ;;  %v7198_v29 = vld [vmem:[#allocation13 + $0x1770] sm:$0xff] }
 0xaef   :  { %v7207_v36 = vld [vmem:[#allocation13 + $0x17b8] sm:$0xff] }
 0xaf0   :  { %12959 = vmatpush1.bf16.msra.mxu1 %v12958_v17  ;;  %v12976_v17 = vpack.c.bf16 %v7173_v61, %v7169_v35  ;;  %v13086_v35 = vpack.c.bf16 %v7198_v29, %v7194_v44  ;;  %v7200_v61 = vld [vmem:[#allocation13 + $0x1780] sm:$0xff]  ;;  %v7716_v44 = vld [vmem:[#allocation13 + $0x18b0] sm:$0xff]  ;;  %v7719_v29 = vld [vmem:[#allocation13 + $0x18c8] sm:$0xff] }
 0xaf1   :  { %13055 = vmatpush1.bf16.msra.mxu0 %v13054_v2  ;;  %12961 = vmatprep.subr.bf16.mxu1 %v12960_v20  ;;  %v13072_v2 = vpack.c.bf16 %v7175_v1, %v7171_v28  ;;  %v7170_v20 = vld [vmem:[#allocation13 + $0x1690] sm:$0xff]  ;;  %v7204_v28 = vld [vmem:[#allocation13 + $0x17a0] sm:$0xff] }
 0xaf2   :  { %13057 = vmatprep.subr.bf16.mxu0 %v13056_v27  ;;  %v7181_v27 = vld [vmem:[#allocation13 + $0x16e8] sm:$0xff]  ;;  %v13074_v18 = vpack.c.bf16 %v7174_v59, %v7170_v20  ;;  %v12994_v20 = vpack.c.bf16 %v7204_v28, %v7200_v61  ;;  %v7718_v61 = vld [vmem:[#allocation13 + $0x18c0] sm:$0xff] }
 0xaf3   :  { %v7722_v28 = vld [vmem:[#allocation13 + $0x18e0] sm:$0xff] }
 0xaf4   :  { %12963 = vmatpush1.bf16.msra.mxu1 %v12962_v3  ;;  %v7180_v3 = vld [vmem:[#allocation13 + $0x16e0] sm:$0xff] }
 0xaf5   :  { %13059 = vmatpush1.bf16.msra.mxu0 %v13058_v32  ;;  %12965 = vmatprep.subr.bf16.mxu1 %v12964_v25  ;;  %v12980_v32 = vpack.c.bf16 %v7181_v27, %v7177_v48  ;;  %v13076_v25 = vpack.c.bf16 %v7183_v63, %v7179_v22  ;;  %v7208_v48 = vld [vmem:[#allocation13 + $0x17c0] sm:$0xff]  ;;  %v7210_v63 = vld [vmem:[#allocation13 + $0x17d0] sm:$0xff] }
 0xaf6   :  { %13061 = vmatprep.subr.bf16.mxu0 %v13060_v34  ;;  %v7185_v34 = vld [vmem:[#allocation13 + $0x1708] sm:$0xff]  ;;  %v7212_v22 = vld [vmem:[#allocation13 + $0x17e0] sm:$0xff] }
 0xaf8   :  { %12967 = vmatpush1.bf16.msra.mxu1 %v12966_v51  ;;  %v7191_v51 = vld [vmem:[#allocation13 + $0x1738] sm:$0xff] }
 0xaf9   :  { %13063 = vmatpush1.bf16.msra.mxu0 %v13062_v55  ;;  %12969 = vmatprep.subr.bf16.mxu1 %v12968_v0  ;;  %v12982_v55 = vpack.c.bf16 %v7180_v3, %v7176_v19  ;;  %v12984_v0 = vpack.c.bf16 %v7189_v6, %v7185_v34  ;;  %v13080_v41 = vpack.c.bf16 %v7191_v51, %v7187_v37  ;;  %v7695_v3 = vld [vmem:[#allocation13 + $0x1808] sm:$0xff]  ;;  %v7696_v34 = vld [vmem:[#allocation13 + $0x1810] sm:$0xff] }
 0xafa   :  { %13065 = vmatprep.subr.bf16.mxu0 %v13064_v21  ;;  %v7186_v21 = vld [vmem:[#allocation13 + $0x1710] sm:$0xff]  ;;  %v7703_v51 = vld [vmem:[#allocation13 + $0x1848] sm:$0xff] }
 0xafb   :  { %v13082_v53 = vpack.c.bf16 %v7190_v42, %v7186_v21  ;;  %v7700_v37 = vld [vmem:[#allocation13 + $0x1830] sm:$0xff]  ;;  %v7706_v21 = vld [vmem:[#allocation13 + $0x1860] sm:$0xff] }
 0xafc   :  { %v13202_v40 = vpack.c.bf16 %v7700_v37, %v7696_v34  ;;  %v7704_v42 = vld [vmem:[#allocation13 + $0x1850] sm:$0xff]  ;;  %v7743_v37 = vld [vmem:[#allocation13 + $0x1988] sm:$0xff] }
 0xafd   :  { %v7736_v34 = vld [vmem:[#allocation13 + $0x1950] sm:$0xff] }
 0xb8e   :  { %v6937_v62 = vpop.f32.mrb[110].mxu1  ;;  %v15770_v23 = vpop.f32.mrb[66].mxu0 }
 0xb8f   :  { %v6939_v4 = vpop.f32.mrb[111].mxu1  ;;  %v15772_v60 = vpop.f32.mrb[67].mxu0 }
 0xb90   :  { %7280 = vmatprep.mubr.f32.mxu1 %v6939_v4  ;;  %7434 = vmatprep.mubr.f32.mxu0 %v6939_v4  ;;  %v7201_v4 = vld [vmem:[#allocation13 + $0x1788] sm:$0xff] }
 0xb91   :  { %7281 = vmatmul.mubr.f32.vlgmr.msra.gmra.mrb[102].mxu1 %v6937_v62  ;;  %7435 = vmatmul.mubr.f32.vlgmr.msra.gmra.mrb[60].mxu0 %v6937_v62  ;;  %v7196_v62 = vld [vmem:[#allocation13 + $0x1760] sm:$0xff] }
 0xb92   :  { %12971 = vmatpush1.bf16.msra.mxu1 %v12970_v56  ;;  %13067 = vmatpush1.bf16.msra.mxu0 %v13066_v58  ;;  %v6943_v11 = vpop.f32.mrb[112].mxu1  ;;  %v12988_v56 = vpack.c.bf16 %v7197_v49, %v7193_v45  ;;  %v13084_v58 = vpack.c.bf16 %v7199_v52, %v7195_v26  ;;  %v12990_v14 = vpack.c.bf16 %v7196_v62, %v7192_v54  ;;  %v7708_v45 = vld [vmem:[#allocation13 + $0x1870] sm:$0xff]  ;;  %v7711_v49 = vld [vmem:[#allocation13 + $0x1888] sm:$0xff]  ;;  %v7717_v26 = vld [vmem:[#allocation13 + $0x18b8] sm:$0xff] }
 0xb93   :  { %12973 = vmatprep.subr.bf16.mxu1 %v12972_v10  ;;  %13069 = vmatprep.subr.bf16.mxu0 %v13068_v50  ;;  %v6945_v9 = vpop.f32.mrb[113].mxu1  ;;  %v7205_v10 = vld [vmem:[#allocation13 + $0x17a8] sm:$0xff]  ;;  %v7203_v50 = vld [vmem:[#allocation13 + $0x1798] sm:$0xff]  ;;  %v7710_v54 = vld [vmem:[#allocation13 + $0x1880] sm:$0xff] }
 0xb94   :  { %7286 = vmatprep.mubr.f32.mxu1 %v6945_v9  ;;  %7440 = vmatprep.mubr.f32.mxu0 %v6945_v9  ;;  %v12992_v1 = vpack.c.bf16 %v7205_v10, %v7201_v4  ;;  %v7714_v62 = vld [vmem:[#allocation13 + $0x18a0] sm:$0xff]  ;;  %v7723_v4 = vld [vmem:[#allocation13 + $0x18e8] sm:$0xff]  ;;  %v7721_v10 = vld [vmem:[#allocation13 + $0x18d8] sm:$0xff] }
 0xb95   :  { %7287 = vmatmul.mubr.f32.gmra.mrb[104].mxu1 %v6943_v11  ;;  %7441 = vmatmul.mubr.f32.gmra.mrb[62].mxu0 %v6943_v11  ;;  %v7213_v11 = vld [vmem:[#allocation13 + $0x17e8] sm:$0xff] }
 0xb96   :  { %12975 = vmatpush1.bf16.msra.mxu1 %v12974_v8  ;;  %13071 = vmatpush1.bf16.msra.mxu0 %v13070_v39  ;;  %v13088_v8 = vpack.c.bf16 %v7207_v36, %v7203_v50  ;;  %v7202_v39 = vld [vmem:[#allocation13 + $0x1790] sm:$0xff]  ;;  %v12996_v9 = vpack.c.bf16 %v7213_v11, %v7209_v43  ;;  %v7725_v50 = vld [vmem:[#allocation13 + $0x18f8] sm:$0xff]  ;;  %v13114_v36 = vpack.c.bf16 %v7714_v62, %v7710_v54  ;;  %v7731_v43 = vld [vmem:[#allocation13 + $0x1928] sm:$0xff] }
 0xb97   :  { %12977 = vmatprep.subr.bf16.mxu1 %v12976_v17  ;;  %13073 = vmatprep.subr.bf16.mxu0 %v13072_v2  ;;  %v7211_v17 = vld [vmem:[#allocation13 + $0x17d8] sm:$0xff]  ;;  %v13090_v59 = vpack.c.bf16 %v7206_v24, %v7202_v39  ;;  %v7724_v39 = vld [vmem:[#allocation13 + $0x18f0] sm:$0xff]  ;;  %v7727_v24 = vld [vmem:[#allocation13 + $0x1908] sm:$0xff] }
 0xb98   :  { %7357 = vmatprep.mubr.f32.mxu1 %v14726_v47  ;;  %7511 = vmatprep.mubr.f32.mxu0 %v14726_v47  ;;  %v7215_v2 = vld [vmem:[#allocation13 + $0x17f8] sm:$0xff]  ;;  %v7756_v62 = vld [vmem:[#allocation13 + $0x19f0] sm:$0xff] }
 0xb99   :  { %v13092_v27 = vpack.c.bf16 %v7215_v2, %v7211_v17  ;;  %v7729_v11 = vld [vmem:[#allocation13 + $0x1918] sm:$0xff]  ;;  %v13118_v2 = vpack.c.bf16 %v7722_v28, %v7718_v61  ;;  %v7764_v28 = vld [vmem:[#allocation13 + $0x1a30] sm:$0xff] }
 0xb9a   :  { %12979 = vmatpush1.bf16.msra.mxu1 %v12978_v30  ;;  %13075 = vmatpush1.bf16.msra.mxu0 %v13074_v18  ;;  %v7214_v30 = vld [vmem:[#allocation13 + $0x17f0] sm:$0xff]  ;;  %v12998_v18 = vpack.c.bf16 %v7212_v22, %v7208_v48  ;;  %v7733_v17 = vld [vmem:[#allocation13 + $0x1938] sm:$0xff]  ;;  %v7726_v48 = vld [vmem:[#allocation13 + $0x1900] sm:$0xff] }
 0xb9b   :  { %12981 = vmatprep.subr.bf16.mxu1 %v12980_v32  ;;  %13077 = vmatprep.subr.bf16.mxu0 %v13076_v25  ;;  %v13094_v19 = vpack.c.bf16 %v7214_v30, %v7210_v63  ;;  %v7699_v32 = vld [vmem:[#allocation13 + $0x1828] sm:$0xff]  ;;  %v7697_v25 = vld [vmem:[#allocation13 + $0x1818] sm:$0xff]  ;;  %v13216_v22 = vpack.c.bf16 %v7733_v17, %v7729_v11  ;;  %v7732_v63 = vld [vmem:[#allocation13 + $0x1930] sm:$0xff] }
 0xb9c   :  { %v13104_v6 = vpack.c.bf16 %v7699_v32, %v7695_v3  ;;  %v7735_v30 = vld [vmem:[#allocation13 + $0x1948] sm:$0xff]  ;;  %v7741_v3 = vld [vmem:[#allocation13 + $0x1978] sm:$0xff] }
 0xb9e   :  { %12983 = vmatpush1.bf16.msra.mxu1 %v12982_v55  ;;  %13079 = vmatpush1.bf16.msra.mxu0 %v13078_v5  ;;  %v7707_v55 = vld [vmem:[#allocation13 + $0x1868] sm:$0xff]  ;;  %v7534_v5 = vld [vmem:[#allocation11 + $0x48] sm:$0xff] }
 0xb9f   :  { %12985 = vmatprep.subr.bf16.mxu1 %v12984_v0  ;;  %13081 = vmatprep.subr.bf16.mxu0 %v13080_v41  ;;  %v13108_v0 = vpack.c.bf16 %v7707_v55, %v7703_v51  ;;  %v7702_v41 = vld [vmem:[#allocation13 + $0x1840] sm:$0xff]  ;;  %v7747_v51 = vld [vmem:[#allocation13 + $0x19a8] sm:$0xff]  ;;  %v7745_v55 = vld [vmem:[#allocation13 + $0x1998] sm:$0xff] }
 0xba0   :  { %v13110_v52 = vpack.c.bf16 %v7706_v21, %v7702_v41  ;;  %v7748_v21 = vld [vmem:[#allocation13 + $0x19b0] sm:$0xff] }
 0xba2   :  { %12987 = vmatpush1.bf16.msra.mxu1 %v12986_v46  ;;  %13083 = vmatpush1.bf16.msra.mxu0 %v13082_v53  ;;  %v13206_v46 = vpack.c.bf16 %v7708_v45, %v7704_v42  ;;  %v7751_v42 = vld [vmem:[#allocation13 + $0x19c8] sm:$0xff]  ;;  %v7753_v45 = vld [vmem:[#allocation13 + $0x19d8] sm:$0xff] }
 0xba3   :  { %12989 = vmatprep.subr.bf16.mxu1 %v12988_v56  ;;  %13085 = vmatprep.subr.bf16.mxu0 %v13084_v58  ;;  %v7712_v56 = vld [vmem:[#allocation13 + $0x1890] sm:$0xff] }
 0xba6   :  { %12991 = vmatpush1.bf16.msra.mxu1 %v12990_v14  ;;  %13087 = vmatpush1.bf16.msra.mxu0 %v13086_v35  ;;  %v13210_v14 = vpack.c.bf16 %v7716_v44, %v7712_v56  ;;  %v13116_v35 = vpack.c.bf16 %v7723_v4, %v7719_v29  ;;  %v7759_v56 = vld [vmem:[#allocation13 + $0x1a08] sm:$0xff]  ;;  %v7761_v44 = vld [vmem:[#allocation13 + $0x1a18] sm:$0xff] }
 0xba7   :  { %12993 = vmatprep.subr.bf16.mxu1 %v12992_v1  ;;  %13089 = vmatprep.subr.bf16.mxu0 %v13088_v8  ;;  %v7720_v1 = vld [vmem:[#allocation13 + $0x18d0] sm:$0xff]  ;;  %v13212_v8 = vpack.c.bf16 %v7725_v50, %v7721_v10  ;;  %v7765_v29 = vld [vmem:[#allocation13 + $0x1a38] sm:$0xff] }
 0xba8   :  { %v13232_v61 = vpack.c.bf16 %v7765_v29, %v7761_v44 }
 0xbaa   :  { %12995 = vmatpush1.bf16.msra.mxu1 %v12994_v20  ;;  %13091 = vmatpush1.bf16.msra.mxu0 %v13090_v59  ;;  %v13214_v20 = vpack.c.bf16 %v7724_v39, %v7720_v1  ;;  %v13120_v59 = vpack.c.bf16 %v7731_v43, %v7727_v24  ;;  %v7767_v1 = vld [vmem:[#allocation13 + $0x1a48] sm:$0xff]  ;;  %v7769_v39 = vld [vmem:[#allocation13 + $0x1a58] sm:$0xff] }
 0xbab   :  { %12997 = vmatprep.subr.bf16.mxu1 %v12996_v9  ;;  %13093 = vmatprep.subr.bf16.mxu0 %v13092_v27  ;;  %v7730_v9 = vld [vmem:[#allocation13 + $0x1920] sm:$0xff]  ;;  %v7728_v27 = vld [vmem:[#allocation13 + $0x1910] sm:$0xff]  ;;  %v7773_v24 = vld [vmem:[#allocation13 + $0x1a78] sm:$0xff] }
 0xbac   :  { %v13122_v32 = vpack.c.bf16 %v7730_v9, %v7726_v48  ;;  %v13236_v48 = vpack.c.bf16 %v7773_v24, %v7769_v39  ;;  %v7772_v9 = vld [vmem:[#allocation13 + $0x1a70] sm:$0xff] }
 0xbae   :  { %12999 = vmatpush1.bf16.msra.mxu1 %v12998_v18  ;;  %13095 = vmatpush1.bf16.msra.mxu0 %v13094_v19  ;;  %v7739_v18 = vld [vmem:[#allocation13 + $0x1968] sm:$0xff]  ;;  %v7737_v19 = vld [vmem:[#allocation13 + $0x1958] sm:$0xff] }
 0xbaf   :  { %13097 = vmatprep.subr.bf16.mxu1 %v15663_v12  ;;  %13101 = vmatprep.subr.bf16.mxu0 %v15651_v57  ;;  %v7698_v12 = vld [vmem:[#allocation13 + $0x1820] sm:$0xff] }
 0xbb0   :  { %v13106_v38 = vpack.c.bf16 %v7698_v12, %v7694_v33  ;;  %v7734_v33 = vld [vmem:[#allocation13 + $0x1940] sm:$0xff] }
 0xbb1   :  { %7358 = vmatmul.mubr.f32.vlgmr.msra.gmra.mrb[102].mxu1 %v15772_v60  ;;  %7512 = vmatmul.mubr.f32.vlgmr.msra.gmra.mrb[60].mxu0 %v15772_v60  ;;  %v13200_v60 = vpack.c.bf16 %v7701_v31, %v7697_v25  ;;  %v13218_v25 = vpack.c.bf16 %v7732_v63, %v7728_v27  ;;  %v13124_v31 = vpack.c.bf16 %v7739_v18, %v7735_v30  ;;  %v7738_v12 = vld [vmem:[#allocation13 + $0x1960] sm:$0xff]  ;;  %v7775_v27 = vld [vmem:[#allocation13 + $0x1a88] sm:$0xff]  ;;  %v7777_v63 = vld [vmem:[#allocation13 + $0x1a98] sm:$0xff] }
 0xbb2   :  { %13099 = vmatpush1.bf16.msra.mxu1 %v15661_v7  ;;  %13103 = vmatpush3.bf16.msra.mxu0 %v15651_v57  ;;  %v7705_v57 = vld [vmem:[#allocation13 + $0x1858] sm:$0xff] }
 0xbb3   :  { %7545 = vmatprep.subr.mxu1 %v15667_v16  ;;  %11433 = vmatprep.subr.mxu0 %v15653_v13  ;;  %v7709_v7 = vld [vmem:[#allocation13 + $0x1878] sm:$0xff]  ;;  %v7533_v16 = vld [vmem:[#allocation11 + $0x40] sm:$0xff] }
 0xbb4   :  { %7363 = vmatprep.mubr.f32.mxu1 %v14726_v47  ;;  %7517 = vmatprep.mubr.f32.mxu0 %v14726_v47  ;;  %v7781_v30 = vld [vmem:[#allocation13 + $0x1ab8] sm:$0xff] }
 0xbb5   :  { %7364 = vmatmul.mubr.f32.gmra.mrb[104].mxu1 %v15770_v23  ;;  %7518 = vmatmul.mubr.f32.gmra.mrb[62].mxu0 %v15770_v23  ;;  %v13204_v23 = vpack.c.bf16 %v7709_v7, %v7705_v57  ;;  %v7749_v57 = vld [vmem:[#allocation13 + $0x19b8] sm:$0xff]  ;;  %v13126_v7 = vpack.c.bf16 %v7738_v12, %v7734_v33  ;;  %v13240_v33 = vpack.c.bf16 %v7781_v30, %v7777_v63  ;;  %v7780_v12 = vld [vmem:[#allocation13 + $0x1ab0] sm:$0xff] }
 0xbb6   :  { %7546 = vmatpush1.msra.mxu1 %v15665_v15  ;;  %11434 = vmatpush3.msra.mxu0 %v15653_v13  ;;  %v7715_v15 = vld [vmem:[#allocation13 + $0x18a8] sm:$0xff]  ;;  %v7713_v13 = vld [vmem:[#allocation13 + $0x1898] sm:$0xff]  ;;  %v13224_v41 = vpack.c.bf16 %v7749_v57, %v7745_v55 }
 0xbb7   :  { %7605 = vmatprep.mubr.f32.mxu1 %v14726_v47  ;;  %11435 = vmatprep.mubr.msk.f32.mxu0 %vm4871_vm6, %v7533_v16  ;;  %v13112_v53 = vpack.c.bf16 %v7715_v15, %v7711_v49  ;;  %v13208_v58 = vpack.c.bf16 %v7717_v26, %v7713_v13  ;;  %v7757_v49 = vld [vmem:[#allocation13 + $0x19f8] sm:$0xff] }
 0xbb8   :  { %13105 = vmatprep.subr.bf16.mxu1 %v13104_v6  ;;  %13201 = vmatprep.subr.bf16.mxu0 %v13200_v60  ;;  %v13220_v6 = vpack.c.bf16 %v7741_v3, %v7737_v19  ;;  %v7740_v60 = vld [vmem:[#allocation13 + $0x1970] sm:$0xff]  ;;  %v13228_v54 = vpack.c.bf16 %v7757_v49, %v7753_v45 }
 0xbb9   :  { %10860 = vmatmul.mubr.msk.f32.vlgmr.msra.gmra.mrb[114].mxu1 %vm4871_vm6, %v7533_v16  ;;  %11436 = vmatmul.mubr.msk.f32.vlgmr.msra.gmra.mrb[68].mxu0 %vm4871_vm6, %v7534_v5  ;;  %v13222_v16 = vpack.c.bf16 %v7740_v60, %v7736_v34  ;;  %v7783_v34 = vld [vmem:[#allocation13 + $0x1ac8] sm:$0xff]  ;;  %v7785_v60 = vld [vmem:[#allocation13 + $0x1ad8] sm:$0xff] }
 0xbba   :  { %7611 = vmatprep.mubr.f32.mxu1 %v14726_v47  ;;  %13107 = vmatpush1.bf16.msra.mxu1 %v13106_v38  ;;  %v7742_v38 = vld [vmem:[#allocation13 + $0x1980] sm:$0xff] }
 0xbbb   :  { %13203 = vmatpush1.bf16.msra.mxu0 %v13202_v40  ;;  %13109 = vmatprep.subr.bf16.mxu1 %v13108_v0  ;;  %v7746_v40 = vld [vmem:[#allocation13 + $0x19a0] sm:$0xff]  ;;  %v7744_v0 = vld [vmem:[#allocation13 + $0x1990] sm:$0xff] }
 0xbbc   :  { %13205 = vmatprep.subr.bf16.mxu0 %v13204_v23  ;;  %v7755_v23 = vld [vmem:[#allocation13 + $0x19e8] sm:$0xff]  ;;  %v13130_v15 = vpack.c.bf16 %v7746_v40, %v7742_v38  ;;  %v13226_v13 = vpack.c.bf16 %v7748_v21, %v7744_v0  ;;  %v7788_v40 = vld [vmem:[#allocation13 + $0x1af0] sm:$0xff]  ;;  %v7793_v21 = vld [vmem:[#allocation13 + $0x1b18] sm:$0xff] }
 0xbbd   :  { %10861 = vmatmul.mubr.msk.f32.gmra.mrb[116].mxu1 %vm4871_vm6, %v7534_v5  ;;  %v13128_v5 = vpack.c.bf16 %v7747_v51, %v7743_v37  ;;  %v13132_v26 = vpack.c.bf16 %v7755_v23, %v7751_v42  ;;  %v7789_v37 = vld [vmem:[#allocation13 + $0x1af8] sm:$0xff]  ;;  %v7791_v0 = vld [vmem:[#allocation13 + $0x1b08] sm:$0xff] }
 0xbbe   :  { %13111 = vmatpush1.bf16.msra.mxu1 %v13110_v52  ;;  %v7750_v52 = vld [vmem:[#allocation13 + $0x19c0] sm:$0xff]  ;;  %v13244_v38 = vpack.c.bf16 %v7789_v37, %v7785_v60  ;;  %v7797_v42 = vld [vmem:[#allocation13 + $0x1b38] sm:$0xff] }
 0xbbf   :  { %13207 = vmatpush1.bf16.msra.mxu0 %v13206_v46  ;;  %13113 = vmatprep.subr.bf16.mxu1 %v13112_v53  ;;  %v7754_v46 = vld [vmem:[#allocation13 + $0x19e0] sm:$0xff]  ;;  %v7752_v53 = vld [vmem:[#allocation13 + $0x19d0] sm:$0xff]  ;;  %v7829_v37 = vld [vmem:[#allocation13 + $0x1c38] sm:$0xff] }
 0xbc0   :  { %13209 = vmatprep.subr.bf16.mxu0 %v13208_v58  ;;  %v7763_v58 = vld [vmem:[#allocation13 + $0x1a28] sm:$0xff]  ;;  %v13134_v4 = vpack.c.bf16 %v7754_v46, %v7750_v52  ;;  %v13230_v10 = vpack.c.bf16 %v7756_v62, %v7752_v53  ;;  %v13248_v52 = vpack.c.bf16 %v7797_v42, %v7793_v21  ;;  %v7796_v46 = vld [vmem:[#allocation13 + $0x1b30] sm:$0xff]  ;;  %v7801_v62 = vld [vmem:[#allocation13 + $0x1b58] sm:$0xff] }
 0xbc1   :  { %v13136_v50 = vpack.c.bf16 %v7763_v58, %v7759_v56  ;;  %v7799_v53 = vld [vmem:[#allocation13 + $0x1b48] sm:$0xff]  ;;  %v7805_v56 = vld [vmem:[#allocation13 + $0x1b78] sm:$0xff] }
 0xbc2   :  { %13115 = vmatpush1.bf16.msra.mxu1 %v13114_v36  ;;  %v7758_v36 = vld [vmem:[#allocation13 + $0x1a00] sm:$0xff] }
 0xbc3   :  { %13211 = vmatpush1.bf16.msra.mxu0 %v13210_v14  ;;  %13117 = vmatprep.subr.bf16.mxu1 %v13116_v35  ;;  %v7762_v14 = vld [vmem:[#allocation13 + $0x1a20] sm:$0xff]  ;;  %v7760_v35 = vld [vmem:[#allocation13 + $0x1a10] sm:$0xff] }
 0xbc4   :  { %13213 = vmatprep.subr.bf16.mxu0 %v13212_v8  ;;  %v7771_v8 = vld [vmem:[#allocation13 + $0x1a68] sm:$0xff]  ;;  %v13138_v43 = vpack.c.bf16 %v7762_v14, %v7758_v36  ;;  %v13234_v11 = vpack.c.bf16 %v7764_v28, %v7760_v35  ;;  %v13252_v36 = vpack.c.bf16 %v7805_v56, %v7801_v62  ;;  %v7804_v14 = vld [vmem:[#allocation13 + $0x1b70] sm:$0xff]  ;;  %v7809_v28 = vld [vmem:[#allocation13 + $0x1b98] sm:$0xff] }
 0xbc5   :  { %v13140_v17 = vpack.c.bf16 %v7771_v8, %v7767_v1  ;;  %v7807_v35 = vld [vmem:[#allocation13 + $0x1b88] sm:$0xff]  ;;  %v7813_v1 = vld [vmem:[#allocation13 + $0x1bb8] sm:$0xff] }
 0xbc6   :  { %13119 = vmatpush1.bf16.msra.mxu1 %v13118_v2  ;;  %v7766_v2 = vld [vmem:[#allocation13 + $0x1a40] sm:$0xff]  ;;  %v7843_v62 = vld [vmem:[#allocation13 + $0x1ca8] sm:$0xff]  ;;  %v7841_v56 = vld [vmem:[#allocation13 + $0x1c98] sm:$0xff] }
 0xbc7   :  { %13215 = vmatpush1.bf16.msra.mxu0 %v13214_v20  ;;  %13121 = vmatprep.subr.bf16.mxu1 %v13120_v59  ;;  %v7770_v20 = vld [vmem:[#allocation13 + $0x1a60] sm:$0xff]  ;;  %v7768_v59 = vld [vmem:[#allocation13 + $0x1a50] sm:$0xff] }
 0xbc8   :  { %13217 = vmatprep.subr.bf16.mxu0 %v13216_v22  ;;  %v7779_v22 = vld [vmem:[#allocation13 + $0x1aa8] sm:$0xff]  ;;  %v13142_v18 = vpack.c.bf16 %v7770_v20, %v7766_v2  ;;  %v13238_v19 = vpack.c.bf16 %v7772_v9, %v7768_v59  ;;  %v13256_v2 = vpack.c.bf16 %v7813_v1, %v7809_v28  ;;  %v7812_v20 = vld [vmem:[#allocation13 + $0x1bb0] sm:$0xff]  ;;  %v7817_v9 = vld [vmem:[#allocation13 + $0x1bd8] sm:$0xff] }
 0xbc9   :  { %v13144_v3 = vpack.c.bf16 %v7779_v22, %v7775_v27  ;;  %v7815_v59 = vld [vmem:[#allocation13 + $0x1bc8] sm:$0xff]  ;;  %v7821_v27 = vld [vmem:[#allocation13 + $0x1bf8] sm:$0xff] }
 0xbca   :  { %13123 = vmatpush1.bf16.msra.mxu1 %v13122_v32  ;;  %v7774_v32 = vld [vmem:[#allocation13 + $0x1a80] sm:$0xff]  ;;  %v7847_v28 = vld [vmem:[#allocation13 + $0x1cc8] sm:$0xff] }
 0xbcb   :  { %13219 = vmatpush1.bf16.msra.mxu0 %v13218_v25  ;;  %13125 = vmatprep.subr.bf16.mxu1 %v13124_v31  ;;  %v7778_v25 = vld [vmem:[#allocation13 + $0x1aa0] sm:$0xff]  ;;  %v7776_v31 = vld [vmem:[#allocation13 + $0x1a90] sm:$0xff] }
 0xbcc   :  { %13221 = vmatprep.subr.bf16.mxu0 %v13220_v6  ;;  %v7787_v6 = vld [vmem:[#allocation13 + $0x1ae8] sm:$0xff]  ;;  %v13146_v51 = vpack.c.bf16 %v7778_v25, %v7774_v32  ;;  %v13242_v55 = vpack.c.bf16 %v7780_v12, %v7776_v31  ;;  %v7816_v32 = vld [vmem:[#allocation13 + $0x1bd0] sm:$0xff] }
 0xbcd   :  { %v13148_v57 = vpack.c.bf16 %v7787_v6, %v7783_v34  ;;  %v7820_v25 = vld [vmem:[#allocation13 + $0x1bf0] sm:$0xff]  ;;  %v7823_v12 = vld [vmem:[#allocation13 + $0x1c08] sm:$0xff]  ;;  %v7825_v6 = vld [vmem:[#allocation13 + $0x1c18] sm:$0xff] }
 0xbce   :  { %13127 = vmatpush1.bf16.msra.mxu1 %v13126_v7  ;;  %v7782_v7 = vld [vmem:[#allocation13 + $0x1ac0] sm:$0xff]  ;;  %v7827_v34 = vld [vmem:[#allocation13 + $0x1c28] sm:$0xff] }
 0xbcf   :  { %13223 = vmatpush1.bf16.msra.mxu0 %v13222_v16  ;;  %13129 = vmatprep.subr.bf16.mxu1 %v13128_v5  ;;  %v7786_v16 = vld [vmem:[#allocation13 + $0x1ae0] sm:$0xff]  ;;  %v7784_v5 = vld [vmem:[#allocation13 + $0x1ad0] sm:$0xff]  ;;  %v13168_v60 = vpack.c.bf16 %v7827_v34, %v7823_v12  ;;  %v7863_v34 = vld [vmem:[#allocation13 + $0x1d48] sm:$0xff] }
 0xbd0   :  { %13225 = vmatprep.subr.bf16.mxu0 %v13224_v41  ;;  %v7795_v41 = vld [vmem:[#allocation13 + $0x1b28] sm:$0xff]  ;;  %v13150_v23 = vpack.c.bf16 %v7786_v16, %v7782_v7  ;;  %v13246_v45 = vpack.c.bf16 %v7788_v40, %v7784_v5  ;;  %v7824_v7 = vld [vmem:[#allocation13 + $0x1c10] sm:$0xff]  ;;  %v7833_v40 = vld [vmem:[#allocation13 + $0x1c58] sm:$0xff] }
 0xbd1   :  { %v13152_v49 = vpack.c.bf16 %v7795_v41, %v7791_v0  ;;  %v7828_v16 = vld [vmem:[#allocation13 + $0x1c30] sm:$0xff]  ;;  %v7831_v5 = vld [vmem:[#allocation13 + $0x1c48] sm:$0xff]  ;;  %v7837_v0 = vld [vmem:[#allocation13 + $0x1c78] sm:$0xff] }
 0xbd2   :  { %13131 = vmatpush1.bf16.msra.mxu1 %v13130_v15  ;;  %v7790_v15 = vld [vmem:[#allocation13 + $0x1b00] sm:$0xff]  ;;  %v13266_v42 = vpack.c.bf16 %v7828_v16, %v7824_v7  ;;  %v7860_v12 = vld [vmem:[#allocation13 + $0x1d30] sm:$0xff] }
 0xbd3   :  { %13227 = vmatpush1.bf16.msra.mxu0 %v13226_v13  ;;  %13133 = vmatprep.subr.bf16.mxu1 %v13132_v26  ;;  %v7794_v13 = vld [vmem:[#allocation13 + $0x1b20] sm:$0xff]  ;;  %v7792_v26 = vld [vmem:[#allocation13 + $0x1b10] sm:$0xff] }
 0xbd4   :  { %13229 = vmatprep.subr.bf16.mxu0 %v13228_v54  ;;  %v7803_v54 = vld [vmem:[#allocation13 + $0x1b68] sm:$0xff]  ;;  %v13154_v58 = vpack.c.bf16 %v7794_v13, %v7790_v15  ;;  %v13250_v44 = vpack.c.bf16 %v7796_v46, %v7792_v26  ;;  %v13268_v26 = vpack.c.bf16 %v7837_v0, %v7833_v40  ;;  %v7836_v46 = vld [vmem:[#allocation13 + $0x1c70] sm:$0xff]  ;;  %v7866_v7 = vld [vmem:[#allocation13 + $0x1d60] sm:$0xff] }
 0xbd5   :  { %v13156_v29 = vpack.c.bf16 %v7803_v54, %v7799_v53  ;;  %v7839_v53 = vld [vmem:[#allocation13 + $0x1c88] sm:$0xff]  ;;  %v7868_v40 = vld [vmem:[#allocation13 + $0x1d70] sm:$0xff] }
 0xbd6   :  { %13135 = vmatpush1.bf16.msra.mxu1 %v13134_v4  ;;  %v7798_v4 = vld [vmem:[#allocation13 + $0x1b40] sm:$0xff]  ;;  %v7871_v0 = vld [vmem:[#allocation13 + $0x1d88] sm:$0xff] }
 0xbd7   :  { %13231 = vmatpush1.bf16.msra.mxu0 %v13230_v10  ;;  %13137 = vmatprep.subr.bf16.mxu1 %v13136_v50  ;;  %v7802_v10 = vld [vmem:[#allocation13 + $0x1b60] sm:$0xff]  ;;  %v7800_v50 = vld [vmem:[#allocation13 + $0x1b50] sm:$0xff] }
 0xbd8   :  { %13233 = vmatprep.subr.bf16.mxu0 %v13232_v61  ;;  %v7811_v61 = vld [vmem:[#allocation13 + $0x1ba8] sm:$0xff]  ;;  %v13158_v8 = vpack.c.bf16 %v7802_v10, %v7798_v4  ;;  %v13254_v39 = vpack.c.bf16 %v7804_v14, %v7800_v50  ;;  %v7838_v4 = vld [vmem:[#allocation13 + $0x1c80] sm:$0xff] }
 0xbd9   :  { %v13160_v24 = vpack.c.bf16 %v7811_v61, %v7807_v35  ;;  %v7842_v10 = vld [vmem:[#allocation13 + $0x1ca0] sm:$0xff]  ;;  %v7840_v35 = vld [vmem:[#allocation13 + $0x1c90] sm:$0xff] }
 0xbda   :  { %13139 = vmatpush1.bf16.msra.mxu1 %v13138_v43  ;;  %v7806_v43 = vld [vmem:[#allocation13 + $0x1b80] sm:$0xff]  ;;  %v7844_v61 = vld [vmem:[#allocation13 + $0x1cb0] sm:$0xff] }
 0xbdb   :  { %13235 = vmatpush1.bf16.msra.mxu0 %v13234_v11  ;;  %13141 = vmatprep.subr.bf16.mxu1 %v13140_v17  ;;  %v7810_v11 = vld [vmem:[#allocation13 + $0x1ba0] sm:$0xff]  ;;  %v7808_v17 = vld [vmem:[#allocation13 + $0x1b90] sm:$0xff] }
 0xbdc   :  { %13237 = vmatprep.subr.bf16.mxu0 %v13236_v48  ;;  %v7819_v48 = vld [vmem:[#allocation13 + $0x1be8] sm:$0xff]  ;;  %v13162_v22 = vpack.c.bf16 %v7810_v11, %v7806_v43  ;;  %v13258_v63 = vpack.c.bf16 %v7812_v20, %v7808_v17  ;;  %v13178_v43 = vpack.c.bf16 %v7842_v10, %v7838_v4  ;;  %v13274_v11 = vpack.c.bf16 %v7844_v61, %v7840_v35  ;;  %v7846_v17 = vld [vmem:[#allocation13 + $0x1cc0] sm:$0xff]  ;;  %v7880_v35 = vld [vmem:[#allocation13 + $0x1dd0] sm:$0xff] }
 0xbdd   :  { %v13164_v30 = vpack.c.bf16 %v7819_v48, %v7815_v59  ;;  %v7848_v48 = vld [vmem:[#allocation13 + $0x1cd0] sm:$0xff]  ;;  %v7878_v10 = vld [vmem:[#allocation13 + $0x1dc0] sm:$0xff] }
 0xbde   :  { %13143 = vmatpush1.bf16.msra.mxu1 %v13142_v18  ;;  %v7814_v18 = vld [vmem:[#allocation13 + $0x1bc0] sm:$0xff]  ;;  %v7884_v61 = vld [vmem:[#allocation13 + $0x1df0] sm:$0xff] }
 0xbdf   :  { %13239 = vmatpush1.bf16.msra.mxu0 %v13238_v19  ;;  %13145 = vmatprep.subr.bf16.mxu1 %v13144_v3  ;;  %v7818_v19 = vld [vmem:[#allocation13 + $0x1be0] sm:$0xff]  ;;  %v13260_v3 = vpack.c.bf16 %v7821_v27, %v7817_v9  ;;  %v7852_v9 = vld [vmem:[#allocation13 + $0x1cf0] sm:$0xff]  ;;  %v7855_v27 = vld [vmem:[#allocation13 + $0x1d08] sm:$0xff] }
 0xbe0   :  { %13241 = vmatprep.subr.bf16.mxu0 %v13240_v33  ;;  %v13166_v31 = vpack.c.bf16 %v7818_v19, %v7814_v18  ;;  %v13262_v33 = vpack.c.bf16 %v7820_v25, %v7816_v32  ;;  %v13278_v19 = vpack.c.bf16 %v7852_v9, %v7848_v48  ;;  %v7858_v32 = vld [vmem:[#allocation13 + $0x1d20] sm:$0xff] }
 0xbe2   :  { %13147 = vmatpush1.bf16.msra.mxu1 %v13146_v51  ;;  %v13264_v51 = vpack.c.bf16 %v7829_v37, %v7825_v6  ;;  %v7867_v6 = vld [vmem:[#allocation13 + $0x1d68] sm:$0xff]  ;;  %v7869_v37 = vld [vmem:[#allocation13 + $0x1d78] sm:$0xff] }
 0xbe3   :  { %13243 = vmatpush1.bf16.msra.mxu0 %v13242_v55  ;;  %13149 = vmatprep.subr.bf16.mxu1 %v13148_v57  ;;  %v7822_v55 = vld [vmem:[#allocation13 + $0x1c00] sm:$0xff]  ;;  %v13188_v16 = vpack.c.bf16 %v7867_v6, %v7863_v34  ;;  %v8508_v34 = vld [vmem:[#allocation16] sm:$0xff] }
 0xbe4   :  { %13245 = vmatprep.subr.bf16.mxu0 %v13244_v38  ;;  %v7826_v57 = vld [vmem:[#allocation13 + $0x1c20] sm:$0xff]  ;;  %v7835_v38 = vld [vmem:[#allocation13 + $0x1c68] sm:$0xff] }
 0xbe5   :  { %v13170_v21 = vpack.c.bf16 %v7826_v57, %v7822_v55  ;;  %v13172_v13 = vpack.c.bf16 %v7835_v38, %v7831_v5  ;;  %v7862_v57 = vld [vmem:[#allocation13 + $0x1d40] sm:$0xff]  ;;  %v7864_v38 = vld [vmem:[#allocation13 + $0x1d50] sm:$0xff] }
 0xbe6   :  { %13151 = vmatpush1.bf16.msra.mxu1 %v13150_v23  ;;  %v7830_v23 = vld [vmem:[#allocation13 + $0x1c40] sm:$0xff] }
 0xbe7   :  { %13247 = vmatpush1.bf16.msra.mxu0 %v13246_v45  ;;  %13153 = vmatprep.subr.bf16.mxu1 %v13152_v49  ;;  %v7834_v45 = vld [vmem:[#allocation13 + $0x1c60] sm:$0xff] }
 0xbe8   :  { %13249 = vmatprep.subr.bf16.mxu0 %v13248_v52  ;;  %v7832_v52 = vld [vmem:[#allocation13 + $0x1c50] sm:$0xff]  ;;  %v8510_v6 = vld [vmem:[#allocation16 + $0x10] sm:$0xff] }
 0xbea   :  { %13155 = vmatpush1.bf16.msra.mxu1 %v13154_v58  ;;  %v7845_v58 = vld [vmem:[#allocation13 + $0x1cb8] sm:$0xff] }
 0xbeb   :  { %13251 = vmatpush1.bf16.msra.mxu0 %v13250_v44  ;;  %13157 = vmatprep.subr.bf16.mxu1 %v13156_v29  ;;  %v13174_v44 = vpack.c.bf16 %v7834_v45, %v7830_v23  ;;  %v13270_v29 = vpack.c.bf16 %v7836_v46, %v7832_v52  ;;  %v13272_v14 = vpack.c.bf16 %v7845_v58, %v7841_v56  ;;  %v7872_v46 = vld [vmem:[#allocation13 + $0x1d90] sm:$0xff]  ;;  %v7883_v56 = vld [vmem:[#allocation13 + $0x1de8] sm:$0xff]  ;;  %v7881_v58 = vld [vmem:[#allocation13 + $0x1dd8] sm:$0xff] }
 0xbec   :  { %13253 = vmatprep.subr.bf16.mxu0 %v13252_v36  ;;  %v13176_v36 = vpack.c.bf16 %v7843_v62, %v7839_v53  ;;  %v13190_v23 = vpack.c.bf16 %v7866_v7, %v7862_v57  ;;  %v13286_v45 = vpack.c.bf16 %v7868_v40, %v7864_v38  ;;  %v7876_v53 = vld [vmem:[#allocation13 + $0x1db0] sm:$0xff]  ;;  %v7879_v62 = vld [vmem:[#allocation13 + $0x1dc8] sm:$0xff]  ;;  %v13314_v40 = vpack.c.bf16 %v8510_v6, %v8508_v34 }
 0xbed   :  { %v13290_v4 = vpack.c.bf16 %v7876_v53, %v7872_v46  ;;  %v8515_v7 = vld [vmem:[#allocation16 + $0x38] sm:$0xff] }
 0xbee   :  { %13159 = vmatpush1.bf16.msra.mxu1 %v13158_v8  ;;  %v7851_v8 = vld [vmem:[#allocation13 + $0x1ce8] sm:$0xff] }
 0xbef   :  { %13255 = vmatpush1.bf16.msra.mxu0 %v13254_v39  ;;  %13161 = vmatprep.subr.bf16.mxu1 %v13160_v24  ;;  %v7849_v39 = vld [vmem:[#allocation13 + $0x1cd8] sm:$0xff]  ;;  %v13180_v20 = vpack.c.bf16 %v7851_v8, %v7847_v28  ;;  %v8358_v38 = vld [vmem:[#allocation14 + $0x8] sm:$0xff] }
 0xbf0   :  { %13257 = vmatprep.subr.bf16.mxu0 %v13256_v2  ;;  %v7853_v24 = vld [vmem:[#allocation13 + $0x1cf8] sm:$0xff]  ;;  %v7850_v2 = vld [vmem:[#allocation13 + $0x1ce0] sm:$0xff]  ;;  %v8790_v46 = vld [vmem:[#allocation16 + $0x458] sm:$0xff] }
 0xbf1   :  { %v13276_v59 = vpack.c.bf16 %v7853_v24, %v7849_v39  ;;  %v13182_v18 = vpack.c.bf16 %v7850_v2, %v7846_v17 }
 0xbf2   :  { %13163 = vmatpush1.bf16.msra.mxu1 %v13162_v22  ;;  %v7859_v22 = vld [vmem:[#allocation13 + $0x1d28] sm:$0xff] }
 0xbf3   :  { %13259 = vmatpush1.bf16.msra.mxu0 %v13258_v63  ;;  %13165 = vmatprep.subr.bf16.mxu1 %v13164_v30  ;;  %v7857_v63 = vld [vmem:[#allocation13 + $0x1d18] sm:$0xff]  ;;  %v13184_v25 = vpack.c.bf16 %v7859_v22, %v7855_v27 }
 0xbf4   :  { %13261 = vmatprep.subr.bf16.mxu0 %v13260_v3  ;;  %v7861_v30 = vld [vmem:[#allocation13 + $0x1d38] sm:$0xff]  ;;  %v7854_v3 = vld [vmem:[#allocation13 + $0x1d00] sm:$0xff] }
 0xbf6   :  { %13167 = vmatpush1.bf16.msra.mxu1 %v13166_v31  ;;  %v13280_v31 = vpack.c.bf16 %v7861_v30, %v7857_v63 }
 0xbf7   :  { %13263 = vmatpush1.bf16.msra.mxu0 %v13262_v33  ;;  %13169 = vmatprep.subr.bf16.mxu1 %v13168_v60  ;;  %v7856_v33 = vld [vmem:[#allocation13 + $0x1d10] sm:$0xff]  ;;  %v7865_v60 = vld [vmem:[#allocation13 + $0x1d58] sm:$0xff] }
 0xbf8   :  { %13265 = vmatprep.subr.bf16.mxu0 %v13264_v51  ;;  %v13186_v51 = vpack.c.bf16 %v7858_v32, %v7854_v3  ;;  %v13282_v55 = vpack.c.bf16 %v7860_v12, %v7856_v33  ;;  %v13284_v5 = vpack.c.bf16 %v7869_v37, %v7865_v60  ;;  %v8509_v32 = vld [vmem:[#allocation16 + $0x8] sm:$0xff]  ;;  %v8782_v33 = vld [vmem:[#allocation16 + $0x418] sm:$0xff]  ;;  %v8210_v12 = vld [vmem:[#allocation14] sm:$0xff] }
 0xbf9   :  { %v8779_v60 = vld [vmem:[#allocation16 + $0x400] sm:$0xff]  ;;  %v8781_v37 = vld [vmem:[#allocation16 + $0x410] sm:$0xff] }
 0xc8c   :  { %v7607_v41 = vpop.f32.mrb[114].mxu1  ;;  %v15796_v49 = vpop.f32.mrb[68].mxu0 }
 0xc8d   :  { %v7609_v15 = vpop.f32.mrb[115].mxu1  ;;  %v15798_v54 = vpop.f32.mrb[69].mxu0 }
 0xc8e   :  { %7950 = vmatprep.mubr.f32.mxu1 %v7609_v15  ;;  %8104 = vmatprep.mubr.f32.mxu0 %v7609_v15  ;;  %v7870_v15 = vld [vmem:[#allocation13 + $0x1d80] sm:$0xff] }
 0xc8f   :  { %7951 = vmatmul.mubr.f32.vlgmr.msra.gmra.mrb[102].mxu1 %v7607_v41  ;;  %8105 = vmatmul.mubr.f32.vlgmr.msra.gmra.mrb[60].mxu0 %v7607_v41  ;;  %v7875_v41 = vld [vmem:[#allocation13 + $0x1da8] sm:$0xff] }
 0xc90   :  { %13171 = vmatpush1.bf16.msra.mxu1 %v13170_v21  ;;  %13267 = vmatpush1.bf16.msra.mxu0 %v13266_v42  ;;  %v7613_v50 = vpop.f32.mrb[116].mxu1  ;;  %v7873_v21 = vld [vmem:[#allocation13 + $0x1d98] sm:$0xff] }
 0xc91   :  { %13173 = vmatprep.subr.bf16.mxu1 %v13172_v13  ;;  %13269 = vmatprep.subr.bf16.mxu0 %v13268_v26  ;;  %v7615_v1 = vpop.f32.mrb[117].mxu1  ;;  %v7877_v42 = vld [vmem:[#allocation13 + $0x1db8] sm:$0xff]  ;;  %v7874_v13 = vld [vmem:[#allocation13 + $0x1da0] sm:$0xff]  ;;  %v13192_v26 = vpack.c.bf16 %v7875_v41, %v7871_v0  ;;  %v13442_v0 = vpack.c.bf16 %v8781_v37, %v8779_v60  ;;  %v8512_v41 = vld [vmem:[#allocation16 + $0x20] sm:$0xff] }
 0xc92   :  { %7956 = vmatprep.mubr.f32.mxu1 %v7615_v1  ;;  %8110 = vmatprep.mubr.f32.mxu0 %v7615_v1  ;;  %v13288_v52 = vpack.c.bf16 %v7877_v42, %v7873_v21  ;;  %v13294_v1 = vpack.c.bf16 %v7884_v61, %v7880_v35  ;;  %v8514_v21 = vld [vmem:[#allocation16 + $0x30] sm:$0xff]  ;;  %v8794_v35 = vld [vmem:[#allocation16 + $0x478] sm:$0xff]  ;;  %v8799_v60 = vld [vmem:[#allocation16 + $0x4a0] sm:$0xff] }
 0xc93   :  { %7957 = vmatmul.mubr.f32.gmra.mrb[104].mxu1 %v7613_v50  ;;  %8111 = vmatmul.mubr.f32.gmra.mrb[62].mxu0 %v7613_v50  ;;  %v13196_v50 = vpack.c.bf16 %v7883_v56, %v7879_v62  ;;  %v13318_v53 = vpack.c.bf16 %v8514_v21, %v8512_v41  ;;  %v8516_v56 = vld [vmem:[#allocation16 + $0x40] sm:$0xff]  ;;  %v8801_v37 = vld [vmem:[#allocation16 + $0x4b0] sm:$0xff] }
 0xc94   :  { %13175 = vmatpush1.bf16.msra.mxu1 %v13174_v44  ;;  %13271 = vmatpush1.bf16.msra.mxu0 %v13270_v29  ;;  %v7885_v44 = vld [vmem:[#allocation13 + $0x1df8] sm:$0xff]  ;;  %v13194_v29 = vpack.c.bf16 %v7874_v13, %v7870_v15  ;;  %v8785_v15 = vld [vmem:[#allocation16 + $0x430] sm:$0xff]  ;;  %v8803_v21 = vld [vmem:[#allocation16 + $0x4c0] sm:$0xff] }
 0xc95   :  { %13177 = vmatprep.subr.bf16.mxu1 %v13176_v36  ;;  %13273 = vmatprep.subr.bf16.mxu0 %v13272_v14  ;;  %v13292_v36 = vpack.c.bf16 %v7885_v44, %v7881_v58  ;;  %v7882_v14 = vld [vmem:[#allocation13 + $0x1de0] sm:$0xff]  ;;  %v8517_v13 = vld [vmem:[#allocation16 + $0x48] sm:$0xff] }
 0xc96   :  { %8027 = vmatprep.mubr.f32.mxu1 %v14726_v47  ;;  %8181 = vmatprep.mubr.f32.mxu0 %v14726_v47  ;;  %v13198_v28 = vpack.c.bf16 %v7882_v14, %v7878_v10  ;;  %v8518_v58 = vld [vmem:[#allocation16 + $0x50] sm:$0xff]  ;;  %v8792_v14 = vld [vmem:[#allocation16 + $0x468] sm:$0xff] }
 0xc97   :  { %v8789_v10 = vld [vmem:[#allocation16 + $0x450] sm:$0xff]  ;;  %v13322_v61 = vpack.c.bf16 %v8518_v58, %v8516_v56  ;;  %v8807_v58 = vld [vmem:[#allocation16 + $0x4e0] sm:$0xff] }
 0xc98   :  { %13179 = vmatpush1.bf16.msra.mxu1 %v13178_v43  ;;  %13275 = vmatpush1.bf16.msra.mxu0 %v13274_v11 }
 0xc99   :  { %13181 = vmatprep.subr.bf16.mxu1 %v13180_v20  ;;  %13277 = vmatprep.subr.bf16.mxu0 %v13276_v59 }
 0xc9c   :  { %13183 = vmatpush1.bf16.msra.mxu1 %v13182_v18  ;;  %13279 = vmatpush1.bf16.msra.mxu0 %v13278_v19 }
 0xc9d   :  { %13185 = vmatprep.subr.bf16.mxu1 %v13184_v25  ;;  %13281 = vmatprep.subr.bf16.mxu0 %v13280_v31  ;;  %v8511_v25 = vld [vmem:[#allocation16 + $0x18] sm:$0xff]  ;;  %v8780_v31 = vld [vmem:[#allocation16 + $0x408] sm:$0xff] }
 0xc9e   :  { %v13440_v57 = vpack.c.bf16 %v8782_v33, %v8780_v31  ;;  %v8528_v33 = vld [vmem:[#allocation16 + $0xa0] sm:$0xff] }
 0xca0   :  { %13187 = vmatpush1.bf16.msra.mxu1 %v13186_v51  ;;  %13283 = vmatpush1.bf16.msra.mxu0 %v13282_v55  ;;  %v8513_v51 = vld [vmem:[#allocation16 + $0x28] sm:$0xff]  ;;  %v13312_v55 = vpack.c.bf16 %v8511_v25, %v8509_v32  ;;  %v8802_v32 = vld [vmem:[#allocation16 + $0x4b8] sm:$0xff] }
 0xca1   :  { %13189 = vmatprep.subr.bf16.mxu1 %v13188_v16  ;;  %13285 = vmatprep.subr.bf16.mxu0 %v13284_v5  ;;  %v8784_v16 = vld [vmem:[#allocation16 + $0x428] sm:$0xff]  ;;  %v8786_v5 = vld [vmem:[#allocation16 + $0x438] sm:$0xff]  ;;  %v13316_v42 = vpack.c.bf16 %v8515_v7, %v8513_v51 }
 0xca2   :  { %v8533_v51 = vld [vmem:[#allocation16 + $0xc8] sm:$0xff]  ;;  %v8806_v7 = vld [vmem:[#allocation16 + $0x4d8] sm:$0xff] }
 0xca4   :  { %13191 = vmatpush1.bf16.msra.mxu1 %v13190_v23  ;;  %13287 = vmatpush1.bf16.msra.mxu0 %v13286_v45  ;;  %v13444_v23 = vpack.c.bf16 %v8786_v5, %v8784_v16  ;;  %v8783_v45 = vld [vmem:[#allocation16 + $0x420] sm:$0xff]  ;;  %v13462_v5 = vpack.c.bf16 %v8801_v37, %v8799_v60  ;;  %v8555_v60 = vld [vmem:[#allocation16 + $0x178] sm:$0xff]  ;;  %v8824_v37 = vld [vmem:[#allocation16 + $0x568] sm:$0xff] }
 0xca5   :  { %13193 = vmatprep.subr.bf16.mxu1 %v13192_v26  ;;  %13289 = vmatprep.subr.bf16.mxu0 %v13288_v52  ;;  %v8519_v26 = vld [vmem:[#allocation16 + $0x58] sm:$0xff]  ;;  %v8788_v52 = vld [vmem:[#allocation16 + $0x448] sm:$0xff]  ;;  %v13446_v62 = vpack.c.bf16 %v8785_v15, %v8783_v45 }
 0xca6   :  { %v13320_v44 = vpack.c.bf16 %v8519_v26, %v8517_v13  ;;  %v8539_v45 = vld [vmem:[#allocation16 + $0xf8] sm:$0xff]  ;;  %v8808_v15 = vld [vmem:[#allocation16 + $0x4e8] sm:$0xff] }
 0xca7   :  { %v8810_v13 = vld [vmem:[#allocation16 + $0x4f8] sm:$0xff] }
 0xca8   :  { %13195 = vmatpush1.bf16.msra.mxu1 %v13194_v29  ;;  %13291 = vmatpush1.bf16.msra.mxu0 %v13290_v4  ;;  %v13448_v29 = vpack.c.bf16 %v8790_v46, %v8788_v52  ;;  %v8787_v4 = vld [vmem:[#allocation16 + $0x440] sm:$0xff]  ;;  %v13468_v56 = vpack.c.bf16 %v8810_v13, %v8808_v15 }
 0xca9   :  { %13197 = vmatprep.subr.bf16.mxu1 %v13196_v50  ;;  %13293 = vmatprep.subr.bf16.mxu0 %v13292_v36  ;;  %v8521_v50 = vld [vmem:[#allocation16 + $0x68] sm:$0xff]  ;;  %v8523_v36 = vld [vmem:[#allocation16 + $0x78] sm:$0xff]  ;;  %v8536_v46 = vld [vmem:[#allocation16 + $0xe0] sm:$0xff] }
 0xcaa   :  { %v8556_v13 = vld [vmem:[#allocation16 + $0x180] sm:$0xff] }
 0xcac   :  { %13199 = vmatpush1.bf16.msra.mxu1 %v13198_v28  ;;  %13295 = vmatpush1.bf16.msra.mxu0 %v13294_v1  ;;  %v13450_v28 = vpack.c.bf16 %v8789_v10, %v8787_v4  ;;  %v8520_v1 = vld [vmem:[#allocation16 + $0x60] sm:$0xff]  ;;  %v8543_v4 = vld [vmem:[#allocation16 + $0x118] sm:$0xff]  ;;  %v8812_v10 = vld [vmem:[#allocation16 + $0x508] sm:$0xff] }
 0xcaf   :  { %8028 = vmatmul.mubr.f32.vlgmr.msra.gmra.mrb[102].mxu1 %v15798_v54  ;;  %8182 = vmatmul.mubr.f32.vlgmr.msra.gmra.mrb[60].mxu0 %v15798_v54 }
 0xcb0   :  { %8033 = vmatprep.mubr.f32.mxu1 %v14726_v47  ;;  %8187 = vmatprep.mubr.f32.mxu0 %v14726_v47 }
 0xcb3   :  { %8034 = vmatmul.mubr.f32.gmra.mrb[104].mxu1 %v15796_v49  ;;  %8188 = vmatmul.mubr.f32.gmra.mrb[62].mxu0 %v15796_v49 }
 0xcb4   :  { %8279 = vmatprep.mubr.f32.mxu1 %v14726_v47  ;;  %8350 = vmatprep.mubr.f32.mxu0 %v14726_v47 }
 0xd82   :  { %v8029_v8 = vpop.f32.mrb[102].mxu1  ;;  %v8183_v39 = vpop.f32.mrb[60].mxu0 }
 0xd83   :  { %v8031_v24 = vpop.f32.mrb[103].mxu1  ;;  %v8185_v43 = vpop.f32.mrb[61].mxu0  ;;  %v8202_v2 = vmax.f32 %v8029_v8, 0.0  ;;  %v8204_v54 = vmax.f32 %v8183_v39, 0.0  ;;  %v8522_v8 = vld [vmem:[#allocation16 + $0x70] sm:$0xff]  ;;  %v13324_v39 = vpack.c.bf16 %v8523_v36, %v8521_v50  ;;  %v8814_v50 = vld [vmem:[#allocation16 + $0x518] sm:$0xff] }
 0xd84   :  { %v8203_v27 = vmax.f32 %v8031_v24, 0.0  ;;  %v8205_v22 = vmax.f32 %v8185_v43, 0.0  ;;  %v13452_v24 = vpack.c.bf16 %v8794_v35, %v8792_v14  ;;  %v8791_v43 = vld [vmem:[#allocation16 + $0x460] sm:$0xff] }
 0xd85   :  { %v8540_v35 = vld [vmem:[#allocation16 + $0x100] sm:$0xff] }
 0xd86   :  { %v8035_v11 = vpop.f32.mrb[104].mxu1  ;;  %v8189_v17 = vpop.f32.mrb[62].mxu0 }
 0xd87   :  { %v8206_v20 = vmax.f32 %v8035_v11, 0.0  ;;  %v8208_v59 = vmax.f32 %v8189_v17, 0.0  ;;  %v8037_v48 = vpop.f32.mrb[105].mxu1  ;;  %v8191_v9 = vpop.f32.mrb[63].mxu0  ;;  %v8793_v11 = vld [vmem:[#allocation16 + $0x470] sm:$0xff]  ;;  %v8525_v17 = vld [vmem:[#allocation16 + $0x88] sm:$0xff] }
 0xd88   :  { %v8207_v63 = vmax.f32 %v8037_v48, 0.0  ;;  %v8209_v49 = vmax.f32 %v8191_v9, 0.0  ;;  %v13454_v48 = vpack.c.bf16 %v8793_v11, %v8791_v43  ;;  %v8524_v9 = vld [vmem:[#allocation16 + $0x80] sm:$0xff]  ;;  %v8547_v43 = vld [vmem:[#allocation16 + $0x138] sm:$0xff]  ;;  %v8816_v11 = vld [vmem:[#allocation16 + $0x528] sm:$0xff] }
 0xd89   :  { %v13298_v30 = vpack.c.bf16 %v8206_v20, %v8202_v2  ;;  %v13302_v18 = vpack.c.bf16 %v8208_v59, %v8204_v54  ;;  %v8527_v2 = vld [vmem:[#allocation16 + $0x98] sm:$0xff]  ;;  %v8796_v54 = vld [vmem:[#allocation16 + $0x488] sm:$0xff]  ;;  %v13326_v59 = vpack.c.bf16 %v8522_v8, %v8520_v1  ;;  %v13472_v1 = vpack.c.bf16 %v8814_v50, %v8812_v10  ;;  %v8811_v8 = vld [vmem:[#allocation16 + $0x500] sm:$0xff] }
 0xd8a   :  { %v13296_v19 = vpack.c.bf16 %v8207_v63, %v8203_v27  ;;  %v13300_v3 = vpack.c.bf16 %v8209_v49, %v8205_v22  ;;  %v8798_v20 = vld [vmem:[#allocation16 + $0x498] sm:$0xff]  ;;  %v8526_v27 = vld [vmem:[#allocation16 + $0x90] sm:$0xff]  ;;  %v13328_v22 = vpack.c.bf16 %v8527_v2, %v8525_v17  ;;  %v8795_v49 = vld [vmem:[#allocation16 + $0x480] sm:$0xff] }
 0xd8b   :  { %v13456_v63 = vpack.c.bf16 %v8798_v20, %v8796_v54  ;;  %v13330_v25 = vpack.c.bf16 %v8526_v27, %v8524_v9  ;;  %v8818_v17 = vld [vmem:[#allocation16 + $0x538] sm:$0xff]  ;;  %v8544_v20 = vld [vmem:[#allocation16 + $0x120] sm:$0xff] }
 0xd8c   :  { %13297 = vmatprep.subr.bf16.mxu1 %v13296_v19  ;;  %13301 = vmatprep.subr.bf16.mxu0 %v13300_v3  ;;  %v13476_v9 = vpack.c.bf16 %v8818_v17, %v8816_v11  ;;  %v8815_v27 = vld [vmem:[#allocation16 + $0x520] sm:$0xff] }
 0xd8d   :  { %13299 = vmatpush1.bf16.msra.mxu1 %v13298_v30  ;;  %13303 = vmatpush1.bf16.msra.mxu0 %v13302_v18  ;;  %v8560_v50 = vld [vmem:[#allocation16 + $0x1a0] sm:$0xff] }
 0xd8e   :  { %13305 = vmatprep.subr.bf16.mxu1 %v13296_v19  ;;  %13309 = vmatprep.subr.bf16.mxu0 %v13300_v3  ;;  %v8531_v19 = vld [vmem:[#allocation16 + $0xb8] sm:$0xff]  ;;  %v8800_v3 = vld [vmem:[#allocation16 + $0x4a8] sm:$0xff] }
 0xd8f   :  { %v13460_v6 = vpack.c.bf16 %v8802_v32, %v8800_v3  ;;  %v8548_v32 = vld [vmem:[#allocation16 + $0x140] sm:$0xff] }
 0xd90   :  { %10864 = vmatmul.mubr.msk.f32.vlgmr.msra.gmra.mrb[118].mxu1 %vm8211_vm7, %v8210_v12  ;;  %10865 = vmatmul.mubr.msk.f32.vlgmr.msra.gmra.mrb[70].mxu0 %vm8211_vm7, %v8210_v12  ;;  %v8530_v12 = vld [vmem:[#allocation16 + $0xb0] sm:$0xff] }
 0xd91   :  { %13307 = vmatpush1.bf16.msra.mxu1 %v13298_v30  ;;  %13311 = vmatpush1.bf16.msra.mxu0 %v13302_v18  ;;  %v8797_v30 = vld [vmem:[#allocation16 + $0x490] sm:$0xff]  ;;  %v8529_v18 = vld [vmem:[#allocation16 + $0xa8] sm:$0xff]  ;;  %v13334_v16 = vpack.c.bf16 %v8530_v12, %v8528_v33  ;;  %v8819_v12 = vld [vmem:[#allocation16 + $0x540] sm:$0xff] }
 0xd92   :  { %8426 = vmatprep.mubr.f32.mxu1 %v14726_v47  ;;  %8497 = vmatprep.mubr.f32.mxu0 %v14726_v47  ;;  %v13458_v31 = vpack.c.bf16 %v8797_v30, %v8795_v49  ;;  %v13332_v34 = vpack.c.bf16 %v8531_v19, %v8529_v18  ;;  %v8551_v49 = vld [vmem:[#allocation16 + $0x158] sm:$0xff]  ;;  %v8820_v30 = vld [vmem:[#allocation16 + $0x548] sm:$0xff] }
 0xd93   :  { %13313 = vmatprep.subr.bf16.mxu1 %v13312_v55  ;;  %13441 = vmatprep.subr.bf16.mxu0 %v13440_v57  ;;  %v8535_v55 = vld [vmem:[#allocation16 + $0xd8] sm:$0xff]  ;;  %v8804_v57 = vld [vmem:[#allocation16 + $0x4c8] sm:$0xff] }
 0xd94   :  { %10866 = vmatmul.mubr.msk.f32.vlgmr.msra.gmra.mrb[120].mxu1 %vm8211_vm7, %v8358_v38  ;;  %10867 = vmatmul.mubr.msk.f32.vlgmr.msra.gmra.mrb[72].mxu0 %vm8211_vm7, %v8358_v38  ;;  %v8532_v38 = vld [vmem:[#allocation16 + $0xc0] sm:$0xff]  ;;  %v13464_v41 = vpack.c.bf16 %v8806_v7, %v8804_v57  ;;  %v8822_v18 = vld [vmem:[#allocation16 + $0x558] sm:$0xff] }
 0xd95   :  { %13315 = vmatpush1.bf16.msra.mxu1 %v13314_v40  ;;  %13443 = vmatpush1.bf16.msra.mxu0 %v13442_v0  ;;  %v8534_v40 = vld [vmem:[#allocation16 + $0xd0] sm:$0xff]  ;;  %v13336_v0 = vpack.c.bf16 %v8535_v55, %v8533_v51  ;;  %v13480_v33 = vpack.c.bf16 %v8822_v18, %v8820_v30  ;;  %v8826_v51 = vld [vmem:[#allocation16 + $0x578] sm:$0xff]  ;;  %v8552_v7 = vld [vmem:[#allocation16 + $0x160] sm:$0xff] }
 0xd96   :  { %13317 = vmatprep.subr.bf16.mxu1 %v13316_v42  ;;  %13445 = vmatprep.subr.bf16.mxu0 %v13444_v23  ;;  %v8805_v42 = vld [vmem:[#allocation16 + $0x4d0] sm:$0xff]  ;;  %v8537_v23 = vld [vmem:[#allocation16 + $0xe8] sm:$0xff]  ;;  %v13338_v26 = vpack.c.bf16 %v8534_v40, %v8532_v38  ;;  %v13484_v38 = vpack.c.bf16 %v8826_v51, %v8824_v37  ;;  %v8823_v40 = vld [vmem:[#allocation16 + $0x560] sm:$0xff] }
 0xd97   :  { %v13466_v52 = vpack.c.bf16 %v8805_v42, %v8803_v21  ;;  %v8559_v21 = vld [vmem:[#allocation16 + $0x198] sm:$0xff]  ;;  %v8828_v42 = vld [vmem:[#allocation16 + $0x588] sm:$0xff] }
 0xd98   :  { %v8842_v18 = vld [vmem:[#allocation16 + $0x5f8] sm:$0xff] }
 0xd99   :  { %13319 = vmatpush1.bf16.msra.mxu1 %v13318_v53  ;;  %13447 = vmatpush1.bf16.msra.mxu0 %v13446_v62  ;;  %v8538_v53 = vld [vmem:[#allocation16 + $0xf0] sm:$0xff]  ;;  %v13340_v62 = vpack.c.bf16 %v8539_v45, %v8537_v23  ;;  %v8830_v23 = vld [vmem:[#allocation16 + $0x598] sm:$0xff] }
 0xd9a   :  { %13321 = vmatprep.subr.bf16.mxu1 %v13320_v44  ;;  %13449 = vmatprep.subr.bf16.mxu0 %v13448_v29  ;;  %v8809_v44 = vld [vmem:[#allocation16 + $0x4f0] sm:$0xff]  ;;  %v8541_v29 = vld [vmem:[#allocation16 + $0x108] sm:$0xff]  ;;  %v13342_v36 = vpack.c.bf16 %v8538_v53, %v8536_v46  ;;  %v13488_v46 = vpack.c.bf16 %v8830_v23, %v8828_v42  ;;  %v8827_v53 = vld [vmem:[#allocation16 + $0x580] sm:$0xff] }
 0xd9b   :  { %v13470_v14 = vpack.c.bf16 %v8809_v44, %v8807_v58  ;;  %v8563_v58 = vld [vmem:[#allocation16 + $0x1b8] sm:$0xff]  ;;  %v8832_v44 = vld [vmem:[#allocation16 + $0x5a8] sm:$0xff] }
 0xd9c   :  { %v8846_v51 = vld [vmem:[#allocation16 + $0x618] sm:$0xff] }
 0xd9d   :  { %13323 = vmatpush1.bf16.msra.mxu1 %v13322_v61  ;;  %13451 = vmatpush1.bf16.msra.mxu0 %v13450_v28  ;;  %v8542_v61 = vld [vmem:[#allocation16 + $0x110] sm:$0xff]  ;;  %v13344_v28 = vpack.c.bf16 %v8543_v4, %v8541_v29  ;;  %v8834_v29 = vld [vmem:[#allocation16 + $0x5b8] sm:$0xff] }
 0xd9e   :  { %13325 = vmatprep.subr.bf16.mxu1 %v13324_v39  ;;  %13453 = vmatprep.subr.bf16.mxu0 %v13452_v24  ;;  %v8813_v39 = vld [vmem:[#allocation16 + $0x510] sm:$0xff]  ;;  %v8545_v24 = vld [vmem:[#allocation16 + $0x128] sm:$0xff]  ;;  %v13346_v2 = vpack.c.bf16 %v8542_v61, %v8540_v35  ;;  %v13492_v35 = vpack.c.bf16 %v8834_v29, %v8832_v44  ;;  %v8831_v61 = vld [vmem:[#allocation16 + $0x5a0] sm:$0xff] }
 0xd9f   :  { %v13474_v54 = vpack.c.bf16 %v8813_v39, %v8811_v8  ;;  %v8567_v8 = vld [vmem:[#allocation16 + $0x1d8] sm:$0xff]  ;;  %v8836_v39 = vld [vmem:[#allocation16 + $0x5c8] sm:$0xff]  ;;  %v8576_v44 = vld [vmem:[#allocation16 + $0x220] sm:$0xff] }
 0xda0   :  { %v8579_v23 = vld [vmem:[#allocation16 + $0x238] sm:$0xff]  ;;  %v8578_v29 = vld [vmem:[#allocation16 + $0x230] sm:$0xff] }
 0xda1   :  { %13327 = vmatpush1.bf16.msra.mxu1 %v13326_v59  ;;  %13455 = vmatpush1.bf16.msra.mxu0 %v13454_v48  ;;  %v8546_v59 = vld [vmem:[#allocation16 + $0x130] sm:$0xff]  ;;  %v13348_v48 = vpack.c.bf16 %v8547_v43, %v8545_v24  ;;  %v8838_v24 = vld [vmem:[#allocation16 + $0x5d8] sm:$0xff] }
 0xda2   :  { %13329 = vmatprep.subr.bf16.mxu1 %v13328_v22  ;;  %13457 = vmatprep.subr.bf16.mxu0 %v13456_v63  ;;  %v8817_v22 = vld [vmem:[#allocation16 + $0x530] sm:$0xff]  ;;  %v8549_v63 = vld [vmem:[#allocation16 + $0x148] sm:$0xff]  ;;  %v13350_v19 = vpack.c.bf16 %v8546_v59, %v8544_v20  ;;  %v8835_v59 = vld [vmem:[#allocation16 + $0x5c0] sm:$0xff] }
 0xda3   :  { %v13478_v3 = vpack.c.bf16 %v8817_v22, %v8815_v27  ;;  %v8566_v20 = vld [vmem:[#allocation16 + $0x1d0] sm:$0xff]  ;;  %v8569_v22 = vld [vmem:[#allocation16 + $0x1e8] sm:$0xff] }
 0xda5   :  { %13331 = vmatpush1.bf16.msra.mxu1 %v13330_v25  ;;  %13459 = vmatpush1.bf16.msra.mxu0 %v13458_v31  ;;  %v8550_v25 = vld [vmem:[#allocation16 + $0x150] sm:$0xff]  ;;  %v13352_v31 = vpack.c.bf16 %v8551_v49, %v8549_v63  ;;  %v8571_v63 = vld [vmem:[#allocation16 + $0x1f8] sm:$0xff]  ;;  %v8840_v49 = vld [vmem:[#allocation16 + $0x5e8] sm:$0xff] }
 0xda6   :  { %13333 = vmatprep.subr.bf16.mxu1 %v13332_v34  ;;  %13461 = vmatprep.subr.bf16.mxu0 %v13460_v6  ;;  %v8821_v34 = vld [vmem:[#allocation16 + $0x550] sm:$0xff]  ;;  %v8553_v6 = vld [vmem:[#allocation16 + $0x168] sm:$0xff]  ;;  %v13354_v55 = vpack.c.bf16 %v8550_v25, %v8548_v32  ;;  %v13372_v30 = vpack.c.bf16 %v8571_v63, %v8569_v22  ;;  %v13500_v32 = vpack.c.bf16 %v8842_v18, %v8840_v49  ;;  %v8584_v63 = vld [vmem:[#allocation16 + $0x260] sm:$0xff] }
 0xda7   :  { %v13482_v57 = vpack.c.bf16 %v8821_v34, %v8819_v12  ;;  %v8573_v34 = vld [vmem:[#allocation16 + $0x208] sm:$0xff]  ;;  %v8586_v49 = vld [vmem:[#allocation16 + $0x270] sm:$0xff] }
 0xda9   :  { %13335 = vmatpush1.bf16.msra.mxu1 %v13334_v16  ;;  %13463 = vmatpush1.bf16.msra.mxu0 %v13462_v5  ;;  %v8554_v16 = vld [vmem:[#allocation16 + $0x170] sm:$0xff]  ;;  %v13356_v5 = vpack.c.bf16 %v8555_v60, %v8553_v6  ;;  %v8575_v6 = vld [vmem:[#allocation16 + $0x218] sm:$0xff]  ;;  %v8844_v60 = vld [vmem:[#allocation16 + $0x608] sm:$0xff] }
 0xdaa   :  { %13337 = vmatprep.subr.bf16.mxu1 %v13336_v0  ;;  %13465 = vmatprep.subr.bf16.mxu0 %v13464_v41  ;;  %v8825_v0 = vld [vmem:[#allocation16 + $0x570] sm:$0xff]  ;;  %v8557_v41 = vld [vmem:[#allocation16 + $0x188] sm:$0xff]  ;;  %v13358_v45 = vpack.c.bf16 %v8554_v16, %v8552_v7  ;;  %v13376_v37 = vpack.c.bf16 %v8575_v6, %v8573_v34  ;;  %v8588_v6 = vld [vmem:[#allocation16 + $0x280] sm:$0xff] }
 0xdab   :  { %v13486_v15 = vpack.c.bf16 %v8825_v0, %v8823_v40  ;;  %v8574_v40 = vld [vmem:[#allocation16 + $0x210] sm:$0xff]  ;;  %v8843_v0 = vld [vmem:[#allocation16 + $0x600] sm:$0xff] }
 0xdad   :  { %13339 = vmatpush1.bf16.msra.mxu1 %v13338_v26  ;;  %13467 = vmatpush1.bf16.msra.mxu0 %v13466_v52  ;;  %v8558_v26 = vld [vmem:[#allocation16 + $0x190] sm:$0xff]  ;;  %v13360_v52 = vpack.c.bf16 %v8559_v21, %v8557_v41  ;;  %v8577_v21 = vld [vmem:[#allocation16 + $0x228] sm:$0xff] }
 0xdae   :  { %13341 = vmatprep.subr.bf16.mxu1 %v13340_v62  ;;  %13469 = vmatprep.subr.bf16.mxu0 %v13468_v56  ;;  %v8829_v62 = vld [vmem:[#allocation16 + $0x590] sm:$0xff]  ;;  %v8561_v56 = vld [vmem:[#allocation16 + $0x1a8] sm:$0xff]  ;;  %v13362_v4 = vpack.c.bf16 %v8558_v26, %v8556_v13 }
 0xdaf   :  { %v13490_v10 = vpack.c.bf16 %v8829_v62, %v8827_v53  ;;  %v8845_v41 = vld [vmem:[#allocation16 + $0x610] sm:$0xff] }
 0xdb1   :  { %13343 = vmatpush1.bf16.msra.mxu1 %v13342_v36  ;;  %13471 = vmatpush1.bf16.msra.mxu0 %v13470_v14  ;;  %v8562_v36 = vld [vmem:[#allocation16 + $0x1b0] sm:$0xff]  ;;  %v13364_v14 = vpack.c.bf16 %v8563_v58, %v8561_v56  ;;  %v13506_v58 = vpack.c.bf16 %v8845_v41, %v8843_v0  ;;  %v8592_v41 = vld [vmem:[#allocation16 + $0x2a0] sm:$0xff] }
 0xdb2   :  { %13345 = vmatprep.subr.bf16.mxu1 %v13344_v28  ;;  %13473 = vmatprep.subr.bf16.mxu0 %v13472_v1  ;;  %v8833_v28 = vld [vmem:[#allocation16 + $0x5b0] sm:$0xff]  ;;  %v8565_v1 = vld [vmem:[#allocation16 + $0x1c8] sm:$0xff]  ;;  %v13366_v43 = vpack.c.bf16 %v8562_v36, %v8560_v50  ;;  %v8847_v36 = vld [vmem:[#allocation16 + $0x620] sm:$0xff] }
 0xdb3   :  { %v13494_v11 = vpack.c.bf16 %v8833_v28, %v8831_v61  ;;  %v13368_v17 = vpack.c.bf16 %v8567_v8, %v8565_v1  ;;  %v8583_v61 = vld [vmem:[#allocation16 + $0x258] sm:$0xff]  ;;  %v8852_v28 = vld [vmem:[#allocation16 + $0x648] sm:$0xff]  ;;  %v13382_v8 = vpack.c.bf16 %v8578_v29, %v8576_v44  ;;  %v8598_v44 = vld [vmem:[#allocation16 + $0x2d0] sm:$0xff] }
 0xdb4   :  { %v8854_v1 = vld [vmem:[#allocation16 + $0x658] sm:$0xff] }
 0xdb5   :  { %13347 = vmatpush1.bf16.msra.mxu1 %v13346_v2  ;;  %13475 = vmatpush1.bf16.msra.mxu0 %v13474_v54  ;;  %v13496_v2 = vpack.c.bf16 %v8838_v24, %v8836_v39  ;;  %v8564_v54 = vld [vmem:[#allocation16 + $0x1c0] sm:$0xff] }
 0xdb6   :  { %13349 = vmatprep.subr.bf16.mxu1 %v13348_v48  ;;  %13477 = vmatprep.subr.bf16.mxu0 %v13476_v9  ;;  %v13370_v48 = vpack.c.bf16 %v8566_v20, %v8564_v54  ;;  %v8837_v9 = vld [vmem:[#allocation16 + $0x5d0] sm:$0xff]  ;;  %v8580_v24 = vld [vmem:[#allocation16 + $0x240] sm:$0xff]  ;;  %v8585_v20 = vld [vmem:[#allocation16 + $0x268] sm:$0xff] }
 0xdb7   :  { %v13498_v27 = vpack.c.bf16 %v8837_v9, %v8835_v59  ;;  %v8853_v54 = vld [vmem:[#allocation16 + $0x650] sm:$0xff]  ;;  %v8587_v59 = vld [vmem:[#allocation16 + $0x278] sm:$0xff] }
 0xdb8   :  { %v8858_v9 = vld [vmem:[#allocation16 + $0x678] sm:$0xff] }
 0xdb9   :  { %13351 = vmatpush1.bf16.msra.mxu1 %v13350_v19  ;;  %13479 = vmatpush1.bf16.msra.mxu0 %v13478_v3  ;;  %v8568_v19 = vld [vmem:[#allocation16 + $0x1e0] sm:$0xff]  ;;  %v8570_v3 = vld [vmem:[#allocation16 + $0x1f0] sm:$0xff] }
 0xdba   :  { %13353 = vmatprep.subr.bf16.mxu1 %v13352_v31  ;;  %13481 = vmatprep.subr.bf16.mxu0 %v13480_v33  ;;  %v13374_v25 = vpack.c.bf16 %v8570_v3, %v8568_v19  ;;  %v8839_v31 = vld [vmem:[#allocation16 + $0x5e0] sm:$0xff]  ;;  %v8841_v33 = vld [vmem:[#allocation16 + $0x5f0] sm:$0xff] }
 0xdbb   :  { %v13502_v12 = vpack.c.bf16 %v8841_v33, %v8839_v31  ;;  %v8855_v19 = vld [vmem:[#allocation16 + $0x660] sm:$0xff]  ;;  %v8857_v3 = vld [vmem:[#allocation16 + $0x670] sm:$0xff]  ;;  %v8860_v31 = vld [vmem:[#allocation16 + $0x688] sm:$0xff] }
 0xdbc   :  { %v8862_v33 = vld [vmem:[#allocation16 + $0x698] sm:$0xff]  ;;  %v13518_v34 = vpack.c.bf16 %v8857_v3, %v8855_v19  ;;  %v8609_v19 = vld [vmem:[#allocation16 + $0x328] sm:$0xff] }
 0xdbd   :  { %13355 = vmatpush1.bf16.msra.mxu1 %v13354_v55  ;;  %13483 = vmatpush1.bf16.msra.mxu0 %v13482_v57  ;;  %v13504_v55 = vpack.c.bf16 %v8846_v51, %v8844_v60  ;;  %v8590_v60 = vld [vmem:[#allocation16 + $0x290] sm:$0xff]  ;;  %v13520_v51 = vpack.c.bf16 %v8862_v33, %v8860_v31  ;;  %v8611_v3 = vld [vmem:[#allocation16 + $0x338] sm:$0xff] }
 0xdbe   :  { %13357 = vmatprep.subr.bf16.mxu1 %v13356_v5  ;;  %13485 = vmatprep.subr.bf16.mxu0 %v13484_v38  ;;  %v8572_v38 = vld [vmem:[#allocation16 + $0x200] sm:$0xff] }
 0xdbf   :  { %v13378_v56 = vpack.c.bf16 %v8574_v40, %v8572_v38  ;;  %v8866_v38 = vld [vmem:[#allocation16 + $0x6b8] sm:$0xff]  ;;  %v13394_v40 = vpack.c.bf16 %v8590_v60, %v8588_v6  ;;  %v13412_v6 = vpack.c.bf16 %v8611_v3, %v8609_v19  ;;  %v8900_v19 = vld [vmem:[#allocation16 + $0x7c8] sm:$0xff] }
 0xdc0   :  { %v8902_v3 = vld [vmem:[#allocation16 + $0x7d8] sm:$0xff] }
 0xdc1   :  { %13359 = vmatpush1.bf16.msra.mxu1 %v13358_v45  ;;  %13487 = vmatpush1.bf16.msra.mxu0 %v13486_v15  ;;  %v8848_v45 = vld [vmem:[#allocation16 + $0x628] sm:$0xff]  ;;  %v8850_v15 = vld [vmem:[#allocation16 + $0x638] sm:$0xff] }
 0xdc2   :  { %13361 = vmatprep.subr.bf16.mxu1 %v13360_v52  ;;  %13489 = vmatprep.subr.bf16.mxu0 %v13488_v46  ;;  %v13508_v50 = vpack.c.bf16 %v8850_v15, %v8848_v45  ;;  %v8863_v45 = vld [vmem:[#allocation16 + $0x6a0] sm:$0xff]  ;;  %v8865_v15 = vld [vmem:[#allocation16 + $0x6b0] sm:$0xff] }
 0xdc5   :  { %13363 = vmatpush1.bf16.msra.mxu1 %v13362_v4  ;;  %13491 = vmatpush1.bf16.msra.mxu0 %v13490_v10  ;;  %v13380_v10 = vpack.c.bf16 %v8579_v23, %v8577_v21  ;;  %v8594_v21 = vld [vmem:[#allocation16 + $0x2b0] sm:$0xff] }
 0xdc6   :  { %13365 = vmatprep.subr.bf16.mxu1 %v13364_v14  ;;  %13493 = vmatprep.subr.bf16.mxu0 %v13492_v35  ;;  %v8849_v14 = vld [vmem:[#allocation16 + $0x630] sm:$0xff]  ;;  %v8581_v35 = vld [vmem:[#allocation16 + $0x248] sm:$0xff] }
 0xdc7   :  { %v13510_v39 = vpack.c.bf16 %v8849_v14, %v8847_v36  ;;  %v8601_v36 = vld [vmem:[#allocation16 + $0x2e8] sm:$0xff]  ;;  %v8603_v14 = vld [vmem:[#allocation16 + $0x2f8] sm:$0xff] }
 0xdc9   :  { %13367 = vmatpush1.bf16.msra.mxu1 %v13366_v43  ;;  %13495 = vmatpush1.bf16.msra.mxu0 %v13494_v11  ;;  %v8582_v43 = vld [vmem:[#allocation16 + $0x250] sm:$0xff]  ;;  %v13384_v11 = vpack.c.bf16 %v8583_v61, %v8581_v35  ;;  %v8872_v35 = vld [vmem:[#allocation16 + $0x6e8] sm:$0xff]  ;;  %v8874_v61 = vld [vmem:[#allocation16 + $0x6f8] sm:$0xff] }
 0xdca   :  { %13369 = vmatprep.subr.bf16.mxu1 %v13368_v17  ;;  %13497 = vmatprep.subr.bf16.mxu0 %v13496_v2  ;;  %v13512_v17 = vpack.c.bf16 %v8854_v1, %v8852_v28  ;;  %v8851_v2 = vld [vmem:[#allocation16 + $0x640] sm:$0xff] }
 0xdcb   :  { %v13514_v22 = vpack.c.bf16 %v8853_v54, %v8851_v2  ;;  %v8605_v2 = vld [vmem:[#allocation16 + $0x308] sm:$0xff]  ;;  %v8607_v54 = vld [vmem:[#allocation16 + $0x318] sm:$0xff] }
 0xdcd   :  { %13371 = vmatpush1.bf16.msra.mxu1 %v13370_v48  ;;  %13499 = vmatpush1.bf16.msra.mxu0 %v13498_v27  ;;  %v8856_v48 = vld [vmem:[#allocation16 + $0x668] sm:$0xff]  ;;  %v13386_v27 = vpack.c.bf16 %v8582_v43, %v8580_v24  ;;  %v13404_v24 = vpack.c.bf16 %v8603_v14, %v8601_v36  ;;  %v13532_v43 = vpack.c.bf16 %v8874_v61, %v8872_v35  ;;  %v8894_v14 = vld [vmem:[#allocation16 + $0x798] sm:$0xff] }
 0xdce   :  { %13373 = vmatprep.subr.bf16.mxu1 %v13372_v30  ;;  %13501 = vmatprep.subr.bf16.mxu0 %v13500_v32  ;;  %v13388_v30 = vpack.c.bf16 %v8587_v59, %v8585_v20  ;;  %v13516_v18 = vpack.c.bf16 %v8858_v9, %v8856_v48  ;;  %v8589_v32 = vld [vmem:[#allocation16 + $0x288] sm:$0xff]  ;;  %v8878_v59 = vld [vmem:[#allocation16 + $0x718] sm:$0xff] }
 0xdcf   :  { %v8876_v20 = vld [vmem:[#allocation16 + $0x708] sm:$0xff] }
 0xdd0   :  { %v8892_v36 = vld [vmem:[#allocation16 + $0x788] sm:$0xff] }
 0xdd1   :  { %13375 = vmatpush1.bf16.msra.mxu1 %v13374_v25  ;;  %13503 = vmatpush1.bf16.msra.mxu0 %v13502_v12  ;;  %v8591_v25 = vld [vmem:[#allocation16 + $0x298] sm:$0xff]  ;;  %v13390_v12 = vpack.c.bf16 %v8586_v49, %v8584_v63  ;;  %v13408_v63 = vpack.c.bf16 %v8607_v54, %v8605_v2  ;;  %v13536_v49 = vpack.c.bf16 %v8878_v59, %v8876_v20  ;;  %v8896_v2 = vld [vmem:[#allocation16 + $0x7a8] sm:$0xff] }
 0xdd2   :  { %13377 = vmatprep.subr.bf16.mxu1 %v13376_v37  ;;  %13505 = vmatprep.subr.bf16.mxu0 %v13504_v55  ;;  %v13392_v37 = vpack.c.bf16 %v8591_v25, %v8589_v32  ;;  %v8859_v55 = vld [vmem:[#allocation16 + $0x680] sm:$0xff]  ;;  %v8880_v32 = vld [vmem:[#allocation16 + $0x728] sm:$0xff]  ;;  %v8882_v25 = vld [vmem:[#allocation16 + $0x738] sm:$0xff] }
 0xdd3   :  { %v13540_v60 = vpack.c.bf16 %v8882_v25, %v8880_v32  ;;  %v8898_v54 = vld [vmem:[#allocation16 + $0x7b8] sm:$0xff] }
 0xe63   :  { %v8281_v57 = vpop.f32.mrb[118].mxu1  ;;  %v8352_v7 = vpop.f32.mrb[70].mxu0 }
 0xe64   :  { %v8283_v16 = vpop.f32.mrb[119].mxu1  ;;  %v8354_v5 = vpop.f32.mrb[71].mxu0 }
 0xe67   :  { %v8428_v42 = vpop.f32.mrb[120].mxu1  ;;  %v8499_v13 = vpop.f32.mrb[72].mxu0 }
 0xe68   :  { %v8504_v26 = vmax.f32 %v8281_v57, %v8428_v42  ;;  %v8430_v52 = vpop.f32.mrb[121].mxu1  ;;  %v15816_v46 = vmax.f32 %v8352_v7, %v8499_v13  ;;  %v8501_v53 = vpop.f32.mrb[73].mxu0  ;;  %v8861_v57 = vld [vmem:[#allocation16 + $0x690] sm:$0xff]  ;;  %v8593_v7 = vld [vmem:[#allocation16 + $0x2a8] sm:$0xff] }
 0xe69   :  { %v8505_v62 = vmax.f32 %v8283_v16, %v8430_v52  ;;  %v8507_v4 = vmax.f32 %v8354_v5, %v8501_v53  ;;  %v8595_v16 = vld [vmem:[#allocation16 + $0x2b8] sm:$0xff]  ;;  %v8864_v5 = vld [vmem:[#allocation16 + $0x6a8] sm:$0xff]  ;;  %v13522_v0 = vpack.c.bf16 %v8861_v57, %v8859_v55 }
 0xe6a   :  { %v13396_v42 = vpack.c.bf16 %v8595_v16, %v8593_v7  ;;  %v13524_v23 = vpack.c.bf16 %v8866_v38, %v8864_v5  ;;  %v8597_v13 = vld [vmem:[#allocation16 + $0x2c8] sm:$0xff]  ;;  %v8870_v53 = vld [vmem:[#allocation16 + $0x6d8] sm:$0xff] }
 0xe6b   :  { %8700 = vmatprep.mubr.f32.mxu1 %v8505_v62  ;;  %8971 = vmatprep.mubr.f32.mxu0 %v8505_v62  ;;  %v8868_v52 = vld [vmem:[#allocation16 + $0x6c8] sm:$0xff]  ;;  %v13398_v62 = vpack.c.bf16 %v8594_v21, %v8592_v41  ;;  %v8615_v57 = vld [vmem:[#allocation16 + $0x358] sm:$0xff] }
 0xe6c   :  { %8701 = vmatmul.mubr.f32.vlgmr.msra.gmra.mrb[122].mxu1 %v8504_v26  ;;  %8972 = vmatmul.mubr.f32.vlgmr.msra.gmra.mrb[74].mxu0 %v8504_v26  ;;  %v8599_v26 = vld [vmem:[#allocation16 + $0x2d8] sm:$0xff]  ;;  %v8613_v55 = vld [vmem:[#allocation16 + $0x348] sm:$0xff] }
 0xe6d   :  { %13379 = vmatpush1.bf16.msra.mxu1 %v13378_v56  ;;  %13507 = vmatpush1.bf16.msra.mxu0 %v13506_v58  ;;  %v13526_v56 = vpack.c.bf16 %v8865_v15, %v8863_v45  ;;  %v8596_v58 = vld [vmem:[#allocation16 + $0x2c0] sm:$0xff]  ;;  %v13400_v29 = vpack.c.bf16 %v8599_v26, %v8597_v13  ;;  %v8884_v7 = vld [vmem:[#allocation16 + $0x748] sm:$0xff]  ;;  %v8886_v16 = vld [vmem:[#allocation16 + $0x758] sm:$0xff]  ;;  %v13416_v41 = vpack.c.bf16 %v8615_v57, %v8613_v55 }
 0xe6e   :  { %13381 = vmatprep.subr.bf16.mxu1 %v13380_v10  ;;  %13509 = vmatprep.subr.bf16.mxu0 %v13508_v50  ;;  %v8867_v10 = vld [vmem:[#allocation16 + $0x6c0] sm:$0xff]  ;;  %v8869_v50 = vld [vmem:[#allocation16 + $0x6d0] sm:$0xff]  ;;  %v13402_v28 = vpack.c.bf16 %v8598_v44, %v8596_v58  ;;  %v13544_v21 = vpack.c.bf16 %v8886_v16, %v8884_v7  ;;  %v8617_v45 = vld [vmem:[#allocation16 + $0x368] sm:$0xff] }
 0xe6f   :  { %8771 = vmatprep.mubr.f32.mxu1 %v8507_v4  ;;  %9042 = vmatprep.mubr.f32.mxu0 %v8507_v4  ;;  %v13528_v4 = vpack.c.bf16 %v8870_v53, %v8868_v52  ;;  %v13530_v1 = vpack.c.bf16 %v8869_v50, %v8867_v10  ;;  %v8619_v15 = vld [vmem:[#allocation16 + $0x378] sm:$0xff]  ;;  %v8888_v13 = vld [vmem:[#allocation16 + $0x768] sm:$0xff] }
 0xe70   :  { %v8890_v26 = vld [vmem:[#allocation16 + $0x778] sm:$0xff]  ;;  %v13420_v58 = vpack.c.bf16 %v8619_v15, %v8617_v45  ;;  %v8621_v10 = vld [vmem:[#allocation16 + $0x388] sm:$0xff]  ;;  %v9333_v45 = vld [vmem:[#allocation19 + $0x408] sm:$0xff] }
 0xe71   :  { %13383 = vmatpush1.bf16.msra.mxu1 %v13382_v8  ;;  %13511 = vmatpush1.bf16.msra.mxu0 %v13510_v39  ;;  %v8600_v8 = vld [vmem:[#allocation16 + $0x2e0] sm:$0xff]  ;;  %v8602_v39 = vld [vmem:[#allocation16 + $0x2f0] sm:$0xff]  ;;  %v13548_v44 = vpack.c.bf16 %v8890_v26, %v8888_v13  ;;  %v8623_v50 = vld [vmem:[#allocation16 + $0x398] sm:$0xff] }
 0xe72   :  { %13385 = vmatprep.subr.bf16.mxu1 %v13384_v11  ;;  %13513 = vmatprep.subr.bf16.mxu0 %v13512_v17  ;;  %v8871_v11 = vld [vmem:[#allocation16 + $0x6e0] sm:$0xff]  ;;  %v8873_v17 = vld [vmem:[#allocation16 + $0x6f0] sm:$0xff]  ;;  %v13406_v48 = vpack.c.bf16 %v8602_v39, %v8600_v8  ;;  %v13424_v8 = vpack.c.bf16 %v8623_v50, %v8621_v10  ;;  %v13552_v39 = vpack.c.bf16 %v8894_v14, %v8892_v36  ;;  %v8904_v55 = vld [vmem:[#allocation16 + $0x7e8] sm:$0xff] }
 0xe73   :  { %v13534_v9 = vpack.c.bf16 %v8873_v17, %v8871_v11  ;;  %v8625_v11 = vld [vmem:[#allocation16 + $0x3a8] sm:$0xff]  ;;  %v8627_v17 = vld [vmem:[#allocation16 + $0x3b8] sm:$0xff]  ;;  %v9337_v15 = vld [vmem:[#allocation19 + $0x428] sm:$0xff] }
 0xe74   :  { %v8906_v57 = vld [vmem:[#allocation16 + $0x7f8] sm:$0xff]  ;;  %v9335_v13 = vld [vmem:[#allocation19 + $0x418] sm:$0xff]  ;;  %v9341_v50 = vld [vmem:[#allocation19 + $0x448] sm:$0xff] }
 0xe75   :  { %13387 = vmatpush1.bf16.msra.mxu1 %v13386_v27  ;;  %13515 = vmatpush1.bf16.msra.mxu0 %v13514_v22  ;;  %v8604_v27 = vld [vmem:[#allocation16 + $0x300] sm:$0xff]  ;;  %v8606_v22 = vld [vmem:[#allocation16 + $0x310] sm:$0xff]  ;;  %v9338_v10 = vld [vmem:[#allocation19 + $0x430] sm:$0xff] }
 0xe76   :  { %13389 = vmatprep.subr.bf16.mxu1 %v13388_v30  ;;  %13517 = vmatprep.subr.bf16.mxu0 %v13516_v18  ;;  %v8875_v30 = vld [vmem:[#allocation16 + $0x700] sm:$0xff]  ;;  %v8877_v18 = vld [vmem:[#allocation16 + $0x710] sm:$0xff]  ;;  %v13410_v31 = vpack.c.bf16 %v8606_v22, %v8604_v27  ;;  %v13428_v27 = vpack.c.bf16 %v8627_v17, %v8625_v11  ;;  %v13556_v22 = vpack.c.bf16 %v8898_v54, %v8896_v2  ;;  %v9344_v11 = vld [vmem:[#allocation19 + $0x460] sm:$0xff] }
 0xe77   :  { %v13538_v33 = vpack.c.bf16 %v8877_v18, %v8875_v30  ;;  %v8629_v30 = vld [vmem:[#allocation16 + $0x3c8] sm:$0xff]  ;;  %v8631_v18 = vld [vmem:[#allocation16 + $0x3d8] sm:$0xff]  ;;  %v9345_v36 = vld [vmem:[#allocation19 + $0x468] sm:$0xff] }
 0xe78   :  { %v9343_v14 = vld [vmem:[#allocation19 + $0x458] sm:$0xff]  ;;  %v13572_v17 = vpack.c.bf16 %v9345_v36, %v9341_v50  ;;  %v9342_v54 = vld [vmem:[#allocation19 + $0x450] sm:$0xff] }
 0xe79   :  { %13391 = vmatpush1.bf16.msra.mxu1 %v13390_v12  ;;  %13519 = vmatpush1.bf16.msra.mxu0 %v13518_v34  ;;  %v8608_v12 = vld [vmem:[#allocation16 + $0x320] sm:$0xff]  ;;  %v8610_v34 = vld [vmem:[#allocation16 + $0x330] sm:$0xff]  ;;  %v9374_v36 = vld [vmem:[#allocation19 + $0x550] sm:$0xff] }
 0xe7a   :  { %13393 = vmatprep.subr.bf16.mxu1 %v13392_v37  ;;  %13521 = vmatprep.subr.bf16.mxu0 %v13520_v51  ;;  %v8879_v37 = vld [vmem:[#allocation16 + $0x720] sm:$0xff]  ;;  %v8881_v51 = vld [vmem:[#allocation16 + $0x730] sm:$0xff]  ;;  %v13414_v5 = vpack.c.bf16 %v8610_v34, %v8608_v12  ;;  %v13432_v12 = vpack.c.bf16 %v8631_v18, %v8629_v30  ;;  %v13560_v34 = vpack.c.bf16 %v8902_v3, %v8900_v19  ;;  %v9352_v30 = vld [vmem:[#allocation19 + $0x4a0] sm:$0xff] }
 0xe7b   :  { %v13542_v38 = vpack.c.bf16 %v8881_v51, %v8879_v37  ;;  %v8633_v37 = vld [vmem:[#allocation16 + $0x3e8] sm:$0xff]  ;;  %v8635_v51 = vld [vmem:[#allocation16 + $0x3f8] sm:$0xff] }
 0xe7c   :  { %v9350_v3 = vld [vmem:[#allocation19 + $0x490] sm:$0xff] }
 0xe7d   :  { %13395 = vmatpush1.bf16.msra.mxu1 %v13394_v40  ;;  %13523 = vmatpush1.bf16.msra.mxu0 %v13522_v0  ;;  %v8612_v40 = vld [vmem:[#allocation16 + $0x340] sm:$0xff]  ;;  %v8614_v0 = vld [vmem:[#allocation16 + $0x350] sm:$0xff] }
 0xe7e   :  { %13397 = vmatprep.subr.bf16.mxu1 %v13396_v42  ;;  %13525 = vmatprep.subr.bf16.mxu0 %v13524_v23  ;;  %v8883_v42 = vld [vmem:[#allocation16 + $0x740] sm:$0xff]  ;;  %v8885_v23 = vld [vmem:[#allocation16 + $0x750] sm:$0xff]  ;;  %v13418_v52 = vpack.c.bf16 %v8614_v0, %v8612_v40  ;;  %v13564_v40 = vpack.c.bf16 %v8906_v57, %v8904_v55  ;;  %v9358_v57 = vld [vmem:[#allocation19 + $0x4d0] sm:$0xff] }
 0xe7f   :  { %v13546_v53 = vpack.c.bf16 %v8885_v23, %v8883_v42  ;;  %v8634_v0 = vld [vmem:[#allocation16 + $0x3f0] sm:$0xff] }
 0xe81   :  { %13399 = vmatpush1.bf16.msra.mxu1 %v13398_v62  ;;  %13527 = vmatpush1.bf16.msra.mxu0 %v13526_v56  ;;  %v8616_v62 = vld [vmem:[#allocation16 + $0x360] sm:$0xff]  ;;  %v8618_v56 = vld [vmem:[#allocation16 + $0x370] sm:$0xff] }
 0xe82   :  { %13401 = vmatprep.subr.bf16.mxu1 %v13400_v29  ;;  %13529 = vmatprep.subr.bf16.mxu0 %v13528_v4  ;;  %v8887_v29 = vld [vmem:[#allocation16 + $0x760] sm:$0xff]  ;;  %v8889_v4 = vld [vmem:[#allocation16 + $0x770] sm:$0xff]  ;;  %v13422_v35 = vpack.c.bf16 %v8618_v56, %v8616_v62  ;;  %v9332_v62 = vld [vmem:[#allocation19 + $0x400] sm:$0xff] }
 0xe83   :  { %v13550_v61 = vpack.c.bf16 %v8889_v4, %v8887_v29  ;;  %v9336_v56 = vld [vmem:[#allocation19 + $0x420] sm:$0xff]  ;;  %v9334_v4 = vld [vmem:[#allocation19 + $0x410] sm:$0xff] }
 0xe85   :  { %13403 = vmatpush1.bf16.msra.mxu1 %v13402_v28  ;;  %13531 = vmatpush1.bf16.msra.mxu0 %v13530_v1  ;;  %v8620_v28 = vld [vmem:[#allocation16 + $0x380] sm:$0xff]  ;;  %v8622_v1 = vld [vmem:[#allocation16 + $0x390] sm:$0xff] }
 0xe86   :  { %13405 = vmatprep.subr.bf16.mxu1 %v13404_v24  ;;  %13533 = vmatprep.subr.bf16.mxu0 %v13532_v43  ;;  %v8891_v24 = vld [vmem:[#allocation16 + $0x780] sm:$0xff]  ;;  %v8893_v43 = vld [vmem:[#allocation16 + $0x790] sm:$0xff]  ;;  %v13426_v20 = vpack.c.bf16 %v8622_v1, %v8620_v28  ;;  %v13568_v1 = vpack.c.bf16 %v9337_v15, %v9333_v45  ;;  %v9366_v15 = vld [vmem:[#allocation19 + $0x510] sm:$0xff] }
 0xe87   :  { %v13554_v59 = vpack.c.bf16 %v8893_v43, %v8891_v24  ;;  %v9051_v28 = vld [vmem:[#allocation17] sm:$0x3]  ;;  %v13634_v24 = vpack.c.bf16 %v9338_v10, %v9334_v4  ;;  %v9340_v43 = vld [vmem:[#allocation19 + $0x440] sm:$0xff] }
 0xe88   :  { %v9376_v4 = vld [vmem:[#allocation19 + $0x560] sm:$0xff] }
 0xe89   :  { %13407 = vmatpush1.bf16.msra.mxu1 %v13406_v48  ;;  %13535 = vmatpush1.bf16.msra.mxu0 %v13534_v9  ;;  %v8624_v48 = vld [vmem:[#allocation16 + $0x3a0] sm:$0xff]  ;;  %v8626_v9 = vld [vmem:[#allocation16 + $0x3b0] sm:$0xff] }
 0xe8a   :  { %13409 = vmatprep.subr.bf16.mxu1 %v13408_v63  ;;  %13537 = vmatprep.subr.bf16.mxu0 %v13536_v49  ;;  %v8895_v63 = vld [vmem:[#allocation16 + $0x7a0] sm:$0xff]  ;;  %v8897_v49 = vld [vmem:[#allocation16 + $0x7b0] sm:$0xff]  ;;  %v13430_v32 = vpack.c.bf16 %v8626_v9, %v8624_v48 }
 0xe8b   :  { %v13558_v25 = vpack.c.bf16 %v8897_v49, %v8895_v63  ;;  %v9353_v48 = vld [vmem:[#allocation19 + $0x4a8] sm:$0xff]  ;;  %v9351_v9 = vld [vmem:[#allocation19 + $0x498] sm:$0xff]  ;;  %v9348_v49 = vld [vmem:[#allocation19 + $0x480] sm:$0xff] }
 0xe8d   :  { %13411 = vmatpush1.bf16.msra.mxu1 %v13410_v31  ;;  %13539 = vmatpush1.bf16.msra.mxu0 %v13538_v33  ;;  %v8628_v31 = vld [vmem:[#allocation16 + $0x3c0] sm:$0xff]  ;;  %v8630_v33 = vld [vmem:[#allocation16 + $0x3d0] sm:$0xff] }
 0xe8e   :  { %13413 = vmatprep.subr.bf16.mxu1 %v13412_v6  ;;  %13541 = vmatprep.subr.bf16.mxu0 %v13540_v60  ;;  %v8899_v6 = vld [vmem:[#allocation16 + $0x7c0] sm:$0xff]  ;;  %v8901_v60 = vld [vmem:[#allocation16 + $0x7d0] sm:$0xff]  ;;  %v13434_v7 = vpack.c.bf16 %v8630_v33, %v8628_v31 }
 0xe8f   :  { %v13562_v16 = vpack.c.bf16 %v8901_v60, %v8899_v6  ;;  %v9361_v31 = vld [vmem:[#allocation19 + $0x4e8] sm:$0xff]  ;;  %v9359_v33 = vld [vmem:[#allocation19 + $0x4d8] sm:$0xff]  ;;  %v9356_v60 = vld [vmem:[#allocation19 + $0x4c0] sm:$0xff] }
 0xe91   :  { %13415 = vmatpush1.bf16.msra.mxu1 %v13414_v5  ;;  %13543 = vmatpush1.bf16.msra.mxu0 %v13542_v38  ;;  %v8632_v5 = vld [vmem:[#allocation16 + $0x3e0] sm:$0xff]  ;;  %v13436_v38 = vpack.c.bf16 %v8635_v51, %v8633_v37  ;;  %v9360_v37 = vld [vmem:[#allocation19 + $0x4e0] sm:$0xff] }
 0xe92   :  { %13417 = vmatprep.subr.bf16.mxu1 %v13416_v41  ;;  %13545 = vmatprep.subr.bf16.mxu0 %v13544_v21  ;;  %v8903_v41 = vld [vmem:[#allocation16 + $0x7e0] sm:$0xff]  ;;  %v8905_v21 = vld [vmem:[#allocation16 + $0x7f0] sm:$0xff]  ;;  %v13438_v42 = vpack.c.bf16 %v8634_v0, %v8632_v5  ;;  %v13582_v0 = vpack.c.bf16 %v9360_v37, %v9356_v60  ;;  %v9400_v60 = vld [vmem:[#allocation19 + $0x620] sm:$0xff] }
 0xe93   :  { %v13566_v23 = vpack.c.bf16 %v8905_v21, %v8903_v41  ;;  %v9369_v5 = vld [vmem:[#allocation19 + $0x528] sm:$0xff]  ;;  %v9364_v21 = vld [vmem:[#allocation19 + $0x500] sm:$0xff] }
 0xe95   :  { %13419 = vmatpush1.bf16.msra.mxu1 %v13418_v52  ;;  %13547 = vmatpush1.bf16.msra.mxu0 %v13546_v53  ;;  %v9339_v53 = vld [vmem:[#allocation19 + $0x438] sm:$0xff] }
 0xe96   :  { %13421 = vmatprep.subr.bf16.mxu1 %v13420_v58  ;;  %13549 = vmatprep.subr.bf16.mxu0 %v13548_v44 }
 0xe99   :  { %13423 = vmatpush1.bf16.msra.mxu1 %v13422_v35  ;;  %13551 = vmatpush1.bf16.msra.mxu0 %v13550_v61  ;;  %v9347_v35 = vld [vmem:[#allocation19 + $0x478] sm:$0xff] }
 0xe9a   :  { %13425 = vmatprep.subr.bf16.mxu1 %v13424_v8  ;;  %13553 = vmatprep.subr.bf16.mxu0 %v13552_v39  ;;  %v9256_v61 = vld [vmem:[#allocation17 + $0x2] sm:$0x3]  ;;  %v13632_v8 = vpack.c.bf16 %v9339_v53, %v9335_v13  ;;  %v13570_v39 = vpack.c.bf16 %v9336_v56, %v9332_v62  ;;  %v13636_v2 = vpack.c.bf16 %v9347_v35, %v9343_v14  ;;  %v9370_v13 = vld [vmem:[#allocation19 + $0x530] sm:$0xff]  ;;  %v9381_v35 = vld [vmem:[#allocation19 + $0x588] sm:$0xff] }
 0xe9b   :  { %v9375_v53 = vld [vmem:[#allocation19 + $0x558] sm:$0xff]  ;;  %v9378_v14 = vld [vmem:[#allocation19 + $0x570] sm:$0xff] }
 0xe9c   :  { %v9379_v62 = vld [vmem:[#allocation19 + $0x578] sm:$0xff] }
 0xe9d   :  { %13427 = vmatpush1.bf16.msra.mxu1 %v13426_v20  ;;  %13555 = vmatpush1.bf16.msra.mxu0 %v13554_v59  ;;  %v9346_v20 = vld [vmem:[#allocation19 + $0x470] sm:$0xff]  ;;  %v9349_v59 = vld [vmem:[#allocation19 + $0x488] sm:$0xff]  ;;  %v13652_v50 = vpack.c.bf16 %v9379_v62, %v9375_v53  ;;  %v9419_v53 = vld [vmem:[#allocation19 + $0x6b8] sm:$0xff] }
 0xe9e   :  { %13429 = vmatprep.subr.bf16.mxu1 %v13428_v27  ;;  %13557 = vmatprep.subr.bf16.mxu0 %v13556_v22  ;;  %v9355_v27 = vld [vmem:[#allocation19 + $0x4b8] sm:$0xff]  ;;  %v13574_v22 = vpack.c.bf16 %v9344_v11, %v9340_v43  ;;  %v13638_v63 = vpack.c.bf16 %v9346_v20, %v9342_v54  ;;  %v13576_v18 = vpack.c.bf16 %v9353_v48, %v9349_v59  ;;  %v9384_v43 = vld [vmem:[#allocation19 + $0x5a0] sm:$0xff]  ;;  %v9386_v54 = vld [vmem:[#allocation19 + $0x5b0] sm:$0xff] }
 0xe9f   :  { %v13640_v19 = vpack.c.bf16 %v9355_v27, %v9351_v9  ;;  %v9389_v20 = vld [vmem:[#allocation19 + $0x5c8] sm:$0xff]  ;;  %v9391_v48 = vld [vmem:[#allocation19 + $0x5d8] sm:$0xff] }
 0xea0   :  { %v9393_v59 = vld [vmem:[#allocation19 + $0x5e8] sm:$0xff]  ;;  %v9395_v9 = vld [vmem:[#allocation19 + $0x5f8] sm:$0xff] }
 0xea1   :  { %13431 = vmatpush1.bf16.msra.mxu1 %v13430_v32  ;;  %13559 = vmatpush1.bf16.msra.mxu0 %v13558_v25  ;;  %v9354_v32 = vld [vmem:[#allocation19 + $0x4b0] sm:$0xff]  ;;  %v9357_v25 = vld [vmem:[#allocation19 + $0x4c8] sm:$0xff] }
 0xea2   :  { %13433 = vmatprep.subr.bf16.mxu1 %v13432_v12  ;;  %13561 = vmatprep.subr.bf16.mxu0 %v13560_v34  ;;  %v9363_v12 = vld [vmem:[#allocation19 + $0x4f8] sm:$0xff]  ;;  %v13578_v34 = vpack.c.bf16 %v9352_v30, %v9348_v49  ;;  %v13642_v6 = vpack.c.bf16 %v9354_v32, %v9350_v3  ;;  %v13580_v51 = vpack.c.bf16 %v9361_v31, %v9357_v25  ;;  %v9392_v49 = vld [vmem:[#allocation19 + $0x5e0] sm:$0xff]  ;;  %v9394_v3 = vld [vmem:[#allocation19 + $0x5f0] sm:$0xff] }
 0xea3   :  { %v13644_v55 = vpack.c.bf16 %v9363_v12, %v9359_v33  ;;  %v13596_v30 = vpack.c.bf16 %v9393_v59, %v9389_v20  ;;  %v9397_v32 = vld [vmem:[#allocation19 + $0x608] sm:$0xff]  ;;  %v9399_v31 = vld [vmem:[#allocation19 + $0x618] sm:$0xff] }
 0xea4   :  { %v9401_v25 = vld [vmem:[#allocation19 + $0x628] sm:$0xff]  ;;  %v9403_v33 = vld [vmem:[#allocation19 + $0x638] sm:$0xff] }
 0xea5   :  { %13435 = vmatpush1.bf16.msra.mxu1 %v13434_v7  ;;  %13563 = vmatpush1.bf16.msra.mxu0 %v13562_v16  ;;  %v9362_v7 = vld [vmem:[#allocation19 + $0x4f0] sm:$0xff]  ;;  %v9365_v16 = vld [vmem:[#allocation19 + $0x508] sm:$0xff]  ;;  %v13600_v37 = vpack.c.bf16 %v9401_v25, %v9397_v32  ;;  %v9431_v59 = vld [vmem:[#allocation19 + $0x718] sm:$0xff] }
 0xea6   :  { %13437 = vmatprep.subr.bf16.mxu1 %v13436_v38  ;;  %13565 = vmatprep.subr.bf16.mxu0 %v13564_v40  ;;  %v9367_v38 = vld [vmem:[#allocation19 + $0x518] sm:$0xff]  ;;  %v13646_v41 = vpack.c.bf16 %v9362_v7, %v9358_v57  ;;  %v9402_v57 = vld [vmem:[#allocation19 + $0x630] sm:$0xff]  ;;  %v9405_v7 = vld [vmem:[#allocation19 + $0x648] sm:$0xff] }
 0xea7   :  { %v9371_v40 = vld [vmem:[#allocation19 + $0x538] sm:$0xff]  ;;  %v9433_v20 = vld [vmem:[#allocation19 + $0x728] sm:$0xff] }
 0xea8   :  { %v13648_v45 = vpack.c.bf16 %v9371_v40, %v9367_v38  ;;  %v9411_v38 = vld [vmem:[#allocation19 + $0x678] sm:$0xff]  ;;  %v9441_v32 = vld [vmem:[#allocation19 + $0x768] sm:$0xff] }
 0xea9   :  { %13439 = vmatpush1.bf16.msra.mxu1 %v13438_v42  ;;  %13567 = vmatpush1.bf16.msra.mxu0 %v13566_v23  ;;  %v9368_v42 = vld [vmem:[#allocation19 + $0x520] sm:$0xff]  ;;  %v13584_v23 = vpack.c.bf16 %v9369_v5, %v9365_v16  ;;  %v9409_v16 = vld [vmem:[#allocation19 + $0x668] sm:$0xff]  ;;  %v9407_v5 = vld [vmem:[#allocation19 + $0x658] sm:$0xff] }
 0xeaa   :  { %v13586_v56 = vpack.c.bf16 %v9368_v42, %v9364_v21  ;;  %v9408_v21 = vld [vmem:[#allocation19 + $0x660] sm:$0xff]  ;;  %v13604_v42 = vpack.c.bf16 %v9409_v16, %v9405_v7  ;;  %v9439_v25 = vld [vmem:[#allocation19 + $0x758] sm:$0xff]  ;;  %v9449_v7 = vld [vmem:[#allocation19 + $0x7a8] sm:$0xff] }
 0xeab   :  { %v9447_v16 = vld [vmem:[#allocation19 + $0x798] sm:$0xff] }
 0xeac   :  { %8772 = vmatmul.mubr.f32.vlgmr.msra.gmra.mrb[122].mxu1 %v15816_v46  ;;  %9043 = vmatmul.mubr.f32.vlgmr.msra.gmra.mrb[74].mxu0 %v15816_v46 }
 0xead   :  { %9324 = vmatprep.mubr.f32.mxu0 %v14726_v47  ;;  %9120 = vmatprep.mubr.f32.mxu1 %v14726_v47 }
 0xf7f   :  { %v8773_v26 = vpop.f32.mrb[122].mxu1  ;;  %v9044_v52 = vpop.f32.mrb[74].mxu0 }
 0xf80   :  { %v15822_v58 = vmax.f32 %v8773_v26, %v9044_v52  ;;  %v8775_v44 = vpop.f32.mrb[123].mxu1  ;;  %v9046_v29 = vpop.f32.mrb[75].mxu0  ;;  %v9373_v26 = vld [vmem:[#allocation19 + $0x548] sm:$0xff] }
 0xf81   :  { %v15824_v46 = vmax.f32 %v8775_v44, %v9046_v29  ;;  %v9377_v52 = vld [vmem:[#allocation19 + $0x568] sm:$0xff]  ;;  %v13650_v44 = vpack.c.bf16 %v9370_v13, %v9366_v15  ;;  %v9372_v29 = vld [vmem:[#allocation19 + $0x540] sm:$0xff]  ;;  %v9410_v15 = vld [vmem:[#allocation19 + $0x670] sm:$0xff] }
 0xf82   :  { %v13588_v10 = vpack.c.bf16 %v9377_v52, %v9373_v26  ;;  %v9413_v13 = vld [vmem:[#allocation19 + $0x688] sm:$0xff]  ;;  %v9415_v52 = vld [vmem:[#allocation19 + $0x698] sm:$0xff] }
 0xf83   :  { %9056 = vmatprep.subr.mxu1 %v15824_v46  ;;  %9260 = vmatprep.subr.mxu0 %v15824_v46  ;;  %v9417_v26 = vld [vmem:[#allocation19 + $0x6a8] sm:$0xff] }
 0xf84   :  { %9057 = vmatpush1.msra.mxu1 %v15822_v58  ;;  %9261 = vmatpush1.msra.mxu0 %v15822_v58 }
 0xf85   :  { %10869 = vmatmul.mubr.msk.f32.vlgmr.msra.gmra.mrb[76].mxu0 %vm9052_vm8, %v9256_v61  ;;  %10868 = vmatmul.mubr.msk.f32.vlgmr.msra.gmra.mrb[124].mxu1 %vm9052_vm8, %v9051_v28  ;;  %v9385_v61 = vld [vmem:[#allocation19 + $0x5a8] sm:$0xff]  ;;  %v9383_v28 = vld [vmem:[#allocation19 + $0x598] sm:$0xff] }
 0xf86   :  { %13569 = vmatprep.subr.bf16.mxu1 %v13568_v1  ;;  %13633 = vmatprep.subr.bf16.mxu0 %v13632_v8  ;;  %v9387_v1 = vld [vmem:[#allocation19 + $0x5b8] sm:$0xff]  ;;  %v13590_v8 = vpack.c.bf16 %v9376_v4, %v9372_v29  ;;  %v13592_v11 = vpack.c.bf16 %v9385_v61, %v9381_v35  ;;  %v9416_v29 = vld [vmem:[#allocation19 + $0x6a0] sm:$0xff]  ;;  %v13608_v4 = vpack.c.bf16 %v9417_v26, %v9413_v13  ;;  %v9425_v35 = vld [vmem:[#allocation19 + $0x6e8] sm:$0xff] }
 0xf87   :  { %13571 = vmatpush1.bf16.msra.mxu1 %v13570_v39  ;;  %13635 = vmatpush1.bf16.msra.mxu0 %v13634_v24  ;;  %v13654_v39 = vpack.c.bf16 %v9378_v14, %v9374_v36  ;;  %v9380_v24 = vld [vmem:[#allocation19 + $0x580] sm:$0xff]  ;;  %v9418_v36 = vld [vmem:[#allocation19 + $0x6b0] sm:$0xff]  ;;  %v9421_v14 = vld [vmem:[#allocation19 + $0x6c8] sm:$0xff] }
 0xf88   :  { %13573 = vmatprep.subr.bf16.mxu1 %v13572_v17  ;;  %13637 = vmatprep.subr.bf16.mxu0 %v13636_v2  ;;  %v13656_v17 = vpack.c.bf16 %v9387_v1, %v9383_v28  ;;  %v9382_v2 = vld [vmem:[#allocation19 + $0x590] sm:$0xff]  ;;  %v13594_v27 = vpack.c.bf16 %v9384_v43, %v9380_v24  ;;  %v9423_v61 = vld [vmem:[#allocation19 + $0x6d8] sm:$0xff]  ;;  %v9424_v24 = vld [vmem:[#allocation19 + $0x6e0] sm:$0xff]  ;;  %v13612_v43 = vpack.c.bf16 %v9425_v35, %v9421_v14 }
 0xf89   :  { %v9427_v28 = vld [vmem:[#allocation19 + $0x6f8] sm:$0xff]  ;;  %v9457_v13 = vld [vmem:[#allocation19 + $0x7e8] sm:$0xff] }
 0xf8a   :  { %v9455_v26 = vld [vmem:[#allocation19 + $0x7d8] sm:$0xff]  ;;  %v9128_v35 = vld [vmem:[#allocation19 + $0x8] sm:$0xff] }
 0xf8b   :  { %13575 = vmatpush1.bf16.msra.mxu1 %v13574_v22  ;;  %13639 = vmatpush1.bf16.msra.mxu0 %v13638_v63  ;;  %v13658_v22 = vpack.c.bf16 %v9386_v54, %v9382_v2  ;;  %v9388_v63 = vld [vmem:[#allocation19 + $0x5c0] sm:$0xff]  ;;  %v9426_v2 = vld [vmem:[#allocation19 + $0x6f0] sm:$0xff]  ;;  %v9429_v54 = vld [vmem:[#allocation19 + $0x708] sm:$0xff] }
 0xf8c   :  { %13577 = vmatprep.subr.bf16.mxu1 %v13576_v18  ;;  %13641 = vmatprep.subr.bf16.mxu0 %v13640_v19  ;;  %v13660_v18 = vpack.c.bf16 %v9395_v9, %v9391_v48  ;;  %v9390_v19 = vld [vmem:[#allocation19 + $0x5d0] sm:$0xff]  ;;  %v13598_v12 = vpack.c.bf16 %v9392_v49, %v9388_v63  ;;  %v9435_v48 = vld [vmem:[#allocation19 + $0x738] sm:$0xff]  ;;  %v9432_v63 = vld [vmem:[#allocation19 + $0x720] sm:$0xff]  ;;  %v13616_v49 = vpack.c.bf16 %v9433_v20, %v9429_v54 }
 0xf8d   :  { %v9140_v54 = vld [vmem:[#allocation19 + $0x68] sm:$0xff]  ;;  %v9138_v20 = vld [vmem:[#allocation19 + $0x58] sm:$0xff] }
 0xf8f   :  { %13579 = vmatpush1.bf16.msra.mxu1 %v13578_v34  ;;  %13643 = vmatpush1.bf16.msra.mxu0 %v13642_v6  ;;  %v13662_v34 = vpack.c.bf16 %v9394_v3, %v9390_v19  ;;  %v9396_v6 = vld [vmem:[#allocation19 + $0x600] sm:$0xff]  ;;  %v9434_v19 = vld [vmem:[#allocation19 + $0x730] sm:$0xff]  ;;  %v9437_v3 = vld [vmem:[#allocation19 + $0x748] sm:$0xff] }
 0xf90   :  { %13581 = vmatprep.subr.bf16.mxu1 %v13580_v51  ;;  %13645 = vmatprep.subr.bf16.mxu0 %v13644_v55  ;;  %v13664_v51 = vpack.c.bf16 %v9403_v33, %v9399_v31  ;;  %v9398_v55 = vld [vmem:[#allocation19 + $0x610] sm:$0xff]  ;;  %v13602_v40 = vpack.c.bf16 %v9400_v60, %v9396_v6  ;;  %v9443_v31 = vld [vmem:[#allocation19 + $0x778] sm:$0xff]  ;;  %v9440_v6 = vld [vmem:[#allocation19 + $0x760] sm:$0xff]  ;;  %v13620_v60 = vpack.c.bf16 %v9441_v32, %v9437_v3 }
 0xf91   :  { %v9137_v3 = vld [vmem:[#allocation19 + $0x50] sm:$0xff] }
 0xf92   :  { %v9141_v32 = vld [vmem:[#allocation19 + $0x70] sm:$0xff] }
 0xf93   :  { %13583 = vmatpush1.bf16.msra.mxu1 %v13582_v0  ;;  %13647 = vmatpush1.bf16.msra.mxu0 %v13646_v41  ;;  %v13666_v0 = vpack.c.bf16 %v9402_v57, %v9398_v55  ;;  %v9404_v41 = vld [vmem:[#allocation19 + $0x640] sm:$0xff]  ;;  %v9442_v55 = vld [vmem:[#allocation19 + $0x770] sm:$0xff]  ;;  %v9445_v57 = vld [vmem:[#allocation19 + $0x788] sm:$0xff] }
 0xf94   :  { %13585 = vmatprep.subr.bf16.mxu1 %v13584_v23  ;;  %13649 = vmatprep.subr.bf16.mxu0 %v13648_v45  ;;  %v13668_v23 = vpack.c.bf16 %v9411_v38, %v9407_v5  ;;  %v9406_v45 = vld [vmem:[#allocation19 + $0x650] sm:$0xff]  ;;  %v13606_v62 = vpack.c.bf16 %v9408_v21, %v9404_v41  ;;  %v9451_v5 = vld [vmem:[#allocation19 + $0x7b8] sm:$0xff]  ;;  %v9448_v41 = vld [vmem:[#allocation19 + $0x7a0] sm:$0xff]  ;;  %v13624_v21 = vpack.c.bf16 %v9449_v7, %v9445_v57 }
 0xf95   :  { %v9145_v7 = vld [vmem:[#allocation19 + $0x90] sm:$0xff] }
 0xf97   :  { %13587 = vmatpush1.bf16.msra.mxu1 %v13586_v56  ;;  %13651 = vmatpush1.bf16.msra.mxu0 %v13650_v44  ;;  %v13670_v56 = vpack.c.bf16 %v9410_v15, %v9406_v45  ;;  %v9412_v44 = vld [vmem:[#allocation19 + $0x680] sm:$0xff]  ;;  %v9450_v45 = vld [vmem:[#allocation19 + $0x7b0] sm:$0xff]  ;;  %v9453_v15 = vld [vmem:[#allocation19 + $0x7c8] sm:$0xff] }
 0xf98   :  { %13589 = vmatprep.subr.bf16.mxu1 %v13588_v10  ;;  %13653 = vmatprep.subr.bf16.mxu0 %v13652_v50  ;;  %v13672_v10 = vpack.c.bf16 %v9419_v53, %v9415_v52  ;;  %v9414_v50 = vld [vmem:[#allocation19 + $0x690] sm:$0xff]  ;;  %v13610_v1 = vpack.c.bf16 %v9416_v29, %v9412_v44  ;;  %v9459_v52 = vld [vmem:[#allocation19 + $0x7f8] sm:$0xff]  ;;  %v13628_v44 = vpack.c.bf16 %v9457_v13, %v9453_v15 }
 0xf99   :  { %v13692_v29 = vpack.c.bf16 %v9459_v52, %v9455_v26  ;;  %v9153_v13 = vld [vmem:[#allocation19 + $0xd0] sm:$0xff]  ;;  %v9160_v52 = vld [vmem:[#allocation19 + $0x108] sm:$0xff] }
 0xf9a   :  { %v9157_v26 = vld [vmem:[#allocation19 + $0xf0] sm:$0xff] }
 0xf9b   :  { %13591 = vmatpush1.bf16.msra.mxu1 %v13590_v8  ;;  %13655 = vmatpush1.bf16.msra.mxu0 %v13654_v39  ;;  %v13674_v8 = vpack.c.bf16 %v9418_v36, %v9414_v50  ;;  %v9420_v39 = vld [vmem:[#allocation19 + $0x6c0] sm:$0xff]  ;;  %v9458_v50 = vld [vmem:[#allocation19 + $0x7f0] sm:$0xff] }
 0xf9c   :  { %13593 = vmatprep.subr.bf16.mxu1 %v13592_v11  ;;  %13657 = vmatprep.subr.bf16.mxu0 %v13656_v17  ;;  %v13676_v11 = vpack.c.bf16 %v9427_v28, %v9423_v61  ;;  %v9422_v17 = vld [vmem:[#allocation19 + $0x6d0] sm:$0xff]  ;;  %v13614_v9 = vpack.c.bf16 %v9424_v24, %v9420_v39  ;;  %v9132_v61 = vld [vmem:[#allocation19 + $0x28] sm:$0xff]  ;;  %v9130_v28 = vld [vmem:[#allocation19 + $0x18] sm:$0xff] }
 0xf9d   :  { %v9127_v24 = vld [vmem:[#allocation19] sm:$0xff] }
 0xf9f   :  { %13595 = vmatpush1.bf16.msra.mxu1 %v13594_v27  ;;  %13659 = vmatpush1.bf16.msra.mxu0 %v13658_v22  ;;  %v13678_v27 = vpack.c.bf16 %v9426_v2, %v9422_v17  ;;  %v9428_v22 = vld [vmem:[#allocation19 + $0x700] sm:$0xff]  ;;  %v9133_v17 = vld [vmem:[#allocation19 + $0x30] sm:$0xff]  ;;  %v9136_v2 = vld [vmem:[#allocation19 + $0x48] sm:$0xff] }
 0xfa0   :  { %13597 = vmatprep.subr.bf16.mxu1 %v13596_v30  ;;  %13661 = vmatprep.subr.bf16.mxu0 %v13660_v18  ;;  %v13680_v30 = vpack.c.bf16 %v9435_v48, %v9431_v59  ;;  %v9430_v18 = vld [vmem:[#allocation19 + $0x710] sm:$0xff]  ;;  %v13618_v33 = vpack.c.bf16 %v9432_v63, %v9428_v22  ;;  %v9142_v59 = vld [vmem:[#allocation19 + $0x78] sm:$0xff]  ;;  %v9135_v22 = vld [vmem:[#allocation19 + $0x40] sm:$0xff] }
 0xfa1   :  { %v9139_v63 = vld [vmem:[#allocation19 + $0x60] sm:$0xff] }
 0xfa3   :  { %13599 = vmatpush1.bf16.msra.mxu1 %v13598_v12  ;;  %13663 = vmatpush1.bf16.msra.mxu0 %v13662_v34  ;;  %v13682_v12 = vpack.c.bf16 %v9434_v19, %v9430_v18  ;;  %v9436_v34 = vld [vmem:[#allocation19 + $0x740] sm:$0xff]  ;;  %v13700_v18 = vpack.c.bf16 %v9140_v54, %v9136_v2  ;;  %v13764_v19 = vpack.c.bf16 %v9142_v59, %v9138_v20  ;;  %v9169_v54 = vld [vmem:[#allocation19 + $0x150] sm:$0xff]  ;;  %v9176_v59 = vld [vmem:[#allocation19 + $0x188] sm:$0xff] }
 0xfa4   :  { %13601 = vmatprep.subr.bf16.mxu1 %v13600_v37  ;;  %13665 = vmatprep.subr.bf16.mxu0 %v13664_v51  ;;  %v13684_v37 = vpack.c.bf16 %v9443_v31, %v9439_v25  ;;  %v9438_v51 = vld [vmem:[#allocation19 + $0x750] sm:$0xff]  ;;  %v13622_v38 = vpack.c.bf16 %v9440_v6, %v9436_v34  ;;  %v9144_v25 = vld [vmem:[#allocation19 + $0x88] sm:$0xff]  ;;  %v9150_v34 = vld [vmem:[#allocation19 + $0xb8] sm:$0xff]  ;;  %v13702_v6 = vpack.c.bf16 %v9139_v63, %v9135_v22 }
 0xfa5   :  { %v9173_v20 = vld [vmem:[#allocation19 + $0x170] sm:$0xff] }
 0xfa6   :  { %v13782_v63 = vpack.c.bf16 %v9173_v20, %v9169_v54  ;;  %v9209_v54 = vld [vmem:[#allocation19 + $0x290] sm:$0xff] }
 0xfa7   :  { %13603 = vmatpush1.bf16.msra.mxu1 %v13602_v40  ;;  %13667 = vmatpush1.bf16.msra.mxu0 %v13666_v0  ;;  %v13686_v40 = vpack.c.bf16 %v9442_v55, %v9438_v51  ;;  %v9444_v0 = vld [vmem:[#allocation19 + $0x780] sm:$0xff]  ;;  %v9213_v20 = vld [vmem:[#allocation19 + $0x2b0] sm:$0xff] }
 0xfa8   :  { %13605 = vmatprep.subr.bf16.mxu1 %v13604_v42  ;;  %13669 = vmatprep.subr.bf16.mxu0 %v13668_v23  ;;  %v13688_v42 = vpack.c.bf16 %v9451_v5, %v9447_v16  ;;  %v9446_v23 = vld [vmem:[#allocation19 + $0x790] sm:$0xff]  ;;  %v13626_v53 = vpack.c.bf16 %v9448_v41, %v9444_v0  ;;  %v9147_v51 = vld [vmem:[#allocation19 + $0xa0] sm:$0xff]  ;;  %v9152_v5 = vld [vmem:[#allocation19 + $0xc8] sm:$0xff] }
 0xfa9   :  { %v9149_v16 = vld [vmem:[#allocation19 + $0xb0] sm:$0xff]  ;;  %v9158_v0 = vld [vmem:[#allocation19 + $0xf8] sm:$0xff] }
 0xfab   :  { %13607 = vmatpush1.bf16.msra.mxu1 %v13606_v62  ;;  %13671 = vmatpush1.bf16.msra.mxu0 %v13670_v56  ;;  %v13690_v62 = vpack.c.bf16 %v9450_v45, %v9446_v23  ;;  %v9452_v56 = vld [vmem:[#allocation19 + $0x7c0] sm:$0xff] }
 0xfac   :  { %13609 = vmatprep.subr.bf16.mxu1 %v13608_v4  ;;  %13673 = vmatprep.subr.bf16.mxu0 %v13672_v10  ;;  %v9456_v4 = vld [vmem:[#allocation19 + $0x7e0] sm:$0xff]  ;;  %v9454_v10 = vld [vmem:[#allocation19 + $0x7d0] sm:$0xff] }
 0xfad   :  { %v13630_v36 = vpack.c.bf16 %v9456_v4, %v9452_v56  ;;  %v13694_v14 = vpack.c.bf16 %v9458_v50, %v9454_v10  ;;  %v9155_v23 = vld [vmem:[#allocation19 + $0xe0] sm:$0xff]  ;;  %v9166_v56 = vld [vmem:[#allocation19 + $0x138] sm:$0xff] }
 0xfae   :  { %v9159_v4 = vld [vmem:[#allocation19 + $0x100] sm:$0xff] }
 0xfaf   :  { %13611 = vmatpush1.bf16.msra.mxu1 %v13610_v1  ;;  %13675 = vmatpush1.bf16.msra.mxu0 %v13674_v8  ;;  %v13696_v1 = vpack.c.bf16 %v9132_v61, %v9128_v35  ;;  %v9134_v8 = vld [vmem:[#allocation19 + $0x38] sm:$0xff]  ;;  %v9163_v10 = vld [vmem:[#allocation19 + $0x120] sm:$0xff]  ;;  %v9165_v35 = vld [vmem:[#allocation19 + $0x130] sm:$0xff] }
 0xfb0   :  { %13613 = vmatprep.subr.bf16.mxu1 %v13612_v43  ;;  %13677 = vmatprep.subr.bf16.mxu0 %v13676_v11  ;;  %v13760_v39 = vpack.c.bf16 %v9134_v8, %v9130_v28  ;;  %v9131_v43 = vld [vmem:[#allocation19 + $0x20] sm:$0xff]  ;;  %v9129_v11 = vld [vmem:[#allocation19 + $0x10] sm:$0xff]  ;;  %v9168_v61 = vld [vmem:[#allocation19 + $0x148] sm:$0xff] }
 0xfb1   :  { %v9172_v28 = vld [vmem:[#allocation19 + $0x168] sm:$0xff]  ;;  %v9174_v8 = vld [vmem:[#allocation19 + $0x178] sm:$0xff] }
 0xfb3   :  { %13615 = vmatpush1.bf16.msra.mxu1 %v13614_v9  ;;  %13679 = vmatpush1.bf16.msra.mxu0 %v13678_v27  ;;  %v13698_v9 = vpack.c.bf16 %v9131_v43, %v9127_v24  ;;  %v13762_v27 = vpack.c.bf16 %v9133_v17, %v9129_v11  ;;  %v9167_v43 = vld [vmem:[#allocation19 + $0x140] sm:$0xff]  ;;  %v13716_v17 = vpack.c.bf16 %v9172_v28, %v9168_v61  ;;  %v9208_v61 = vld [vmem:[#allocation19 + $0x288] sm:$0xff] }
 0xfb4   :  { %13617 = vmatprep.subr.bf16.mxu1 %v13616_v49  ;;  %13681 = vmatprep.subr.bf16.mxu0 %v13680_v30  ;;  %v9171_v11 = vld [vmem:[#allocation19 + $0x160] sm:$0xff]  ;;  %v9212_v28 = vld [vmem:[#allocation19 + $0x2a8] sm:$0xff] }
 0xfb5   :  { %v13718_v22 = vpack.c.bf16 %v9171_v11, %v9167_v43  ;;  %v9207_v43 = vld [vmem:[#allocation19 + $0x280] sm:$0xff] }
 0xfb6   :  { %v9211_v11 = vld [vmem:[#allocation19 + $0x2a0] sm:$0xff] }
 0xfb7   :  { %13619 = vmatpush1.bf16.msra.mxu1 %v13618_v33  ;;  %13683 = vmatpush1.bf16.msra.mxu0 %v13682_v12  ;;  %v9148_v33 = vld [vmem:[#allocation19 + $0xa8] sm:$0xff]  ;;  %v9146_v12 = vld [vmem:[#allocation19 + $0x98] sm:$0xff] }
 0xfb8   :  { %13621 = vmatprep.subr.bf16.mxu1 %v13620_v60  ;;  %13685 = vmatprep.subr.bf16.mxu0 %v13684_v37  ;;  %v13766_v60 = vpack.c.bf16 %v9141_v32, %v9137_v3  ;;  %v9143_v37 = vld [vmem:[#allocation19 + $0x80] sm:$0xff]  ;;  %v13704_v55 = vpack.c.bf16 %v9148_v33, %v9144_v25  ;;  %v13768_v57 = vpack.c.bf16 %v9150_v34, %v9146_v12  ;;  %v9177_v32 = vld [vmem:[#allocation19 + $0x190] sm:$0xff]  ;;  %v9188_v33 = vld [vmem:[#allocation19 + $0x1e8] sm:$0xff] }
 0xfb9   :  { %v13706_v41 = vpack.c.bf16 %v9147_v51, %v9143_v37  ;;  %v9181_v25 = vld [vmem:[#allocation19 + $0x1b0] sm:$0xff]  ;;  %v9186_v12 = vld [vmem:[#allocation19 + $0x1d8] sm:$0xff]  ;;  %v9183_v37 = vld [vmem:[#allocation19 + $0x1c0] sm:$0xff] }
 0xfba   :  { %v9190_v34 = vld [vmem:[#allocation19 + $0x1f8] sm:$0xff]  ;;  %v9187_v51 = vld [vmem:[#allocation19 + $0x1e0] sm:$0xff] }
 0xfbb   :  { %13623 = vmatpush1.bf16.msra.mxu1 %v13622_v38  ;;  %13687 = vmatpush1.bf16.msra.mxu0 %v13686_v40  ;;  %v9156_v38 = vld [vmem:[#allocation19 + $0xe8] sm:$0xff]  ;;  %v9154_v40 = vld [vmem:[#allocation19 + $0xd8] sm:$0xff] }
 0xfbc   :  { %13625 = vmatprep.subr.bf16.mxu1 %v13624_v21  ;;  %13689 = vmatprep.subr.bf16.mxu0 %v13688_v42  ;;  %v13770_v21 = vpack.c.bf16 %v9149_v16, %v9145_v7  ;;  %v9151_v42 = vld [vmem:[#allocation19 + $0xc0] sm:$0xff]  ;;  %v13708_v45 = vpack.c.bf16 %v9156_v38, %v9152_v5  ;;  %v13772_v15 = vpack.c.bf16 %v9158_v0, %v9154_v40  ;;  %v9185_v7 = vld [vmem:[#allocation19 + $0x1d0] sm:$0xff]  ;;  %v9192_v5 = vld [vmem:[#allocation19 + $0x208] sm:$0xff] }
 0xfbd   :  { %v9189_v16 = vld [vmem:[#allocation19 + $0x1f0] sm:$0xff]  ;;  %v9196_v38 = vld [vmem:[#allocation19 + $0x228] sm:$0xff]  ;;  %v9194_v40 = vld [vmem:[#allocation19 + $0x218] sm:$0xff] }
 0xfbe   :  { %v9198_v0 = vld [vmem:[#allocation19 + $0x238] sm:$0xff] }
 0xfbf   :  { %13627 = vmatpush1.bf16.msra.mxu1 %v13626_v53  ;;  %13691 = vmatpush1.bf16.msra.mxu0 %v13690_v62  ;;  %v9164_v53 = vld [vmem:[#allocation19 + $0x128] sm:$0xff]  ;;  %v9162_v62 = vld [vmem:[#allocation19 + $0x118] sm:$0xff] }
 0xfc0   :  { %13629 = vmatprep.subr.bf16.mxu1 %v13628_v44  ;;  %13693 = vmatprep.subr.bf16.mxu0 %v13692_v29  ;;  %v13710_v44 = vpack.c.bf16 %v9155_v23, %v9151_v42  ;;  %v13774_v29 = vpack.c.bf16 %v9157_v26, %v9153_v13  ;;  %v13712_v50 = vpack.c.bf16 %v9164_v53, %v9160_v52  ;;  %v9191_v42 = vld [vmem:[#allocation19 + $0x200] sm:$0xff]  ;;  %v9193_v13 = vld [vmem:[#allocation19 + $0x210] sm:$0xff]  ;;  %v9200_v52 = vld [vmem:[#allocation19 + $0x248] sm:$0xff] }
 0xfc1   :  { %v9195_v23 = vld [vmem:[#allocation19 + $0x220] sm:$0xff]  ;;  %v9197_v26 = vld [vmem:[#allocation19 + $0x230] sm:$0xff]  ;;  %v9204_v53 = vld [vmem:[#allocation19 + $0x268] sm:$0xff] }
 0xfc3   :  { %13631 = vmatpush1.bf16.msra.mxu1 %v13630_v36  ;;  %13695 = vmatpush1.bf16.msra.mxu0 %v13694_v14  ;;  %v13776_v36 = vpack.c.bf16 %v9166_v56, %v9162_v62  ;;  %v9161_v14 = vld [vmem:[#allocation19 + $0x110] sm:$0xff]  ;;  %v9202_v62 = vld [vmem:[#allocation19 + $0x258] sm:$0xff] }
 0xfc4   :  { %13697 = vmatprep.subr.bf16.mxu1 %v13696_v1  ;;  %13761 = vmatprep.subr.bf16.mxu0 %v13760_v39  ;;  %v9170_v1 = vld [vmem:[#allocation19 + $0x158] sm:$0xff]  ;;  %v13714_v39 = vpack.c.bf16 %v9163_v10, %v9159_v4  ;;  %v13778_v24 = vpack.c.bf16 %v9165_v35, %v9161_v14  ;;  %v9199_v4 = vld [vmem:[#allocation19 + $0x240] sm:$0xff]  ;;  %v9201_v14 = vld [vmem:[#allocation19 + $0x250] sm:$0xff] }
 0xfc5   :  { %v13780_v2 = vpack.c.bf16 %v9174_v8, %v9170_v1  ;;  %v9206_v56 = vld [vmem:[#allocation19 + $0x278] sm:$0xff]  ;;  %v9203_v10 = vld [vmem:[#allocation19 + $0x260] sm:$0xff]  ;;  %v9205_v35 = vld [vmem:[#allocation19 + $0x270] sm:$0xff] }
 0xfc6   :  { %v9210_v1 = vld [vmem:[#allocation19 + $0x298] sm:$0xff] }
 0xfc7   :  { %v9214_v8 = vld [vmem:[#allocation19 + $0x2b8] sm:$0xff] }
0x1058   :  { %v9326_v48 = vpop.f32.mrb[76].mxu0  ;;  %v15832_v49 = vpop.f32.mrb[124].mxu1 }
0x1059   :  { %v9328_v30 = vpop.f32.mrb[77].mxu0  ;;  %v9124_v31 = vpop.f32.mrb[125].mxu1 }
0x105a   :  { %9524 = vmatprep.mubr.f32.mxu1 %v9328_v30  ;;  %9595 = vmatprep.mubr.f32.mxu0 %v9328_v30  ;;  %v9175_v30 = vld [vmem:[#allocation19 + $0x180] sm:$0xff] }
0x105b   :  { %9525 = vmatmul.mubr.f32.vlgmr.msra.gmra.mrb[126].mxu1 %v9326_v48  ;;  %9596 = vmatmul.mubr.f32.vlgmr.msra.gmra.mrb[78].mxu0 %v9326_v48  ;;  %v9180_v48 = vld [vmem:[#allocation19 + $0x1a8] sm:$0xff] }
0x105c   :  { %13699 = vmatpush1.bf16.msra.mxu1 %v13698_v9  ;;  %13763 = vmatpush1.bf16.msra.mxu0 %v13762_v27  ;;  %v9178_v9 = vld [vmem:[#allocation19 + $0x198] sm:$0xff] }
0x105d   :  { %13701 = vmatprep.subr.bf16.mxu1 %v13700_v18  ;;  %13765 = vmatprep.subr.bf16.mxu0 %v13764_v19  ;;  %v9182_v27 = vld [vmem:[#allocation19 + $0x1b8] sm:$0xff]  ;;  %v9179_v18 = vld [vmem:[#allocation19 + $0x1a0] sm:$0xff]  ;;  %v13720_v19 = vpack.c.bf16 %v9180_v48, %v9176_v59  ;;  %v9216_v59 = vld [vmem:[#allocation19 + $0x2c8] sm:$0xff] }
0x105e   :  { %9666 = vmatprep.mubr.f32.mxu1 %v9124_v31  ;;  %9737 = vmatprep.mubr.f32.mxu0 %v9124_v31  ;;  %v13784_v3 = vpack.c.bf16 %v9182_v27, %v9178_v9  ;;  %v9184_v31 = vld [vmem:[#allocation19 + $0x1c8] sm:$0xff]  ;;  %v9218_v9 = vld [vmem:[#allocation19 + $0x2d8] sm:$0xff] }
0x105f   :  { %v9220_v48 = vld [vmem:[#allocation19 + $0x2e8] sm:$0xff]  ;;  %v9222_v27 = vld [vmem:[#allocation19 + $0x2f8] sm:$0xff] }
0x1060   :  { %13703 = vmatpush1.bf16.msra.mxu1 %v13702_v6  ;;  %13767 = vmatpush1.bf16.msra.mxu0 %v13766_v60  ;;  %v13722_v6 = vpack.c.bf16 %v9179_v18, %v9175_v30  ;;  %v13786_v60 = vpack.c.bf16 %v9181_v25, %v9177_v32  ;;  %v9215_v30 = vld [vmem:[#allocation19 + $0x2c0] sm:$0xff]  ;;  %v9217_v32 = vld [vmem:[#allocation19 + $0x2d0] sm:$0xff] }
0x1061   :  { %13705 = vmatprep.subr.bf16.mxu1 %v13704_v55  ;;  %13769 = vmatprep.subr.bf16.mxu0 %v13768_v57  ;;  %v13724_v55 = vpack.c.bf16 %v9188_v33, %v9184_v31  ;;  %v13788_v57 = vpack.c.bf16 %v9190_v34, %v9186_v12  ;;  %v9219_v18 = vld [vmem:[#allocation19 + $0x2e0] sm:$0xff]  ;;  %v9221_v25 = vld [vmem:[#allocation19 + $0x2f0] sm:$0xff]  ;;  %v9224_v31 = vld [vmem:[#allocation19 + $0x308] sm:$0xff] }
0x1062   :  { %v9228_v33 = vld [vmem:[#allocation19 + $0x328] sm:$0xff]  ;;  %v9226_v12 = vld [vmem:[#allocation19 + $0x318] sm:$0xff] }
0x1063   :  { %v9230_v34 = vld [vmem:[#allocation19 + $0x338] sm:$0xff] }
0x1064   :  { %13707 = vmatpush1.bf16.msra.mxu1 %v13706_v41  ;;  %13771 = vmatpush1.bf16.msra.mxu0 %v13770_v21  ;;  %v13726_v41 = vpack.c.bf16 %v9187_v51, %v9183_v37  ;;  %v13790_v21 = vpack.c.bf16 %v9189_v16, %v9185_v7  ;;  %v9223_v37 = vld [vmem:[#allocation19 + $0x300] sm:$0xff]  ;;  %v9225_v7 = vld [vmem:[#allocation19 + $0x310] sm:$0xff] }
0x1065   :  { %13709 = vmatprep.subr.bf16.mxu1 %v13708_v45  ;;  %13773 = vmatprep.subr.bf16.mxu0 %v13772_v15  ;;  %v13728_v45 = vpack.c.bf16 %v9196_v38, %v9192_v5  ;;  %v13792_v15 = vpack.c.bf16 %v9198_v0, %v9194_v40  ;;  %v9227_v51 = vld [vmem:[#allocation19 + $0x320] sm:$0xff]  ;;  %v9229_v16 = vld [vmem:[#allocation19 + $0x330] sm:$0xff]  ;;  %v9232_v5 = vld [vmem:[#allocation19 + $0x348] sm:$0xff] }
0x1066   :  { %v9236_v38 = vld [vmem:[#allocation19 + $0x368] sm:$0xff]  ;;  %v9234_v40 = vld [vmem:[#allocation19 + $0x358] sm:$0xff] }
0x1067   :  { %v9238_v0 = vld [vmem:[#allocation19 + $0x378] sm:$0xff] }
0x1068   :  { %13711 = vmatpush1.bf16.msra.mxu1 %v13710_v44  ;;  %13775 = vmatpush1.bf16.msra.mxu0 %v13774_v29  ;;  %v13730_v44 = vpack.c.bf16 %v9195_v23, %v9191_v42  ;;  %v13794_v29 = vpack.c.bf16 %v9197_v26, %v9193_v13  ;;  %v9231_v42 = vld [vmem:[#allocation19 + $0x340] sm:$0xff]  ;;  %v9233_v13 = vld [vmem:[#allocation19 + $0x350] sm:$0xff] }
0x1069   :  { %13713 = vmatprep.subr.bf16.mxu1 %v13712_v50  ;;  %13777 = vmatprep.subr.bf16.mxu0 %v13776_v36  ;;  %v13732_v50 = vpack.c.bf16 %v9204_v53, %v9200_v52  ;;  %v13796_v36 = vpack.c.bf16 %v9206_v56, %v9202_v62  ;;  %v9235_v23 = vld [vmem:[#allocation19 + $0x360] sm:$0xff]  ;;  %v9237_v26 = vld [vmem:[#allocation19 + $0x370] sm:$0xff]  ;;  %v9240_v52 = vld [vmem:[#allocation19 + $0x388] sm:$0xff] }
0x106a   :  { %v9244_v53 = vld [vmem:[#allocation19 + $0x3a8] sm:$0xff]  ;;  %v9242_v62 = vld [vmem:[#allocation19 + $0x398] sm:$0xff] }
0x106b   :  { %v9246_v56 = vld [vmem:[#allocation19 + $0x3b8] sm:$0xff] }
0x106c   :  { %13715 = vmatpush1.bf16.msra.mxu1 %v13714_v39  ;;  %13779 = vmatpush1.bf16.msra.mxu0 %v13778_v24  ;;  %v13734_v39 = vpack.c.bf16 %v9203_v10, %v9199_v4  ;;  %v13798_v24 = vpack.c.bf16 %v9205_v35, %v9201_v14  ;;  %v9239_v4 = vld [vmem:[#allocation19 + $0x380] sm:$0xff]  ;;  %v9241_v14 = vld [vmem:[#allocation19 + $0x390] sm:$0xff] }
0x106d   :  { %13717 = vmatprep.subr.bf16.mxu1 %v13716_v17  ;;  %13781 = vmatprep.subr.bf16.mxu0 %v13780_v2  ;;  %v13736_v17 = vpack.c.bf16 %v9212_v28, %v9208_v61  ;;  %v13800_v2 = vpack.c.bf16 %v9214_v8, %v9210_v1  ;;  %v9243_v10 = vld [vmem:[#allocation19 + $0x3a0] sm:$0xff]  ;;  %v9245_v35 = vld [vmem:[#allocation19 + $0x3b0] sm:$0xff]  ;;  %v9248_v61 = vld [vmem:[#allocation19 + $0x3c8] sm:$0xff] }
0x106e   :  { %v9252_v28 = vld [vmem:[#allocation19 + $0x3e8] sm:$0xff]  ;;  %v9250_v1 = vld [vmem:[#allocation19 + $0x3d8] sm:$0xff] }
0x106f   :  { %v9254_v8 = vld [vmem:[#allocation19 + $0x3f8] sm:$0xff] }
0x1070   :  { %13719 = vmatpush1.bf16.msra.mxu1 %v13718_v22  ;;  %13783 = vmatpush1.bf16.msra.mxu0 %v13782_v63  ;;  %v13738_v22 = vpack.c.bf16 %v9211_v11, %v9207_v43  ;;  %v13802_v63 = vpack.c.bf16 %v9213_v20, %v9209_v54  ;;  %v9247_v43 = vld [vmem:[#allocation19 + $0x3c0] sm:$0xff]  ;;  %v13756_v11 = vpack.c.bf16 %v9252_v28, %v9248_v61  ;;  %v9249_v54 = vld [vmem:[#allocation19 + $0x3d0] sm:$0xff] }
0x1071   :  { %13721 = vmatprep.subr.bf16.mxu1 %v13720_v19  ;;  %13785 = vmatprep.subr.bf16.mxu0 %v13784_v3  ;;  %v13740_v19 = vpack.c.bf16 %v9220_v48, %v9216_v59  ;;  %v13804_v3 = vpack.c.bf16 %v9222_v27, %v9218_v9  ;;  %v9253_v20 = vld [vmem:[#allocation19 + $0x3f0] sm:$0xff]  ;;  %v9824_v59 = vld [vmem:[#allocation19 + $0x818] sm:$0xff] }
0x1072   :  { %v9828_v48 = vld [vmem:[#allocation19 + $0x838] sm:$0xff]  ;;  %v13822_v27 = vpack.c.bf16 %v9253_v20, %v9249_v54  ;;  %v9859_v61 = vld [vmem:[#allocation19 + $0x930] sm:$0xff] }
0x1073   :  { %v9863_v20 = vld [vmem:[#allocation19 + $0x950] sm:$0xff] }
0x1074   :  { %13723 = vmatpush1.bf16.msra.mxu1 %v13722_v6  ;;  %13787 = vmatpush1.bf16.msra.mxu0 %v13786_v60  ;;  %v13742_v6 = vpack.c.bf16 %v9219_v18, %v9215_v30  ;;  %v13806_v60 = vpack.c.bf16 %v9221_v25, %v9217_v32  ;;  %v9827_v30 = vld [vmem:[#allocation19 + $0x830] sm:$0xff]  ;;  %v9832_v18 = vld [vmem:[#allocation19 + $0x858] sm:$0xff]  ;;  %v9826_v32 = vld [vmem:[#allocation19 + $0x828] sm:$0xff] }
0x1075   :  { %13725 = vmatprep.subr.bf16.mxu1 %v13724_v55  ;;  %13789 = vmatprep.subr.bf16.mxu0 %v13788_v57  ;;  %v13744_v55 = vpack.c.bf16 %v9228_v33, %v9224_v31  ;;  %v13808_v57 = vpack.c.bf16 %v9230_v34, %v9226_v12  ;;  %v9831_v31 = vld [vmem:[#allocation19 + $0x850] sm:$0xff]  ;;  %v9840_v34 = vld [vmem:[#allocation19 + $0x898] sm:$0xff] }
0x1076   :  { %v9835_v33 = vld [vmem:[#allocation19 + $0x870] sm:$0xff] }
0x1078   :  { %13727 = vmatpush1.bf16.msra.mxu1 %v13726_v41  ;;  %13791 = vmatpush1.bf16.msra.mxu0 %v13790_v21  ;;  %v13746_v41 = vpack.c.bf16 %v9227_v51, %v9223_v37  ;;  %v13810_v21 = vpack.c.bf16 %v9229_v16, %v9225_v7  ;;  %v9844_v37 = vld [vmem:[#allocation19 + $0x8b8] sm:$0xff]  ;;  %v13894_v16 = vpack.c.bf16 %v9835_v33, %v9831_v31  ;;  %v9875_v31 = vld [vmem:[#allocation19 + $0x9b0] sm:$0xff] }
0x1079   :  { %13729 = vmatprep.subr.bf16.mxu1 %v13728_v45  ;;  %13793 = vmatprep.subr.bf16.mxu0 %v13792_v15  ;;  %v13748_v45 = vpack.c.bf16 %v9236_v38, %v9232_v5  ;;  %v13812_v15 = vpack.c.bf16 %v9238_v0, %v9234_v40  ;;  %v9745_v7 = vld [vmem:[#allocation17 + $0x4] sm:$0x3]  ;;  %v9839_v5 = vld [vmem:[#allocation19 + $0x890] sm:$0xff]  ;;  %v13896_v0 = vpack.c.bf16 %v9844_v37, %v9840_v34  ;;  %v9865_v37 = vld [vmem:[#allocation19 + $0x960] sm:$0xff] }
0x107a   :  { %v9843_v38 = vld [vmem:[#allocation19 + $0x8b0] sm:$0xff]  ;;  %v9880_v34 = vld [vmem:[#allocation19 + $0x9d8] sm:$0xff] }
0x107c   :  { %13731 = vmatpush1.bf16.msra.mxu1 %v13730_v44  ;;  %13795 = vmatpush1.bf16.msra.mxu0 %v13794_v29  ;;  %v13750_v44 = vpack.c.bf16 %v9235_v23, %v9231_v42  ;;  %v13814_v29 = vpack.c.bf16 %v9237_v26, %v9233_v13  ;;  %v9829_v42 = vld [vmem:[#allocation19 + $0x840] sm:$0xff]  ;;  %v13898_v13 = vpack.c.bf16 %v9843_v38, %v9839_v5  ;;  %v9847_v26 = vld [vmem:[#allocation19 + $0x8d0] sm:$0xff] }
0x107d   :  { %13733 = vmatprep.subr.bf16.mxu1 %v13732_v50  ;;  %13797 = vmatprep.subr.bf16.mxu0 %v13796_v36  ;;  %v13752_v50 = vpack.c.bf16 %v9244_v53, %v9240_v52  ;;  %v13816_v36 = vpack.c.bf16 %v9246_v56, %v9242_v62  ;;  %v9833_v23 = vld [vmem:[#allocation19 + $0x860] sm:$0xff]  ;;  %v9851_v52 = vld [vmem:[#allocation19 + $0x8f0] sm:$0xff]  ;;  %v9856_v56 = vld [vmem:[#allocation19 + $0x918] sm:$0xff] }
0x107e   :  { %v13830_v53 = vpack.c.bf16 %v9833_v23, %v9829_v42  ;;  %v9883_v5 = vld [vmem:[#allocation19 + $0x9f0] sm:$0xff]  ;;  %v9873_v42 = vld [vmem:[#allocation19 + $0x9a0] sm:$0xff]  ;;  %v9892_v23 = vld [vmem:[#allocation19 + $0xa38] sm:$0xff] }
0x1080   :  { %13735 = vmatpush1.bf16.msra.mxu1 %v13734_v39  ;;  %13799 = vmatpush1.bf16.msra.mxu0 %v13798_v24  ;;  %v13754_v39 = vpack.c.bf16 %v9243_v10, %v9239_v4  ;;  %v13818_v24 = vpack.c.bf16 %v9245_v35, %v9241_v14  ;;  %v9841_v4 = vld [vmem:[#allocation19 + $0x8a0] sm:$0xff]  ;;  %v9860_v10 = vld [vmem:[#allocation19 + $0x938] sm:$0xff]  ;;  %v13902_v14 = vpack.c.bf16 %v9851_v52, %v9847_v26  ;;  %v9855_v35 = vld [vmem:[#allocation19 + $0x910] sm:$0xff] }
0x1081   :  { %13737 = vmatprep.subr.bf16.mxu1 %v13736_v17  ;;  %13801 = vmatprep.subr.bf16.mxu0 %v13800_v2  ;;  %v13820_v17 = vpack.c.bf16 %v9254_v8, %v9250_v1  ;;  %v9251_v2 = vld [vmem:[#allocation19 + $0x3e0] sm:$0xff]  ;;  %v13904_v1 = vpack.c.bf16 %v9860_v10, %v9856_v56  ;;  %v9864_v8 = vld [vmem:[#allocation19 + $0x958] sm:$0xff]  ;;  %v13906_v54 = vpack.c.bf16 %v9859_v61, %v9855_v35  ;;  %v9891_v26 = vld [vmem:[#allocation19 + $0xa30] sm:$0xff] }
0x1082   :  { %v13758_v9 = vpack.c.bf16 %v9251_v2, %v9247_v43  ;;  %v9849_v43 = vld [vmem:[#allocation19 + $0x8e0] sm:$0xff]  ;;  %v9858_v2 = vld [vmem:[#allocation19 + $0x928] sm:$0xff]  ;;  %v9899_v35 = vld [vmem:[#allocation19 + $0xa70] sm:$0xff] }
0x1083   :  { %v9886_v10 = vld [vmem:[#allocation19 + $0xa08] sm:$0xff] }
0x1084   :  { %13739 = vmatpush1.bf16.msra.mxu1 %v13738_v22  ;;  %13803 = vmatpush1.bf16.msra.mxu0 %v13802_v63  ;;  %v13888_v22 = vpack.c.bf16 %v9828_v48, %v9824_v59  ;;  %v9823_v63 = vld [vmem:[#allocation19 + $0x810] sm:$0xff] }
0x1085   :  { %13741 = vmatprep.subr.bf16.mxu1 %v13740_v19  ;;  %13805 = vmatprep.subr.bf16.mxu0 %v13804_v3  ;;  %v9836_v19 = vld [vmem:[#allocation19 + $0x878] sm:$0xff]  ;;  %v9822_v3 = vld [vmem:[#allocation19 + $0x808] sm:$0xff]  ;;  %v13890_v25 = vpack.c.bf16 %v9827_v30, %v9823_v63  ;;  %v9867_v59 = vld [vmem:[#allocation19 + $0x970] sm:$0xff] }
0x1086   :  { %v13892_v12 = vpack.c.bf16 %v9836_v19, %v9832_v18  ;;  %v13824_v51 = vpack.c.bf16 %v9826_v32, %v9822_v3  ;;  %v9853_v63 = vld [vmem:[#allocation19 + $0x900] sm:$0xff]  ;;  %v9876_v18 = vld [vmem:[#allocation19 + $0x9b8] sm:$0xff]  ;;  %v9862_v19 = vld [vmem:[#allocation19 + $0x948] sm:$0xff]  ;;  %v13910_v32 = vpack.c.bf16 %v9867_v59, %v9863_v20 }
0x1087   :  { %v9857_v30 = vld [vmem:[#allocation19 + $0x920] sm:$0xff]  ;;  %v9866_v3 = vld [vmem:[#allocation19 + $0x968] sm:$0xff]  ;;  %v9907_v20 = vld [vmem:[#allocation19 + $0xab0] sm:$0xff] }
0x1088   :  { %13743 = vmatpush1.bf16.msra.mxu1 %v13742_v6  ;;  %13807 = vmatpush1.bf16.msra.mxu0 %v13806_v60  ;;  %v9821_v6 = vld [vmem:[#allocation19 + $0x800] sm:$0xff]  ;;  %v13842_v33 = vpack.c.bf16 %v9857_v30, %v9853_v63  ;;  %v9916_v30 = vld [vmem:[#allocation19 + $0xaf8] sm:$0xff] }
0x1089   :  { %13745 = vmatprep.subr.bf16.mxu1 %v13744_v55  ;;  %13809 = vmatprep.subr.bf16.mxu0 %v13808_v57  ;;  %v9825_v60 = vld [vmem:[#allocation19 + $0x820] sm:$0xff]  ;;  %v9830_v55 = vld [vmem:[#allocation19 + $0x848] sm:$0xff] }
0x108a   :  { %v9834_v57 = vld [vmem:[#allocation19 + $0x868] sm:$0xff]  ;;  %v13826_v40 = vpack.c.bf16 %v9825_v60, %v9821_v6  ;;  %v13844_v6 = vpack.c.bf16 %v9866_v3, %v9862_v19  ;;  %v9861_v60 = vld [vmem:[#allocation19 + $0x940] sm:$0xff] }
0x108b   :  { %v13846_v38 = vpack.c.bf16 %v9865_v37, %v9861_v60  ;;  %v9897_v63 = vld [vmem:[#allocation19 + $0xa60] sm:$0xff]  ;;  %v9906_v19 = vld [vmem:[#allocation19 + $0xaa8] sm:$0xff]  ;;  %v9924_v37 = vld [vmem:[#allocation19 + $0xb38] sm:$0xff] }
0x108c   :  { %13747 = vmatpush1.bf16.msra.mxu1 %v13746_v41  ;;  %13811 = vmatpush1.bf16.msra.mxu0 %v13810_v21  ;;  %v9848_v41 = vld [vmem:[#allocation19 + $0x8d8] sm:$0xff]  ;;  %v13828_v21 = vpack.c.bf16 %v9834_v57, %v9830_v55  ;;  %v9870_v55 = vld [vmem:[#allocation19 + $0x988] sm:$0xff]  ;;  %v9905_v60 = vld [vmem:[#allocation19 + $0xaa0] sm:$0xff] }
0x108d   :  { %13749 = vmatprep.subr.bf16.mxu1 %v13748_v45  ;;  %13813 = vmatprep.subr.bf16.mxu0 %v13812_v15  ;;  %v9852_v45 = vld [vmem:[#allocation19 + $0x8f8] sm:$0xff]  ;;  %v9838_v15 = vld [vmem:[#allocation19 + $0x888] sm:$0xff] }
0x108e   :  { %v13900_v62 = vpack.c.bf16 %v9852_v45, %v9848_v41  ;;  %v9874_v57 = vld [vmem:[#allocation19 + $0x9a8] sm:$0xff] }
0x108f   :  { %v13848_v41 = vpack.c.bf16 %v9874_v57, %v9870_v55  ;;  %v9878_v45 = vld [vmem:[#allocation19 + $0x9c8] sm:$0xff] }
0x1090   :  { %13751 = vmatpush1.bf16.msra.mxu1 %v13750_v44  ;;  %13815 = vmatpush1.bf16.msra.mxu0 %v13814_v29  ;;  %v9837_v29 = vld [vmem:[#allocation19 + $0x880] sm:$0xff]  ;;  %v9914_v55 = vld [vmem:[#allocation19 + $0xae8] sm:$0xff] }
0x1091   :  { %13753 = vmatprep.subr.bf16.mxu1 %v13752_v50  ;;  %13817 = vmatprep.subr.bf16.mxu0 %v13816_v36  ;;  %v9846_v50 = vld [vmem:[#allocation19 + $0x8c8] sm:$0xff]  ;;  %v13834_v28 = vpack.c.bf16 %v9841_v4, %v9837_v29  ;;  %v9881_v29 = vld [vmem:[#allocation19 + $0x9e0] sm:$0xff]  ;;  %v9900_v4 = vld [vmem:[#allocation19 + $0xa78] sm:$0xff] }
0x1092   :  { %v9850_v36 = vld [vmem:[#allocation19 + $0x8e8] sm:$0xff] }
0x1094   :  { %13755 = vmatpush1.bf16.msra.mxu1 %v13754_v39  ;;  %13819 = vmatpush1.bf16.msra.mxu0 %v13818_v24  ;;  %v13836_v39 = vpack.c.bf16 %v9850_v36, %v9846_v50  ;;  %v9845_v24 = vld [vmem:[#allocation19 + $0x8c0] sm:$0xff]  ;;  %v9890_v50 = vld [vmem:[#allocation19 + $0xa28] sm:$0xff] }
0x1095   :  { %13757 = vmatprep.subr.bf16.mxu1 %v13756_v11  ;;  %13821 = vmatprep.subr.bf16.mxu0 %v13820_v17  ;;  %v9868_v11 = vld [vmem:[#allocation19 + $0x978] sm:$0xff]  ;;  %v9854_v17 = vld [vmem:[#allocation19 + $0x908] sm:$0xff]  ;;  %v13838_v48 = vpack.c.bf16 %v9849_v43, %v9845_v24  ;;  %v9889_v24 = vld [vmem:[#allocation19 + $0xa20] sm:$0xff] }
0x1096   :  { %v9908_v43 = vld [vmem:[#allocation19 + $0xab8] sm:$0xff] }
0x1098   :  { %13759 = vmatpush1.bf16.msra.mxu1 %v13758_v9  ;;  %13823 = vmatpush1.bf16.msra.mxu0 %v13822_v27  ;;  %v13908_v9 = vpack.c.bf16 %v9868_v11, %v9864_v8  ;;  %v9872_v27 = vld [vmem:[#allocation19 + $0x998] sm:$0xff]  ;;  %v13856_v8 = vpack.c.bf16 %v9890_v50, %v9886_v10  ;;  %v9894_v11 = vld [vmem:[#allocation19 + $0xa48] sm:$0xff] }
0x1099   :  { %9749 = vmatprep.subr.mxu1 %v15824_v46  ;;  %13889 = vmatprep.subr.bf16.mxu0 %v13888_v22  ;;  %v13840_v22 = vpack.c.bf16 %v9858_v2, %v9854_v17  ;;  %v9898_v17 = vld [vmem:[#allocation19 + $0xa68] sm:$0xff] }
0x109a   :  { %v9930_v10 = vld [vmem:[#allocation19 + $0xb68] sm:$0xff] }
0x109b   :  { %9667 = vmatmul.mubr.f32.vlgmr.msra.gmra.mrb[126].mxu1 %v15832_v49  ;;  %9738 = vmatmul.mubr.f32.vlgmr.msra.gmra.mrb[78].mxu0 %v15832_v49  ;;  %v9842_v49 = vld [vmem:[#allocation19 + $0x8a8] sm:$0xff] }
0x109c   :  { %9750 = vmatpush1.msra.mxu1 %v15822_v58  ;;  %13891 = vmatpush1.bf16.msra.mxu0 %v13890_v25  ;;  %v13832_v44 = vpack.c.bf16 %v9842_v49, %v9838_v15  ;;  %v9871_v25 = vld [vmem:[#allocation19 + $0x990] sm:$0xff]  ;;  %v9882_v15 = vld [vmem:[#allocation19 + $0x9e8] sm:$0xff] }
0x109d   :  { %9813 = vmatprep.mubr.f32.mxu1 %v14726_v47  ;;  %13893 = vmatprep.subr.bf16.mxu0 %v13892_v12  ;;  %v13912_v12 = vpack.c.bf16 %v9876_v18, %v9872_v27  ;;  %v13852_v56 = vpack.c.bf16 %v9882_v15, %v9878_v45  ;;  %v13860_v27 = vpack.c.bf16 %v9898_v17, %v9894_v11  ;;  %v9902_v18 = vld [vmem:[#allocation19 + $0xa88] sm:$0xff] }
0x109e   :  { %13825 = vmatprep.subr.bf16.mxu1 %v13824_v51  ;;  %v9884_v51 = vld [vmem:[#allocation19 + $0x9f8] sm:$0xff]  ;;  %v9922_v45 = vld [vmem:[#allocation19 + $0xb28] sm:$0xff] }
0x109f   :  { %10870 = vmatmul.mubr.msk.f32.vlgmr.msra.gmra.mrb[128].mxu1 %vm9052_vm8, %v9745_v7  ;;  %v13914_v7 = vpack.c.bf16 %v9875_v31, %v9871_v25  ;;  %v9915_v25 = vld [vmem:[#allocation19 + $0xaf0] sm:$0xff]  ;;  %v9938_v11 = vld [vmem:[#allocation19 + $0xba8] sm:$0xff] }
0x10a0   :  { %13895 = vmatpush1.bf16.msra.mxu0 %v13894_v16  ;;  %13827 = vmatpush1.bf16.msra.mxu1 %v13826_v40  ;;  %v9879_v16 = vld [vmem:[#allocation19 + $0x9d0] sm:$0xff]  ;;  %v13916_v40 = vpack.c.bf16 %v9884_v51, %v9880_v34  ;;  %v13864_v34 = vpack.c.bf16 %v9906_v19, %v9902_v18  ;;  %v9910_v51 = vld [vmem:[#allocation19 + $0xac8] sm:$0xff] }
0x10a1   :  { %13897 = vmatprep.subr.bf16.mxu0 %v13896_v0  ;;  %13829 = vmatprep.subr.bf16.mxu1 %v13828_v21  ;;  %v9888_v0 = vld [vmem:[#allocation19 + $0xa18] sm:$0xff]  ;;  %v9869_v21 = vld [vmem:[#allocation19 + $0x980] sm:$0xff]  ;;  %v13918_v49 = vpack.c.bf16 %v9883_v5, %v9879_v16  ;;  %v9923_v16 = vld [vmem:[#allocation19 + $0xb30] sm:$0xff] }
0x10a2   :  { %v13850_v52 = vpack.c.bf16 %v9873_v42, %v9869_v21  ;;  %v9913_v21 = vld [vmem:[#allocation19 + $0xae0] sm:$0xff]  ;;  %v9932_v42 = vld [vmem:[#allocation19 + $0xb78] sm:$0xff]  ;;  %v9946_v18 = vld [vmem:[#allocation19 + $0xbe8] sm:$0xff] }
0x10a4   :  { %13899 = vmatpush1.bf16.msra.mxu0 %v13898_v13  ;;  %13831 = vmatpush1.bf16.msra.mxu1 %v13830_v53  ;;  %v9887_v13 = vld [vmem:[#allocation19 + $0xa10] sm:$0xff]  ;;  %v13920_v53 = vpack.c.bf16 %v9892_v23, %v9888_v0  ;;  %v13868_v0 = vpack.c.bf16 %v9914_v55, %v9910_v51  ;;  %v9918_v23 = vld [vmem:[#allocation19 + $0xb08] sm:$0xff] }
0x10a5   :  { %13901 = vmatprep.subr.bf16.mxu0 %v13900_v62  ;;  %13833 = vmatprep.subr.bf16.mxu1 %v13832_v44  ;;  %v9896_v62 = vld [vmem:[#allocation19 + $0xa58] sm:$0xff]  ;;  %v9877_v44 = vld [vmem:[#allocation19 + $0x9c0] sm:$0xff]  ;;  %v13922_v36 = vpack.c.bf16 %v9891_v26, %v9887_v13  ;;  %v9931_v13 = vld [vmem:[#allocation19 + $0xb70] sm:$0xff] }
0x10a6   :  { %v13854_v61 = vpack.c.bf16 %v9881_v29, %v9877_v44  ;;  %v9921_v44 = vld [vmem:[#allocation19 + $0xb20] sm:$0xff]  ;;  %v9940_v29 = vld [vmem:[#allocation19 + $0xbb8] sm:$0xff]  ;;  %v10181_v51 = vld [vmem:[#allocation19 + $0xc48] sm:$0xff] }
0x10a7   :  { %v10185_v55 = vld [vmem:[#allocation19 + $0xc68] sm:$0xff] }
0x10a8   :  { %13903 = vmatpush1.bf16.msra.mxu0 %v13902_v14  ;;  %13835 = vmatpush1.bf16.msra.mxu1 %v13834_v28  ;;  %v9895_v14 = vld [vmem:[#allocation19 + $0xa50] sm:$0xff]  ;;  %v13924_v28 = vpack.c.bf16 %v9900_v4, %v9896_v62  ;;  %v13872_v62 = vpack.c.bf16 %v9922_v45, %v9918_v23  ;;  %v9926_v4 = vld [vmem:[#allocation19 + $0xb48] sm:$0xff] }
0x10a9   :  { %13905 = vmatprep.subr.bf16.mxu0 %v13904_v1  ;;  %13837 = vmatprep.subr.bf16.mxu1 %v13836_v39  ;;  %v9904_v1 = vld [vmem:[#allocation19 + $0xa98] sm:$0xff]  ;;  %v9885_v39 = vld [vmem:[#allocation19 + $0xa00] sm:$0xff]  ;;  %v13926_v2 = vpack.c.bf16 %v9899_v35, %v9895_v14  ;;  %v9939_v14 = vld [vmem:[#allocation19 + $0xbb0] sm:$0xff] }
0x10aa   :  { %v13858_v59 = vpack.c.bf16 %v9889_v24, %v9885_v39  ;;  %v9929_v39 = vld [vmem:[#allocation19 + $0xb60] sm:$0xff]  ;;  %v9948_v24 = vld [vmem:[#allocation19 + $0xbf8] sm:$0xff]  ;;  %v10189_v23 = vld [vmem:[#allocation19 + $0xc88] sm:$0xff] }
0x10ab   :  { %v10193_v45 = vld [vmem:[#allocation19 + $0xca8] sm:$0xff] }
0x10ac   :  { %13907 = vmatpush1.bf16.msra.mxu0 %v13906_v54  ;;  %13839 = vmatpush1.bf16.msra.mxu1 %v13838_v48  ;;  %v9903_v54 = vld [vmem:[#allocation19 + $0xa90] sm:$0xff]  ;;  %v13928_v48 = vpack.c.bf16 %v9908_v43, %v9904_v1  ;;  %v13876_v1 = vpack.c.bf16 %v9930_v10, %v9926_v4  ;;  %v9934_v43 = vld [vmem:[#allocation19 + $0xb88] sm:$0xff]  ;;  %v10192_v4 = vld [vmem:[#allocation19 + $0xca0] sm:$0xff] }
0x10ad   :  { %13909 = vmatprep.subr.bf16.mxu0 %v13908_v9  ;;  %13841 = vmatprep.subr.bf16.mxu1 %v13840_v22  ;;  %v9912_v9 = vld [vmem:[#allocation19 + $0xad8] sm:$0xff]  ;;  %v9893_v22 = vld [vmem:[#allocation19 + $0xa40] sm:$0xff]  ;;  %v13930_v3 = vpack.c.bf16 %v9907_v20, %v9903_v54  ;;  %v10197_v10 = vld [vmem:[#allocation19 + $0xcc8] sm:$0xff] }
0x10ae   :  { %v13862_v31 = vpack.c.bf16 %v9897_v63, %v9893_v22 }
0x10b0   :  { %13911 = vmatpush1.bf16.msra.mxu0 %v13910_v32  ;;  %13843 = vmatpush1.bf16.msra.mxu1 %v13842_v33  ;;  %v9911_v32 = vld [vmem:[#allocation19 + $0xad0] sm:$0xff]  ;;  %v13932_v33 = vpack.c.bf16 %v9916_v30, %v9912_v9  ;;  %v9933_v9 = vld [vmem:[#allocation19 + $0xb80] sm:$0xff]  ;;  %v9942_v30 = vld [vmem:[#allocation19 + $0xbc8] sm:$0xff] }
0x10b1   :  { %13913 = vmatprep.subr.bf16.mxu0 %v13912_v12  ;;  %13845 = vmatprep.subr.bf16.mxu1 %v13844_v6  ;;  %v9920_v12 = vld [vmem:[#allocation19 + $0xb18] sm:$0xff]  ;;  %v9901_v6 = vld [vmem:[#allocation19 + $0xa80] sm:$0xff]  ;;  %v13934_v57 = vpack.c.bf16 %v9915_v25, %v9911_v32  ;;  %v13884_v19 = vpack.c.bf16 %v9946_v18, %v9942_v30  ;;  %v10217_v30 = vld [vmem:[#allocation19 + $0xd68] sm:$0xff] }
0x10b2   :  { %v13866_v5 = vpack.c.bf16 %v9905_v60, %v9901_v6  ;;  %v9945_v32 = vld [vmem:[#allocation19 + $0xbe0] sm:$0xff]  ;;  %v10179_v6 = vld [vmem:[#allocation19 + $0xc38] sm:$0xff] }
0x10b3   :  { %v10172_v60 = vld [vmem:[#allocation19 + $0xc00] sm:$0xff] }
0x10b4   :  { %13915 = vmatpush1.bf16.msra.mxu0 %v13914_v7  ;;  %13847 = vmatpush1.bf16.msra.mxu1 %v13846_v38  ;;  %v9919_v7 = vld [vmem:[#allocation19 + $0xb10] sm:$0xff]  ;;  %v13936_v38 = vpack.c.bf16 %v9924_v37, %v9920_v12  ;;  %v10176_v37 = vld [vmem:[#allocation19 + $0xc20] sm:$0xff] }
0x10b5   :  { %13917 = vmatprep.subr.bf16.mxu0 %v13916_v40  ;;  %13849 = vmatprep.subr.bf16.mxu1 %v13848_v41  ;;  %v9928_v40 = vld [vmem:[#allocation19 + $0xb58] sm:$0xff]  ;;  %v9909_v41 = vld [vmem:[#allocation19 + $0xac0] sm:$0xff]  ;;  %v13938_v15 = vpack.c.bf16 %v9923_v16, %v9919_v7  ;;  %v13954_v16 = vpack.c.bf16 %v10176_v37, %v10172_v60  ;;  %v10221_v60 = vld [vmem:[#allocation19 + $0xd88] sm:$0xff] }
0x10b6   :  { %v13870_v26 = vpack.c.bf16 %v9913_v21, %v9909_v41  ;;  %v10187_v41 = vld [vmem:[#allocation19 + $0xc78] sm:$0xff]  ;;  %v10180_v21 = vld [vmem:[#allocation19 + $0xc40] sm:$0xff]  ;;  %v10225_v37 = vld [vmem:[#allocation19 + $0xda8] sm:$0xff] }
0x10b8   :  { %13919 = vmatpush1.bf16.msra.mxu0 %v13918_v49  ;;  %13851 = vmatpush1.bf16.msra.mxu1 %v13850_v52  ;;  %v9927_v49 = vld [vmem:[#allocation19 + $0xb50] sm:$0xff]  ;;  %v13940_v52 = vpack.c.bf16 %v9932_v42, %v9928_v40  ;;  %v10183_v40 = vld [vmem:[#allocation19 + $0xc58] sm:$0xff]  ;;  %v10184_v42 = vld [vmem:[#allocation19 + $0xc60] sm:$0xff] }
0x10b9   :  { %13921 = vmatprep.subr.bf16.mxu0 %v13920_v53  ;;  %13853 = vmatprep.subr.bf16.mxu1 %v13852_v56  ;;  %v9936_v53 = vld [vmem:[#allocation19 + $0xb98] sm:$0xff]  ;;  %v9917_v56 = vld [vmem:[#allocation19 + $0xb00] sm:$0xff]  ;;  %v13942_v50 = vpack.c.bf16 %v9931_v13, %v9927_v49  ;;  %v14020_v13 = vpack.c.bf16 %v10187_v41, %v10183_v40  ;;  %v10229_v41 = vld [vmem:[#allocation19 + $0xdc8] sm:$0xff] }
0x10ba   :  { %v13874_v35 = vpack.c.bf16 %v9921_v44, %v9917_v56  ;;  %v13960_v56 = vpack.c.bf16 %v10193_v45, %v10189_v23  ;;  %v10195_v44 = vld [vmem:[#allocation19 + $0xcb8] sm:$0xff]  ;;  %v10220_v40 = vld [vmem:[#allocation19 + $0xd80] sm:$0xff] }
0x10bc   :  { %13923 = vmatpush1.bf16.msra.mxu0 %v13922_v36  ;;  %13855 = vmatpush1.bf16.msra.mxu1 %v13854_v61  ;;  %v9935_v36 = vld [vmem:[#allocation19 + $0xb90] sm:$0xff]  ;;  %v13944_v61 = vpack.c.bf16 %v9940_v29, %v9936_v53  ;;  %v10188_v29 = vld [vmem:[#allocation19 + $0xc80] sm:$0xff] }
0x10bd   :  { %13925 = vmatprep.subr.bf16.mxu0 %v13924_v28  ;;  %13857 = vmatprep.subr.bf16.mxu1 %v13856_v8  ;;  %v9944_v28 = vld [vmem:[#allocation19 + $0xbd8] sm:$0xff]  ;;  %v9925_v8 = vld [vmem:[#allocation19 + $0xb40] sm:$0xff]  ;;  %v13946_v17 = vpack.c.bf16 %v9939_v14, %v9935_v36  ;;  %v10186_v53 = vld [vmem:[#allocation19 + $0xc70] sm:$0xff]  ;;  %v13962_v36 = vpack.c.bf16 %v10192_v4, %v10188_v29 }
0x10be   :  { %v13878_v54 = vpack.c.bf16 %v9929_v39, %v9925_v8  ;;  %v13948_v20 = vpack.c.bf16 %v9948_v24, %v9944_v28  ;;  %v10190_v14 = vld [vmem:[#allocation19 + $0xc90] sm:$0xff]  ;;  %v10196_v8 = vld [vmem:[#allocation19 + $0xcc0] sm:$0xff]  ;;  %v10205_v24 = vld [vmem:[#allocation19 + $0xd08] sm:$0xff] }
0x10bf   :  { %v10200_v39 = vld [vmem:[#allocation19 + $0xce0] sm:$0xff] }
0x10c0   :  { %13927 = vmatpush1.bf16.msra.mxu0 %v13926_v2  ;;  %13859 = vmatpush1.bf16.msra.mxu1 %v13858_v59  ;;  %v9943_v2 = vld [vmem:[#allocation19 + $0xbd0] sm:$0xff] }
0x10c1   :  { %13929 = vmatprep.subr.bf16.mxu0 %v13928_v48  ;;  %13861 = vmatprep.subr.bf16.mxu1 %v13860_v27  ;;  %v9947_v59 = vld [vmem:[#allocation19 + $0xbf0] sm:$0xff]  ;;  %v13880_v48 = vpack.c.bf16 %v9938_v11, %v9934_v43  ;;  %v9937_v27 = vld [vmem:[#allocation19 + $0xba0] sm:$0xff]  ;;  %v10209_v43 = vld [vmem:[#allocation19 + $0xd28] sm:$0xff] }
0x10c2   :  { %v13950_v22 = vpack.c.bf16 %v9947_v59, %v9943_v2  ;;  %v13882_v63 = vpack.c.bf16 %v9937_v27, %v9933_v9  ;;  %v13966_v2 = vpack.c.bf16 %v10200_v39, %v10196_v8  ;;  %v10207_v59 = vld [vmem:[#allocation19 + $0xd18] sm:$0xff]  ;;  %v10204_v27 = vld [vmem:[#allocation19 + $0xd00] sm:$0xff] }
0x10c3   :  { %v10211_v9 = vld [vmem:[#allocation19 + $0xd38] sm:$0xff] }
0x10c4   :  { %13931 = vmatpush1.bf16.msra.mxu0 %v13930_v3  ;;  %13863 = vmatpush1.bf16.msra.mxu1 %v13862_v31  ;;  %v9941_v3 = vld [vmem:[#allocation19 + $0xbc0] sm:$0xff]  ;;  %v10173_v31 = vld [vmem:[#allocation19 + $0xc08] sm:$0xff] }
0x10c5   :  { %13933 = vmatprep.subr.bf16.mxu0 %v13932_v33  ;;  %13865 = vmatprep.subr.bf16.mxu1 %v13864_v34  ;;  %v13886_v25 = vpack.c.bf16 %v9945_v32, %v9941_v3  ;;  %v10177_v33 = vld [vmem:[#allocation19 + $0xc28] sm:$0xff]  ;;  %v10175_v34 = vld [vmem:[#allocation19 + $0xc18] sm:$0xff]  ;;  %v10206_v32 = vld [vmem:[#allocation19 + $0xd10] sm:$0xff] }
0x10c6   :  { %v13952_v12 = vpack.c.bf16 %v10177_v33, %v10173_v31  ;;  %v14016_v7 = vpack.c.bf16 %v10179_v6, %v10175_v34  ;;  %v10215_v31 = vld [vmem:[#allocation19 + $0xd58] sm:$0xff]  ;;  %v10212_v34 = vld [vmem:[#allocation19 + $0xd40] sm:$0xff] }
0x10c7   :  { %v10216_v6 = vld [vmem:[#allocation19 + $0xd60] sm:$0xff] }
0x10c8   :  { %13935 = vmatpush1.bf16.msra.mxu0 %v13934_v57  ;;  %13867 = vmatpush1.bf16.msra.mxu1 %v13866_v5  ;;  %v10174_v5 = vld [vmem:[#allocation19 + $0xc10] sm:$0xff] }
0x10c9   :  { %13937 = vmatprep.subr.bf16.mxu0 %v13936_v38  ;;  %13869 = vmatprep.subr.bf16.mxu1 %v13868_v0  ;;  %v10178_v38 = vld [vmem:[#allocation19 + $0xc30] sm:$0xff]  ;;  %v13956_v0 = vpack.c.bf16 %v10185_v55, %v10181_v51 }
0x10ca   :  { %v14018_v49 = vpack.c.bf16 %v10178_v38, %v10174_v5  ;;  %v13976_v5 = vpack.c.bf16 %v10225_v37, %v10221_v60  ;;  %v10227_v38 = vld [vmem:[#allocation19 + $0xdb8] sm:$0xff]  ;;  %v10254_v37 = vld [vmem:[#allocation19 + $0xe90] sm:$0xff] }
0x10cc   :  { %13939 = vmatpush1.bf16.msra.mxu0 %v13938_v15  ;;  %13871 = vmatpush1.bf16.msra.mxu1 %v13870_v26  ;;  %v10096_v15 = vld [vmem:[#allocation17 + $0x6] sm:$0x3]  ;;  %v13958_v26 = vpack.c.bf16 %v10184_v42, %v10180_v21  ;;  %v10233_v21 = vld [vmem:[#allocation19 + $0xde8] sm:$0xff] }
0x10cd   :  { %13941 = vmatprep.subr.bf16.mxu0 %v13940_v52  ;;  %13873 = vmatprep.subr.bf16.mxu1 %v13872_v62  ;;  %v10182_v52 = vld [vmem:[#allocation19 + $0xc50] sm:$0xff]  ;;  %v10191_v62 = vld [vmem:[#allocation19 + $0xc98] sm:$0xff] }
0x10d0   :  { %13943 = vmatpush1.bf16.msra.mxu0 %v13942_v50  ;;  %13875 = vmatpush1.bf16.msra.mxu1 %v13874_v35  ;;  %v14024_v50 = vpack.c.bf16 %v10195_v44, %v10191_v62  ;;  %v10194_v35 = vld [vmem:[#allocation19 + $0xcb0] sm:$0xff]  ;;  %v10232_v62 = vld [vmem:[#allocation19 + $0xde0] sm:$0xff]  ;;  %v10241_v44 = vld [vmem:[#allocation19 + $0xe28] sm:$0xff] }
0x10d1   :  { %13945 = vmatprep.subr.bf16.mxu0 %v13944_v61  ;;  %13877 = vmatprep.subr.bf16.mxu1 %v13876_v1  ;;  %v10199_v61 = vld [vmem:[#allocation19 + $0xcd8] sm:$0xff]  ;;  %v14026_v11 = vpack.c.bf16 %v10194_v35, %v10190_v14  ;;  %v10236_v35 = vld [vmem:[#allocation19 + $0xe00] sm:$0xff] }
0x10d2   :  { %v10203_v1 = vld [vmem:[#allocation19 + $0xcf8] sm:$0xff] }
0x10d3   :  { %v10243_v14 = vld [vmem:[#allocation19 + $0xe38] sm:$0xff] }
0x10d4   :  { %13947 = vmatpush1.bf16.msra.mxu0 %v13946_v17  ;;  %13879 = vmatpush1.bf16.msra.mxu1 %v13878_v54  ;;  %v14028_v17 = vpack.c.bf16 %v10203_v1, %v10199_v61  ;;  %v10198_v54 = vld [vmem:[#allocation19 + $0xcd0] sm:$0xff]  ;;  %v10240_v61 = vld [vmem:[#allocation19 + $0xe20] sm:$0xff]  ;;  %v10249_v1 = vld [vmem:[#allocation19 + $0xe68] sm:$0xff] }
0x10d5   :  { %13949 = vmatprep.subr.bf16.mxu0 %v13948_v20  ;;  %13881 = vmatprep.subr.bf16.mxu1 %v13880_v48  ;;  %v10202_v20 = vld [vmem:[#allocation19 + $0xcf0] sm:$0xff]  ;;  %v13968_v48 = vpack.c.bf16 %v10209_v43, %v10205_v24  ;;  %v13986_v24 = vpack.c.bf16 %v10240_v61, %v10236_v35 }
0x10d6   :  { %v14030_v18 = vpack.c.bf16 %v10202_v20, %v10198_v54  ;;  %v10238_v43 = vld [vmem:[#allocation19 + $0xe10] sm:$0xff]  ;;  %v10251_v54 = vld [vmem:[#allocation19 + $0xe78] sm:$0xff]  ;;  %v10244_v20 = vld [vmem:[#allocation19 + $0xe40] sm:$0xff] }
0x10d8   :  { %13951 = vmatpush1.bf16.msra.mxu0 %v13950_v22  ;;  %13883 = vmatpush1.bf16.msra.mxu1 %v13882_v63  ;;  %v10208_v22 = vld [vmem:[#allocation19 + $0xd20] sm:$0xff]  ;;  %v10213_v63 = vld [vmem:[#allocation19 + $0xd48] sm:$0xff] }
0x10d9   :  { %10100 = vmatprep.subr.mxu0 %v15824_v46  ;;  %13885 = vmatprep.subr.bf16.mxu1 %v13884_v19  ;;  %v14032_v19 = vpack.c.bf16 %v10211_v9, %v10207_v59  ;;  %v13970_v3 = vpack.c.bf16 %v10208_v22, %v10204_v27  ;;  %v13972_v33 = vpack.c.bf16 %v10217_v30, %v10213_v63  ;;  %v10248_v59 = vld [vmem:[#allocation19 + $0xe60] sm:$0xff]  ;;  %v10257_v9 = vld [vmem:[#allocation19 + $0xea8] sm:$0xff]  ;;  %v10246_v30 = vld [vmem:[#allocation19 + $0xe50] sm:$0xff] }
0x10da   :  { %v13990_v63 = vpack.c.bf16 %v10248_v59, %v10244_v20 }
0x10dc   :  { %13887 = vmatpush1.bf16.msra.mxu1 %v13886_v25  ;;  %v10210_v25 = vld [vmem:[#allocation19 + $0xd30] sm:$0xff] }
0x10dd   :  { %13953 = vmatprep.subr.bf16.mxu1 %v13952_v12  ;;  %v10219_v12 = vld [vmem:[#allocation19 + $0xd78] sm:$0xff]  ;;  %v14034_v51 = vpack.c.bf16 %v10210_v25, %v10206_v32  ;;  %v10252_v25 = vld [vmem:[#allocation19 + $0xe80] sm:$0xff] }
0x10de   :  { %v14036_v55 = vpack.c.bf16 %v10219_v12, %v10215_v31  ;;  %v10259_v32 = vld [vmem:[#allocation19 + $0xeb8] sm:$0xff]  ;;  %v10256_v31 = vld [vmem:[#allocation19 + $0xea0] sm:$0xff]  ;;  %v10265_v12 = vld [vmem:[#allocation19 + $0xee8] sm:$0xff] }
0x10df   :  { %v13994_v60 = vpack.c.bf16 %v10256_v31, %v10252_v25  ;;  %v10294_v25 = vld [vmem:[#allocation19 + $0xfd0] sm:$0xff] }
0x1172   :  { %v9815_v57 = vpop.f32.mrb[128].mxu1 }
0x1173   :  { %v9817_v46 = vpop.f32.mrb[129].mxu1 }
0x1174   :  { %10084 = vmatprep.mubr.f32.mxu0 %v9817_v46  ;;  %10013 = vmatprep.mubr.f32.mxu1 %v9817_v46  ;;  %v10214_v46 = vld [vmem:[#allocation19 + $0xd50] sm:$0xff] }
0x1175   :  { %10085 = vmatmul.mubr.f32.vlgmr.msra.gmra.mrb[78].mxu0 %v9815_v57  ;;  %10014 = vmatmul.mubr.f32.vlgmr.msra.gmra.mrb[126].mxu1 %v9815_v57  ;;  %v13974_v57 = vpack.c.bf16 %v10216_v6, %v10212_v34 }
0x1176   :  { %10101 = vmatpush1.msra.mxu0 %v15822_v58  ;;  %10164 = vmatprep.mubr.f32.mxu0 %v14726_v47  ;;  %v10201_v58 = vld [vmem:[#allocation19 + $0xce8] sm:$0xff]  ;;  %v14022_v47 = vpack.c.bf16 %v10186_v53, %v10182_v52  ;;  %v10235_v52 = vld [vmem:[#allocation19 + $0xdf8] sm:$0xff]  ;;  %v10228_v53 = vld [vmem:[#allocation19 + $0xdc0] sm:$0xff] }
0x1177   :  { %14017 = vmatprep.subr.bf16.mxu0 %v14016_v7  ;;  %13955 = vmatpush1.bf16.msra.mxu1 %v13954_v16  ;;  %v13964_v28 = vpack.c.bf16 %v10201_v58, %v10197_v10  ;;  %v10218_v7 = vld [vmem:[#allocation19 + $0xd70] sm:$0xff]  ;;  %v10223_v16 = vld [vmem:[#allocation19 + $0xd98] sm:$0xff]  ;;  %v13982_v10 = vpack.c.bf16 %v10232_v62, %v10228_v53 }
0x1178   :  { %13957 = vmatprep.subr.bf16.mxu1 %v13956_v0  ;;  %v10224_v0 = vld [vmem:[#allocation19 + $0xda0] sm:$0xff]  ;;  %v14038_v42 = vpack.c.bf16 %v10218_v7, %v10214_v46  ;;  %v14040_v23 = vpack.c.bf16 %v10227_v38, %v10223_v16  ;;  %v10230_v58 = vld [vmem:[#allocation19 + $0xdd0] sm:$0xff]  ;;  %v10267_v46 = vld [vmem:[#allocation19 + $0xef8] sm:$0xff] }
0x1179   :  { %10871 = vmatmul.mubr.msk.f32.vlgmr.msra.gmra.mrb[80].mxu0 %vm9052_vm8, %v10096_v15  ;;  %v13978_v45 = vpack.c.bf16 %v10224_v0, %v10220_v40  ;;  %v10222_v15 = vld [vmem:[#allocation19 + $0xd90] sm:$0xff]  ;;  %v10260_v7 = vld [vmem:[#allocation19 + $0xec0] sm:$0xff]  ;;  %v10273_v38 = vld [vmem:[#allocation19 + $0xf28] sm:$0xff] }
0x117a   :  { %14019 = vmatpush1.bf16.msra.mxu0 %v14018_v49  ;;  %v10226_v49 = vld [vmem:[#allocation19 + $0xdb0] sm:$0xff]  ;;  %v10264_v16 = vld [vmem:[#allocation19 + $0xee0] sm:$0xff] }
0x117b   :  { %14021 = vmatprep.subr.bf16.mxu0 %v14020_v13  ;;  %13959 = vmatpush1.bf16.msra.mxu1 %v13958_v26  ;;  %v10231_v13 = vld [vmem:[#allocation19 + $0xdd8] sm:$0xff]  ;;  %v13980_v26 = vpack.c.bf16 %v10233_v21, %v10229_v41  ;;  %v14042_v29 = vpack.c.bf16 %v10226_v49, %v10222_v15  ;;  %v13998_v41 = vpack.c.bf16 %v10264_v16, %v10260_v7  ;;  %v10262_v21 = vld [vmem:[#allocation19 + $0xed0] sm:$0xff]  ;;  %v10268_v49 = vld [vmem:[#allocation19 + $0xf00] sm:$0xff] }
0x117c   :  { %13961 = vmatprep.subr.bf16.mxu1 %v13960_v56  ;;  %v10237_v56 = vld [vmem:[#allocation19 + $0xe08] sm:$0xff]  ;;  %v14044_v4 = vpack.c.bf16 %v10235_v52, %v10231_v13  ;;  %v10275_v15 = vld [vmem:[#allocation19 + $0xf38] sm:$0xff]  ;;  %v10272_v13 = vld [vmem:[#allocation19 + $0xf20] sm:$0xff] }
0x117d   :  { %v10281_v52 = vld [vmem:[#allocation19 + $0xf68] sm:$0xff]  ;;  %v10482_v7 = vld [vmem:[%s16059_s11 + $0x100] sm:$0xff] }
0x117e   :  { %14023 = vmatpush1.bf16.msra.mxu0 %v14022_v47  ;;  %v10234_v47 = vld [vmem:[#allocation19 + $0xdf0] sm:$0xff]  ;;  %v10483_v16 = vld [vmem:[%s16059_s11 + $0x108] sm:$0xff] }
0x117f   :  { %14025 = vmatprep.subr.bf16.mxu0 %v14024_v50  ;;  %13963 = vmatpush1.bf16.msra.mxu1 %v13962_v36  ;;  %v10239_v50 = vld [vmem:[#allocation19 + $0xe18] sm:$0xff]  ;;  %v13984_v36 = vpack.c.bf16 %v10241_v44, %v10237_v56  ;;  %v14046_v8 = vpack.c.bf16 %v10234_v47, %v10230_v58  ;;  %v14002_v56 = vpack.c.bf16 %v10272_v13, %v10268_v49  ;;  %v10270_v44 = vld [vmem:[#allocation19 + $0xf10] sm:$0xff]  ;;  %v10276_v47 = vld [vmem:[#allocation19 + $0xf40] sm:$0xff] }
0x1180   :  { %13965 = vmatprep.subr.bf16.mxu1 %v13964_v28  ;;  %v10245_v28 = vld [vmem:[#allocation19 + $0xe48] sm:$0xff]  ;;  %v14048_v39 = vpack.c.bf16 %v10243_v14, %v10239_v50  ;;  %v10283_v58 = vld [vmem:[#allocation19 + $0xf78] sm:$0xff]  ;;  %v10280_v50 = vld [vmem:[#allocation19 + $0xf60] sm:$0xff] }
0x1181   :  { %v10289_v14 = vld [vmem:[#allocation19 + $0xfa8] sm:$0xff] }
0x1182   :  { %14027 = vmatpush1.bf16.msra.mxu0 %v14026_v11  ;;  %v10242_v11 = vld [vmem:[#allocation19 + $0xe30] sm:$0xff] }
0x1183   :  { %14029 = vmatprep.subr.bf16.mxu0 %v14028_v17  ;;  %13967 = vmatpush1.bf16.msra.mxu1 %v13966_v2  ;;  %v10247_v17 = vld [vmem:[#allocation19 + $0xe58] sm:$0xff]  ;;  %v13988_v2 = vpack.c.bf16 %v10249_v1, %v10245_v28  ;;  %v14050_v27 = vpack.c.bf16 %v10242_v11, %v10238_v43  ;;  %v14006_v28 = vpack.c.bf16 %v10280_v50, %v10276_v47  ;;  %v10278_v1 = vld [vmem:[#allocation19 + $0xf50] sm:$0xff]  ;;  %v10284_v11 = vld [vmem:[#allocation19 + $0xf80] sm:$0xff] }
0x1184   :  { %13969 = vmatprep.subr.bf16.mxu1 %v13968_v48  ;;  %v10253_v48 = vld [vmem:[#allocation19 + $0xe88] sm:$0xff]  ;;  %v14052_v22 = vpack.c.bf16 %v10251_v54, %v10247_v17  ;;  %v10291_v43 = vld [vmem:[#allocation19 + $0xfb8] sm:$0xff]  ;;  %v10288_v17 = vld [vmem:[#allocation19 + $0xfa0] sm:$0xff] }
0x1185   :  { %v10297_v54 = vld [vmem:[#allocation19 + $0xfe8] sm:$0xff] }
0x1186   :  { %14031 = vmatpush1.bf16.msra.mxu0 %v14030_v18  ;;  %v10250_v18 = vld [vmem:[#allocation19 + $0xe70] sm:$0xff] }
0x1187   :  { %14033 = vmatprep.subr.bf16.mxu0 %v14032_v19  ;;  %13971 = vmatpush1.bf16.msra.mxu1 %v13970_v3  ;;  %v10255_v19 = vld [vmem:[#allocation19 + $0xe98] sm:$0xff]  ;;  %v13992_v3 = vpack.c.bf16 %v10257_v9, %v10253_v48  ;;  %v14054_v34 = vpack.c.bf16 %v10250_v18, %v10246_v30  ;;  %v14010_v48 = vpack.c.bf16 %v10288_v17, %v10284_v11  ;;  %v10286_v9 = vld [vmem:[#allocation19 + $0xf90] sm:$0xff] }
0x1188   :  { %13973 = vmatprep.subr.bf16.mxu1 %v13972_v33  ;;  %v10261_v33 = vld [vmem:[#allocation19 + $0xec8] sm:$0xff]  ;;  %v14056_v6 = vpack.c.bf16 %v10259_v32, %v10255_v19  ;;  %v10299_v30 = vld [vmem:[#allocation19 + $0xff8] sm:$0xff]  ;;  %v10296_v32 = vld [vmem:[#allocation19 + $0xfe0] sm:$0xff] }
0x118a   :  { %14035 = vmatpush1.bf16.msra.mxu0 %v14034_v51  ;;  %v10258_v51 = vld [vmem:[#allocation19 + $0xeb0] sm:$0xff] }
0x118b   :  { %14037 = vmatprep.subr.bf16.mxu0 %v14036_v55  ;;  %13975 = vmatpush1.bf16.msra.mxu1 %v13974_v57  ;;  %v10263_v55 = vld [vmem:[#allocation19 + $0xed8] sm:$0xff]  ;;  %v13996_v57 = vpack.c.bf16 %v10265_v12, %v10261_v33  ;;  %v14058_v40 = vpack.c.bf16 %v10258_v51, %v10254_v37  ;;  %v10298_v33 = vld [vmem:[#allocation19 + $0xff0] sm:$0xff]  ;;  %v10499_v51 = vld [vmem:[%s16059_s11 + $0x188] sm:$0xff] }
0x118c   :  { %13977 = vmatprep.subr.bf16.mxu1 %v13976_v5  ;;  %v10269_v5 = vld [vmem:[#allocation19 + $0xf08] sm:$0xff]  ;;  %v14060_v0 = vpack.c.bf16 %v10267_v46, %v10263_v55  ;;  %v14078_v12 = vpack.c.bf16 %v10298_v33, %v10294_v25  ;;  %v10476_v25 = vld [vmem:[%s16059_s11 + $0xd0] sm:$0xff] }
0x118d   :  { %v10451_v46 = vld [vmem:[%s16059_s11 + $0x8] sm:$0xff]  ;;  %v10508_v33 = vld [vmem:[%s16059_s11 + $0x1d0] sm:$0xff] }
0x118e   :  { %14039 = vmatpush1.bf16.msra.mxu0 %v14038_v42  ;;  %v10266_v42 = vld [vmem:[#allocation19 + $0xef0] sm:$0xff] }
0x118f   :  { %14041 = vmatprep.subr.bf16.mxu0 %v14040_v23  ;;  %13979 = vmatpush1.bf16.msra.mxu1 %v13978_v45  ;;  %v10271_v23 = vld [vmem:[#allocation19 + $0xf18] sm:$0xff]  ;;  %v14000_v45 = vpack.c.bf16 %v10273_v38, %v10269_v5  ;;  %v14062_v53 = vpack.c.bf16 %v10266_v42, %v10262_v21  ;;  %v10468_v5 = vld [vmem:[%s16059_s11 + $0x90] sm:$0xff]  ;;  %v14114_v42 = vpack.c.bf16 %v10483_v16, %v10482_v7  ;;  %v10478_v7 = vld [vmem:[%s16059_s11 + $0xe0] sm:$0xff] }
0x1190   :  { %13981 = vmatprep.subr.bf16.mxu1 %v13980_v26  ;;  %v10277_v26 = vld [vmem:[#allocation19 + $0xf48] sm:$0xff]  ;;  %v14064_v62 = vpack.c.bf16 %v10275_v15, %v10271_v23  ;;  %v10469_v38 = vld [vmem:[%s16059_s11 + $0x98] sm:$0xff]  ;;  %v10452_v23 = vld [vmem:[%s16059_s11 + $0x10] sm:$0xff] }
0x1191   :  { %v14084_v49 = vpack.c.bf16 %v10469_v38, %v10468_v5  ;;  %v10479_v16 = vld [vmem:[%s16059_s11 + $0xe8] sm:$0xff]  ;;  %v10510_v5 = vld [vmem:[%s16059_s11 + $0x1e0] sm:$0xff] }
0x1192   :  { %14043 = vmatpush1.bf16.msra.mxu0 %v14042_v29  ;;  %v10274_v29 = vld [vmem:[#allocation19 + $0xf30] sm:$0xff]  ;;  %v10511_v38 = vld [vmem:[%s16059_s11 + $0x1e8] sm:$0xff] }
0x1193   :  { %14045 = vmatprep.subr.bf16.mxu0 %v14044_v4  ;;  %13983 = vmatpush1.bf16.msra.mxu1 %v13982_v10  ;;  %v10279_v4 = vld [vmem:[#allocation19 + $0xf58] sm:$0xff]  ;;  %v14004_v10 = vpack.c.bf16 %v10281_v52, %v10277_v26  ;;  %v14066_v35 = vpack.c.bf16 %v10274_v29, %v10270_v44  ;;  %v10484_v26 = vld [vmem:[%s16059_s11 + $0x110] sm:$0xff]  ;;  %v10503_v44 = vld [vmem:[%s16059_s11 + $0x1a8] sm:$0xff] }
0x1194   :  { %13985 = vmatprep.subr.bf16.mxu1 %v13984_v36  ;;  %v10285_v36 = vld [vmem:[#allocation19 + $0xf88] sm:$0xff]  ;;  %v14068_v61 = vpack.c.bf16 %v10283_v58, %v10279_v4  ;;  %v10485_v52 = vld [vmem:[%s16059_s11 + $0x118] sm:$0xff] }
0x1195   :  { %v14118_v4 = vpack.c.bf16 %v10485_v52, %v10484_v26  ;;  %v10455_v58 = vld [vmem:[%s16059_s11 + $0x28] sm:$0xff]  ;;  %v10480_v26 = vld [vmem:[%s16059_s11 + $0xf0] sm:$0xff]  ;;  %v10481_v52 = vld [vmem:[%s16059_s11 + $0xf8] sm:$0xff] }
0x1196   :  { %14047 = vmatpush1.bf16.msra.mxu0 %v14046_v8  ;;  %v10282_v8 = vld [vmem:[#allocation19 + $0xf70] sm:$0xff] }
0x1197   :  { %14049 = vmatprep.subr.bf16.mxu0 %v14048_v39  ;;  %13987 = vmatpush1.bf16.msra.mxu1 %v13986_v24  ;;  %v10287_v39 = vld [vmem:[#allocation19 + $0xf98] sm:$0xff]  ;;  %v14008_v24 = vpack.c.bf16 %v10289_v14, %v10285_v36  ;;  %v14070_v20 = vpack.c.bf16 %v10282_v8, %v10278_v1  ;;  %v10486_v36 = vld [vmem:[%s16059_s11 + $0x120] sm:$0xff]  ;;  %v10487_v14 = vld [vmem:[%s16059_s11 + $0x128] sm:$0xff] }
0x1198   :  { %13989 = vmatprep.subr.bf16.mxu1 %v13988_v2  ;;  %v10293_v2 = vld [vmem:[#allocation19 + $0xfc8] sm:$0xff]  ;;  %v14072_v59 = vpack.c.bf16 %v10291_v43, %v10287_v39  ;;  %v10505_v1 = vld [vmem:[%s16059_s11 + $0x1b8] sm:$0xff]  ;;  %v14122_v39 = vpack.c.bf16 %v10487_v14, %v10486_v36 }
0x1199   :  { %v10457_v43 = vld [vmem:[%s16059_s11 + $0x38] sm:$0xff] }
0x119a   :  { %14051 = vmatpush1.bf16.msra.mxu0 %v14050_v27  ;;  %v10290_v27 = vld [vmem:[#allocation19 + $0xfb0] sm:$0xff] }
0x119b   :  { %14053 = vmatprep.subr.bf16.mxu0 %v14052_v22  ;;  %13991 = vmatpush1.bf16.msra.mxu1 %v13990_v63  ;;  %v14012_v22 = vpack.c.bf16 %v10297_v54, %v10293_v2  ;;  %v10295_v63 = vld [vmem:[#allocation19 + $0xfd8] sm:$0xff]  ;;  %v14074_v18 = vpack.c.bf16 %v10290_v27, %v10286_v9  ;;  %v10488_v2 = vld [vmem:[%s16059_s11 + $0x130] sm:$0xff]  ;;  %v10507_v9 = vld [vmem:[%s16059_s11 + $0x1c8] sm:$0xff] }
0x119c   :  { %13993 = vmatprep.subr.bf16.mxu1 %v13992_v3  ;;  %v14076_v19 = vpack.c.bf16 %v10299_v30, %v10295_v63  ;;  %v10292_v3 = vld [vmem:[#allocation19 + $0xfc0] sm:$0xff]  ;;  %v10489_v54 = vld [vmem:[%s16059_s11 + $0x138] sm:$0xff]  ;;  %v10459_v30 = vld [vmem:[%s16059_s11 + $0x48] sm:$0xff] }
0x119d   :  { %v14014_v31 = vpack.c.bf16 %v10296_v32, %v10292_v3  ;;  %v10458_v63 = vld [vmem:[%s16059_s11 + $0x40] sm:$0xff]  ;;  %v10491_v32 = vld [vmem:[%s16059_s11 + $0x148] sm:$0xff] }
0x119e   :  { %14055 = vmatpush1.bf16.msra.mxu0 %v14054_v34  ;;  %v10466_v34 = vld [vmem:[%s16059_s11 + $0x80] sm:$0xff] }
0x119f   :  { %14057 = vmatprep.subr.bf16.mxu0 %v14056_v6  ;;  %13995 = vmatpush1.bf16.msra.mxu1 %v13994_v60  ;;  %v10467_v6 = vld [vmem:[%s16059_s11 + $0x88] sm:$0xff]  ;;  %v10498_v60 = vld [vmem:[%s16059_s11 + $0x180] sm:$0xff] }
0x11a0   :  { %13997 = vmatprep.subr.bf16.mxu1 %v13996_v57  ;;  %v14080_v37 = vpack.c.bf16 %v10467_v6, %v10466_v34  ;;  %v14112_v55 = vpack.c.bf16 %v10499_v51, %v10498_v60  ;;  %v10450_v57 = vld [vmem:[%s16059_s11] sm:$0xff]  ;;  %v14098_v34 = vpack.c.bf16 %v10459_v30, %v10458_v63  ;;  %v10460_v60 = vld [vmem:[%s16059_s11 + $0x50] sm:$0xff] }
0x11a1   :  { %v14082_v21 = vpack.c.bf16 %v10451_v46, %v10450_v57  ;;  %v10490_v3 = vld [vmem:[%s16059_s11 + $0x140] sm:$0xff]  ;;  %v10492_v57 = vld [vmem:[%s16059_s11 + $0x150] sm:$0xff]  ;;  %v10493_v46 = vld [vmem:[%s16059_s11 + $0x158] sm:$0xff] }
0x11a2   :  { %14059 = vmatpush1.bf16.msra.mxu0 %v14058_v40  ;;  %v10500_v40 = vld [vmem:[%s16059_s11 + $0x190] sm:$0xff]  ;;  %v14130_v6 = vpack.c.bf16 %v10491_v32, %v10490_v3 }
0x11a3   :  { %14061 = vmatprep.subr.bf16.mxu0 %v14060_v0  ;;  %13999 = vmatpush1.bf16.msra.mxu1 %v13998_v41  ;;  %v10501_v0 = vld [vmem:[%s16059_s11 + $0x198] sm:$0xff] }
0x11a4   :  { %14001 = vmatprep.subr.bf16.mxu1 %v14000_v45  ;;  %v10453_v45 = vld [vmem:[%s16059_s11 + $0x18] sm:$0xff]  ;;  %v14116_v13 = vpack.c.bf16 %v10501_v0, %v10500_v40  ;;  %v14134_v0 = vpack.c.bf16 %v10493_v46, %v10492_v57 }
0x11a5   :  { %v14086_v29 = vpack.c.bf16 %v10453_v45, %v10452_v23  ;;  %v10463_v23 = vld [vmem:[%s16059_s11 + $0x68] sm:$0xff]  ;;  %v10494_v45 = vld [vmem:[%s16059_s11 + $0x160] sm:$0xff] }
0x11a6   :  { %14063 = vmatpush1.bf16.msra.mxu0 %v14062_v53  ;;  %v10470_v53 = vld [vmem:[%s16059_s11 + $0xa0] sm:$0xff] }
0x11a7   :  { %14065 = vmatprep.subr.bf16.mxu0 %v14064_v62  ;;  %14003 = vmatpush1.bf16.msra.mxu1 %v14002_v56  ;;  %v10471_v62 = vld [vmem:[%s16059_s11 + $0xa8] sm:$0xff]  ;;  %v10502_v56 = vld [vmem:[%s16059_s11 + $0x1a0] sm:$0xff] }
0x11a8   :  { %14005 = vmatprep.subr.bf16.mxu1 %v14004_v10  ;;  %v10454_v10 = vld [vmem:[%s16059_s11 + $0x20] sm:$0xff]  ;;  %v14088_v47 = vpack.c.bf16 %v10471_v62, %v10470_v53  ;;  %v14120_v50 = vpack.c.bf16 %v10503_v44, %v10502_v56  ;;  %v10512_v53 = vld [vmem:[%s16059_s11 + $0x1f0] sm:$0xff]  ;;  %v14108_v62 = vpack.c.bf16 %v10481_v52, %v10480_v26  ;;  %v10513_v56 = vld [vmem:[%s16059_s11 + $0x1f8] sm:$0xff] }
0x11a9   :  { %v14090_v8 = vpack.c.bf16 %v10455_v58, %v10454_v10  ;;  %v10464_v44 = vld [vmem:[%s16059_s11 + $0x70] sm:$0xff] }
0x11aa   :  { %14067 = vmatpush1.bf16.msra.mxu0 %v14066_v35  ;;  %v10472_v35 = vld [vmem:[%s16059_s11 + $0xb0] sm:$0xff] }
0x11ab   :  { %14069 = vmatprep.subr.bf16.mxu0 %v14068_v61  ;;  %14007 = vmatpush1.bf16.msra.mxu1 %v14006_v28  ;;  %v10473_v61 = vld [vmem:[%s16059_s11 + $0xb8] sm:$0xff]  ;;  %v10504_v28 = vld [vmem:[%s16059_s11 + $0x1b0] sm:$0xff] }
0x11ac   :  { %14009 = vmatprep.subr.bf16.mxu1 %v14008_v24  ;;  %v10456_v24 = vld [vmem:[%s16059_s11 + $0x30] sm:$0xff]  ;;  %v14092_v11 = vpack.c.bf16 %v10473_v61, %v10472_v35  ;;  %v14124_v17 = vpack.c.bf16 %v10505_v1, %v10504_v28 }
0x11ad   :  { %v14094_v27 = vpack.c.bf16 %v10457_v43, %v10456_v24  ;;  %v10496_v58 = vld [vmem:[%s16059_s11 + $0x170] sm:$0xff] }
0x11ae   :  { %14071 = vmatpush1.bf16.msra.mxu0 %v14070_v20  ;;  %v10474_v20 = vld [vmem:[%s16059_s11 + $0xc0] sm:$0xff] }
0x11af   :  { %14073 = vmatprep.subr.bf16.mxu0 %v14072_v59  ;;  %14011 = vmatpush1.bf16.msra.mxu1 %v14010_v48  ;;  %v10475_v59 = vld [vmem:[%s16059_s11 + $0xc8] sm:$0xff]  ;;  %v10506_v48 = vld [vmem:[%s16059_s11 + $0x1c0] sm:$0xff] }
0x11b0   :  { %14013 = vmatprep.subr.bf16.mxu1 %v14012_v22  ;;  %v14126_v22 = vpack.c.bf16 %v10489_v54, %v10488_v2 }
0x11b2   :  { %14075 = vmatpush1.bf16.msra.mxu0 %v14074_v18  ;;  %v14096_v18 = vpack.c.bf16 %v10475_v59, %v10474_v20 }
0x11b3   :  { %14077 = vmatprep.subr.bf16.mxu0 %v14076_v19  ;;  %14015 = vmatpush1.bf16.msra.mxu1 %v14014_v31  ;;  %v14128_v19 = vpack.c.bf16 %v10507_v9, %v10506_v48  ;;  %v10477_v31 = vld [vmem:[%s16059_s11 + $0xd8] sm:$0xff] }
0x11b4   :  { %14081 = vmatprep.subr.bf16.mxu1 %v14080_v37  ;;  %v10461_v37 = vld [vmem:[%s16059_s11 + $0x58] sm:$0xff]  ;;  %v14100_v51 = vpack.c.bf16 %v10477_v31, %v10476_v25 }
0x11b5   :  { %v14102_v40 = vpack.c.bf16 %v10461_v37, %v10460_v60 }
0x11b6   :  { %14079 = vmatpush1.bf16.msra.mxu0 %v14078_v12  ;;  %v10509_v12 = vld [vmem:[%s16059_s11 + $0x1d8] sm:$0xff] }
0x11b7   :  { %14113 = vmatprep.subr.bf16.mxu0 %v14112_v55  ;;  %v14132_v55 = vpack.c.bf16 %v10509_v12, %v10508_v33 }
0x124c   :  { %v10166_v41 = vpop.f32.mrb[80].mxu0 }
0x124d   :  { %v10168_v15 = vpop.f32.mrb[81].mxu0 }
0x124e   :  { %10364 = vmatprep.mubr.f32.mxu1 %v10168_v15  ;;  %10435 = vmatprep.mubr.f32.mxu0 %v10168_v15  ;;  %v10495_v15 = vld [vmem:[%s16059_s11 + $0x168] sm:$0xff] }
0x124f   :  { %10365 = vmatmul.mubr.f32.vlgmr.msra.gmra.mrb[126].mxu1 %v10166_v41  ;;  %10436 = vmatmul.mubr.f32.vlgmr.msra.gmra.mrb[78].mxu0 %v10166_v41  ;;  %v10462_v41 = vld [vmem:[%s16059_s11 + $0x60] sm:$0xff] }
0x1250   :  { %14083 = vmatpush3.bf16.msra.mxu1 %v14082_v21  ;;  %14115 = vmatpush3.bf16.msra.mxu0 %v14114_v42  ;;  %v14104_v21 = vpack.c.bf16 %v10479_v16, %v10478_v7  ;;  %v14136_v42 = vpack.c.bf16 %v10511_v38, %v10510_v5 }
0x1251   :  { %14085 = vmatprep.subr.bf16.mxu1 %v14084_v49  ;;  %14117 = vmatprep.subr.bf16.mxu0 %v14116_v13  ;;  %v14106_v49 = vpack.c.bf16 %v10463_v23, %v10462_v41  ;;  %v14138_v13 = vpack.c.bf16 %v10495_v15, %v10494_v45 }
0x1254   :  { %14087 = vmatpush3.bf16.msra.mxu1 %v14086_v29  ;;  %14119 = vmatpush3.bf16.msra.mxu0 %v14118_v4  ;;  %v10465_v29 = vld [vmem:[%s16059_s11 + $0x78] sm:$0xff]  ;;  %v14140_v4 = vpack.c.bf16 %v10513_v56, %v10512_v53 }
0x1255   :  { %14089 = vmatprep.subr.bf16.mxu1 %v14088_v47  ;;  %14121 = vmatprep.subr.bf16.mxu0 %v14120_v50  ;;  %v14110_v10 = vpack.c.bf16 %v10465_v29, %v10464_v44  ;;  %v10497_v47 = vld [vmem:[%s16059_s11 + $0x178] sm:$0xff]  ;;  %s14727_s11 = smov [#allocation20]  }
0x1256   :  { %v14142_v50 = vpack.c.bf16 %v10497_v47, %v10496_v58  ;;  %s10662_s18 = sshll.u32 %s14727_s11, 4  ;;  %s10663_s18 = int_to_ptr.vmem [resolvable:$true] %s10662_s18 }
0x1257   :  { %s14667_s6 = scalar_lea.vmem %s10663_s18, 32  ;;  %p14672_p5 = scmp.lt.s32.totalorder %s10663_s18, %s10663_s18 }
0x1258   :  { %14091 = vmatpush3.bf16.msra.mxu1 %v14090_v8  ;;  %14123 = vmatpush3.bf16.msra.mxu0 %v14122_v39  ;;  %p14668_p4 = scmp.ne.s32.totalorder %s10663_s18, %s14667_s6  ;;  %p14673_p6 = scmp.lt.s32.totalorder %s14667_s6, %s14667_s6 }
0x1259   :  { %14093 = vmatprep.subr.bf16.mxu1 %v14092_v11  ;;  %14125 = vmatprep.subr.bf16.mxu0 %v14124_v17 }
0x125a   :  { %p14674_p7 = por %p14673_p6, %p14672_p5 }
0x125c   :  { %14095 = vmatpush3.bf16.msra.mxu1 %v14094_v27  ;;  %14127 = vmatpush3.bf16.msra.mxu0 %v14126_v22  ;;  %p14675_p8 = pnand %p14674_p7, %p14668_p4 }
0x125d   :  { %14097 = vmatprep.subr.bf16.mxu1 %v14096_v18  ;;  %14129 = vmatprep.subr.bf16.mxu0 %v14128_v19 }
0x1260   :  { %14099 = vmatpush3.bf16.msra.mxu1 %v14098_v34  ;;  %14131 = vmatpush3.bf16.msra.mxu0 %v14130_v6 }
0x1261   :  { %14101 = vmatprep.subr.bf16.mxu1 %v14100_v51  ;;  %14133 = vmatprep.subr.bf16.mxu0 %v14132_v55 }
0x1264   :  { %14103 = vmatpush3.bf16.msra.mxu1 %v14102_v40  ;;  %14135 = vmatpush3.bf16.msra.mxu0 %v14134_v0 }
0x1265   :  { %14105 = vmatprep.subr.bf16.mxu1 %v14104_v21  ;;  %14137 = vmatprep.subr.bf16.mxu0 %v14136_v42 }
0x1268   :  { %14107 = vmatpush3.bf16.msra.mxu1 %v14106_v49  ;;  %14139 = vmatpush3.bf16.msra.mxu0 %v14138_v13 }
0x1269   :  { %14109 = vmatprep.subr.bf16.mxu1 %v14108_v62  ;;  %14141 = vmatprep.subr.bf16.mxu0 %v14140_v4 }
0x126c   :  { %14111 = vmatpush3.bf16.msra.mxu1 %v14110_v10  ;;  %14143 = vmatpush3.bf16.msra.mxu0 %v14142_v50 }
0x1322   :  { %v10366_v36 = vpop.f32.mrb[126].mxu1  ;;  %v10437_v14 = vpop.f32.mrb[78].mxu0 }
0x1323   :  { %v10368_v35 = vpop.f32.mrb[127].mxu1  ;;  %v10439_v61 = vpop.f32.mrb[79].mxu0  ;;  %v10446_v8 = vmax.f32 %v10366_v36, 0.0  ;;  %v10448_v39 = vmax.f32 %v10437_v14, 0.0 }
0x1324   :  { %v10447_v28 = vmax.f32 %v10368_v35, 0.0  ;;  %v10449_v1 = vmax.f32 %v10439_v61, 0.0 }
0x1326   :  { %10578 = vmatprep.mubr.f32.mxu1 %v10447_v28  ;;  %10648 = vmatprep.mubr.f32.mxu0 %v10449_v1 }
0x1327   :  { %10579 = vmatmul.mubr.f32.vlgmr.msra.gmra.mrb[130].mxu1 %v10446_v8  ;;  %10649 = vmatmul.mubr.f32.vlgmr.msra.gmra.mrb[82].mxu0 %v10448_v39 }
0x13fa   :  { %v11240_v24 = vpop.f32.mrb[130].mxu1  ;;  %v11275_v43 = vpop.f32.mrb[82].mxu0 }
0x13fb   :  { %v11241_v11 = vpop.f32.mrb[131].mxu1  ;;  %v11276_v17 = vpop.f32.mrb[83].mxu0 }
0x13fc   :  { %v11242_v2 = vadd.f32 %v11241_v11, %v11240_v24  ;;  %v11277_v54 = vadd.f32 %v11276_v17, %v11275_v43 }
0x13fe   :  { %v10651_v20 = vadd.f32 %v11277_v54, %v11242_v2 }
0x1400   :  { %10655 = vst.msk [vmem:[#allocation20] sm:$0x3] %vm10654_vm9, %v10651_v20 }
0x1401   :  { %14678 = shalt.err (!%p14675_p8)
}
0x1402   :  { %s14679_s28 = scalar_lea.hbm %s16060_s12, 32 }
0x1403   :  { %p14680_p9 = scmp.ne.s32.totalorder %s16060_s12, %s14679_s28  ;;  %p14683_p10 = scmp.lt.u32.totalorder %s14679_s28, %s16060_s12 }
0x1405   :  { %p14685_p11 = pnand %p14683_p10, %p14680_p9 }
0x1407   :  { %14688 = shalt.err (!%p14685_p11)
}
0x1408   :  { %10665 = dma.vmem_to_hbm [thread:$0]  %s10663_s18, 32, %s16060_s12, [#allocation4]  }
0x1409   :  { %14701 = dma.done.wait [#allocation4], 32  }
0x140a   :  { %14702 = vsyncadd [#allocation4], 4294967264 }
0x140b   :  { %10669 = vsyncpa [#allocation3], 1 }
0x140c   :  { %10670 = vsyncpa [#allocation6], 1 }
0x140d   :  { %10671 = vsyncpa [#allocation9], 1 }
0x140e   :  { %10672 = vsyncpa [#allocation12], 1 }
0x140f   :  { %10673 = vsyncpa [#allocation15], 1 }
0x1410   :  { %10674 = vsyncpa [#allocation18], 1 }
0x1411   :  { %10675 = vsyncpa [#allocation4], 1 }

</bundles_post_ra>
